<compile_context>
chip_gen: v5e
topology: v5e:2x2
jax: 0.10.0
libtpu: 0.0.40
codegen_flags: <defaults>
</compile_context>

<pallas_src>
import functools

import jax
import jax.numpy as jnp
from jax import lax
from jax.experimental import pallas as pl
from jax.experimental.pallas import tpu as pltpu


# ----------------------------- static LeNet dims --------------------------- #
H_IN, W_IN, C_IN = 32, 32, 3                 # input image (3 x 32 x 32)
K = 5                                        # conv kernel size
C1, C2 = 6, 16                               # conv output channels
H1, W1 = H_IN - K + 1, W_IN - K + 1          # 28, 28   conv1 output
HP1, WP1 = H1 // 2, W1 // 2                  # 14, 14   pool1 output
H2, W2 = HP1 - K + 1, WP1 - K + 1            # 10, 10   conv2 output
HP2, WP2 = H2 // 2, W2 // 2                  # 5, 5     pool2 output
FC1, FC2 = 120, 84
NPAD = 128                                   # lane-dense width for padded dims


# ------------------------------- fused kernel ------------------------------ #
def _lenet_fused_kernel(x_ref,
                        t1_ref, b1_ref, s1e_ref, s1o_ref,
                        t2_ref, b2_ref, s2e_ref, s2o_ref,
                        wf1_ref, bf1_ref, wf2_ref, bf2_ref, wf3_ref, bf3_ref,
                        o_ref, *, bt):
    """One tile of `bt` samples per grid step; H-major (H, bt, W*C) layout."""
    f32, bf16 = jnp.float32, jnp.bfloat16

    # ---- conv1 (valid 5x5, 3->6): K row-shifted Toeplitz matmuls, M = 28*bt.
    xb = x_ref[...].astype(bf16)                                  # (32, bt, 96)
    acc1 = jnp.zeros((H1 * bt, W1 * C1), f32)
    for kh in range(K):
        lhs = xb[kh:kh + H1].reshape(H1 * bt, W_IN * C_IN)        # aligned merge
        acc1 = acc1 + jnp.dot(lhs, t1_ref[kh], preferred_element_type=f32)
    y1 = jnp.maximum(acc1 + b1_ref[...], 0.0)                     # (28*bt, 168)

    # ---- maxpool1 2x2: aligned row-pair max (VPU) + lane compaction (MXU).
    y1r = y1.reshape(HP1, 2 * bt, W1 * C1)
    y1h = jnp.maximum(y1r[:, :bt, :], y1r[:, bt:, :]).reshape(HP1 * bt, W1 * C1)
    y1hb = y1h.astype(bf16)
    act1 = jnp.maximum(
        jnp.dot(y1hb, s1e_ref[...], preferred_element_type=f32),
        jnp.dot(y1hb, s1o_ref[...], preferred_element_type=f32))  # (14*bt, 128)

    # ---- conv2 (valid 5x5, 6->16): K Toeplitz matmuls, K-dim exactly 128.
    a1b = act1.astype(bf16).reshape(HP1, bt, NPAD)
    acc2 = jnp.zeros((H2 * bt, W2 * C2), f32)
    for kh in range(K):
        lhs = a1b[kh:kh + H2].reshape(H2 * bt, NPAD)
        acc2 = acc2 + jnp.dot(lhs, t2_ref[kh], preferred_element_type=f32)
    y2 = jnp.maximum(acc2 + b2_ref[...], 0.0)                     # (10*bt, 160)

    # ---- maxpool2 2x2.
    y2r = y2.reshape(HP2, 2 * bt, W2 * C2)
    y2h = jnp.maximum(y2r[:, :bt, :], y2r[:, bt:, :]).reshape(HP2 * bt, W2 * C2)
    y2hb = y2h.astype(bf16)
    act2 = jnp.maximum(
        jnp.dot(y2hb, s2e_ref[...], preferred_element_type=f32),
        jnp.dot(y2hb, s2o_ref[...], preferred_element_type=f32))  # (5*bt, 128)

    # ---- fc1 (400 -> 120, padded K=128/N=128): contract the 5 pooled rows.
    a2b = act2.astype(bf16).reshape(HP2, bt, NPAD)
    f = jnp.zeros((bt, NPAD), f32)
    for h in range(HP2):
        f = f + jnp.dot(a2b[h], wf1_ref[h], preferred_element_type=f32)
    f = jnp.maximum(f + bf1_ref[...], 0.0)

    # ---- fc2 / fc3 (128-lane padded); the reference module ReLUs fc3 too.
    f = jnp.maximum(jnp.dot(f.astype(bf16), wf2_ref[...],
                            preferred_element_type=f32) + bf2_ref[...], 0.0)
    f = jnp.maximum(jnp.dot(f.astype(bf16), wf3_ref[...],
                            preferred_element_type=f32) + bf3_ref[...], 0.0)

    o_ref[...] = f                                # lane-dense (bt, 128) store


# --------------------------- wrapper / pallas_call -------------------------- #
def _const_spec(arr):
    """Whole-array block, constant block index: stays resident across steps."""
    zeros = (0,) * arr.ndim
    return pl.BlockSpec(arr.shape, lambda b: zeros)


def lenet_pallas_forward(operands, classes, x_nchw, *, bt=16):
    """x_nchw: (B, 3, 32, 32) float32 (PyTorch convention). bt: samples/step."""
    assert bt % 8 == 0, "batch tile must be sublane-aligned"
    B = x_nchw.shape[0]
    b_pad = ((B + bt - 1) // bt) * bt

    # One-time input relayout: NCHW -> H-major (H, B, W*C); pad batch to b_pad.
    x = jnp.transpose(x_nchw, (2, 0, 3, 1)).reshape(H_IN, B, W_IN * C_IN)
    if b_pad != B:
        x = jnp.pad(x, ((0, 0), (0, b_pad - B), (0, 0)))

    kernel = functools.partial(_lenet_fused_kernel, bt=bt)
    out = pl.pallas_call(
        kernel,
        out_shape=jax.ShapeDtypeStruct((b_pad, NPAD), jnp.float32),
        grid=(b_pad // bt,),
        in_specs=[pl.BlockSpec((H_IN, bt, W_IN * C_IN), lambda b: (0, b, 0))]
                 + [_const_spec(a) for a in operands],
        out_specs=pl.BlockSpec((bt, NPAD), lambda b: (b, 0)),
        compiler_params=pltpu.CompilerParams(
            dimension_semantics=("parallel",)),     # shards steps on v7x's 2 TCs
    )(x, *operands)
    return out[:B, :classes]


# --------------------- one-time parameter preprocessing --------------------- #
def _toeplitz_conv_weights(w_oihw, w_in):
    """T[kh, wi*Ci + c, wo*O + o] = w[o, c, kh, wi - wo] for valid taps, else 0."""
    O, Ci, KH, KW = w_oihw.shape
    Wo = w_in - KW + 1
    wi = jnp.arange(w_in)[:, None]
    wo = jnp.arange(Wo)[None, :]
    kw = wi - wo                                               # (w_in, Wo)
    valid = ((kw >= 0) & (kw < KW)).astype(w_oihw.dtype)
    kw_c = jnp.clip(kw, 0, KW - 1)
    w_perm = jnp.transpose(w_oihw, (2, 3, 1, 0))               # (KH, KW, Ci, O)
    gathered = w_perm[:, kw_c, :, :]                           # (KH, w_in, Wo, Ci, O)
    gathered = gathered * valid[None, :, :, None, None]
    return jnp.transpose(gathered, (0, 1, 3, 2, 4)).reshape(KH, w_in * Ci, Wo * O)


def _pool_lane_selectors(w_out, c, n_pad, dtype):
    """Exact 0/1 lane-compaction matrices for 2x2 pooling, padded to n_pad cols."""
    wp = w_out // 2
    j = jnp.arange(w_out * c)
    k_ = jnp.arange(wp * c)
    j_w, j_c = (j // c)[:, None], (j % c)[:, None]
    k_w, k_c = (k_ // c)[None, :], (k_ % c)[None, :]
    s_even = ((j_c == k_c) & (j_w == 2 * k_w)).astype(dtype)        # (w_out*c, wp*c)
    s_odd = ((j_c == k_c) & (j_w == 2 * k_w + 1)).astype(dtype)
    pad = ((0, 0), (0, n_pad - wp * c))
    return jnp.pad(s_even, pad), jnp.pad(s_odd, pad)


def prepare_lenet_operands(params):
    """Transform PyTorch-layout params into kernel operands (done once)."""
    f32, bf16 = jnp.float32, jnp.bfloat16
    classes = params["fc3_w"].shape[0]
    assert classes <= NPAD

    # conv1: block-Toeplitz (5, 96, 168), bf16; bias tiled to (w*C1 + o) lanes.
    t1 = _toeplitz_conv_weights(params["conv1_w"].astype(f32), W_IN).astype(bf16)
    b1 = jnp.tile(params["conv1_b"].astype(f32), W1).reshape(1, W1 * C1)
    s1e, s1o = _pool_lane_selectors(W1, C1, NPAD, bf16)                 # (168, 128)

    # conv2: Toeplitz rows padded 84 -> 128 so the MXU contraction is 128 deep.
    t2 = _toeplitz_conv_weights(params["conv2_w"].astype(f32), WP1)     # (5, 84, 160)
    t2 = jnp.pad(t2, ((0, 0), (0, NPAD - WP1 * C1), (0, 0))).astype(bf16)
    b2 = jnp.tile(params["conv2_b"].astype(f32), W2).reshape(1, W2 * C2)
    s2e, s2o = _pool_lane_selectors(W2, C2, NPAD, bf16)                 # (160, 128)

    # fc1: columns follow PyTorch's (C, H, W) flatten; permute rows to the
    # in-kernel (h, w*C2 + c) layout; pad K 80->128 and N 120->128.
    wf1 = params["fc1_w"].astype(f32).reshape(FC1, C2, HP2, WP2)
    wf1 = jnp.transpose(wf1, (2, 3, 1, 0)).reshape(HP2, WP2 * C2, FC1)
    wf1 = jnp.pad(wf1, ((0, 0), (0, NPAD - WP2 * C2), (0, NPAD - FC1))).astype(bf16)
    bf1 = jnp.pad(params["fc1_b"].astype(f32), (0, NPAD - FC1)).reshape(1, NPAD)

    wf2 = jnp.pad(params["fc2_w"].astype(f32).T,
                  ((0, NPAD - FC1), (0, NPAD - FC2))).astype(bf16)      # (128, 128)
    bf2 = jnp.pad(params["fc2_b"].astype(f32), (0, NPAD - FC2)).reshape(1, NPAD)

    # NOTE: zero padding beyond `classes` keeps the padded output lanes at 0.
    wf3 = jnp.pad(params["fc3_w"].astype(f32).T,
                  ((0, NPAD - FC2), (0, NPAD - classes))).astype(bf16)  # (128, 128)
    bf3 = jnp.pad(params["fc3_b"].astype(f32),
                  (0, NPAD - classes)).reshape(1, NPAD)

    return (t1, b1, s1e, s1o, t2, b2, s2e, s2o,
            wf1, bf1, wf2, bf2, wf3, bf3)


# ------------------------------- params / ref ------------------------------- #
def init_lenet_params(classes, key):
    ks = jax.random.split(key, 10)

    def u(k, shape, fan_in):
        bound = 1.0 / jnp.sqrt(jnp.float32(fan_in))
        return jax.random.uniform(k, shape, jnp.float32, -bound, bound)

    return {
        "conv1_w": u(ks[0], (C1, C_IN, K, K), C_IN * K * K),
        "conv1_b": u(ks[1], (C1,), C_IN * K * K),
        "conv2_w": u(ks[2], (C2, C1, K, K), C1 * K * K),
        "conv2_b": u(ks[3], (C2,), C1 * K * K),
        "fc1_w": u(ks[4], (FC1, C2 * HP2 * WP2), C2 * HP2 * WP2),
        "fc1_b": u(ks[5], (FC1,), C2 * HP2 * WP2),
        "fc2_w": u(ks[6], (FC2, FC1), FC1),
        "fc2_b": u(ks[7], (FC2,), FC1),
        "fc3_w": u(ks[8], (classes, FC2), FC2),
        "fc3_b": u(ks[9], (classes,), FC2),
    }


def lenet_reference(params, x):
    """Pure-JAX f32 reference matching the PyTorch module (sanity check)."""
    dn = ("NCHW", "OIHW", "NCHW")
    y = lax.conv_general_dilated(x, params["conv1_w"], (1, 1), "VALID",
                                 dimension_numbers=dn)
    y = jax.nn.relu(y + params["conv1_b"][None, :, None, None])
    y = lax.reduce_window(y, -jnp.inf, lax.max, (1, 1, 2, 2), (1, 1, 2, 2), "VALID")
    y = lax.conv_general_dilated(y, params["conv2_w"], (1, 1), "VALID",
                                 dimension_numbers=dn)
    y = jax.nn.relu(y + params["conv2_b"][None, :, None, None])
    y = lax.reduce_window(y, -jnp.inf, lax.max, (1, 1, 2, 2), (1, 1, 2, 2), "VALID")
    y = y.reshape(y.shape[0], -1)
    y = jax.nn.relu(y @ params["fc1_w"].T + params["fc1_b"])
    y = jax.nn.relu(y @ params["fc2_w"].T + params["fc2_b"])
    return jax.nn.relu(y @ params["fc3_w"].T + params["fc3_b"])


# ----------------------------------- main ----------------------------------- #
if __name__ == "__main__":
    classes = 10
    batch = 18                      # > bt, not a multiple of bt: exercises
    bt = 16                         # multi-tile grid (v7x 2-TC sharding) + padding
    key = jax.random.PRNGKey(0)
    pkey, xkey = jax.random.split(key)
    params = init_lenet_params(classes, pkey)
    x = jax.random.normal(xkey, (batch, C_IN, H_IN, W_IN), dtype=jnp.float32)

    operands = prepare_lenet_operands(params)          # one-time weight prep
    fwd = jax.jit(functools.partial(lenet_pallas_forward, operands, classes, bt=bt))
    out = jax.block_until_ready(fwd(x))

    ref = jax.block_until_ready(jax.jit(functools.partial(lenet_reference, params))(x))

    assert out.shape == (batch, classes), out.shape
    assert bool(jnp.all(out >= 0.0))                    # final ReLU (per the spec)
    # bf16 MXU inputs with f32 accumulation vs an all-f32 reference.
    max_err = float(jnp.max(jnp.abs(out - ref)))
    assert bool(jnp.allclose(out, ref, rtol=5e-2, atol=2e-2)), (max_err, out, ref)
    print("KERNEL_OK")
</pallas_src>

<mosaic_0001>
module attributes {stable_mosaic.version = 11 : i64} {
  func.func @_lenet_fused_kernel(%arg0: i32, %arg1: memref<32x16x96xf32, #tpu.memory_space<vmem>>, %arg2: memref<5x96x168xbf16, #tpu.memory_space<vmem>>, %arg3: memref<1x168xf32, #tpu.memory_space<vmem>>, %arg4: memref<168x128xbf16, #tpu.memory_space<vmem>>, %arg5: memref<168x128xbf16, #tpu.memory_space<vmem>>, %arg6: memref<5x128x160xbf16, #tpu.memory_space<vmem>>, %arg7: memref<1x160xf32, #tpu.memory_space<vmem>>, %arg8: memref<160x128xbf16, #tpu.memory_space<vmem>>, %arg9: memref<160x128xbf16, #tpu.memory_space<vmem>>, %arg10: memref<5x128x128xbf16, #tpu.memory_space<vmem>>, %arg11: memref<1x128xf32, #tpu.memory_space<vmem>>, %arg12: memref<128x128xbf16, #tpu.memory_space<vmem>>, %arg13: memref<1x128xf32, #tpu.memory_space<vmem>>, %arg14: memref<128x128xbf16, #tpu.memory_space<vmem>>, %arg15: memref<1x128xf32, #tpu.memory_space<vmem>>, %arg16: memref<16x128xf32, #tpu.memory_space<vmem>>) attributes {dimension_semantics = [#tpu.dimension_semantics<parallel>], iteration_bounds = array<i64: 2>, scalar_prefetch = 0 : i64, scratch_operands = 0 : i64, tpu.core_type = #tpu.core_type<tc>, window_params = [{transform_indices = @transform_0, window_bounds = array<i64: 32, 16, 96>}, {pipeline_mode = #tpu.pipeline_mode<synchronous>, transform_indices = @transform_1, window_bounds = array<i64: 5, 96, 168>}, {pipeline_mode = #tpu.pipeline_mode<synchronous>, transform_indices = @transform_2, window_bounds = array<i64: 1, 168>}, {pipeline_mode = #tpu.pipeline_mode<synchronous>, transform_indices = @transform_3, window_bounds = array<i64: 168, 128>}, {pipeline_mode = #tpu.pipeline_mode<synchronous>, transform_indices = @transform_4, window_bounds = array<i64: 168, 128>}, {pipeline_mode = #tpu.pipeline_mode<synchronous>, transform_indices = @transform_5, window_bounds = array<i64: 5, 128, 160>}, {pipeline_mode = #tpu.pipeline_mode<synchronous>, transform_indices = @transform_6, window_bounds = array<i64: 1, 160>}, {pipeline_mode = #tpu.pipeline_mode<synchronous>, transform_indices = @transform_7, window_bounds = array<i64: 160, 128>}, {pipeline_mode = #tpu.pipeline_mode<synchronous>, transform_indices = @transform_8, window_bounds = array<i64: 160, 128>}, {pipeline_mode = #tpu.pipeline_mode<synchronous>, transform_indices = @transform_9, window_bounds = array<i64: 5, 128, 128>}, {pipeline_mode = #tpu.pipeline_mode<synchronous>, transform_indices = @transform_10, window_bounds = array<i64: 1, 128>}, {pipeline_mode = #tpu.pipeline_mode<synchronous>, transform_indices = @transform_11, window_bounds = array<i64: 128, 128>}, {pipeline_mode = #tpu.pipeline_mode<synchronous>, transform_indices = @transform_12, window_bounds = array<i64: 1, 128>}, {pipeline_mode = #tpu.pipeline_mode<synchronous>, transform_indices = @transform_13, window_bounds = array<i64: 128, 128>}, {pipeline_mode = #tpu.pipeline_mode<synchronous>, transform_indices = @transform_14, window_bounds = array<i64: 1, 128>}, {transform_indices = @transform_15, window_bounds = array<i64: 16, 128>}]} {
    %c0 = arith.constant 0 : index
    %c0_0 = arith.constant 0 : index
    %c0_1 = arith.constant 0 : index
    %0 = vector.load %arg1[%c0, %c0_0, %c0_1] : memref<32x16x96xf32, #tpu.memory_space<vmem>>, vector<32x16x96xf32>
    %1 = arith.truncf %0 : vector<32x16x96xf32> to vector<32x16x96xbf16>
    %cst = arith.constant 0.000000e+00 : f32
    %2 = vector.broadcast %cst : f32 to vector<448x168xf32>
    %3 = vector.extract_strided_slice %1 {offsets = [0, 0, 0], sizes = [28, 16, 96], strides = [1, 1, 1]} : vector<32x16x96xbf16> to vector<28x16x96xbf16>
    %4 = vector.shape_cast %3 : vector<28x16x96xbf16> to vector<448x96xbf16>
    %c0_2 = arith.constant 0 : index
    %c0_3 = arith.constant 0 : index
    %c0_4 = arith.constant 0 : index
    %5 = vector.load %arg2[%c0_2, %c0_3, %c0_4] : memref<5x96x168xbf16, #tpu.memory_space<vmem>>, vector<1x96x168xbf16>
    %6 = vector.shape_cast %5 : vector<1x96x168xbf16> to vector<96x168xbf16>
    %cst_5 = arith.constant dense<0.000000e+00> : vector<448x168xf32>
    %7 = tpu.matmul %4, %6, %cst_5 {dimension_numbers = #tpu.dot_dimension_numbers<[1], [0], [0], [1], [0, 0, 1, 1], [], []>} : vector<448x96xbf16>, vector<96x168xbf16>, vector<448x168xf32> -> vector<448x168xf32>
    %8 = arith.addf %2, %7 : vector<448x168xf32>
    %9 = vector.extract_strided_slice %1 {offsets = [1, 0, 0], sizes = [28, 16, 96], strides = [1, 1, 1]} : vector<32x16x96xbf16> to vector<28x16x96xbf16>
    %10 = vector.shape_cast %9 : vector<28x16x96xbf16> to vector<448x96xbf16>
    %c1 = arith.constant 1 : index
    %c0_6 = arith.constant 0 : index
    %c0_7 = arith.constant 0 : index
    %11 = vector.load %arg2[%c1, %c0_6, %c0_7] : memref<5x96x168xbf16, #tpu.memory_space<vmem>>, vector<1x96x168xbf16>
    %12 = vector.shape_cast %11 : vector<1x96x168xbf16> to vector<96x168xbf16>
    %cst_8 = arith.constant dense<0.000000e+00> : vector<448x168xf32>
    %13 = tpu.matmul %10, %12, %cst_8 {dimension_numbers = #tpu.dot_dimension_numbers<[1], [0], [0], [1], [0, 0, 1, 1], [], []>} : vector<448x96xbf16>, vector<96x168xbf16>, vector<448x168xf32> -> vector<448x168xf32>
    %14 = arith.addf %8, %13 : vector<448x168xf32>
    %15 = vector.extract_strided_slice %1 {offsets = [2, 0, 0], sizes = [28, 16, 96], strides = [1, 1, 1]} : vector<32x16x96xbf16> to vector<28x16x96xbf16>
    %16 = vector.shape_cast %15 : vector<28x16x96xbf16> to vector<448x96xbf16>
    %c2 = arith.constant 2 : index
    %c0_9 = arith.constant 0 : index
    %c0_10 = arith.constant 0 : index
    %17 = vector.load %arg2[%c2, %c0_9, %c0_10] : memref<5x96x168xbf16, #tpu.memory_space<vmem>>, vector<1x96x168xbf16>
    %18 = vector.shape_cast %17 : vector<1x96x168xbf16> to vector<96x168xbf16>
    %cst_11 = arith.constant dense<0.000000e+00> : vector<448x168xf32>
    %19 = tpu.matmul %16, %18, %cst_11 {dimension_numbers = #tpu.dot_dimension_numbers<[1], [0], [0], [1], [0, 0, 1, 1], [], []>} : vector<448x96xbf16>, vector<96x168xbf16>, vector<448x168xf32> -> vector<448x168xf32>
    %20 = arith.addf %14, %19 : vector<448x168xf32>
    %21 = vector.extract_strided_slice %1 {offsets = [3, 0, 0], sizes = [28, 16, 96], strides = [1, 1, 1]} : vector<32x16x96xbf16> to vector<28x16x96xbf16>
    %22 = vector.shape_cast %21 : vector<28x16x96xbf16> to vector<448x96xbf16>
    %c3 = arith.constant 3 : index
    %c0_12 = arith.constant 0 : index
    %c0_13 = arith.constant 0 : index
    %23 = vector.load %arg2[%c3, %c0_12, %c0_13] : memref<5x96x168xbf16, #tpu.memory_space<vmem>>, vector<1x96x168xbf16>
    %24 = vector.shape_cast %23 : vector<1x96x168xbf16> to vector<96x168xbf16>
    %cst_14 = arith.constant dense<0.000000e+00> : vector<448x168xf32>
    %25 = tpu.matmul %22, %24, %cst_14 {dimension_numbers = #tpu.dot_dimension_numbers<[1], [0], [0], [1], [0, 0, 1, 1], [], []>} : vector<448x96xbf16>, vector<96x168xbf16>, vector<448x168xf32> -> vector<448x168xf32>
    %26 = arith.addf %20, %25 : vector<448x168xf32>
    %27 = vector.extract_strided_slice %1 {offsets = [4, 0, 0], sizes = [28, 16, 96], strides = [1, 1, 1]} : vector<32x16x96xbf16> to vector<28x16x96xbf16>
    %28 = vector.shape_cast %27 : vector<28x16x96xbf16> to vector<448x96xbf16>
    %c4 = arith.constant 4 : index
    %c0_15 = arith.constant 0 : index
    %c0_16 = arith.constant 0 : index
    %29 = vector.load %arg2[%c4, %c0_15, %c0_16] : memref<5x96x168xbf16, #tpu.memory_space<vmem>>, vector<1x96x168xbf16>
    %30 = vector.shape_cast %29 : vector<1x96x168xbf16> to vector<96x168xbf16>
    %cst_17 = arith.constant dense<0.000000e+00> : vector<448x168xf32>
    %31 = tpu.matmul %28, %30, %cst_17 {dimension_numbers = #tpu.dot_dimension_numbers<[1], [0], [0], [1], [0, 0, 1, 1], [], []>} : vector<448x96xbf16>, vector<96x168xbf16>, vector<448x168xf32> -> vector<448x168xf32>
    %32 = arith.addf %26, %31 : vector<448x168xf32>
    %c0_18 = arith.constant 0 : index
    %c0_19 = arith.constant 0 : index
    %33 = vector.load %arg3[%c0_18, %c0_19] : memref<1x168xf32, #tpu.memory_space<vmem>>, vector<1x168xf32>
    %34 = vector.broadcast %33 : vector<1x168xf32> to vector<448x168xf32>
    %35 = arith.addf %32, %34 : vector<448x168xf32>
    %cst_20 = arith.constant 0.000000e+00 : f32
    %36 = vector.broadcast %cst_20 : f32 to vector<448x168xf32>
    %37 = arith.maximumf %35, %36 : vector<448x168xf32>
    %38 = vector.shape_cast %37 : vector<448x168xf32> to vector<14x32x168xf32>
    %39 = vector.extract_strided_slice %38 {offsets = [0, 0, 0], sizes = [14, 16, 168], strides = [1, 1, 1]} : vector<14x32x168xf32> to vector<14x16x168xf32>
    %40 = vector.extract_strided_slice %38 {offsets = [0, 16, 0], sizes = [14, 16, 168], strides = [1, 1, 1]} : vector<14x32x168xf32> to vector<14x16x168xf32>
    %41 = arith.maximumf %39, %40 : vector<14x16x168xf32>
    %42 = vector.shape_cast %41 : vector<14x16x168xf32> to vector<224x168xf32>
    %43 = arith.truncf %42 : vector<224x168xf32> to vector<224x168xbf16>
    %c0_21 = arith.constant 0 : index
    %c0_22 = arith.constant 0 : index
    %44 = vector.load %arg4[%c0_21, %c0_22] : memref<168x128xbf16, #tpu.memory_space<vmem>>, vector<168x128xbf16>
    %cst_23 = arith.constant dense<0.000000e+00> : vector<224x128xf32>
    %45 = tpu.matmul %43, %44, %cst_23 {dimension_numbers = #tpu.dot_dimension_numbers<[1], [0], [0], [1], [0, 0, 1, 1], [], []>} : vector<224x168xbf16>, vector<168x128xbf16>, vector<224x128xf32> -> vector<224x128xf32>
    %c0_24 = arith.constant 0 : index
    %c0_25 = arith.constant 0 : index
    %46 = vector.load %arg5[%c0_24, %c0_25] : memref<168x128xbf16, #tpu.memory_space<vmem>>, vector<168x128xbf16>
    %cst_26 = arith.constant dense<0.000000e+00> : vector<224x128xf32>
    %47 = tpu.matmul %43, %46, %cst_26 {dimension_numbers = #tpu.dot_dimension_numbers<[1], [0], [0], [1], [0, 0, 1, 1], [], []>} : vector<224x168xbf16>, vector<168x128xbf16>, vector<224x128xf32> -> vector<224x128xf32>
    %48 = arith.maximumf %45, %47 : vector<224x128xf32>
    %49 = arith.truncf %48 : vector<224x128xf32> to vector<224x128xbf16>
    %50 = vector.shape_cast %49 : vector<224x128xbf16> to vector<14x16x128xbf16>
    %cst_27 = arith.constant 0.000000e+00 : f32
    %51 = vector.broadcast %cst_27 : f32 to vector<160x160xf32>
    %52 = vector.extract_strided_slice %50 {offsets = [0, 0, 0], sizes = [10, 16, 128], strides = [1, 1, 1]} : vector<14x16x128xbf16> to vector<10x16x128xbf16>
    %53 = vector.shape_cast %52 : vector<10x16x128xbf16> to vector<160x128xbf16>
    %c0_28 = arith.constant 0 : index
    %c0_29 = arith.constant 0 : index
    %c0_30 = arith.constant 0 : index
    %54 = vector.load %arg6[%c0_28, %c0_29, %c0_30] : memref<5x128x160xbf16, #tpu.memory_space<vmem>>, vector<1x128x160xbf16>
    %55 = vector.shape_cast %54 : vector<1x128x160xbf16> to vector<128x160xbf16>
    %cst_31 = arith.constant dense<0.000000e+00> : vector<160x160xf32>
    %56 = tpu.matmul %53, %55, %cst_31 {dimension_numbers = #tpu.dot_dimension_numbers<[1], [0], [0], [1], [0, 0, 1, 1], [], []>} : vector<160x128xbf16>, vector<128x160xbf16>, vector<160x160xf32> -> vector<160x160xf32>
    %57 = arith.addf %51, %56 : vector<160x160xf32>
    %58 = vector.extract_strided_slice %50 {offsets = [1, 0, 0], sizes = [10, 16, 128], strides = [1, 1, 1]} : vector<14x16x128xbf16> to vector<10x16x128xbf16>
    %59 = vector.shape_cast %58 : vector<10x16x128xbf16> to vector<160x128xbf16>
    %c1_32 = arith.constant 1 : index
    %c0_33 = arith.constant 0 : index
    %c0_34 = arith.constant 0 : index
    %60 = vector.load %arg6[%c1_32, %c0_33, %c0_34] : memref<5x128x160xbf16, #tpu.memory_space<vmem>>, vector<1x128x160xbf16>
    %61 = vector.shape_cast %60 : vector<1x128x160xbf16> to vector<128x160xbf16>
    %cst_35 = arith.constant dense<0.000000e+00> : vector<160x160xf32>
    %62 = tpu.matmul %59, %61, %cst_35 {dimension_numbers = #tpu.dot_dimension_numbers<[1], [0], [0], [1], [0, 0, 1, 1], [], []>} : vector<160x128xbf16>, vector<128x160xbf16>, vector<160x160xf32> -> vector<160x160xf32>
    %63 = arith.addf %57, %62 : vector<160x160xf32>
    %64 = vector.extract_strided_slice %50 {offsets = [2, 0, 0], sizes = [10, 16, 128], strides = [1, 1, 1]} : vector<14x16x128xbf16> to vector<10x16x128xbf16>
    %65 = vector.shape_cast %64 : vector<10x16x128xbf16> to vector<160x128xbf16>
    %c2_36 = arith.constant 2 : index
    %c0_37 = arith.constant 0 : index
    %c0_38 = arith.constant 0 : index
    %66 = vector.load %arg6[%c2_36, %c0_37, %c0_38] : memref<5x128x160xbf16, #tpu.memory_space<vmem>>, vector<1x128x160xbf16>
    %67 = vector.shape_cast %66 : vector<1x128x160xbf16> to vector<128x160xbf16>
    %cst_39 = arith.constant dense<0.000000e+00> : vector<160x160xf32>
    %68 = tpu.matmul %65, %67, %cst_39 {dimension_numbers = #tpu.dot_dimension_numbers<[1], [0], [0], [1], [0, 0, 1, 1], [], []>} : vector<160x128xbf16>, vector<128x160xbf16>, vector<160x160xf32> -> vector<160x160xf32>
    %69 = arith.addf %63, %68 : vector<160x160xf32>
    %70 = vector.extract_strided_slice %50 {offsets = [3, 0, 0], sizes = [10, 16, 128], strides = [1, 1, 1]} : vector<14x16x128xbf16> to vector<10x16x128xbf16>
    %71 = vector.shape_cast %70 : vector<10x16x128xbf16> to vector<160x128xbf16>
    %c3_40 = arith.constant 3 : index
    %c0_41 = arith.constant 0 : index
    %c0_42 = arith.constant 0 : index
    %72 = vector.load %arg6[%c3_40, %c0_41, %c0_42] : memref<5x128x160xbf16, #tpu.memory_space<vmem>>, vector<1x128x160xbf16>
    %73 = vector.shape_cast %72 : vector<1x128x160xbf16> to vector<128x160xbf16>
    %cst_43 = arith.constant dense<0.000000e+00> : vector<160x160xf32>
    %74 = tpu.matmul %71, %73, %cst_43 {dimension_numbers = #tpu.dot_dimension_numbers<[1], [0], [0], [1], [0, 0, 1, 1], [], []>} : vector<160x128xbf16>, vector<128x160xbf16>, vector<160x160xf32> -> vector<160x160xf32>
    %75 = arith.addf %69, %74 : vector<160x160xf32>
    %76 = vector.extract_strided_slice %50 {offsets = [4, 0, 0], sizes = [10, 16, 128], strides = [1, 1, 1]} : vector<14x16x128xbf16> to vector<10x16x128xbf16>
    %77 = vector.shape_cast %76 : vector<10x16x128xbf16> to vector<160x128xbf16>
    %c4_44 = arith.constant 4 : index
    %c0_45 = arith.constant 0 : index
    %c0_46 = arith.constant 0 : index
    %78 = vector.load %arg6[%c4_44, %c0_45, %c0_46] : memref<5x128x160xbf16, #tpu.memory_space<vmem>>, vector<1x128x160xbf16>
    %79 = vector.shape_cast %78 : vector<1x128x160xbf16> to vector<128x160xbf16>
    %cst_47 = arith.constant dense<0.000000e+00> : vector<160x160xf32>
    %80 = tpu.matmul %77, %79, %cst_47 {dimension_numbers = #tpu.dot_dimension_numbers<[1], [0], [0], [1], [0, 0, 1, 1], [], []>} : vector<160x128xbf16>, vector<128x160xbf16>, vector<160x160xf32> -> vector<160x160xf32>
    %81 = arith.addf %75, %80 : vector<160x160xf32>
    %c0_48 = arith.constant 0 : index
    %c0_49 = arith.constant 0 : index
    %82 = vector.load %arg7[%c0_48, %c0_49] : memref<1x160xf32, #tpu.memory_space<vmem>>, vector<1x160xf32>
    %83 = vector.broadcast %82 : vector<1x160xf32> to vector<160x160xf32>
    %84 = arith.addf %81, %83 : vector<160x160xf32>
    %cst_50 = arith.constant 0.000000e+00 : f32
    %85 = vector.broadcast %cst_50 : f32 to vector<160x160xf32>
    %86 = arith.maximumf %84, %85 : vector<160x160xf32>
    %87 = vector.shape_cast %86 : vector<160x160xf32> to vector<5x32x160xf32>
    %88 = vector.extract_strided_slice %87 {offsets = [0, 0, 0], sizes = [5, 16, 160], strides = [1, 1, 1]} : vector<5x32x160xf32> to vector<5x16x160xf32>
    %89 = vector.extract_strided_slice %87 {offsets = [0, 16, 0], sizes = [5, 16, 160], strides = [1, 1, 1]} : vector<5x32x160xf32> to vector<5x16x160xf32>
    %90 = arith.maximumf %88, %89 : vector<5x16x160xf32>
    %91 = vector.shape_cast %90 : vector<5x16x160xf32> to vector<80x160xf32>
    %92 = arith.truncf %91 : vector<80x160xf32> to vector<80x160xbf16>
    %c0_51 = arith.constant 0 : index
    %c0_52 = arith.constant 0 : index
    %93 = vector.load %arg8[%c0_51, %c0_52] : memref<160x128xbf16, #tpu.memory_space<vmem>>, vector<160x128xbf16>
    %cst_53 = arith.constant dense<0.000000e+00> : vector<80x128xf32>
    %94 = tpu.matmul %92, %93, %cst_53 {dimension_numbers = #tpu.dot_dimension_numbers<[1], [0], [0], [1], [0, 0, 1, 1], [], []>} : vector<80x160xbf16>, vector<160x128xbf16>, vector<80x128xf32> -> vector<80x128xf32>
    %c0_54 = arith.constant 0 : index
    %c0_55 = arith.constant 0 : index
    %95 = vector.load %arg9[%c0_54, %c0_55] : memref<160x128xbf16, #tpu.memory_space<vmem>>, vector<160x128xbf16>
    %cst_56 = arith.constant dense<0.000000e+00> : vector<80x128xf32>
    %96 = tpu.matmul %92, %95, %cst_56 {dimension_numbers = #tpu.dot_dimension_numbers<[1], [0], [0], [1], [0, 0, 1, 1], [], []>} : vector<80x160xbf16>, vector<160x128xbf16>, vector<80x128xf32> -> vector<80x128xf32>
    %97 = arith.maximumf %94, %96 : vector<80x128xf32>
    %98 = arith.truncf %97 : vector<80x128xf32> to vector<80x128xbf16>
    %99 = vector.shape_cast %98 : vector<80x128xbf16> to vector<5x16x128xbf16>
    %cst_57 = arith.constant 0.000000e+00 : f32
    %100 = vector.broadcast %cst_57 : f32 to vector<16x128xf32>
    %101 = vector.extract_strided_slice %99 {offsets = [0, 0, 0], sizes = [1, 16, 128], strides = [1, 1, 1]} : vector<5x16x128xbf16> to vector<1x16x128xbf16>
    %102 = vector.shape_cast %101 : vector<1x16x128xbf16> to vector<16x128xbf16>
    %c0_58 = arith.constant 0 : index
    %c0_59 = arith.constant 0 : index
    %c0_60 = arith.constant 0 : index
    %103 = vector.load %arg10[%c0_58, %c0_59, %c0_60] : memref<5x128x128xbf16, #tpu.memory_space<vmem>>, vector<1x128x128xbf16>
    %104 = vector.shape_cast %103 : vector<1x128x128xbf16> to vector<128x128xbf16>
    %cst_61 = arith.constant dense<0.000000e+00> : vector<16x128xf32>
    %105 = tpu.matmul %102, %104, %cst_61 {dimension_numbers = #tpu.dot_dimension_numbers<[1], [0], [0], [1], [0, 0, 1, 1], [], []>} : vector<16x128xbf16>, vector<128x128xbf16>, vector<16x128xf32> -> vector<16x128xf32>
    %106 = arith.addf %100, %105 : vector<16x128xf32>
    %107 = vector.extract_strided_slice %99 {offsets = [1, 0, 0], sizes = [1, 16, 128], strides = [1, 1, 1]} : vector<5x16x128xbf16> to vector<1x16x128xbf16>
    %108 = vector.shape_cast %107 : vector<1x16x128xbf16> to vector<16x128xbf16>
    %c1_62 = arith.constant 1 : index
    %c0_63 = arith.constant 0 : index
    %c0_64 = arith.constant 0 : index
    %109 = vector.load %arg10[%c1_62, %c0_63, %c0_64] : memref<5x128x128xbf16, #tpu.memory_space<vmem>>, vector<1x128x128xbf16>
    %110 = vector.shape_cast %109 : vector<1x128x128xbf16> to vector<128x128xbf16>
    %cst_65 = arith.constant dense<0.000000e+00> : vector<16x128xf32>
    %111 = tpu.matmul %108, %110, %cst_65 {dimension_numbers = #tpu.dot_dimension_numbers<[1], [0], [0], [1], [0, 0, 1, 1], [], []>} : vector<16x128xbf16>, vector<128x128xbf16>, vector<16x128xf32> -> vector<16x128xf32>
    %112 = arith.addf %106, %111 : vector<16x128xf32>
    %113 = vector.extract_strided_slice %99 {offsets = [2, 0, 0], sizes = [1, 16, 128], strides = [1, 1, 1]} : vector<5x16x128xbf16> to vector<1x16x128xbf16>
    %114 = vector.shape_cast %113 : vector<1x16x128xbf16> to vector<16x128xbf16>
    %c2_66 = arith.constant 2 : index
    %c0_67 = arith.constant 0 : index
    %c0_68 = arith.constant 0 : index
    %115 = vector.load %arg10[%c2_66, %c0_67, %c0_68] : memref<5x128x128xbf16, #tpu.memory_space<vmem>>, vector<1x128x128xbf16>
    %116 = vector.shape_cast %115 : vector<1x128x128xbf16> to vector<128x128xbf16>
    %cst_69 = arith.constant dense<0.000000e+00> : vector<16x128xf32>
    %117 = tpu.matmul %114, %116, %cst_69 {dimension_numbers = #tpu.dot_dimension_numbers<[1], [0], [0], [1], [0, 0, 1, 1], [], []>} : vector<16x128xbf16>, vector<128x128xbf16>, vector<16x128xf32> -> vector<16x128xf32>
    %118 = arith.addf %112, %117 : vector<16x128xf32>
    %119 = vector.extract_strided_slice %99 {offsets = [3, 0, 0], sizes = [1, 16, 128], strides = [1, 1, 1]} : vector<5x16x128xbf16> to vector<1x16x128xbf16>
    %120 = vector.shape_cast %119 : vector<1x16x128xbf16> to vector<16x128xbf16>
    %c3_70 = arith.constant 3 : index
    %c0_71 = arith.constant 0 : index
    %c0_72 = arith.constant 0 : index
    %121 = vector.load %arg10[%c3_70, %c0_71, %c0_72] : memref<5x128x128xbf16, #tpu.memory_space<vmem>>, vector<1x128x128xbf16>
    %122 = vector.shape_cast %121 : vector<1x128x128xbf16> to vector<128x128xbf16>
    %cst_73 = arith.constant dense<0.000000e+00> : vector<16x128xf32>
    %123 = tpu.matmul %120, %122, %cst_73 {dimension_numbers = #tpu.dot_dimension_numbers<[1], [0], [0], [1], [0, 0, 1, 1], [], []>} : vector<16x128xbf16>, vector<128x128xbf16>, vector<16x128xf32> -> vector<16x128xf32>
    %124 = arith.addf %118, %123 : vector<16x128xf32>
    %125 = vector.extract_strided_slice %99 {offsets = [4, 0, 0], sizes = [1, 16, 128], strides = [1, 1, 1]} : vector<5x16x128xbf16> to vector<1x16x128xbf16>
    %126 = vector.shape_cast %125 : vector<1x16x128xbf16> to vector<16x128xbf16>
    %c4_74 = arith.constant 4 : index
    %c0_75 = arith.constant 0 : index
    %c0_76 = arith.constant 0 : index
    %127 = vector.load %arg10[%c4_74, %c0_75, %c0_76] : memref<5x128x128xbf16, #tpu.memory_space<vmem>>, vector<1x128x128xbf16>
    %128 = vector.shape_cast %127 : vector<1x128x128xbf16> to vector<128x128xbf16>
    %cst_77 = arith.constant dense<0.000000e+00> : vector<16x128xf32>
    %129 = tpu.matmul %126, %128, %cst_77 {dimension_numbers = #tpu.dot_dimension_numbers<[1], [0], [0], [1], [0, 0, 1, 1], [], []>} : vector<16x128xbf16>, vector<128x128xbf16>, vector<16x128xf32> -> vector<16x128xf32>
    %130 = arith.addf %124, %129 : vector<16x128xf32>
    %c0_78 = arith.constant 0 : index
    %c0_79 = arith.constant 0 : index
    %131 = vector.load %arg11[%c0_78, %c0_79] : memref<1x128xf32, #tpu.memory_space<vmem>>, vector<1x128xf32>
    %132 = vector.broadcast %131 : vector<1x128xf32> to vector<16x128xf32>
    %133 = arith.addf %130, %132 : vector<16x128xf32>
    %cst_80 = arith.constant 0.000000e+00 : f32
    %134 = vector.broadcast %cst_80 : f32 to vector<16x128xf32>
    %135 = arith.maximumf %133, %134 : vector<16x128xf32>
    %136 = arith.truncf %135 : vector<16x128xf32> to vector<16x128xbf16>
    %c0_81 = arith.constant 0 : index
    %c0_82 = arith.constant 0 : index
    %137 = vector.load %arg12[%c0_81, %c0_82] : memref<128x128xbf16, #tpu.memory_space<vmem>>, vector<128x128xbf16>
    %cst_83 = arith.constant dense<0.000000e+00> : vector<16x128xf32>
    %138 = tpu.matmul %136, %137, %cst_83 {dimension_numbers = #tpu.dot_dimension_numbers<[1], [0], [0], [1], [0, 0, 1, 1], [], []>} : vector<16x128xbf16>, vector<128x128xbf16>, vector<16x128xf32> -> vector<16x128xf32>
    %c0_84 = arith.constant 0 : index
    %c0_85 = arith.constant 0 : index
    %139 = vector.load %arg13[%c0_84, %c0_85] : memref<1x128xf32, #tpu.memory_space<vmem>>, vector<1x128xf32>
    %140 = vector.broadcast %139 : vector<1x128xf32> to vector<16x128xf32>
    %141 = arith.addf %138, %140 : vector<16x128xf32>
    %cst_86 = arith.constant 0.000000e+00 : f32
    %142 = vector.broadcast %cst_86 : f32 to vector<16x128xf32>
    %143 = arith.maximumf %141, %142 : vector<16x128xf32>
    %144 = arith.truncf %143 : vector<16x128xf32> to vector<16x128xbf16>
    %c0_87 = arith.constant 0 : index
    %c0_88 = arith.constant 0 : index
    %145 = vector.load %arg14[%c0_87, %c0_88] : memref<128x128xbf16, #tpu.memory_space<vmem>>, vector<128x128xbf16>
    %cst_89 = arith.constant dense<0.000000e+00> : vector<16x128xf32>
    %146 = tpu.matmul %144, %145, %cst_89 {dimension_numbers = #tpu.dot_dimension_numbers<[1], [0], [0], [1], [0, 0, 1, 1], [], []>} : vector<16x128xbf16>, vector<128x128xbf16>, vector<16x128xf32> -> vector<16x128xf32>
    %c0_90 = arith.constant 0 : index
    %c0_91 = arith.constant 0 : index
    %147 = vector.load %arg15[%c0_90, %c0_91] : memref<1x128xf32, #tpu.memory_space<vmem>>, vector<1x128xf32>
    %148 = vector.broadcast %147 : vector<1x128xf32> to vector<16x128xf32>
    %149 = arith.addf %146, %148 : vector<16x128xf32>
    %cst_92 = arith.constant 0.000000e+00 : f32
    %150 = vector.broadcast %cst_92 : f32 to vector<16x128xf32>
    %151 = arith.maximumf %149, %150 : vector<16x128xf32>
    %c0_93 = arith.constant 0 : index
    %c0_94 = arith.constant 0 : index
    %152 = vector.load %arg16[%c0_93, %c0_94] : memref<16x128xf32, #tpu.memory_space<vmem>>, vector<16x128xf32>
    tpu.vector_store %arg16[%c0_93, %c0_94], %151 {strides = array<i32>} : memref<16x128xf32, #tpu.memory_space<vmem>>, vector<16x128xf32>,
    return
  }
  func.func @transform_0(%arg0: i32) -> (i32, i32, i32) {
    %c0_i32 = arith.constant 0 : i32
    %c0_i32_0 = arith.constant 0 : i32
    %c0_i32_1 = arith.constant 0 : i32
    return %c0_i32, %arg0, %c0_i32_0 : i32, i32, i32
  }
  func.func @transform_1(%arg0: i32) -> (i32, i32, i32) {
    %c0_i32 = arith.constant 0 : i32
    %c0_i32_0 = arith.constant 0 : i32
    %c0_i32_1 = arith.constant 0 : i32
    %c0_i32_2 = arith.constant 0 : i32
    return %c0_i32, %c0_i32_0, %c0_i32_1 : i32, i32, i32
  }
  func.func @transform_2(%arg0: i32) -> (i32, i32) {
    %c0_i32 = arith.constant 0 : i32
    %c0_i32_0 = arith.constant 0 : i32
    %c0_i32_1 = arith.constant 0 : i32
    return %c0_i32, %c0_i32_0 : i32, i32
  }
  func.func @transform_3(%arg0: i32) -> (i32, i32) {
    %c0_i32 = arith.constant 0 : i32
    %c0_i32_0 = arith.constant 0 : i32
    %c0_i32_1 = arith.constant 0 : i32
    return %c0_i32, %c0_i32_0 : i32, i32
  }
  func.func @transform_4(%arg0: i32) -> (i32, i32) {
    %c0_i32 = arith.constant 0 : i32
    %c0_i32_0 = arith.constant 0 : i32
    %c0_i32_1 = arith.constant 0 : i32
    return %c0_i32, %c0_i32_0 : i32, i32
  }
  func.func @transform_5(%arg0: i32) -> (i32, i32, i32) {
    %c0_i32 = arith.constant 0 : i32
    %c0_i32_0 = arith.constant 0 : i32
    %c0_i32_1 = arith.constant 0 : i32
    %c0_i32_2 = arith.constant 0 : i32
    return %c0_i32, %c0_i32_0, %c0_i32_1 : i32, i32, i32
  }
  func.func @transform_6(%arg0: i32) -> (i32, i32) {
    %c0_i32 = arith.constant 0 : i32
    %c0_i32_0 = arith.constant 0 : i32
    %c0_i32_1 = arith.constant 0 : i32
    return %c0_i32, %c0_i32_0 : i32, i32
  }
  func.func @transform_7(%arg0: i32) -> (i32, i32) {
    %c0_i32 = arith.constant 0 : i32
    %c0_i32_0 = arith.constant 0 : i32
    %c0_i32_1 = arith.constant 0 : i32
    return %c0_i32, %c0_i32_0 : i32, i32
  }
  func.func @transform_8(%arg0: i32) -> (i32, i32) {
    %c0_i32 = arith.constant 0 : i32
    %c0_i32_0 = arith.constant 0 : i32
    %c0_i32_1 = arith.constant 0 : i32
    return %c0_i32, %c0_i32_0 : i32, i32
  }
  func.func @transform_9(%arg0: i32) -> (i32, i32, i32) {
    %c0_i32 = arith.constant 0 : i32
    %c0_i32_0 = arith.constant 0 : i32
    %c0_i32_1 = arith.constant 0 : i32
    %c0_i32_2 = arith.constant 0 : i32
    return %c0_i32, %c0_i32_0, %c0_i32_1 : i32, i32, i32
  }
  func.func @transform_10(%arg0: i32) -> (i32, i32) {
    %c0_i32 = arith.constant 0 : i32
    %c0_i32_0 = arith.constant 0 : i32
    %c0_i32_1 = arith.constant 0 : i32
    return %c0_i32, %c0_i32_0 : i32, i32
  }
  func.func @transform_11(%arg0: i32) -> (i32, i32) {
    %c0_i32 = arith.constant 0 : i32
    %c0_i32_0 = arith.constant 0 : i32
    %c0_i32_1 = arith.constant 0 : i32
    return %c0_i32, %c0_i32_0 : i32, i32
  }
  func.func @transform_12(%arg0: i32) -> (i32, i32) {
    %c0_i32 = arith.constant 0 : i32
    %c0_i32_0 = arith.constant 0 : i32
    %c0_i32_1 = arith.constant 0 : i32
    return %c0_i32, %c0_i32_0 : i32, i32
  }
  func.func @transform_13(%arg0: i32) -> (i32, i32) {
    %c0_i32 = arith.constant 0 : i32
    %c0_i32_0 = arith.constant 0 : i32
    %c0_i32_1 = arith.constant 0 : i32
    return %c0_i32, %c0_i32_0 : i32, i32
  }
  func.func @transform_14(%arg0: i32) -> (i32, i32) {
    %c0_i32 = arith.constant 0 : i32
    %c0_i32_0 = arith.constant 0 : i32
    %c0_i32_1 = arith.constant 0 : i32
    return %c0_i32, %c0_i32_0 : i32, i32
  }
  func.func @transform_15(%arg0: i32) -> (i32, i32) {
    %c0_i32 = arith.constant 0 : i32
    %c0_i32_0 = arith.constant 0 : i32
    return %arg0, %c0_i32 : i32, i32
  }
}

</mosaic_0001>

<bundles_post_ra>
// kernel: lenet_pallas_forward.1
= control target key start
LH: loop header
LB: loop body
LE: loop exit
PB: predicated region body
PF: predicated region fallthrough
CT: control target
= control target key end

     0   :  { %s12235_s0 = inlined_call_operand.vmem [shape: f32[32,32,96], index: 0, kind: input, shape index: {}]   ;;  %s12236_s1 = inlined_call_operand.vmem [shape: bf16[5,96,168], index: 1, kind: input, shape index: {}]   ;;  %s12237_s2 = inlined_call_operand.vmem [shape: f32[1,168], index: 2, kind: input, shape index: {}]   ;;  %s12238_s3 = inlined_call_operand.vmem [shape: bf16[168,128], index: 3, kind: input, shape index: {}]   ;;  %s12239_s4 = inlined_call_operand.vmem [shape: bf16[168,128], index: 4, kind: input, shape index: {}]   ;;  %s12240_s5 = inlined_call_operand.vmem [shape: bf16[5,128,160], index: 5, kind: input, shape index: {}]   ;;  %s12241_s6 = inlined_call_operand.vmem [shape: f32[1,160], index: 6, kind: input, shape index: {}]   ;;  %s12242_s7 = inlined_call_operand.vmem [shape: bf16[160,128], index: 7, kind: input, shape index: {}]   ;;  %s12243_s8 = inlined_call_operand.vmem [shape: bf16[160,128], index: 8, kind: input, shape index: {}]   ;;  %s12244_s9 = inlined_call_operand.vmem [shape: bf16[5,128,128], index: 9, kind: input, shape index: {}]   ;;  %s12245_s10 = inlined_call_operand.vmem [shape: f32[1,128], index: 10, kind: input, shape index: {}]   ;;  %s12246_s11 = inlined_call_operand.vmem [shape: bf16[128,128], index: 11, kind: input, shape index: {}]   ;;  %s12247_s12 = inlined_call_operand.vmem [shape: f32[1,128], index: 12, kind: input, shape index: {}]   ;;  %s12248_s13 = inlined_call_operand.vmem [shape: bf16[128,128], index: 13, kind: input, shape index: {}]   ;;  %s12249_s14 = inlined_call_operand.vmem [shape: f32[1,128], index: 14, kind: input, shape index: {}]   ;;  %s12250_s15 = inlined_call_operand.vmem [shape: f32[32,128], index: 15, kind: output, shape index: {}]  }
   0x1   :  { %12289 = sst [smem:[#allocation109_spill]] %s12235_s0 }
   0x2   :  { %s8482_s18 = smov 0   ;;  %s8484_s19 = smov 0  }
   0x3   :  { %s8486_s20 = smov 0  }
   0x4 LB: > { %s8499_s22 = sadd.s32 1, %s8400_s20   ;;  %s32_s24 = sadd.s32 1, %s8396_s19  ;;  %s8400_s20 = sphi %s8486_s20, %s12734_s20   ;;  %s8396_s19 = sphi %s8484_s19, %s12733_s19   ;;  %s8392_s18 = sphi %s8482_s18, %s12732_s18  }
   0x5   : > { %s29_s23 = ssub.s32 %s8400_s20, %s8499_s22  ;;  %p39_p1 = scmp.ne.s32.totalorder %s8396_s19, %s8392_s18 }
   0x6   : > { %p30_p0 = scmp.eq.s32.totalorder %s29_s23, 0  ;;  %p40_p2 = scmp.eq.s32.totalorder %s8400_s20, 0 }
   0x7   : > { %p6666_p4 = scmp.ge.s32.totalorder %s8400_s20, 2 }
   0x8   : > { %s8508_s25 = scalar_select %p30_p0, %s8396_s19, %s32_s24  }
   0x9   : > { %p41_p3 = por %p40_p2, %p39_p1  ;;  %427 = sbr.rel (%p6666_p4) target bundleno = 88 (0x58), region = 72 }
   0xa   : > { %12290 = sst [smem:[#allocation3_spill]] %s8508_s25 }
   0xe   : > { %430 = sbr.rel (!%p41_p3) target bundleno = 88 (0x58), region = 76  ;;  %s432_s26 = sand.u32 (%p41_p3), 1, %s8396_s19  }
   0xf   : > { %s8114_s27 = sshll.u32 (%p41_p3), %s8400_s20, 4  ;;  %s6667_s28 = sshll.u32 (%p41_p3), %s432_s26, 9 }
  0x10   : > { %s12291_s0 = sld [smem:[#allocation109_spill]] (%p41_p3)  ;;  %s8521_s17 = scalar_lea.vmem (%p41_p3), [#allocation2], %s6667_s28 }
  0x16   : > { %s8516_s16 = scalar_lea.vmem %s12291_s0, %s8114_s27 }
  0x17   : > { %v592_v0 = vld [vmem:[%s8516_s16] sm:$0xff]  ;;  %v594_v1 = vld [vmem:[%s8516_s16 + $0x8] sm:$0xff] }
  0x18   : > { %v596_v2 = vld [vmem:[%s8516_s16 + $0x20] sm:$0xff]  ;;  %593 = vst [vmem:[%s8521_s17] sm:$0xff] %v592_v0  ;;  %v598_v3 = vld [vmem:[%s8516_s16 + $0x28] sm:$0xff] }
  0x19   : > { %595 = vst [vmem:[%s8521_s17 + $0x8] sm:$0xff] %v594_v1  ;;  %v600_v4 = vld [vmem:[%s8516_s16 + $0x40] sm:$0xff]  ;;  %v602_v5 = vld [vmem:[%s8516_s16 + $0x48] sm:$0xff] }
  0x1a   : > { %597 = vst [vmem:[%s8521_s17 + $0x10] sm:$0xff] %v596_v2  ;;  %v604_v6 = vld [vmem:[%s8516_s16 + $0x60] sm:$0xff]  ;;  %v606_v7 = vld [vmem:[%s8516_s16 + $0x68] sm:$0xff] }
  0x1b   : > { %599 = vst [vmem:[%s8521_s17 + $0x18] sm:$0xff] %v598_v3  ;;  %v608_v8 = vld [vmem:[%s8516_s16 + $0x80] sm:$0xff]  ;;  %v610_v9 = vld [vmem:[%s8516_s16 + $0x88] sm:$0xff] }
  0x1c   : > { %601 = vst [vmem:[%s8521_s17 + $0x20] sm:$0xff] %v600_v4  ;;  %v612_v10 = vld [vmem:[%s8516_s16 + $0xa0] sm:$0xff]  ;;  %v614_v11 = vld [vmem:[%s8516_s16 + $0xa8] sm:$0xff] }
  0x1d   : > { %603 = vst [vmem:[%s8521_s17 + $0x28] sm:$0xff] %v602_v5  ;;  %v616_v12 = vld [vmem:[%s8516_s16 + $0xc0] sm:$0xff]  ;;  %v618_v13 = vld [vmem:[%s8516_s16 + $0xc8] sm:$0xff] }
  0x1e   : > { %605 = vst [vmem:[%s8521_s17 + $0x30] sm:$0xff] %v604_v6  ;;  %v620_v14 = vld [vmem:[%s8516_s16 + $0xe0] sm:$0xff]  ;;  %v622_v15 = vld [vmem:[%s8516_s16 + $0xe8] sm:$0xff] }
  0x1f   : > { %607 = vst [vmem:[%s8521_s17 + $0x38] sm:$0xff] %v606_v7  ;;  %v624_v16 = vld [vmem:[%s8516_s16 + $0x100] sm:$0xff]  ;;  %v626_v17 = vld [vmem:[%s8516_s16 + $0x108] sm:$0xff] }
  0x20   : > { %609 = vst [vmem:[%s8521_s17 + $0x40] sm:$0xff] %v608_v8  ;;  %v628_v18 = vld [vmem:[%s8516_s16 + $0x120] sm:$0xff]  ;;  %v630_v19 = vld [vmem:[%s8516_s16 + $0x128] sm:$0xff] }
  0x21   : > { %611 = vst [vmem:[%s8521_s17 + $0x48] sm:$0xff] %v610_v9  ;;  %v632_v20 = vld [vmem:[%s8516_s16 + $0x140] sm:$0xff]  ;;  %v634_v21 = vld [vmem:[%s8516_s16 + $0x148] sm:$0xff] }
  0x22   : > { %613 = vst [vmem:[%s8521_s17 + $0x50] sm:$0xff] %v612_v10  ;;  %v636_v22 = vld [vmem:[%s8516_s16 + $0x160] sm:$0xff]  ;;  %v638_v23 = vld [vmem:[%s8516_s16 + $0x168] sm:$0xff] }
  0x23   : > { %615 = vst [vmem:[%s8521_s17 + $0x58] sm:$0xff] %v614_v11  ;;  %v640_v24 = vld [vmem:[%s8516_s16 + $0x180] sm:$0xff]  ;;  %v642_v25 = vld [vmem:[%s8516_s16 + $0x188] sm:$0xff] }
  0x24   : > { %617 = vst [vmem:[%s8521_s17 + $0x60] sm:$0xff] %v616_v12  ;;  %v644_v26 = vld [vmem:[%s8516_s16 + $0x1a0] sm:$0xff]  ;;  %v646_v27 = vld [vmem:[%s8516_s16 + $0x1a8] sm:$0xff] }
  0x25   : > { %619 = vst [vmem:[%s8521_s17 + $0x68] sm:$0xff] %v618_v13  ;;  %v648_v28 = vld [vmem:[%s8516_s16 + $0x1c0] sm:$0xff]  ;;  %v650_v29 = vld [vmem:[%s8516_s16 + $0x1c8] sm:$0xff] }
  0x26   : > { %621 = vst [vmem:[%s8521_s17 + $0x70] sm:$0xff] %v620_v14  ;;  %v652_v30 = vld [vmem:[%s8516_s16 + $0x1e0] sm:$0xff]  ;;  %v654_v31 = vld [vmem:[%s8516_s16 + $0x1e8] sm:$0xff] }
  0x27   : > { %623 = vst [vmem:[%s8521_s17 + $0x78] sm:$0xff] %v622_v15  ;;  %v656_v32 = vld [vmem:[%s8516_s16 + $0x200] sm:$0xff]  ;;  %v658_v33 = vld [vmem:[%s8516_s16 + $0x208] sm:$0xff] }
  0x28   : > { %625 = vst [vmem:[%s8521_s17 + $0x80] sm:$0xff] %v624_v16  ;;  %v660_v34 = vld [vmem:[%s8516_s16 + $0x220] sm:$0xff]  ;;  %v662_v35 = vld [vmem:[%s8516_s16 + $0x228] sm:$0xff] }
  0x29   : > { %627 = vst [vmem:[%s8521_s17 + $0x88] sm:$0xff] %v626_v17  ;;  %v664_v36 = vld [vmem:[%s8516_s16 + $0x240] sm:$0xff]  ;;  %v666_v37 = vld [vmem:[%s8516_s16 + $0x248] sm:$0xff] }
  0x2a   : > { %629 = vst [vmem:[%s8521_s17 + $0x90] sm:$0xff] %v628_v18  ;;  %v668_v38 = vld [vmem:[%s8516_s16 + $0x260] sm:$0xff]  ;;  %v670_v39 = vld [vmem:[%s8516_s16 + $0x268] sm:$0xff] }
  0x2b   : > { %631 = vst [vmem:[%s8521_s17 + $0x98] sm:$0xff] %v630_v19  ;;  %v672_v40 = vld [vmem:[%s8516_s16 + $0x280] sm:$0xff]  ;;  %v674_v41 = vld [vmem:[%s8516_s16 + $0x288] sm:$0xff] }
  0x2c   : > { %633 = vst [vmem:[%s8521_s17 + $0xa0] sm:$0xff] %v632_v20  ;;  %v676_v42 = vld [vmem:[%s8516_s16 + $0x2a0] sm:$0xff]  ;;  %v678_v43 = vld [vmem:[%s8516_s16 + $0x2a8] sm:$0xff] }
  0x2d   : > { %635 = vst [vmem:[%s8521_s17 + $0xa8] sm:$0xff] %v634_v21  ;;  %v680_v44 = vld [vmem:[%s8516_s16 + $0x2c0] sm:$0xff]  ;;  %v682_v45 = vld [vmem:[%s8516_s16 + $0x2c8] sm:$0xff] }
  0x2e   : > { %637 = vst [vmem:[%s8521_s17 + $0xb0] sm:$0xff] %v636_v22  ;;  %v684_v46 = vld [vmem:[%s8516_s16 + $0x2e0] sm:$0xff]  ;;  %v686_v47 = vld [vmem:[%s8516_s16 + $0x2e8] sm:$0xff] }
  0x2f   : > { %639 = vst [vmem:[%s8521_s17 + $0xb8] sm:$0xff] %v638_v23  ;;  %v688_v48 = vld [vmem:[%s8516_s16 + $0x300] sm:$0xff]  ;;  %v690_v49 = vld [vmem:[%s8516_s16 + $0x308] sm:$0xff] }
  0x30   : > { %641 = vst [vmem:[%s8521_s17 + $0xc0] sm:$0xff] %v640_v24  ;;  %v692_v50 = vld [vmem:[%s8516_s16 + $0x320] sm:$0xff]  ;;  %v694_v51 = vld [vmem:[%s8516_s16 + $0x328] sm:$0xff] }
  0x31   : > { %643 = vst [vmem:[%s8521_s17 + $0xc8] sm:$0xff] %v642_v25  ;;  %v696_v52 = vld [vmem:[%s8516_s16 + $0x340] sm:$0xff]  ;;  %v698_v53 = vld [vmem:[%s8516_s16 + $0x348] sm:$0xff] }
  0x32   : > { %645 = vst [vmem:[%s8521_s17 + $0xd0] sm:$0xff] %v644_v26  ;;  %v700_v54 = vld [vmem:[%s8516_s16 + $0x360] sm:$0xff]  ;;  %v702_v55 = vld [vmem:[%s8516_s16 + $0x368] sm:$0xff] }
  0x33   : > { %647 = vst [vmem:[%s8521_s17 + $0xd8] sm:$0xff] %v646_v27  ;;  %v704_v56 = vld [vmem:[%s8516_s16 + $0x380] sm:$0xff]  ;;  %v706_v57 = vld [vmem:[%s8516_s16 + $0x388] sm:$0xff] }
  0x34   : > { %649 = vst [vmem:[%s8521_s17 + $0xe0] sm:$0xff] %v648_v28  ;;  %v708_v58 = vld [vmem:[%s8516_s16 + $0x3a0] sm:$0xff]  ;;  %v710_v59 = vld [vmem:[%s8516_s16 + $0x3a8] sm:$0xff] }
  0x35   : > { %651 = vst [vmem:[%s8521_s17 + $0xe8] sm:$0xff] %v650_v29  ;;  %v712_v60 = vld [vmem:[%s8516_s16 + $0x3c0] sm:$0xff]  ;;  %v714_v61 = vld [vmem:[%s8516_s16 + $0x3c8] sm:$0xff] }
  0x36   : > { %653 = vst [vmem:[%s8521_s17 + $0xf0] sm:$0xff] %v652_v30  ;;  %v716_v62 = vld [vmem:[%s8516_s16 + $0x3e0] sm:$0xff]  ;;  %v718_v63 = vld [vmem:[%s8516_s16 + $0x3e8] sm:$0xff] }
  0x37   : > { %655 = vst [vmem:[%s8521_s17 + $0xf8] sm:$0xff] %v654_v31 }
  0x38   : > { %657 = vst [vmem:[%s8521_s17 + $0x100] sm:$0xff] %v656_v32 }
  0x39   : > { %659 = vst [vmem:[%s8521_s17 + $0x108] sm:$0xff] %v658_v33 }
  0x3a   : > { %661 = vst [vmem:[%s8521_s17 + $0x110] sm:$0xff] %v660_v34 }
  0x3b   : > { %663 = vst [vmem:[%s8521_s17 + $0x118] sm:$0xff] %v662_v35 }
  0x3c   : > { %665 = vst [vmem:[%s8521_s17 + $0x120] sm:$0xff] %v664_v36 }
  0x3d   : > { %667 = vst [vmem:[%s8521_s17 + $0x128] sm:$0xff] %v666_v37 }
  0x3e   : > { %669 = vst [vmem:[%s8521_s17 + $0x130] sm:$0xff] %v668_v38 }
  0x3f   : > { %671 = vst [vmem:[%s8521_s17 + $0x138] sm:$0xff] %v670_v39 }
  0x40   : > { %673 = vst [vmem:[%s8521_s17 + $0x140] sm:$0xff] %v672_v40 }
  0x41   : > { %675 = vst [vmem:[%s8521_s17 + $0x148] sm:$0xff] %v674_v41 }
  0x42   : > { %677 = vst [vmem:[%s8521_s17 + $0x150] sm:$0xff] %v676_v42 }
  0x43   : > { %679 = vst [vmem:[%s8521_s17 + $0x158] sm:$0xff] %v678_v43 }
  0x44   : > { %681 = vst [vmem:[%s8521_s17 + $0x160] sm:$0xff] %v680_v44 }
  0x45   : > { %683 = vst [vmem:[%s8521_s17 + $0x168] sm:$0xff] %v682_v45 }
  0x46   : > { %685 = vst [vmem:[%s8521_s17 + $0x170] sm:$0xff] %v684_v46 }
  0x47   : > { %687 = vst [vmem:[%s8521_s17 + $0x178] sm:$0xff] %v686_v47 }
  0x48   : > { %689 = vst [vmem:[%s8521_s17 + $0x180] sm:$0xff] %v688_v48 }
  0x49   : > { %691 = vst [vmem:[%s8521_s17 + $0x188] sm:$0xff] %v690_v49 }
  0x4a   : > { %693 = vst [vmem:[%s8521_s17 + $0x190] sm:$0xff] %v692_v50 }
  0x4b   : > { %695 = vst [vmem:[%s8521_s17 + $0x198] sm:$0xff] %v694_v51 }
  0x4c   : > { %697 = vst [vmem:[%s8521_s17 + $0x1a0] sm:$0xff] %v696_v52 }
  0x4d   : > { %699 = vst [vmem:[%s8521_s17 + $0x1a8] sm:$0xff] %v698_v53 }
  0x4e   : > { %701 = vst [vmem:[%s8521_s17 + $0x1b0] sm:$0xff] %v700_v54 }
  0x4f   : > { %703 = vst [vmem:[%s8521_s17 + $0x1b8] sm:$0xff] %v702_v55 }
  0x50   : > { %705 = vst [vmem:[%s8521_s17 + $0x1c0] sm:$0xff] %v704_v56 }
  0x51   : > { %707 = vst [vmem:[%s8521_s17 + $0x1c8] sm:$0xff] %v706_v57 }
  0x52   : > { %709 = vst [vmem:[%s8521_s17 + $0x1d0] sm:$0xff] %v708_v58 }
  0x53   : > { %711 = vst [vmem:[%s8521_s17 + $0x1d8] sm:$0xff] %v710_v59 }
  0x54   : > { %713 = vst [vmem:[%s8521_s17 + $0x1e0] sm:$0xff] %v712_v60 }
  0x55   : > { %715 = vst [vmem:[%s8521_s17 + $0x1e8] sm:$0xff] %v714_v61 }
  0x56   : > { %717 = vst [vmem:[%s8521_s17 + $0x1f0] sm:$0xff] %v716_v62 }
  0x57   : > { %719 = vst [vmem:[%s8521_s17 + $0x1f8] sm:$0xff] %v718_v63 }
  0x58 PF: > { %p6670_p5 = scmp.ge.s32.totalorder %s8400_s20, 1  ;;  %p724_p6 = scmp.lt.s32.totalorder %s8400_s20, 3 }
  0x5a   : > { %p725_p7 = pnand %p6670_p5, %p724_p6 }
  0x5c   : > { %728 = sbr.rel (%p725_p7) target bundleno = 3044 (0xbe4), region = 114 }
  0x61   : > { %v6728_v0 = vld [vmem:[%s12236_s1 + $0xb0] sm:$0xf]  ;;  %v8138_v1 = vld [vmem:[%s12236_s1 + $0xb4] sm:$0xf0]  ;;  %v8137_v2 = vld [vmem:[%s12236_s1 + $0xb4] sm:$0xf] }
  0x62   : > { %v6729_v3 = vor.u32 %v8138_v1, %v6728_v0  ;;  %v6730_v4 = vld [vmem:[%s12236_s1 + $0xb8] sm:$0xf0]  ;;  %v6832_v5 = vld [vmem:[%s12236_s1 + $0x50] sm:$0xf]  ;;  %v8126_v6 = vld [vmem:[%s12236_s1 + $0x54] sm:$0xf0] }
  0x63   : > { %v6733_v7 = vor.u32 %v8137_v2, %v6730_v4  ;;  %v6833_v8 = vor.u32 %v8126_v6, %v6832_v5  ;;  %v8125_v9 = vld [vmem:[%s12236_s1 + $0x54] sm:$0xf]  ;;  %v6834_v10 = vld [vmem:[%s12236_s1 + $0x58] sm:$0xf0]  ;;  %v6720_v11 = vld [vmem:[%s12236_s1 + $0xa0] sm:$0xf] }
  0x64   : > { %1226 = vmatpush.bf16.msra.mxu0 %v6729_v3  ;;  %v6837_v12 = vor.u32 %v8125_v9, %v6834_v10  ;;  %v8136_v13 = vld [vmem:[%s12236_s1 + $0xa4] sm:$0xf0]  ;;  %v8135_v14 = vld [vmem:[%s12236_s1 + $0xa4] sm:$0xf]  ;;  %v6722_v15 = vld [vmem:[%s12236_s1 + $0xa8] sm:$0xf0] }
  0x65   : > { %1375 = vmatpush.bf16.msra.mxu1 %v6733_v7  ;;  %1592 = vmatpush.bf16.msra.mxu2 %v6833_v8  ;;  %v6721_v16 = vor.u32 %v8136_v13, %v6720_v11  ;;  %v6725_v17 = vor.u32 %v8135_v14, %v6722_v15  ;;  %v6824_v18 = vld [vmem:[%s12236_s1 + $0x40] sm:$0xf]  ;;  %v8124_v19 = vld [vmem:[%s12236_s1 + $0x44] sm:$0xf0]  ;;  %v8123_v20 = vld [vmem:[%s12236_s1 + $0x44] sm:$0xf] }
  0x66   : > { %1741 = vmatpush.bf16.msra.mxu3 %v6837_v12  ;;  %v6825_v21 = vor.u32 %v8124_v19, %v6824_v18  ;;  %v6826_v22 = vld [vmem:[%s12236_s1 + $0x48] sm:$0xf0]  ;;  %v6712_v23 = vld [vmem:[%s12236_s1 + $0x90] sm:$0xf]  ;;  %v8134_v24 = vld [vmem:[%s12236_s1 + $0x94] sm:$0xf0] }
  0x67   : > { %v6829_v25 = vor.u32 %v8123_v20, %v6826_v22  ;;  %v8133_v26 = vld [vmem:[%s12236_s1 + $0x94] sm:$0xf]  ;;  %v6714_v27 = vld [vmem:[%s12236_s1 + $0x98] sm:$0xf0]  ;;  %v6816_v28 = vld [vmem:[%s12236_s1 + $0x30] sm:$0xf]  ;;  %v6713_v29 = vor.u32 %v8134_v24, %v6712_v23 }
  0x68   : > { %1227 = vmatpush.bf16.msra.mxu0 %v6721_v16  ;;  %v8122_v30 = vld [vmem:[%s12236_s1 + $0x34] sm:$0xf0]  ;;  %v8121_v31 = vld [vmem:[%s12236_s1 + $0x34] sm:$0xf]  ;;  %v6818_v32 = vld [vmem:[%s12236_s1 + $0x38] sm:$0xf0]  ;;  %v6717_v33 = vor.u32 %v8133_v26, %v6714_v27 }
  0x69   : > { %1376 = vmatpush.bf16.msra.mxu1 %v6725_v17  ;;  %1593 = vmatpush.bf16.msra.mxu2 %v6825_v21  ;;  %v6817_v34 = vor.u32 %v8122_v30, %v6816_v28  ;;  %v6704_v35 = vld [vmem:[%s12236_s1 + $0x80] sm:$0xf]  ;;  %v8132_v36 = vld [vmem:[%s12236_s1 + $0x84] sm:$0xf0]  ;;  %v8131_v37 = vld [vmem:[%s12236_s1 + $0x84] sm:$0xf]  ;;  %v6821_v38 = vor.u32 %v8121_v31, %v6818_v32 }
  0x6a   : > { %1742 = vmatpush.bf16.msra.mxu3 %v6829_v25  ;;  %v6706_v39 = vld [vmem:[%s12236_s1 + $0x88] sm:$0xf0]  ;;  %v6808_v40 = vld [vmem:[%s12236_s1 + $0x20] sm:$0xf]  ;;  %v8120_v41 = vld [vmem:[%s12236_s1 + $0x24] sm:$0xf0]  ;;  %v6705_v44 = vor.u32 %v8132_v36, %v6704_v35 }
  0x6b   : > { %v8119_v42 = vld [vmem:[%s12236_s1 + $0x24] sm:$0xf]  ;;  %v6810_v43 = vld [vmem:[%s12236_s1 + $0x28] sm:$0xf0]  ;;  %v6696_v45 = vld [vmem:[%s12236_s1 + $0x70] sm:$0xf]  ;;  %v6709_v47 = vor.u32 %v8131_v37, %v6706_v39  ;;  %v6809_v48 = vor.u32 %v8120_v41, %v6808_v40 }
  0x6c   : > { %1228 = vmatpush.bf16.msra.mxu0 %v6713_v29  ;;  %v8130_v46 = vld [vmem:[%s12236_s1 + $0x74] sm:$0xf0]  ;;  %v8129_v49 = vld [vmem:[%s12236_s1 + $0x74] sm:$0xf]  ;;  %v6698_v50 = vld [vmem:[%s12236_s1 + $0x78] sm:$0xf0]  ;;  %v6813_v52 = vor.u32 %v8119_v42, %v6810_v43 }
  0x6d   : > { %1377 = vmatpush.bf16.msra.mxu1 %v6717_v33  ;;  %1594 = vmatpush.bf16.msra.mxu2 %v6817_v34  ;;  %v6800_v51 = vld [vmem:[%s12236_s1 + $0x10] sm:$0xf]  ;;  %v8118_v53 = vld [vmem:[%s12236_s1 + $0x14] sm:$0xf0]  ;;  %v8117_v54 = vld [vmem:[%s12236_s1 + $0x14] sm:$0xf]  ;;  %v6697_v59 = vor.u32 %v8130_v46, %v6696_v45  ;;  %v6701_v63 = vor.u32 %v8129_v49, %v6698_v50 }
  0x6e   : > { %1743 = vmatpush.bf16.msra.mxu3 %v6821_v38  ;;  %v6802_v55 = vld [vmem:[%s12236_s1 + $0x18] sm:$0xf0]  ;;  %v6688_v56 = vld [vmem:[%s12236_s1 + $0x60] sm:$0xf]  ;;  %v8128_v57 = vld [vmem:[%s12236_s1 + $0x64] sm:$0xf0]  ;;  %v6801_v0 = vor.u32 %v8118_v53, %v6800_v51 }
  0x6f   : > { %v8127_v58 = vld [vmem:[%s12236_s1 + $0x64] sm:$0xf]  ;;  %v6690_v60 = vld [vmem:[%s12236_s1 + $0x68] sm:$0xf0]  ;;  %v6792_v61 = vld [vmem:[%s12236_s1] sm:$0xf]  ;;  %v6805_v5 = vor.u32 %v8117_v54, %v6802_v55  ;;  %v6689_v8 = vor.u32 %v8128_v57, %v6688_v56 }
  0x70   : > { %1229 = vmatpush.bf16.msra.mxu0 %v6705_v44  ;;  %v8116_v62 = vld [vmem:[%s12236_s1 + $0x4] sm:$0xf0]  ;;  %v8115_v1 = vld [vmem:[%s12236_s1 + $0x4] sm:$0xf]  ;;  %v6794_v2 = vld [vmem:[%s12236_s1 + $0x8] sm:$0xf0]  ;;  %v6693_v9 = vor.u32 %v8127_v58, %v6690_v60 }
  0x71   : > { %1378 = vmatpush.bf16.msra.mxu1 %v6709_v47  ;;  %1595 = vmatpush.bf16.msra.mxu2 %v6809_v48  ;;  %s731_s16 = sand.u32 1, %s8392_s18   ;;  %v6948_v3 = vld [vmem:[%s12236_s1 + $0x110] sm:$0xf]  ;;  %v8150_v4 = vld [vmem:[%s12236_s1 + $0x114] sm:$0xf0]  ;;  %v6793_v10 = vor.u32 %v8116_v62, %v6792_v61  ;;  %v6797_v18 = vor.u32 %v8115_v1, %v6794_v2  ;;  %vm1139_vm0 = vcmask 785408  }
  0x72   : > { %1744 = vmatpush.bf16.msra.mxu3 %v6813_v52  ;;  %s6671_s26 = sshll.u32 %s731_s16, 9  ;;  %v8149_v6 = vld [vmem:[%s12236_s1 + $0x114] sm:$0xf]  ;;  %v6950_v7 = vld [vmem:[%s12236_s1 + $0x118] sm:$0xf0]  ;;  %v6949_v20 = vor.u32 %v8150_v4, %v6948_v3  ;;  %vm3802_vm1 = vcmask 1043456  }
  0x73   : > { %s8807_s18 = scalar_lea.vmem [#allocation2], %s6671_s26  ;;  %v6953_v24 = vor.u32 %v8149_v6, %v6950_v7  ;;  %v6940_v44 = vld [vmem:[%s12236_s1 + $0x100] sm:$0xf]  ;;  %v8148_v45 = vld [vmem:[%s12236_s1 + $0x104] sm:$0xf0]  ;;  %vm3759_vm2 = vcmask 326656  }
  0x74   : > { %1230 = vmatpush.bf16.msra.mxu0 %v6697_v59  ;;  %v788_v11 = vld [vmem:[%s8807_s18 + $0x10] sm:$0xff]  ;;  %v789_v12 = vld [vmem:[%s8807_s18 + $0x18] sm:$0xff]  ;;  %v786_v13 = vld [vmem:[%s8807_s18] sm:$0xff]  ;;  %v6941_v47 = vor.u32 %v8148_v45, %v6940_v44  ;;  %vm5739_vm3 = vcmask 261120   ;;  %s12730_s25 = sadd.s32 4294967295, %s8400_s20  }
  0x75   : > { %1379 = vmatpush.bf16.msra.mxu1 %v6701_v63  ;;  %1596 = vmatpush.bf16.msra.mxu2 %v6801_v0  ;;  %v852_v14 = vpack.c.bf16 %v788_v11, %v788_v11  ;;  %v853_v15 = vpack.c.bf16 %v789_v12, %v789_v12  ;;  %v787_v16 = vld [vmem:[%s8807_s18 + $0x8] sm:$0xff]  ;;  %v850_v17 = vpack.c.bf16 %v786_v13, %v786_v13  ;;  %v790_v28 = vld [vmem:[%s8807_s18 + $0x20] sm:$0xff]  ;;  %v792_v35 = vld [vmem:[%s8807_s18 + $0x30] sm:$0xff]  ;;  %s6672_s30 = sshll.u32 %s12730_s25, 1 }
  0x76   : > { %1745 = vmatpush.bf16.msra.mxu3 %v6805_v5  ;;  %v851_v19 = vpack.c.bf16 %v787_v16, %v787_v16  ;;  %v791_v29 = vld [vmem:[%s8807_s18 + $0x28] sm:$0xff]  ;;  %v854_v30 = vpack.c.bf16 %v790_v28, %v790_v28  ;;  %v793_v36 = vld [vmem:[%s8807_s18 + $0x38] sm:$0xff]  ;;  %v856_v37 = vpack.c.bf16 %v792_v35, %v792_v35  ;;  %v794_v42 = vld [vmem:[%s8807_s18 + $0x40] sm:$0xff]  ;;  %p780_p8 = scmp.lt.s32.totalorder %s6672_s30, 3 }
  0x77   : > { %v995_v21 = vunpack.c.l.b16 %v852_v14  ;;  %v996_v22 = vunpack.c.l.b16 %v853_v15  ;;  %v1524_v23 = vunpack.c.l.b16 %v850_v17  ;;  %v855_v31 = vpack.c.bf16 %v791_v29, %v791_v29  ;;  %v795_v43 = vld [vmem:[%s8807_s18 + $0x48] sm:$0xff]  ;;  %v8147_v46 = vld [vmem:[%s12236_s1 + $0x104] sm:$0xf]  ;;  %v796_v55 = vld [vmem:[%s8807_s18 + $0x50] sm:$0xff] }
  0x78   : > { %1231 = vmatpush.bf16.msra.mxu0 %v6689_v8  ;;  %v1525_v25 = vunpack.c.l.b16 %v851_v19  ;;  %v997_v32 = vunpack.c.l.b16 %v854_v30  ;;  %v857_v38 = vpack.c.bf16 %v793_v36, %v793_v36  ;;  %v999_v39 = vunpack.c.l.b16 %v856_v37  ;;  %v6942_v48 = vld [vmem:[%s12236_s1 + $0x108] sm:$0xf0]  ;;  %v797_v56 = vld [vmem:[%s8807_s18 + $0x58] sm:$0xff]  ;;  %v798_v62 = vld [vmem:[%s8807_s18 + $0x60] sm:$0xff]  ;;  %s12736_s30 = smov (!%p780_p8, %s6672_s30), 3 }
  0x79   : > { %1380 = vmatpush.bf16.msra.mxu1 %v6693_v9  ;;  %1597 = vmatpush.bf16.msra.mxu2 %v6793_v10  ;;  %v1051_v26 = vpack.c.b16 %v996_v22, %v995_v21  ;;  %v998_v33 = vunpack.c.l.b16 %v855_v31  ;;  %v858_v49 = vpack.c.bf16 %v794_v42, %v794_v42  ;;  %v859_v50 = vpack.c.bf16 %v795_v43, %v795_v43  ;;  %v799_v63 = vld [vmem:[%s8807_s18 + $0x68] sm:$0xff]  ;;  %v800_v5 = vld [vmem:[%s8807_s18 + $0x70] sm:$0xff]  ;;  %v801_v6 = vld [vmem:[%s8807_s18 + $0x78] sm:$0xff] }
  0x7a   : > { %1746 = vmatpush.bf16.msra.mxu3 %v6797_v18  ;;  %v1526_v27 = vpack.c.b16 %v1525_v25, %v1524_v23  ;;  %v1000_v40 = vunpack.c.l.b16 %v857_v38  ;;  %v6945_v51 = vor.u32 %v8147_v46, %v6942_v48  ;;  %v860_v57 = vpack.c.bf16 %v796_v55, %v796_v55  ;;  %v802_v12 = vld [vmem:[%s8807_s18 + $0x80] sm:$0xff]  ;;  %v803_v13 = vld [vmem:[%s8807_s18 + $0x88] sm:$0xff]  ;;  %v804_v19 = vld [vmem:[%s8807_s18 + $0x90] sm:$0xff] }
  0x7b   : > { %6734 = vmatmul.msk.bf16.vlgmr.msra.gmra.mxu0 %vm1139_vm0, %v1051_v26  ;;  %v8819_v34 = vpack.c.b16 %v998_v33, %v997_v32  ;;  %v1001_v52 = vunpack.c.l.b16 %v858_v49  ;;  %v1002_v53 = vunpack.c.l.b16 %v859_v50  ;;  %v861_v58 = vpack.c.bf16 %v797_v56, %v797_v56  ;;  %v6932_v23 = vld [vmem:[%s12236_s1 + $0xf0] sm:$0xf]  ;;  %v8145_v25 = vld [vmem:[%s12236_s1 + $0xf4] sm:$0xf]  ;;  %v806_v35 = vld [vmem:[%s8807_s18 + $0xa0] sm:$0xff] }
  0x7c   : > { %1971 = vmatpush.bf16.msrb.mxu0 %v6949_v20  ;;  %6762 = vmatmul.msk.bf16.vlgmr.msra.gmra.mxu1 %vm1139_vm0, %v1051_v26  ;;  %v8829_v41 = vpack.c.b16 %v1000_v40, %v999_v39  ;;  %v1003_v59 = vunpack.c.l.b16 %v860_v57  ;;  %v862_v0 = vpack.c.bf16 %v798_v62, %v798_v62  ;;  %v863_v1 = vpack.c.bf16 %v799_v63, %v799_v63  ;;  %v805_v20 = vld [vmem:[%s8807_s18 + $0x98] sm:$0xff]  ;;  %v807_v36 = vld [vmem:[%s8807_s18 + $0xa8] sm:$0xff]  ;;  %v808_v56 = vld [vmem:[%s8807_s18 + $0xb0] sm:$0xff] }
  0x7d   : > { %2120 = vmatpush.bf16.msrb.mxu1 %v6953_v24  ;;  %6838 = vmatmul.msk.bf16.vlgmr.msra.gmra.mxu2 %vm1139_vm0, %v1526_v27  ;;  %v8853_v54 = vpack.c.b16 %v1002_v53, %v1001_v52  ;;  %v1004_v60 = vunpack.c.l.b16 %v861_v58  ;;  %v864_v7 = vpack.c.bf16 %v800_v5, %v800_v5  ;;  %v865_v8 = vpack.c.bf16 %v801_v6, %v801_v6  ;;  %v8146_v24 = vld [vmem:[%s12236_s1 + $0xf4] sm:$0xf0] }
  0x7e   : > { %6866 = vmatmul.msk.bf16.vlgmr.msra.gmra.mxu3 %vm1139_vm0, %v1526_v27  ;;  %v1005_v2 = vunpack.c.l.b16 %v862_v0  ;;  %v1006_v3 = vunpack.c.l.b16 %v863_v1  ;;  %v866_v14 = vpack.c.bf16 %v802_v12, %v802_v12  ;;  %v867_v15 = vpack.c.bf16 %v803_v13, %v803_v13  ;;  %v6934_v27 = vld [vmem:[%s12236_s1 + $0xf8] sm:$0xf0] }
  0x7f   : > { %12292 = vst [vmem:[#allocation4_spill] sm:$0xff] %v8853_v54  ;;  %v8865_v61 = vpack.c.b16 %v1004_v60, %v1003_v59  ;;  %v1007_v9 = vunpack.c.l.b16 %v864_v7  ;;  %v1008_v10 = vunpack.c.l.b16 %v865_v8  ;;  %v868_v21 = vpack.c.bf16 %v804_v19, %v804_v19  ;;  %v809_v57 = vld [vmem:[%s8807_s18 + $0xb8] sm:$0xff] }
  0x80   : > { %1972 = vmatpush.bf16.msrb.mxu0 %v6941_v47  ;;  %v8877_v4 = vpack.c.b16 %v1006_v3, %v1005_v2  ;;  %v1009_v16 = vunpack.c.l.b16 %v866_v14  ;;  %v1010_v17 = vunpack.c.l.b16 %v867_v15  ;;  %v869_v22 = vpack.c.bf16 %v805_v20, %v805_v20  ;;  %v810_v14 = vld [vmem:[%s8807_s18 + $0xc0] sm:$0xff]  ;;  %v811_v15 = vld [vmem:[%s8807_s18 + $0xc8] sm:$0xff] }
  0x81   : > { %2121 = vmatpush.bf16.msrb.mxu1 %v6945_v51  ;;  %12293 = vst [vmem:[#allocation5_spill] sm:$0xff] %v8865_v61  ;;  %v8889_v11 = vpack.c.b16 %v1008_v10, %v1007_v9  ;;  %v1011_v28 = vunpack.c.l.b16 %v868_v21  ;;  %v6937_v30 = vor.u32 %v8145_v25, %v6934_v27  ;;  %v870_v38 = vpack.c.bf16 %v806_v35, %v806_v35 }
  0x82   : > { %v8901_v18 = vpack.c.b16 %v1010_v17, %v1009_v16  ;;  %v1012_v29 = vunpack.c.l.b16 %v869_v22  ;;  %v871_v39 = vpack.c.bf16 %v807_v36, %v807_v36  ;;  %v872_v59 = vpack.c.bf16 %v808_v56, %v808_v56  ;;  %v812_v36 = vld [vmem:[%s8807_s18 + $0xd0] sm:$0xff] }
  0x83   : > { %v1013_v46 = vunpack.c.l.b16 %v870_v38  ;;  %v873_v60 = vpack.c.bf16 %v809_v57, %v809_v57  ;;  %v874_v17 = vpack.c.bf16 %v810_v14, %v810_v14  ;;  %v875_v19 = vpack.c.bf16 %v811_v15, %v811_v15 }
  0x84   : > { %12294 = vst [vmem:[#allocation6_spill] sm:$0xff] %v8901_v18  ;;  %v8925_v31 = vpack.c.b16 %v1012_v29, %v1011_v28  ;;  %v1014_v47 = vunpack.c.l.b16 %v871_v39  ;;  %v1015_v3 = vunpack.c.l.b16 %v872_v59  ;;  %v876_v39 = vpack.c.bf16 %v812_v36, %v812_v36 }
  0x85   : > { %2122 = vmatpush.bf16.msrb.mxu1 %v6937_v30  ;;  %v1016_v5 = vunpack.c.l.b16 %v873_v60  ;;  %v1017_v25 = vunpack.c.l.b16 %v874_v17 }
  0x86   : > { %12295 = vst [vmem:[#allocation7_spill] sm:$0xff] %v8925_v31  ;;  %v8941_v49 = vpack.c.b16 %v1014_v47, %v1013_v46 }
  0x87   : > { %v8961_v7 = vpack.c.b16 %v1016_v5, %v1015_v3  ;;  %v6924_v3 = vld [vmem:[%s12236_s1 + $0xe0] sm:$0xf]  ;;  %v8144_v5 = vld [vmem:[%s12236_s1 + $0xe4] sm:$0xf0] }
  0x8b   : > { %6735 = vmatmul.msk.bf16.gmra.mxu0 %vm1139_vm0, %v8819_v34 }
  0x8c   : > { %6763 = vmatmul.msk.bf16.gmra.mxu1 %vm1139_vm0, %v8819_v34 }
  0x8d   : > { %6839 = vmatmul.msk.bf16.gmra.mxu2 %vm1139_vm0, %v1051_v26 }
  0x8e   : > { %6867 = vmatmul.msk.bf16.gmra.mxu3 %vm1139_vm0, %v1051_v26  ;;  %v6933_v26 = vor.u32 %v8146_v24, %v6932_v23 }
  0x90   : > { %1973 = vmatpush.bf16.msrb.mxu0 %v6933_v26  ;;  %v1018_v26 = vunpack.c.l.b16 %v875_v19 }
  0x92   : > { %v8981_v28 = vpack.c.b16 %v1018_v26, %v1017_v25 }
  0x9b   : > { %6736 = vmatmul.msk.bf16.gmra.mxu0 %vm1139_vm0, %v8829_v41 }
  0x9c   : > { %6764 = vmatmul.msk.bf16.gmra.mxu1 %vm1139_vm0, %v8829_v41 }
  0x9d   : > { %6840 = vmatmul.msk.bf16.gmra.mxu2 %vm1139_vm0, %v8819_v34 }
  0x9e   : > { %6868 = vmatmul.msk.bf16.gmra.mxu3 %vm1139_vm0, %v8819_v34 }
  0xab   : > { %6737 = vmatmul.msk.bf16.gmra.mxu0 %vm1139_vm0, %v8853_v54 }
  0xac   : > { %6765 = vmatmul.msk.bf16.gmra.mxu1 %vm1139_vm0, %v8853_v54 }
  0xad   : > { %6841 = vmatmul.msk.bf16.gmra.mxu2 %vm1139_vm0, %v8829_v41 }
  0xae   : > { %6869 = vmatmul.msk.bf16.gmra.mxu3 %vm1139_vm0, %v8829_v41 }
  0xbb   : > { %6738 = vmatmul.msk.bf16.gmra.mxu0 %vm1139_vm0, %v8865_v61 }
  0xbc   : > { %6766 = vmatmul.msk.bf16.gmra.mxu1 %vm1139_vm0, %v8865_v61 }
  0xbd   : > { %6842 = vmatmul.msk.bf16.gmra.mxu2 %vm1139_vm0, %v8853_v54 }
  0xbe   : > { %6870 = vmatmul.msk.bf16.gmra.mxu3 %vm1139_vm0, %v8853_v54 }
  0xcb   : > { %6739 = vmatmul.msk.bf16.gmra.mxu0 %vm1139_vm0, %v8877_v4 }
  0xcc   : > { %6767 = vmatmul.msk.bf16.gmra.mxu1 %vm1139_vm0, %v8877_v4 }
  0xcd   : > { %6843 = vmatmul.msk.bf16.gmra.mxu2 %vm1139_vm0, %v8865_v61 }
  0xce   : > { %6871 = vmatmul.msk.bf16.gmra.mxu3 %vm1139_vm0, %v8865_v61 }
  0xdb   : > { %6740 = vmatmul.msk.bf16.gmra.mxu0 %vm1139_vm0, %v8889_v11 }
  0xdc   : > { %6768 = vmatmul.msk.bf16.gmra.mxu1 %vm1139_vm0, %v8889_v11 }
  0xdd   : > { %6844 = vmatmul.msk.bf16.gmra.mxu2 %vm1139_vm0, %v8877_v4 }
  0xde   : > { %6872 = vmatmul.msk.bf16.gmra.mxu3 %vm1139_vm0, %v8877_v4 }
  0xeb   : > { %6741 = vmatmul.msk.bf16.gmra.mxu0 %vm1139_vm0, %v8901_v18 }
  0xec   : > { %6769 = vmatmul.msk.bf16.gmra.mxu1 %vm1139_vm0, %v8901_v18 }
  0xed   : > { %6845 = vmatmul.msk.bf16.gmra.mxu2 %vm1139_vm0, %v8889_v11 }
  0xee   : > { %6873 = vmatmul.msk.bf16.gmra.mxu3 %vm1139_vm0, %v8889_v11 }
  0xf8   : > { %v1233_v32 = vpop.f32.mrf.mxu0 }
  0xf9   : > { %v1382_v33 = vpop.f32.mrf.mxu1 }
  0xfb   : > { %6742 = vmatmul.msk.bf16.gmra.mxu0 %vm1139_vm0, %v8925_v31 }
  0xfc   : > { %6770 = vmatmul.msk.bf16.gmra.mxu1 %vm1139_vm0, %v8925_v31 }
  0xfd   : > { %6846 = vmatmul.msk.bf16.gmra.mxu2 %vm1139_vm0, %v8901_v18 }
  0xfe   : > { %6874 = vmatmul.msk.bf16.gmra.mxu3 %vm1139_vm0, %v8901_v18 }
 0x100   : > { %v1599_v37 = vpop.f32.mrf.mxu2  ;;  %v1235_v43 = vpop.f32.mrf.mxu0 }
 0x101   : > { %v8937_v40 = vadd.f32 %v1599_v37, %v1233_v32  ;;  %v1748_v42 = vpop.f32.mrf.mxu3  ;;  %v1384_v45 = vpop.f32.mrf.mxu1  ;;  %v813_v37 = vld [vmem:[%s8807_s18 + $0xd8] sm:$0xff] }
 0x102   : > { %v8939_v44 = vadd.f32 %v1748_v42, %v1382_v33  ;;  %v877_v42 = vpack.c.bf16 %v813_v37, %v813_v37 }
 0x108   : > { %v1601_v48 = vpop.f32.mrf.mxu2  ;;  %v1238_v52 = vpop.f32.mrf.mxu0 }
 0x109   : > { %v8943_v50 = vadd.f32 %v1601_v48, %v1235_v43  ;;  %v1750_v51 = vpop.f32.mrf.mxu3  ;;  %v1387_v55 = vpop.f32.mrf.mxu1 }
 0x10a   : > { %v8945_v53 = vadd.f32 %v1750_v51, %v1384_v45  ;;  %v1019_v51 = vunpack.c.l.b16 %v876_v39  ;;  %v816_v39 = vld [vmem:[%s8807_s18 + $0xf0] sm:$0xff] }
 0x10b   : > { %6743 = vmatmul.msk.bf16.gmra.mxu0 %vm1139_vm0, %v8941_v49 }
 0x10c   : > { %6771 = vmatmul.msk.bf16.gmra.mxu1 %vm1139_vm0, %v8941_v49 }
 0x10d   : > { %6847 = vmatmul.msk.bf16.gmra.mxu2 %vm1139_vm0, %v8925_v31 }
 0x10e   : > { %6875 = vmatmul.msk.bf16.gmra.mxu3 %vm1139_vm0, %v8925_v31 }
 0x110   : > { %v1604_v58 = vpop.f32.mrf.mxu2  ;;  %v1240_v0 = vpop.f32.mrf.mxu0 }
 0x111   : > { %v8957_v62 = vadd.f32 %v1604_v58, %v1238_v52  ;;  %v1753_v63 = vpop.f32.mrf.mxu3  ;;  %v1389_v2 = vpop.f32.mrf.mxu1  ;;  %v1020_v52 = vunpack.c.l.b16 %v877_v42  ;;  %v817_v42 = vld [vmem:[%s8807_s18 + $0xf8] sm:$0xff] }
 0x112   : > { %v8959_v1 = vadd.f32 %v1753_v63, %v1387_v55 }
 0x113   : > { %v9001_v56 = vpack.c.b16 %v1020_v52, %v1019_v51 }
 0x118   : > { %v1606_v6 = vpop.f32.mrf.mxu2  ;;  %v1243_v10 = vpop.f32.mrf.mxu0 }
 0x119   : > { %v8963_v8 = vadd.f32 %v1606_v6, %v1240_v0  ;;  %v1755_v9 = vpop.f32.mrf.mxu3  ;;  %v1392_v13 = vpop.f32.mrf.mxu1  ;;  %v814_v0 = vld [vmem:[%s8807_s18 + $0xe0] sm:$0xff] }
 0x11a   : > { %v8965_v12 = vadd.f32 %v1755_v9, %v1389_v2  ;;  %v815_v2 = vld [vmem:[%s8807_s18 + $0xe8] sm:$0xff]  ;;  %v8143_v6 = vld [vmem:[%s12236_s1 + $0xe4] sm:$0xf]  ;;  %v6925_v9 = vor.u32 %v8144_v5, %v6924_v3  ;;  %v878_v14 = vpack.c.bf16 %v814_v0, %v814_v0 }
 0x11b   : > { %6744 = vmatmul.msk.bf16.gmra.mxu0 %vm1139_vm0, %v8961_v7  ;;  %v879_v15 = vpack.c.bf16 %v815_v2, %v815_v2 }
 0x11c   : > { %6772 = vmatmul.msk.bf16.gmra.mxu1 %vm1139_vm0, %v8961_v7  ;;  %1974 = vmatpush.bf16.msrb.mxu0 %v6925_v9  ;;  %v1021_v25 = vunpack.c.l.b16 %v878_v14  ;;  %v818_v14 = vld [vmem:[%s8807_s18 + $0x100] sm:$0xff] }
 0x11d   : > { %6848 = vmatmul.msk.bf16.gmra.mxu2 %vm1139_vm0, %v8941_v49  ;;  %v1022_v26 = vunpack.c.l.b16 %v879_v15  ;;  %v819_v15 = vld [vmem:[%s8807_s18 + $0x108] sm:$0xff] }
 0x11e   : > { %6876 = vmatmul.msk.bf16.gmra.mxu3 %vm1139_vm0, %v8941_v49 }
 0x120   : > { %v1609_v16 = vpop.f32.mrf.mxu2  ;;  %v1245_v22 = vpop.f32.mrf.mxu0 }
 0x121   : > { %v8977_v20 = vadd.f32 %v1609_v16, %v1243_v10  ;;  %v1758_v21 = vpop.f32.mrf.mxu3  ;;  %v1394_v24 = vpop.f32.mrf.mxu1  ;;  %v6926_v10 = vld [vmem:[%s12236_s1 + $0xe8] sm:$0xf0] }
 0x122   : > { %v8979_v23 = vadd.f32 %v1758_v21, %v1392_v13  ;;  %v6929_v16 = vor.u32 %v8143_v6, %v6926_v10 }
 0x124   : > { %2123 = vmatpush.bf16.msrb.mxu1 %v6929_v16 }
 0x128   : > { %v1611_v27 = vpop.f32.mrf.mxu2  ;;  %v1248_v32 = vpop.f32.mrf.mxu0 }
 0x129   : > { %v8983_v29 = vadd.f32 %v1611_v27, %v1245_v22  ;;  %v1760_v30 = vpop.f32.mrf.mxu3  ;;  %v1397_v35 = vpop.f32.mrf.mxu1 }
 0x12a   : > { %v8985_v33 = vadd.f32 %v1760_v30, %v1394_v24  ;;  %v9033_v30 = vpack.c.b16 %v1022_v26, %v1021_v25 }
 0x12b   : > { %6745 = vmatmul.msk.bf16.gmra.mxu0 %vm1139_vm0, %v8981_v28 }
 0x12c   : > { %6773 = vmatmul.msk.bf16.gmra.mxu1 %vm1139_vm0, %v8981_v28 }
 0x12d   : > { %6849 = vmatmul.msk.bf16.gmra.mxu2 %vm1139_vm0, %v8961_v7 }
 0x12e   : > { %6877 = vmatmul.msk.bf16.gmra.mxu3 %vm1139_vm0, %v8961_v7 }
 0x130   : > { %v1614_v38 = vpop.f32.mrf.mxu2  ;;  %v1250_v46 = vpop.f32.mrf.mxu0 }
 0x131   : > { %v8997_v43 = vadd.f32 %v1614_v38, %v1248_v32  ;;  %v1763_v45 = vpop.f32.mrf.mxu3  ;;  %v1399_v48 = vpop.f32.mrf.mxu1 }
 0x132   : > { %v8999_v47 = vadd.f32 %v1763_v45, %v1397_v35 }
 0x138   : > { %v1616_v55 = vpop.f32.mrf.mxu2  ;;  %v1253_v59 = vpop.f32.mrf.mxu0 }
 0x139   : > { %v9003_v57 = vadd.f32 %v1616_v55, %v1250_v46  ;;  %v1765_v58 = vpop.f32.mrf.mxu3  ;;  %v1402_v63 = vpop.f32.mrf.mxu1  ;;  %v880_v46 = vpack.c.bf16 %v816_v39, %v816_v39 }
 0x13a   : > { %v9005_v60 = vadd.f32 %v1765_v58, %v1399_v48  ;;  %v881_v48 = vpack.c.bf16 %v817_v42, %v817_v42 }
 0x13b   : > { %6746 = vmatmul.msk.bf16.gmra.mxu0 %vm1139_vm0, %v9001_v56 }
 0x13c   : > { %6774 = vmatmul.msk.bf16.gmra.mxu1 %vm1139_vm0, %v9001_v56  ;;  %v1024_v0 = vunpack.c.l.b16 %v881_v48 }
 0x13d   : > { %6850 = vmatmul.msk.bf16.gmra.mxu2 %vm1139_vm0, %v8981_v28 }
 0x13e   : > { %6878 = vmatmul.msk.bf16.gmra.mxu3 %vm1139_vm0, %v8981_v28 }
 0x140   : > { %v1619_v13 = vpop.f32.mrf.mxu2  ;;  %v1255_v21 = vpop.f32.mrf.mxu0 }
 0x141   : > { %v9029_v17 = vadd.f32 %v1619_v13, %v1253_v59  ;;  %v1768_v19 = vpop.f32.mrf.mxu3  ;;  %v1404_v24 = vpop.f32.mrf.mxu1 }
 0x142   : > { %v9031_v22 = vadd.f32 %v1768_v19, %v1402_v63  ;;  %v1023_v63 = vunpack.c.l.b16 %v880_v46  ;;  %v882_v19 = vpack.c.bf16 %v818_v14, %v818_v14 }
 0x144   : > { %v9053_v3 = vpack.c.b16 %v1024_v0, %v1023_v63  ;;  %v821_v63 = vld [vmem:[%s8807_s18 + $0x118] sm:$0xff] }
 0x148   : > { %v1621_v27 = vpop.f32.mrf.mxu2  ;;  %v1258_v36 = vpop.f32.mrf.mxu0 }
 0x149   : > { %v9035_v32 = vadd.f32 %v1621_v27, %v1255_v21  ;;  %v1770_v35 = vpop.f32.mrf.mxu3  ;;  %v1407_v38 = vpop.f32.mrf.mxu1  ;;  %v883_v21 = vpack.c.bf16 %v819_v15, %v819_v15 }
 0x14a   : > { %v9037_v37 = vadd.f32 %v1770_v35, %v1404_v24 }
 0x14b   : > { %6747 = vmatmul.msk.bf16.gmra.mxu0 %vm1139_vm0, %v9033_v30 }
 0x14c   : > { %6775 = vmatmul.msk.bf16.gmra.mxu1 %vm1139_vm0, %v9033_v30 }
 0x14d   : > { %6851 = vmatmul.msk.bf16.gmra.mxu2 %vm1139_vm0, %v9001_v56 }
 0x14e   : > { %6879 = vmatmul.msk.bf16.gmra.mxu3 %vm1139_vm0, %v9001_v56 }
 0x150   : > { %v1624_v45 = vpop.f32.mrf.mxu2  ;;  %v1260_v55 = vpop.f32.mrf.mxu0 }
 0x151   : > { %v9049_v51 = vadd.f32 %v1624_v45, %v1258_v36  ;;  %v1773_v52 = vpop.f32.mrf.mxu3  ;;  %v1409_v59 = vpop.f32.mrf.mxu1  ;;  %v1025_v36 = vunpack.c.l.b16 %v882_v19 }
 0x152   : > { %v9051_v58 = vadd.f32 %v1773_v52, %v1407_v38  ;;  %v1026_v38 = vunpack.c.l.b16 %v883_v21 }
 0x154   : > { %v9073_v42 = vpack.c.b16 %v1026_v38, %v1025_v36 }
 0x158   : > { %v1626_v2 = vpop.f32.mrf.mxu2  ;;  %v1263_v9 = vpop.f32.mrf.mxu0 }
 0x159   : > { %v9055_v5 = vadd.f32 %v1626_v2, %v1260_v55  ;;  %v1775_v6 = vpop.f32.mrf.mxu3  ;;  %v1412_v13 = vpop.f32.mrf.mxu1 }
 0x15a   : > { %v9057_v10 = vadd.f32 %v1775_v6, %v1409_v59  ;;  %v820_v59 = vld [vmem:[%s8807_s18 + $0x110] sm:$0xff]  ;;  %v885_v6 = vpack.c.bf16 %v821_v63, %v821_v63 }
 0x15b   : > { %6748 = vmatmul.msk.bf16.gmra.mxu0 %vm1139_vm0, %v9053_v3  ;;  %v884_v2 = vpack.c.bf16 %v820_v59, %v820_v59 }
 0x15c   : > { %6776 = vmatmul.msk.bf16.gmra.mxu1 %vm1139_vm0, %v9053_v3  ;;  %v1028_v21 = vunpack.c.l.b16 %v885_v6 }
 0x15d   : > { %6852 = vmatmul.msk.bf16.gmra.mxu2 %vm1139_vm0, %v9033_v30  ;;  %v1027_v19 = vunpack.c.l.b16 %v884_v2 }
 0x15e   : > { %6880 = vmatmul.msk.bf16.gmra.mxu3 %vm1139_vm0, %v9033_v30 }
 0x160   : > { %v1629_v16 = vpop.f32.mrf.mxu2  ;;  %v1265_v26 = vpop.f32.mrf.mxu0 }
 0x161   : > { %v9069_v24 = vadd.f32 %v1629_v16, %v1263_v9  ;;  %v1778_v25 = vpop.f32.mrf.mxu3  ;;  %v1414_v35 = vpop.f32.mrf.mxu1 }
 0x162   : > { %v9071_v27 = vadd.f32 %v1778_v25, %v1412_v13 }
 0x168   : > { %v1631_v39 = vpop.f32.mrf.mxu2  ;;  %v1268_v48 = vpop.f32.mrf.mxu0 }
 0x169   : > { %v9075_v45 = vadd.f32 %v1631_v39, %v1265_v26  ;;  %v1780_v46 = vpop.f32.mrf.mxu3  ;;  %v1417_v55 = vpop.f32.mrf.mxu1  ;;  %v9093_v26 = vpack.c.b16 %v1028_v21, %v1027_v19 }
 0x16a   : > { %v9077_v52 = vadd.f32 %v1780_v46, %v1414_v35 }
 0x16b   : > { %12296 = vst [vmem:[#allocation8_spill] sm:$0xff] %v9075_v45  ;;  %6749 = vmatmul.msk.bf16.gmra.mxu0 %vm1139_vm0, %v9073_v42 }
 0x16c   : > { %12297 = vst [vmem:[#allocation9_spill] sm:$0xff] %v9077_v52  ;;  %6777 = vmatmul.msk.bf16.gmra.mxu1 %vm1139_vm0, %v9073_v42 }
 0x16d   : > { %6853 = vmatmul.msk.bf16.gmra.mxu2 %vm1139_vm0, %v9053_v3  ;;  %12300 = vst [vmem:[#allocation12_spill] sm:$0xff] %v9093_v26 }
 0x16e   : > { %6881 = vmatmul.msk.bf16.gmra.mxu3 %vm1139_vm0, %v9053_v3 }
 0x170   : > { %v1634_v0 = vpop.f32.mrf.mxu2  ;;  %v1270_v14 = vpop.f32.mrf.mxu0 }
 0x171   : > { %v9089_v9 = vadd.f32 %v1634_v0, %v1268_v48  ;;  %v1783_v13 = vpop.f32.mrf.mxu3  ;;  %v1419_v16 = vpop.f32.mrf.mxu1  ;;  %v822_v48 = vld [vmem:[%s8807_s18 + $0x120] sm:$0xff] }
 0x172   : > { %v9091_v15 = vadd.f32 %v1783_v13, %v1417_v55  ;;  %v823_v55 = vld [vmem:[%s8807_s18 + $0x128] sm:$0xff]  ;;  %v886_v63 = vpack.c.bf16 %v822_v48, %v822_v48 }
 0x173   : > { %12298 = vst [vmem:[#allocation10_spill] sm:$0xff] %v9089_v9  ;;  %v887_v0 = vpack.c.bf16 %v823_v55, %v823_v55  ;;  %v8142_v55 = vld [vmem:[%s12236_s1 + $0xd4] sm:$0xf0] }
 0x174   : > { %12299 = vst [vmem:[#allocation11_spill] sm:$0xff] %v9091_v15  ;;  %v1029_v19 = vunpack.c.l.b16 %v886_v63 }
 0x175   : > { %v1030_v21 = vunpack.c.l.b16 %v887_v0  ;;  %v6918_v0 = vld [vmem:[%s12236_s1 + $0xd8] sm:$0xf0] }
 0x178   : > { %v1636_v25 = vpop.f32.mrf.mxu2  ;;  %v1273_v38 = vpop.f32.mrf.mxu0 }
 0x179   : > { %v9095_v35 = vadd.f32 %v1636_v25, %v1270_v14  ;;  %v1785_v36 = vpop.f32.mrf.mxu3  ;;  %v1422_v46 = vpop.f32.mrf.mxu1 }
 0x17a   : > { %v9097_v39 = vadd.f32 %v1785_v36, %v1419_v16  ;;  %v9113_v36 = vpack.c.b16 %v1030_v21, %v1029_v19 }
 0x17b   : > { %12301 = vst [vmem:[#allocation13_spill] sm:$0xff] %v9095_v35  ;;  %6750 = vmatmul.msk.bf16.gmra.mxu0 %vm1139_vm0, %v9093_v26 }
 0x17c   : > { %12302 = vst [vmem:[#allocation14_spill] sm:$0xff] %v9097_v39  ;;  %6778 = vmatmul.msk.bf16.gmra.mxu1 %vm1139_vm0, %v9093_v26 }
 0x17d   : > { %6854 = vmatmul.msk.bf16.gmra.mxu2 %vm1139_vm0, %v9073_v42  ;;  %12305 = vst [vmem:[#allocation17_spill] sm:$0xff] %v9113_v36 }
 0x17e   : > { %6882 = vmatmul.msk.bf16.gmra.mxu3 %vm1139_vm0, %v9073_v42 }
 0x180   : > { %v1639_v59 = vpop.f32.mrf.mxu2  ;;  %v1275_v13 = vpop.f32.mrf.mxu0 }
 0x181   : > { %v9109_v2 = vadd.f32 %v1639_v59, %v1273_v38  ;;  %v1788_v6 = vpop.f32.mrf.mxu3  ;;  %v1424_v16 = vpop.f32.mrf.mxu1  ;;  %v8141_v59 = vld [vmem:[%s12236_s1 + $0xd4] sm:$0xf] }
 0x182   : > { %v9111_v14 = vadd.f32 %v1788_v6, %v1422_v46  ;;  %v6916_v46 = vld [vmem:[%s12236_s1 + $0xd0] sm:$0xf] }
 0x183   : > { %12303 = vst [vmem:[#allocation15_spill] sm:$0xff] %v9109_v2  ;;  %v6917_v63 = vor.u32 %v8142_v55, %v6916_v46  ;;  %v824_v6 = vld [vmem:[%s8807_s18 + $0x130] sm:$0xff] }
 0x184   : > { %12304 = vst [vmem:[#allocation16_spill] sm:$0xff] %v9111_v14  ;;  %v888_v19 = vpack.c.bf16 %v824_v6, %v824_v6 }
 0x185   : > { %1975 = vmatpush.bf16.msrb.mxu0 %v6917_v63 }
 0x188   : > { %v1641_v25 = vpop.f32.mrf.mxu2  ;;  %v1278_v15 = vpop.f32.mrf.mxu0 }
 0x189   : > { %v9115_v39 = vadd.f32 %v1641_v25, %v1275_v13  ;;  %v1790_v35 = vpop.f32.mrf.mxu3  ;;  %v1427_v38 = vpop.f32.mrf.mxu1  ;;  %v825_v13 = vld [vmem:[%s8807_s18 + $0x138] sm:$0xff] }
 0x18a   : > { %v9117_v48 = vadd.f32 %v1790_v35, %v1424_v16  ;;  %v6921_v35 = vor.u32 %v8141_v59, %v6918_v0  ;;  %v889_v21 = vpack.c.bf16 %v825_v13, %v825_v13  ;;  %v827_v13 = vld [vmem:[%s8807_s18 + $0x148] sm:$0xff] }
 0x18b   : > { %12306 = vst [vmem:[#allocation18_spill] sm:$0xff] %v9115_v39  ;;  %6751 = vmatmul.msk.bf16.gmra.mxu0 %vm1139_vm0, %v9113_v36 }
 0x18c   : > { %12307 = vst [vmem:[#allocation19_spill] sm:$0xff] %v9117_v48  ;;  %6779 = vmatmul.msk.bf16.gmra.mxu1 %vm1139_vm0, %v9113_v36  ;;  %v1031_v48 = vunpack.c.l.b16 %v888_v19  ;;  %v1032_v39 = vunpack.c.l.b16 %v889_v21 }
 0x18d   : > { %6855 = vmatmul.msk.bf16.gmra.mxu2 %vm1139_vm0, %v9093_v26  ;;  %2124 = vmatpush.bf16.msrb.mxu1 %v6921_v35 }
 0x18e   : > { %6883 = vmatmul.msk.bf16.gmra.mxu3 %vm1139_vm0, %v9093_v26  ;;  %v9145_v2 = vpack.c.b16 %v1032_v39, %v1031_v48  ;;  %v891_v48 = vpack.c.bf16 %v827_v13, %v827_v13  ;;  %v829_v13 = vld [vmem:[%s8807_s18 + $0x158] sm:$0xff] }
 0x190   : > { %v1644_v16 = vpop.f32.mrf.mxu2  ;;  %v1280_v55 = vpop.f32.mrf.mxu0  ;;  %12310 = vst [vmem:[#allocation22_spill] sm:$0xff] %v9145_v2 }
 0x191   : > { %v9141_v25 = vadd.f32 %v1644_v16, %v1278_v15  ;;  %v1793_v46 = vpop.f32.mrf.mxu3  ;;  %v1429_v0 = vpop.f32.mrf.mxu1 }
 0x192   : > { %v9143_v59 = vadd.f32 %v1793_v46, %v1427_v38  ;;  %v826_v38 = vld [vmem:[%s8807_s18 + $0x140] sm:$0xff] }
 0x193   : > { %12308 = vst [vmem:[#allocation20_spill] sm:$0xff] %v9141_v25 }
 0x194   : > { %12309 = vst [vmem:[#allocation21_spill] sm:$0xff] %v9143_v59 }
 0x198   : > { %v1646_v14 = vpop.f32.mrf.mxu2  ;;  %v1283_v35 = vpop.f32.mrf.mxu0 }
 0x199   : > { %v9147_v9 = vadd.f32 %v1646_v14, %v1280_v55  ;;  %v1795_v63 = vpop.f32.mrf.mxu3  ;;  %v1432_v15 = vpop.f32.mrf.mxu1  ;;  %v890_v14 = vpack.c.bf16 %v826_v38, %v826_v38 }
 0x19a   : > { %v9149_v6 = vadd.f32 %v1795_v63, %v1429_v0  ;;  %v1034_v63 = vunpack.c.l.b16 %v891_v48 }
 0x19b   : > { %12311 = vst [vmem:[#allocation23_spill] sm:$0xff] %v9147_v9  ;;  %6752 = vmatmul.msk.bf16.gmra.mxu0 %vm1139_vm0, %v9145_v2  ;;  %v1033_v0 = vunpack.c.l.b16 %v890_v14  ;;  %v893_v14 = vpack.c.bf16 %v829_v13, %v829_v13  ;;  %v831_v13 = vld [vmem:[%s8807_s18 + $0x168] sm:$0xff] }
 0x19c   : > { %12312 = vst [vmem:[#allocation24_spill] sm:$0xff] %v9149_v6  ;;  %6780 = vmatmul.msk.bf16.gmra.mxu1 %vm1139_vm0, %v9145_v2 }
 0x19d   : > { %6856 = vmatmul.msk.bf16.gmra.mxu2 %vm1139_vm0, %v9113_v36  ;;  %v9165_v9 = vpack.c.b16 %v1034_v63, %v1033_v0  ;;  %v1036_v63 = vunpack.c.l.b16 %v893_v14 }
 0x19e   : > { %6884 = vmatmul.msk.bf16.gmra.mxu3 %vm1139_vm0, %v9113_v36 }
 0x19f   : > { %12315 = vst [vmem:[#allocation27_spill] sm:$0xff] %v9165_v9 }
 0x1a0   : > { %v1649_v39 = vpop.f32.mrf.mxu2  ;;  %v1285_v21 = vpop.f32.mrf.mxu0 }
 0x1a1   : > { %v9161_v16 = vadd.f32 %v1649_v39, %v1283_v35  ;;  %v1798_v19 = vpop.f32.mrf.mxu3  ;;  %v1434_v55 = vpop.f32.mrf.mxu1 }
 0x1a2   : > { %v9163_v46 = vadd.f32 %v1798_v19, %v1432_v15  ;;  %v828_v15 = vld [vmem:[%s8807_s18 + $0x150] sm:$0xff] }
 0x1a3   : > { %12313 = vst [vmem:[#allocation25_spill] sm:$0xff] %v9161_v16  ;;  %v892_v39 = vpack.c.bf16 %v828_v15, %v828_v15 }
 0x1a4   : > { %12314 = vst [vmem:[#allocation26_spill] sm:$0xff] %v9163_v46 }
 0x1a5   : > { %v1035_v0 = vunpack.c.l.b16 %v892_v39  ;;  %v895_v39 = vpack.c.bf16 %v831_v13, %v831_v13  ;;  %v833_v13 = vld [vmem:[%s8807_s18 + $0x178] sm:$0xff] }
 0x1a8   : > { %v1651_v6 = vpop.f32.mrf.mxu2  ;;  %v1288_v36 = vpop.f32.mrf.mxu0 }
 0x1a9   : > { %v9167_v59 = vadd.f32 %v1651_v6, %v1285_v21  ;;  %v1800_v25 = vpop.f32.mrf.mxu3  ;;  %v1437_v35 = vpop.f32.mrf.mxu1 }
 0x1aa   : > { %v9169_v38 = vadd.f32 %v1800_v25, %v1434_v55 }
 0x1ab   : > { %12316 = vst [vmem:[#allocation28_spill] sm:$0xff] %v9167_v59  ;;  %6753 = vmatmul.msk.bf16.gmra.mxu0 %vm1139_vm0, %v9165_v9  ;;  %v9185_v59 = vpack.c.b16 %v1036_v63, %v1035_v0  ;;  %v1038_v63 = vunpack.c.l.b16 %v895_v39  ;;  %v7066_v39 = vld [vmem:[%s12236_s1 + $0x178] sm:$0xf0] }
 0x1ac   : > { %12317 = vst [vmem:[#allocation29_spill] sm:$0xff] %v9169_v38  ;;  %6781 = vmatmul.msk.bf16.gmra.mxu1 %vm1139_vm0, %v9165_v9 }
 0x1ad   : > { %6857 = vmatmul.msk.bf16.gmra.mxu2 %vm1139_vm0, %v9145_v2  ;;  %12320 = vst [vmem:[#allocation32_spill] sm:$0xff] %v9185_v59 }
 0x1ae   : > { %6885 = vmatmul.msk.bf16.gmra.mxu3 %vm1139_vm0, %v9145_v2 }
 0x1b0   : > { %v1654_v6 = vpop.f32.mrf.mxu2  ;;  %v1290_v19 = vpop.f32.mrf.mxu0 }
 0x1b1   : > { %v9181_v25 = vadd.f32 %v1654_v6, %v1288_v36  ;;  %v1803_v48 = vpop.f32.mrf.mxu3  ;;  %v1439_v55 = vpop.f32.mrf.mxu1 }
 0x1b2   : > { %v9183_v21 = vadd.f32 %v1803_v48, %v1437_v35  ;;  %v830_v35 = vld [vmem:[%s8807_s18 + $0x160] sm:$0xff] }
 0x1b3   : > { %12318 = vst [vmem:[#allocation30_spill] sm:$0xff] %v9181_v25  ;;  %v894_v6 = vpack.c.bf16 %v830_v35, %v830_v35 }
 0x1b4   : > { %12319 = vst [vmem:[#allocation31_spill] sm:$0xff] %v9183_v21 }
 0x1b5   : > { %v1037_v0 = vunpack.c.l.b16 %v894_v6 }
 0x1b8   : > { %v1656_v38 = vpop.f32.mrf.mxu2  ;;  %v1293_v2 = vpop.f32.mrf.mxu0 }
 0x1b9   : > { %v9187_v46 = vadd.f32 %v1656_v38, %v1290_v19  ;;  %v1805_v16 = vpop.f32.mrf.mxu3  ;;  %v1442_v36 = vpop.f32.mrf.mxu1 }
 0x1ba   : > { %v9189_v15 = vadd.f32 %v1805_v16, %v1439_v55 }
 0x1bb   : > { %12321 = vst [vmem:[#allocation33_spill] sm:$0xff] %v9187_v46  ;;  %6754 = vmatmul.msk.bf16.gmra.mxu0 %vm1139_vm0, %v9185_v59  ;;  %v9205_v46 = vpack.c.b16 %v1038_v63, %v1037_v0 }
 0x1bc   : > { %12322 = vst [vmem:[#allocation34_spill] sm:$0xff] %v9189_v15  ;;  %6782 = vmatmul.msk.bf16.gmra.mxu1 %vm1139_vm0, %v9185_v59 }
 0x1bd   : > { %6858 = vmatmul.msk.bf16.gmra.mxu2 %vm1139_vm0, %v9165_v9  ;;  %12325 = vst [vmem:[#allocation37_spill] sm:$0xff] %v9205_v46 }
 0x1be   : > { %6886 = vmatmul.msk.bf16.gmra.mxu3 %vm1139_vm0, %v9165_v9 }
 0x1c0   : > { %v1659_v38 = vpop.f32.mrf.mxu2  ;;  %v1295_v48 = vpop.f32.mrf.mxu0 }
 0x1c1   : > { %v9201_v16 = vadd.f32 %v1659_v38, %v1293_v2  ;;  %v1808_v14 = vpop.f32.mrf.mxu3  ;;  %v1444_v55 = vpop.f32.mrf.mxu1  ;;  %v8161_v38 = vld [vmem:[%s12236_s1 + $0x174] sm:$0xf] }
 0x1c2   : > { %v9203_v19 = vadd.f32 %v1808_v14, %v1442_v36  ;;  %v832_v36 = vld [vmem:[%s8807_s18 + $0x170] sm:$0xff]  ;;  %v7069_v0 = vor.u32 %v8161_v38, %v7066_v39 }
 0x1c3   : > { %12323 = vst [vmem:[#allocation35_spill] sm:$0xff] %v9201_v16 }
 0x1c4   : > { %12324 = vst [vmem:[#allocation36_spill] sm:$0xff] %v9203_v19  ;;  %2611 = vmatpush.bf16.msrb.mxu3 %v7069_v0 }
 0x1c8   : > { %v1661_v15 = vpop.f32.mrf.mxu2  ;;  %v1298_v9 = vpop.f32.mrf.mxu0 }
 0x1c9   : > { %v9207_v21 = vadd.f32 %v1661_v15, %v1295_v48  ;;  %v1810_v25 = vpop.f32.mrf.mxu3  ;;  %v1447_v2 = vpop.f32.mrf.mxu1  ;;  %v8162_v15 = vld [vmem:[%s12236_s1 + $0x174] sm:$0xf0]  ;;  %v896_v48 = vpack.c.bf16 %v832_v36, %v832_v36 }
 0x1ca   : > { %v9209_v35 = vadd.f32 %v1810_v25, %v1444_v55  ;;  %v7064_v25 = vld [vmem:[%s12236_s1 + $0x170] sm:$0xf]  ;;  %v897_v55 = vpack.c.bf16 %v833_v13, %v833_v13 }
 0x1cb   : > { %12326 = vst [vmem:[#allocation38_spill] sm:$0xff] %v9207_v21  ;;  %6755 = vmatmul.msk.bf16.gmra.mxu0 %vm1139_vm0, %v9205_v46  ;;  %v7065_v6 = vor.u32 %v8162_v15, %v7064_v25  ;;  %v6908_v25 = vld [vmem:[%s12236_s1 + $0xc0] sm:$0xf]  ;;  %v8140_v15 = vld [vmem:[%s12236_s1 + $0xc4] sm:$0xf0] }
 0x1cc   : > { %12327 = vst [vmem:[#allocation39_spill] sm:$0xff] %v9209_v35  ;;  %6783 = vmatmul.msk.bf16.gmra.mxu1 %vm1139_vm0, %v9205_v46  ;;  %v6909_v36 = vor.u32 %v8140_v15, %v6908_v25  ;;  %v1040_v13 = vunpack.c.l.b16 %v897_v55  ;;  %v835_v55 = vld [vmem:[%s8807_s18 + $0x188] sm:$0xff] }
 0x1cd   : > { %6859 = vmatmul.msk.bf16.gmra.mxu2 %vm1139_vm0, %v9185_v59 }
 0x1ce   : > { %6887 = vmatmul.msk.bf16.gmra.mxu3 %vm1139_vm0, %v9185_v59  ;;  %2462 = vmatpush.bf16.msrb.mxu2 %v7065_v6 }
 0x1cf   : > { %1976 = vmatpush.bf16.msrb.mxu0 %v6909_v36 }
 0x1d0   : > { %v1664_v14 = vpop.f32.mrf.mxu2  ;;  %v1300_v21 = vpop.f32.mrf.mxu0 }
 0x1d1   : > { %v9233_v63 = vadd.f32 %v1664_v14, %v1298_v9  ;;  %v1813_v35 = vpop.f32.mrf.mxu3  ;;  %v1449_v16 = vpop.f32.mrf.mxu1  ;;  %v8139_v9 = vld [vmem:[%s12236_s1 + $0xc4] sm:$0xf] }
 0x1d2   : > { %v9235_v19 = vadd.f32 %v1813_v35, %v1447_v2  ;;  %v6910_v35 = vld [vmem:[%s12236_s1 + $0xc8] sm:$0xf0]  ;;  %v1039_v2 = vunpack.c.l.b16 %v896_v48  ;;  %v834_v48 = vld [vmem:[%s8807_s18 + $0x180] sm:$0xff] }
 0x1d3   : > { %12328 = vst [vmem:[#allocation40_spill] sm:$0xff] %v9233_v63  ;;  %v6913_v38 = vor.u32 %v8139_v9, %v6910_v35  ;;  %v898_v15 = vpack.c.bf16 %v834_v48, %v834_v48  ;;  %v899_v9 = vpack.c.bf16 %v835_v55, %v835_v55  ;;  %v837_v55 = vld [vmem:[%s8807_s18 + $0x198] sm:$0xff] }
 0x1d4   : > { %12329 = vst [vmem:[#allocation41_spill] sm:$0xff] %v9235_v19  ;;  %v9249_v39 = vpack.c.b16 %v1040_v13, %v1039_v2 }
 0x1d5   : > { %2125 = vmatpush.bf16.msrb.mxu1 %v6913_v38  ;;  %v1041_v38 = vunpack.c.l.b16 %v898_v15 }
 0x1d6   : > { %12330 = vst [vmem:[#allocation42_spill] sm:$0xff] %v9249_v39 }
 0x1d8   : > { %v1666_v6 = vpop.f32.mrf.mxu2  ;;  %v1303_v19 = vpop.f32.mrf.mxu0 }
 0x1d9   : > { %v9251_v14 = vadd.f32 %v1666_v6, %v1300_v21  ;;  %v1815_v0 = vpop.f32.mrf.mxu3  ;;  %v1452_v25 = vpop.f32.mrf.mxu1  ;;  %v1042_v6 = vunpack.c.l.b16 %v899_v9  ;;  %v901_v9 = vpack.c.bf16 %v837_v55, %v837_v55  ;;  %v839_v55 = vld [vmem:[%s8807_s18 + $0x1a8] sm:$0xff] }
 0x1da   : > { %v9253_v63 = vadd.f32 %v1815_v0, %v1449_v16 }
 0x1db   : > { %12331 = vst [vmem:[#allocation43_spill] sm:$0xff] %v9251_v14  ;;  %6756 = vmatmul.msk.bf16.gmra.mxu0 %vm1139_vm0, %v9249_v39 }
 0x1dc   : > { %12332 = vst [vmem:[#allocation44_spill] sm:$0xff] %v9253_v63  ;;  %6784 = vmatmul.msk.bf16.gmra.mxu1 %vm1139_vm0, %v9249_v39  ;;  %v9269_v63 = vpack.c.b16 %v1042_v6, %v1041_v38 }
 0x1dd   : > { %6860 = vmatmul.msk.bf16.gmra.mxu2 %vm1139_vm0, %v9205_v46 }
 0x1de   : > { %6888 = vmatmul.msk.bf16.gmra.mxu3 %vm1139_vm0, %v9205_v46  ;;  %12335 = vst [vmem:[#allocation47_spill] sm:$0xff] %v9269_v63 }
 0x1e0   : > { %v1669_v21 = vpop.f32.mrf.mxu2  ;;  %v1305_v35 = vpop.f32.mrf.mxu0 }
 0x1e1   : > { %v9265_v16 = vadd.f32 %v1669_v21, %v1303_v19  ;;  %v1818_v36 = vpop.f32.mrf.mxu3  ;;  %v1454_v13 = vpop.f32.mrf.mxu1 }
 0x1e2   : > { %v9267_v2 = vadd.f32 %v1818_v36, %v1452_v25  ;;  %v836_v25 = vld [vmem:[%s8807_s18 + $0x190] sm:$0xff] }
 0x1e3   : > { %12333 = vst [vmem:[#allocation45_spill] sm:$0xff] %v9265_v16  ;;  %v900_v15 = vpack.c.bf16 %v836_v25, %v836_v25 }
 0x1e4   : > { %12334 = vst [vmem:[#allocation46_spill] sm:$0xff] %v9267_v2 }
 0x1e5   : > { %v1043_v6 = vunpack.c.l.b16 %v900_v15  ;;  %v903_v15 = vpack.c.bf16 %v839_v55, %v839_v55 }
 0x1e8   : > { %v1671_v0 = vpop.f32.mrf.mxu2  ;;  %v1308_v59 = vpop.f32.mrf.mxu0 }
 0x1e9   : > { %v9271_v14 = vadd.f32 %v1671_v0, %v1305_v35  ;;  %v1820_v46 = vpop.f32.mrf.mxu3  ;;  %v1457_v19 = vpop.f32.mrf.mxu1  ;;  %v1044_v0 = vunpack.c.l.b16 %v901_v9 }
 0x1ea   : > { %v9273_v48 = vadd.f32 %v1820_v46, %v1454_v13 }
 0x1eb   : > { %12336 = vst [vmem:[#allocation48_spill] sm:$0xff] %v9271_v14  ;;  %6757 = vmatmul.msk.bf16.gmra.mxu0 %vm1139_vm0, %v9269_v63  ;;  %v9289_v14 = vpack.c.b16 %v1044_v0, %v1043_v6  ;;  %v1046_v0 = vunpack.c.l.b16 %v903_v15  ;;  %v7058_v15 = vld [vmem:[%s12236_s1 + $0x168] sm:$0xf0] }
 0x1ec   : > { %12337 = vst [vmem:[#allocation49_spill] sm:$0xff] %v9273_v48  ;;  %6785 = vmatmul.msk.bf16.gmra.mxu1 %vm1139_vm0, %v9269_v63 }
 0x1ed   : > { %6861 = vmatmul.msk.bf16.gmra.mxu2 %vm1139_vm0, %v9249_v39  ;;  %12340 = vst [vmem:[#allocation52_spill] sm:$0xff] %v9289_v14 }
 0x1ee   : > { %6889 = vmatmul.msk.bf16.gmra.mxu3 %vm1139_vm0, %v9249_v39 }
 0x1f0   : > { %v1674_v21 = vpop.f32.mrf.mxu2  ;;  %v1310_v35 = vpop.f32.mrf.mxu0 }
 0x1f1   : > { %v9285_v46 = vadd.f32 %v1674_v21, %v1308_v59  ;;  %v1823_v36 = vpop.f32.mrf.mxu3  ;;  %v1459_v38 = vpop.f32.mrf.mxu1 }
 0x1f2   : > { %v9287_v13 = vadd.f32 %v1823_v36, %v1457_v19  ;;  %v838_v19 = vld [vmem:[%s8807_s18 + $0x1a0] sm:$0xff] }
 0x1f3   : > { %12338 = vst [vmem:[#allocation50_spill] sm:$0xff] %v9285_v46  ;;  %v902_v21 = vpack.c.bf16 %v838_v19, %v838_v19  ;;  %v8160_v19 = vld [vmem:[%s12236_s1 + $0x164] sm:$0xf0]  ;;  %v7032_v46 = vld [vmem:[%s12236_s1 + $0x130] sm:$0xf] }
 0x1f4   : > { %12339 = vst [vmem:[#allocation51_spill] sm:$0xff] %v9287_v13  ;;  %v7056_v13 = vld [vmem:[%s12236_s1 + $0x160] sm:$0xf] }
 0x1f5   : > { %v1045_v6 = vunpack.c.l.b16 %v902_v21  ;;  %v7057_v21 = vor.u32 %v8160_v19, %v7056_v13  ;;  %v8158_v13 = vld [vmem:[%s12236_s1 + $0x154] sm:$0xf0] }
 0x1f6   : > { %v841_v19 = vld [vmem:[%s8807_s18 + $0x1b8] sm:$0xff] }
 0x1f7   : > { %2463 = vmatpush.bf16.msrb.mxu2 %v7057_v21 }
 0x1f8   : > { %v1676_v48 = vpop.f32.mrf.mxu2  ;;  %v1313_v39 = vpop.f32.mrf.mxu0 }
 0x1f9   : > { %v9291_v2 = vadd.f32 %v1676_v48, %v1310_v35  ;;  %v1825_v16 = vpop.f32.mrf.mxu3  ;;  %v1462_v59 = vpop.f32.mrf.mxu1 }
 0x1fa   : > { %v9293_v25 = vadd.f32 %v1825_v16, %v1459_v38 }
 0x1fb   : > { %12341 = vst [vmem:[#allocation53_spill] sm:$0xff] %v9291_v2  ;;  %6758 = vmatmul.msk.bf16.gmra.mxu0 %vm1139_vm0, %v9289_v14  ;;  %v9309_v2 = vpack.c.b16 %v1046_v0, %v1045_v6 }
 0x1fc   : > { %12342 = vst [vmem:[#allocation54_spill] sm:$0xff] %v9293_v25  ;;  %6786 = vmatmul.msk.bf16.gmra.mxu1 %vm1139_vm0, %v9289_v14 }
 0x1fd   : > { %6862 = vmatmul.msk.bf16.gmra.mxu2 %vm1139_vm0, %v9269_v63  ;;  %12345 = vst [vmem:[#allocation57_spill] sm:$0xff] %v9309_v2 }
 0x1fe   : > { %6890 = vmatmul.msk.bf16.gmra.mxu3 %vm1139_vm0, %v9269_v63 }
 0x200   : > { %v1679_v48 = vpop.f32.mrf.mxu2  ;;  %v1315_v36 = vpop.f32.mrf.mxu0 }
 0x201   : > { %v9305_v16 = vadd.f32 %v1679_v48, %v1313_v39  ;;  %v1828_v9 = vpop.f32.mrf.mxu3  ;;  %v1464_v38 = vpop.f32.mrf.mxu1  ;;  %v8159_v39 = vld [vmem:[%s12236_s1 + $0x164] sm:$0xf] }
 0x202   : > { %v9307_v35 = vadd.f32 %v1828_v9, %v1462_v59  ;;  %v7061_v0 = vor.u32 %v8159_v39, %v7058_v15 }
 0x203   : > { %12343 = vst [vmem:[#allocation55_spill] sm:$0xff] %v9305_v16 }
 0x204   : > { %12344 = vst [vmem:[#allocation56_spill] sm:$0xff] %v9307_v35  ;;  %2612 = vmatpush.bf16.msrb.mxu3 %v7061_v0 }
 0x208   : > { %v1681_v25 = vpop.f32.mrf.mxu2  ;;  %v1318_v48 = vpop.f32.mrf.mxu0 }
 0x209   : > { %v9320_v59 = vadd.f32 %v1681_v25, %v1315_v36  ;;  %v1830_v55 = vpop.f32.mrf.mxu3  ;;  %v1467_v6 = vpop.f32.mrf.mxu1  ;;  %v7048_v25 = vld [vmem:[%s12236_s1 + $0x150] sm:$0xf]  ;;  %v8157_v36 = vld [vmem:[%s12236_s1 + $0x154] sm:$0xf] }
 0x20a   : > { %v9325_v9 = vadd.f32 %v1830_v55, %v1464_v38  ;;  %v840_v38 = vld [vmem:[%s8807_s18 + $0x1b0] sm:$0xff]  ;;  %v7049_v39 = vor.u32 %v8158_v13, %v7048_v25  ;;  %v7050_v55 = vld [vmem:[%s12236_s1 + $0x158] sm:$0xf0]  ;;  %v8156_v25 = vld [vmem:[%s12236_s1 + $0x144] sm:$0xf0] }
 0x20b   : > { %12346 = vst [vmem:[#allocation58_spill] sm:$0xff] %v9320_v59  ;;  %6759 = vmatmul.msk.bf16.gmra.mxu0 %vm1139_vm0, %v9309_v2  ;;  %v7053_v21 = vor.u32 %v8157_v36, %v7050_v55  ;;  %v904_v0 = vpack.c.bf16 %v840_v38, %v840_v38  ;;  %v7040_v59 = vld [vmem:[%s12236_s1 + $0x140] sm:$0xf]  ;;  %v8155_v13 = vld [vmem:[%s12236_s1 + $0x144] sm:$0xf] }
 0x20c   : > { %12347 = vst [vmem:[#allocation59_spill] sm:$0xff] %v9325_v9  ;;  %6787 = vmatmul.msk.bf16.gmra.mxu1 %vm1139_vm0, %v9309_v2  ;;  %2464 = vmatpush.bf16.msrb.mxu2 %v7049_v39  ;;  %v905_v9 = vpack.c.bf16 %v841_v19, %v841_v19  ;;  %v7041_v55 = vor.u32 %v8156_v25, %v7040_v59  ;;  %v7042_v38 = vld [vmem:[%s12236_s1 + $0x148] sm:$0xf0]  ;;  %v8153_v59 = vld [vmem:[%s12236_s1 + $0x134] sm:$0xf] }
 0x20d   : > { %6863 = vmatmul.msk.bf16.gmra.mxu2 %vm1139_vm0, %v9289_v14  ;;  %2613 = vmatpush.bf16.msrb.mxu3 %v7053_v21  ;;  %v7045_v16 = vor.u32 %v8155_v13, %v7042_v38  ;;  %v1047_v25 = vunpack.c.l.b16 %v904_v0 }
 0x20e   : > { %6891 = vmatmul.msk.bf16.gmra.mxu3 %vm1139_vm0, %v9289_v14  ;;  %v1048_v13 = vunpack.c.l.b16 %v905_v9 }
 0x210   : > { %v1684_v15 = vpop.f32.mrf.mxu2  ;;  %v1320_v39 = vpop.f32.mrf.mxu0  ;;  %2465 = vmatpush.bf16.msrb.mxu2 %v7041_v55 }
 0x211   : > { %v9358_v35 = vadd.f32 %v1684_v15, %v1318_v48  ;;  %v1833_v36 = vpop.f32.mrf.mxu3  ;;  %v1469_v21 = vpop.f32.mrf.mxu1  ;;  %v8154_v48 = vld [vmem:[%s12236_s1 + $0x134] sm:$0xf0]  ;;  %2614 = vmatpush.bf16.msrb.mxu3 %v7045_v16  ;;  %v8151_v16 = vld [vmem:[%s12236_s1 + $0x124] sm:$0xf] }
 0x212   : > { %v9363_v19 = vadd.f32 %v1833_v36, %v1467_v6  ;;  %v7033_v15 = vor.u32 %v8154_v48, %v7032_v46  ;;  %v7034_v6 = vld [vmem:[%s12236_s1 + $0x138] sm:$0xf0]  ;;  %v8152_v46 = vld [vmem:[%s12236_s1 + $0x124] sm:$0xf0] }
 0x213   : > { %12348 = vst [vmem:[#allocation60_spill] sm:$0xff] %v9358_v35  ;;  %v7037_v36 = vor.u32 %v8153_v59, %v7034_v6  ;;  %v7024_v35 = vld [vmem:[%s12236_s1 + $0x120] sm:$0xf]  ;;  %v7026_v59 = vld [vmem:[%s12236_s1 + $0x128] sm:$0xf0] }
 0x214   : > { %12349 = vst [vmem:[#allocation61_spill] sm:$0xff] %v9363_v19  ;;  %2466 = vmatpush.bf16.msrb.mxu2 %v7033_v15  ;;  %v9377_v19 = vpack.c.b16 %v1048_v13, %v1047_v25  ;;  %v7025_v48 = vor.u32 %v8152_v46, %v7024_v35  ;;  %v7029_v25 = vor.u32 %v8151_v16, %v7026_v59  ;;  %v842_v35 = vld [vmem:[%s8807_s18 + $0x1c0] sm:$0xff]  ;;  %v8174_v13 = vld [vmem:[%s12236_s1 + $0x1d4] sm:$0xf0]  ;;  %v7182_v46 = vld [vmem:[%s12236_s1 + $0x1d8] sm:$0xf0] }
 0x215   : > { %2615 = vmatpush.bf16.msrb.mxu3 %v7037_v36  ;;  %v8173_v36 = vld [vmem:[%s12236_s1 + $0x1d4] sm:$0xf] }
 0x216   : > { %12350 = vst [vmem:[#allocation62_spill] sm:$0xff] %v9377_v19  ;;  %v7185_v59 = vor.u32 %v8173_v36, %v7182_v46 }
 0x218   : > { %v1686_v38 = vpop.f32.mrf.mxu2  ;;  %v1323_v55 = vpop.f32.mrf.mxu0  ;;  %2467 = vmatpush.bf16.msrb.mxu2 %v7025_v48  ;;  %3102 = vmatpush.bf16.msra.mxu1 %v7185_v59 }
 0x219   : > { %v9388_v9 = vadd.f32 %v1686_v38, %v1320_v39  ;;  %v1835_v0 = vpop.f32.mrf.mxu3  ;;  %v1472_v6 = vpop.f32.mrf.mxu1  ;;  %2616 = vmatpush.bf16.msrb.mxu3 %v7029_v25  ;;  %v843_v39 = vld [vmem:[%s8807_s18 + $0x1c8] sm:$0xff] }
 0x21a   : > { %v9393_v15 = vadd.f32 %v1835_v0, %v1469_v21  ;;  %v7180_v21 = vld [vmem:[%s12236_s1 + $0x1d0] sm:$0xf]  ;;  %v906_v0 = vpack.c.bf16 %v842_v35, %v842_v35  ;;  %v907_v48 = vpack.c.bf16 %v843_v39, %v843_v39 }
 0x21b   : > { %12351 = vst [vmem:[#allocation63_spill] sm:$0xff] %v9388_v9  ;;  %6760 = vmatmul.msk.bf16.gmra.mxu0 %vm1139_vm0, %v9377_v19  ;;  %v7181_v38 = vor.u32 %v8174_v13, %v7180_v21 }
 0x21c   : > { %12352 = vst [vmem:[#allocation64_spill] sm:$0xff] %v9393_v15  ;;  %6788 = vmatmul.msk.bf16.gmra.mxu1 %vm1139_vm0, %v9377_v19  ;;  %v1049_v63 = vunpack.c.l.b16 %v906_v0  ;;  %v1050_v52 = vunpack.c.l.b16 %v907_v48 }
 0x21d   : > { %6864 = vmatmul.msk.bf16.gmra.mxu2 %vm1139_vm0, %v9309_v2  ;;  %2953 = vmatpush.bf16.msra.mxu0 %v7181_v38 }
 0x21e   : > { %6892 = vmatmul.msk.bf16.gmra.mxu3 %vm1139_vm0, %v9309_v2  ;;  %v9421_v13 = vpack.c.b16 %v1050_v52, %v1049_v63 }
 0x220   : > { %v1689_v16 = vpop.f32.mrf.mxu2  ;;  %v1325_v9 = vpop.f32.mrf.mxu0 }
 0x221   : > { %v9417_v25 = vadd.f32 %v1689_v16, %v1323_v55  ;;  %v1838_v15 = vpop.f32.mrf.mxu3  ;;  %v1474_v14 = vpop.f32.mrf.mxu1 }
 0x222   : > { %v9419_v2 = vadd.f32 %v1838_v15, %v1472_v6 }
 0x228   : > { %v1691_v21 = vpop.f32.mrf.mxu2  ;;  %v1328_v35 = vpop.f32.mrf.mxu0 }
 0x229   : > { %v9423_v45 = vadd.f32 %v1691_v21, %v1325_v9  ;;  %v1840_v26 = vpop.f32.mrf.mxu3  ;;  %v1477_v55 = vpop.f32.mrf.mxu1 }
 0x22a   : > { %v9425_v39 = vadd.f32 %v1840_v26, %v1474_v14 }
 0x22b   : > { %6761 = vmatmul.msk.bf16.gmra.mxu0 %vm1139_vm0, %v9421_v13 }
 0x22c   : > { %6789 = vmatmul.msk.bf16.gmra.mxu1 %vm1139_vm0, %v9421_v13 }
 0x22d   : > { %6865 = vmatmul.msk.bf16.gmra.mxu2 %vm1139_vm0, %v9377_v19 }
 0x22e   : > { %6893 = vmatmul.msk.bf16.gmra.mxu3 %vm1139_vm0, %v9377_v19 }
 0x230   : > { %v1694_v52 = vpop.f32.mrf.mxu2  ;;  %v1330_v15 = vpop.f32.mrf.mxu0 }
 0x231   : > { %v9435_v63 = vadd.f32 %v1694_v52, %v1328_v35  ;;  %v1843_v9 = vpop.f32.mrf.mxu3  ;;  %v1479_v14 = vpop.f32.mrf.mxu1 }
 0x232   : > { %v9437_v26 = vadd.f32 %v1843_v9, %v1477_v55 }
 0x238   : > { %v1696_v6 = vpop.f32.mrf.mxu2  ;;  %v1333_v46 = vpop.f32.mrf.mxu0 }
 0x239   : > { %v9439_v36 = vadd.f32 %v1696_v6, %v1330_v15  ;;  %v1845_v38 = vpop.f32.mrf.mxu3  ;;  %v1482_v0 = vpop.f32.mrf.mxu1 }
 0x23a   : > { %v9441_v16 = vadd.f32 %v1845_v38, %v1479_v14 }
 0x23b   : > { %6954 = vmatmul.msk.bf16.vlgmr.msrb.gmra.mxu0 %vm1139_vm0, %v8819_v34 }
 0x23c   : > { %6982 = vmatmul.msk.bf16.vlgmr.msrb.gmra.mxu1 %vm1139_vm0, %v8819_v34 }
 0x23d   : > { %7070 = vmatmul.msk.bf16.vlgmr.msrb.gmra.mxu2 %vm1139_vm0, %v8829_v41 }
 0x23e   : > { %7098 = vmatmul.msk.bf16.vlgmr.msrb.gmra.mxu3 %vm1139_vm0, %v8829_v41 }
 0x240   : > { %v1699_v48 = vpop.f32.mrf.mxu2  ;;  %v1335_v35 = vpop.f32.mrf.mxu0 }
 0x241   : > { %v9451_v59 = vadd.f32 %v1699_v48, %v1333_v46  ;;  %v1848_v21 = vpop.f32.mrf.mxu3  ;;  %v1484_v52 = vpop.f32.mrf.mxu1 }
 0x242   : > { %v9453_v55 = vadd.f32 %v1848_v21, %v1482_v0 }
 0x244   : > { %12353 = vst [vmem:[#allocation65_spill] sm:$0xff] %v9453_v55 }
 0x248   : > { %v1701_v9 = vpop.f32.mrf.mxu2  ;;  %v1338_v6 = vpop.f32.mrf.mxu0 }
 0x249   : > { %v9455_v15 = vadd.f32 %v1701_v9, %v1335_v35  ;;  %v1850_v14 = vpop.f32.mrf.mxu3  ;;  %v1487_v38 = vpop.f32.mrf.mxu1 }
 0x24a   : > { %v9457_v34 = vadd.f32 %v1850_v14, %v1484_v52 }
 0x24b   : > { %12354 = vst [vmem:[#allocation66_spill] sm:$0xff] %v9455_v15  ;;  %6955 = vmatmul.msk.bf16.gmra.mxu0 %vm1139_vm0, %v8829_v41 }
 0x24c   : > { %12355 = vst [vmem:[#allocation67_spill] sm:$0xff] %v9457_v34  ;;  %6983 = vmatmul.msk.bf16.gmra.mxu1 %vm1139_vm0, %v8829_v41 }
 0x24d   : > { %7071 = vmatmul.msk.bf16.gmra.mxu2 %vm1139_vm0, %v8853_v54 }
 0x24e   : > { %7099 = vmatmul.msk.bf16.gmra.mxu3 %vm1139_vm0, %v8853_v54 }
 0x250   : > { %v1704_v46 = vpop.f32.mrf.mxu2  ;;  %v1340_v21 = vpop.f32.mrf.mxu0 }
 0x251   : > { %v9467_v0 = vadd.f32 %v1704_v46, %v1338_v6  ;;  %v1853_v48 = vpop.f32.mrf.mxu3  ;;  %v1489_v52 = vpop.f32.mrf.mxu1 }
 0x252   : > { %v9469_v35 = vadd.f32 %v1853_v48, %v1487_v38 }
 0x253   : > { %12356 = vst [vmem:[#allocation68_spill] sm:$0xff] %v9467_v0 }
 0x254   : > { %12357 = vst [vmem:[#allocation69_spill] sm:$0xff] %v9469_v35 }
 0x258   : > { %v1706_v9 = vpop.f32.mrf.mxu2  ;;  %v1343_v15 = vpop.f32.mrf.mxu0 }
 0x259   : > { %v9471_v14 = vadd.f32 %v1706_v9, %v1340_v21  ;;  %v1855_v34 = vpop.f32.mrf.mxu3  ;;  %v1492_v55 = vpop.f32.mrf.mxu1 }
 0x25a   : > { %v9473_v41 = vadd.f32 %v1855_v34, %v1489_v52 }
 0x25b   : > { %12358 = vst [vmem:[#allocation70_spill] sm:$0xff] %v9471_v14  ;;  %6956 = vmatmul.msk.bf16.gmra.mxu0 %vm1139_vm0, %v8853_v54 }
 0x25c   : > { %12359 = vst [vmem:[#allocation71_spill] sm:$0xff] %v9473_v41  ;;  %6984 = vmatmul.msk.bf16.gmra.mxu1 %vm1139_vm0, %v8853_v54  ;;  %v7172_v54 = vld [vmem:[%s12236_s1 + $0x1c0] sm:$0xf] }
 0x25d   : > { %7072 = vmatmul.msk.bf16.gmra.mxu2 %vm1139_vm0, %v8865_v61 }
 0x25e   : > { %7100 = vmatmul.msk.bf16.gmra.mxu3 %vm1139_vm0, %v8865_v61 }
 0x260   : > { %v1709_v6 = vpop.f32.mrf.mxu2  ;;  %v1345_v48 = vpop.f32.mrf.mxu0 }
 0x261   : > { %v9483_v38 = vadd.f32 %v1709_v6, %v1343_v15  ;;  %v1858_v46 = vpop.f32.mrf.mxu3  ;;  %v1494_v21 = vpop.f32.mrf.mxu1  ;;  %v8172_v15 = vld [vmem:[%s12236_s1 + $0x1c4] sm:$0xf0] }
 0x262   : > { %v9485_v34 = vadd.f32 %v1858_v46, %v1492_v55  ;;  %v8171_v55 = vld [vmem:[%s12236_s1 + $0x1c4] sm:$0xf]  ;;  %v7173_v6 = vor.u32 %v8172_v15, %v7172_v54  ;;  %v7174_v46 = vld [vmem:[%s12236_s1 + $0x1c8] sm:$0xf0] }
 0x263   : > { %12360 = vst [vmem:[#allocation72_spill] sm:$0xff] %v9483_v38 }
 0x264   : > { %12361 = vst [vmem:[#allocation73_spill] sm:$0xff] %v9485_v34  ;;  %2954 = vmatpush.bf16.msra.mxu0 %v7173_v6 }
 0x268   : > { %v1711_v52 = vpop.f32.mrf.mxu2  ;;  %v1348_v14 = vpop.f32.mrf.mxu0 }
 0x269   : > { %v9487_v9 = vadd.f32 %v1711_v52, %v1345_v48  ;;  %v1860_v41 = vpop.f32.mrf.mxu3  ;;  %v1497_v0 = vpop.f32.mrf.mxu1 }
 0x26a   : > { %v9489_v35 = vadd.f32 %v1860_v41, %v1494_v21  ;;  %v7177_v41 = vor.u32 %v8171_v55, %v7174_v46 }
 0x26b   : > { %12362 = vst [vmem:[#allocation74_spill] sm:$0xff] %v9487_v9  ;;  %6957 = vmatmul.msk.bf16.gmra.mxu0 %vm1139_vm0, %v8865_v61 }
 0x26c   : > { %12363 = vst [vmem:[#allocation75_spill] sm:$0xff] %v9489_v35  ;;  %6985 = vmatmul.msk.bf16.gmra.mxu1 %vm1139_vm0, %v8865_v61 }
 0x26d   : > { %7073 = vmatmul.msk.bf16.gmra.mxu2 %vm1139_vm0, %v8877_v4  ;;  %3103 = vmatpush.bf16.msra.mxu1 %v7177_v41 }
 0x26e   : > { %7101 = vmatmul.msk.bf16.gmra.mxu3 %vm1139_vm0, %v8877_v4 }
 0x270   : > { %v1714_v54 = vpop.f32.mrf.mxu2  ;;  %v1350_v52 = vpop.f32.mrf.mxu0 }
 0x271   : > { %v9511_v48 = vadd.f32 %v1714_v54, %v1348_v14  ;;  %v1863_v21 = vpop.f32.mrf.mxu3  ;;  %v1499_v35 = vpop.f32.mrf.mxu1 }
 0x272   : > { %v9513_v15 = vadd.f32 %v1863_v21, %v1497_v0 }
 0x278   : > { %v1716_v55 = vpop.f32.mrf.mxu2  ;;  %v1353_v34 = vpop.f32.mrf.mxu0 }
 0x279   : > { %v9515_v46 = vadd.f32 %v1716_v55, %v1350_v52  ;;  %v1865_v9 = vpop.f32.mrf.mxu3  ;;  %v1502_v61 = vpop.f32.mrf.mxu1 }
 0x27a   : > { %v9517_v38 = vadd.f32 %v1865_v9, %v1499_v35 }
 0x27b   : > { %12364 = vst [vmem:[#allocation76_spill] sm:$0xff] %v9515_v46  ;;  %6958 = vmatmul.msk.bf16.gmra.mxu0 %vm1139_vm0, %v8877_v4 }
 0x27c   : > { %12365 = vst [vmem:[#allocation77_spill] sm:$0xff] %v9517_v38  ;;  %6986 = vmatmul.msk.bf16.gmra.mxu1 %vm1139_vm0, %v8877_v4 }
 0x27d   : > { %7074 = vmatmul.msk.bf16.gmra.mxu2 %vm1139_vm0, %v8889_v11 }
 0x27e   : > { %7102 = vmatmul.msk.bf16.gmra.mxu3 %vm1139_vm0, %v8889_v11 }
 0x280   : > { %v1719_v0 = vpop.f32.mrf.mxu2  ;;  %v1355_v41 = vpop.f32.mrf.mxu0 }
 0x281   : > { %v9527_v14 = vadd.f32 %v1719_v0, %v1353_v34  ;;  %v1868_v6 = vpop.f32.mrf.mxu3  ;;  %v1504_v9 = vpop.f32.mrf.mxu1 }
 0x282   : > { %v9529_v35 = vadd.f32 %v1868_v6, %v1502_v61 }
 0x283   : > { %12366 = vst [vmem:[#allocation78_spill] sm:$0xff] %v9527_v14 }
 0x284   : > { %12367 = vst [vmem:[#allocation79_spill] sm:$0xff] %v9529_v35 }
 0x288   : > { %v1721_v54 = vpop.f32.mrf.mxu2  ;;  %v1358_v55 = vpop.f32.mrf.mxu0 }
 0x289   : > { %v9531_v21 = vadd.f32 %v1721_v54, %v1355_v41  ;;  %v1870_v52 = vpop.f32.mrf.mxu3  ;;  %v1507_v46 = vpop.f32.mrf.mxu1 }
 0x28a   : > { %v9533_v38 = vadd.f32 %v1870_v52, %v1504_v9 }
 0x28b   : > { %12368 = vst [vmem:[#allocation80_spill] sm:$0xff] %v9531_v21  ;;  %6959 = vmatmul.msk.bf16.gmra.mxu0 %vm1139_vm0, %v8889_v11 }
 0x28c   : > { %12369 = vst [vmem:[#allocation81_spill] sm:$0xff] %v9533_v38  ;;  %6987 = vmatmul.msk.bf16.gmra.mxu1 %vm1139_vm0, %v8889_v11 }
 0x28d   : > { %7075 = vmatmul.msk.bf16.gmra.mxu2 %vm1139_vm0, %v8901_v18 }
 0x28e   : > { %7103 = vmatmul.msk.bf16.gmra.mxu3 %vm1139_vm0, %v8901_v18 }
 0x290   : > { %v1724_v61 = vpop.f32.mrf.mxu2  ;;  %v1360_v6 = vpop.f32.mrf.mxu0 }
 0x291   : > { %v9543_v34 = vadd.f32 %v1724_v61, %v1358_v55  ;;  %v1873_v0 = vpop.f32.mrf.mxu3  ;;  %v1509_v9 = vpop.f32.mrf.mxu1 }
 0x292   : > { %v9545_v41 = vadd.f32 %v1873_v0, %v1507_v46 }
 0x293   : > { %12370 = vst [vmem:[#allocation82_spill] sm:$0xff] %v9543_v34 }
 0x294   : > { %12371 = vst [vmem:[#allocation83_spill] sm:$0xff] %v9545_v41 }
 0x298   : > { %v1726_v54 = vpop.f32.mrf.mxu2  ;;  %v1363_v21 = vpop.f32.mrf.mxu0 }
 0x299   : > { %v9547_v52 = vadd.f32 %v1726_v54, %v1360_v6  ;;  %v1875_v38 = vpop.f32.mrf.mxu3  ;;  %v1512_v14 = vpop.f32.mrf.mxu1 }
 0x29a   : > { %v9549_v35 = vadd.f32 %v1875_v38, %v1509_v9 }
 0x29b   : > { %12372 = vst [vmem:[#allocation84_spill] sm:$0xff] %v9547_v52  ;;  %6960 = vmatmul.msk.bf16.gmra.mxu0 %vm1139_vm0, %v8901_v18 }
 0x29c   : > { %12373 = vst [vmem:[#allocation85_spill] sm:$0xff] %v9549_v35  ;;  %6988 = vmatmul.msk.bf16.gmra.mxu1 %vm1139_vm0, %v8901_v18 }
 0x29d   : > { %7076 = vmatmul.msk.bf16.gmra.mxu2 %vm1139_vm0, %v8925_v31 }
 0x29e   : > { %7104 = vmatmul.msk.bf16.gmra.mxu3 %vm1139_vm0, %v8925_v31 }
 0x2a0   : > { %v1729_v46 = vpop.f32.mrf.mxu2  ;;  %v1365_v0 = vpop.f32.mrf.mxu0 }
 0x2a1   : > { %v9559_v55 = vadd.f32 %v1729_v46, %v1363_v21  ;;  %v1878_v61 = vpop.f32.mrf.mxu3  ;;  %v1514_v6 = vpop.f32.mrf.mxu1 }
 0x2a2   : > { %v9561_v38 = vadd.f32 %v1878_v61, %v1512_v14 }
 0x2a3   : > { %12374 = vst [vmem:[#allocation86_spill] sm:$0xff] %v9559_v55 }
 0x2a4   : > { %12375 = vst [vmem:[#allocation87_spill] sm:$0xff] %v9561_v38 }
 0x2a8   : > { %v1731_v9 = vpop.f32.mrf.mxu2  ;;  %v1368_v52 = vpop.f32.mrf.mxu0 }
 0x2a9   : > { %v9563_v54 = vadd.f32 %v1731_v9, %v1365_v0  ;;  %v1880_v35 = vpop.f32.mrf.mxu3  ;;  %v1517_v34 = vpop.f32.mrf.mxu1  ;;  %v8170_v9 = vld [vmem:[%s12236_s1 + $0x1b4] sm:$0xf0] }
 0x2aa   : > { %v9565_v41 = vadd.f32 %v1880_v35, %v1514_v6  ;;  %v7164_v6 = vld [vmem:[%s12236_s1 + $0x1b0] sm:$0xf] }
 0x2ab   : > { %12376 = vst [vmem:[#allocation88_spill] sm:$0xff] %v9563_v54  ;;  %6961 = vmatmul.msk.bf16.gmra.mxu0 %vm1139_vm0, %v8925_v31  ;;  %v7165_v54 = vor.u32 %v8170_v9, %v7164_v6 }
 0x2ac   : > { %12377 = vst [vmem:[#allocation89_spill] sm:$0xff] %v9565_v41  ;;  %6989 = vmatmul.msk.bf16.gmra.mxu1 %vm1139_vm0, %v8925_v31  ;;  %v8169_v41 = vld [vmem:[%s12236_s1 + $0x1b4] sm:$0xf] }
 0x2ad   : > { %7077 = vmatmul.msk.bf16.gmra.mxu2 %vm1139_vm0, %v8941_v49  ;;  %2955 = vmatpush.bf16.msra.mxu0 %v7165_v54 }
 0x2ae   : > { %7105 = vmatmul.msk.bf16.gmra.mxu3 %vm1139_vm0, %v8941_v49 }
 0x2b0   : > { %v1734_v14 = vpop.f32.mrf.mxu2  ;;  %v1370_v61 = vpop.f32.mrf.mxu0 }
 0x2b1   : > { %v9575_v21 = vadd.f32 %v1734_v14, %v1368_v52  ;;  %v1883_v46 = vpop.f32.mrf.mxu3  ;;  %v1519_v0 = vpop.f32.mrf.mxu1  ;;  %v7166_v52 = vld [vmem:[%s12236_s1 + $0x1b8] sm:$0xf0] }
 0x2b2   : > { %v9577_v35 = vadd.f32 %v1883_v46, %v1517_v34  ;;  %v7169_v34 = vor.u32 %v8169_v41, %v7166_v52 }
 0x2b3   : > { %12378 = vst [vmem:[#allocation90_spill] sm:$0xff] %v9575_v21 }
 0x2b4   : > { %12379 = vst [vmem:[#allocation91_spill] sm:$0xff] %v9577_v35  ;;  %3104 = vmatpush.bf16.msra.mxu1 %v7169_v34 }
 0x2b8   : > { %v1736_v14 = vpop.f32.mrf.mxu2  ;;  %v1978_v21 = vpop.f32.mrf.mxu0 }
 0x2b9   : > { %v9591_v46 = vadd.f32 %v1736_v14, %v1370_v61  ;;  %v1885_v35 = vpop.f32.mrf.mxu3  ;;  %v2267_v55 = vadd.f32 %v1978_v21, %v8937_v40  ;;  %v2127_v31 = vpop.f32.mrf.mxu1 }
 0x2ba   : > { %v9593_v38 = vadd.f32 %v1885_v35, %v1519_v0  ;;  %v2268_v18 = vadd.f32 %v2127_v31, %v8939_v44 }
 0x2bb   : > { %6962 = vmatmul.msk.bf16.gmra.mxu0 %vm1139_vm0, %v8941_v49 }
 0x2bc   : > { %6990 = vmatmul.msk.bf16.gmra.mxu1 %vm1139_vm0, %v8941_v49 }
 0x2bd   : > { %7078 = vmatmul.msk.bf16.gmra.mxu2 %vm1139_vm0, %v8961_v7 }
 0x2be   : > { %7106 = vmatmul.msk.bf16.gmra.mxu3 %vm1139_vm0, %v8961_v7 }
 0x2c0   : > { %v2469_v41 = vpop.f32.mrf.mxu2  ;;  %v1980_v40 = vpop.f32.mrf.mxu0 }
 0x2c1   : > { %v9605_v54 = vadd.f32 %v2469_v41, %v2267_v55  ;;  %v2618_v61 = vpop.f32.mrf.mxu3  ;;  %v2269_v31 = vadd.f32 %v1980_v40, %v8943_v50  ;;  %v2129_v44 = vpop.f32.mrf.mxu1 }
 0x2c2   : > { %v9607_v21 = vadd.f32 %v2618_v61, %v2268_v18  ;;  %v2270_v35 = vadd.f32 %v2129_v44, %v8945_v53 }
 0x2c8   : > { %v2471_v0 = vpop.f32.mrf.mxu2  ;;  %v1983_v52 = vpop.f32.mrf.mxu0 }
 0x2c9   : > { %v9611_v6 = vadd.f32 %v2471_v0, %v2269_v31  ;;  %v2620_v9 = vpop.f32.mrf.mxu3  ;;  %v2271_v14 = vadd.f32 %v1983_v52, %v8957_v62  ;;  %v2132_v55 = vpop.f32.mrf.mxu1 }
 0x2ca   : > { %v9613_v34 = vadd.f32 %v2620_v9, %v2270_v35  ;;  %v2272_v41 = vadd.f32 %v2132_v55, %v8959_v1 }
 0x2cb   : > { %6963 = vmatmul.msk.bf16.gmra.mxu0 %vm1139_vm0, %v8961_v7 }
 0x2cc   : > { %6991 = vmatmul.msk.bf16.gmra.mxu1 %vm1139_vm0, %v8961_v7 }
 0x2cd   : > { %7079 = vmatmul.msk.bf16.gmra.mxu2 %vm1139_vm0, %v8981_v28 }
 0x2ce   : > { %7107 = vmatmul.msk.bf16.gmra.mxu3 %vm1139_vm0, %v8981_v28 }
 0x2d0   : > { %v2474_v18 = vpop.f32.mrf.mxu2  ;;  %v1985_v62 = vpop.f32.mrf.mxu0 }
 0x2d1   : > { %v9625_v50 = vadd.f32 %v2474_v18, %v2271_v14  ;;  %v2623_v53 = vpop.f32.mrf.mxu3  ;;  %v2273_v1 = vadd.f32 %v1985_v62, %v8963_v8  ;;  %v2134_v40 = vpop.f32.mrf.mxu1 }
 0x2d2   : > { %v9627_v61 = vadd.f32 %v2623_v53, %v2272_v41  ;;  %v2274_v31 = vadd.f32 %v2134_v40, %v8965_v12 }
 0x2d8   : > { %v2476_v44 = vpop.f32.mrf.mxu2  ;;  %v1988_v9 = vpop.f32.mrf.mxu0 }
 0x2d9   : > { %v9631_v35 = vadd.f32 %v2476_v44, %v2273_v1  ;;  %v2625_v0 = vpop.f32.mrf.mxu3  ;;  %v2275_v55 = vadd.f32 %v1988_v9, %v8977_v20  ;;  %v2137_v14 = vpop.f32.mrf.mxu1 }
 0x2da   : > { %v9633_v52 = vadd.f32 %v2625_v0, %v2274_v31  ;;  %v2276_v18 = vadd.f32 %v2137_v14, %v8979_v23 }
 0x2db   : > { %6964 = vmatmul.msk.bf16.gmra.mxu0 %vm1139_vm0, %v8981_v28 }
 0x2dc   : > { %6992 = vmatmul.msk.bf16.gmra.mxu1 %vm1139_vm0, %v8981_v28 }
 0x2dd   : > { %7080 = vmatmul.msk.bf16.gmra.mxu2 %vm1139_vm0, %v9001_v56 }
 0x2de   : > { %7108 = vmatmul.msk.bf16.gmra.mxu3 %vm1139_vm0, %v9001_v56 }
 0x2e0   : > { %v2479_v8 = vpop.f32.mrf.mxu2  ;;  %v1990_v20 = vpop.f32.mrf.mxu0 }
 0x2e1   : > { %v9645_v12 = vadd.f32 %v2479_v8, %v2275_v55  ;;  %v2628_v41 = vpop.f32.mrf.mxu3  ;;  %v2277_v23 = vadd.f32 %v1990_v20, %v8983_v29  ;;  %v2139_v62 = vpop.f32.mrf.mxu1 }
 0x2e2   : > { %v9647_v53 = vadd.f32 %v2628_v41, %v2276_v18  ;;  %v2278_v1 = vadd.f32 %v2139_v62, %v8985_v33 }
 0x2e8   : > { %v2481_v40 = vpop.f32.mrf.mxu2  ;;  %v1993_v0 = vpop.f32.mrf.mxu0 }
 0x2e9   : > { %v9651_v31 = vadd.f32 %v2481_v40, %v2277_v23  ;;  %v2630_v44 = vpop.f32.mrf.mxu3  ;;  %v2279_v14 = vadd.f32 %v1993_v0, %v8997_v43  ;;  %v2142_v55 = vpop.f32.mrf.mxu1 }
 0x2ea   : > { %v9653_v9 = vadd.f32 %v2630_v44, %v2278_v1  ;;  %v2280_v8 = vadd.f32 %v2142_v55, %v8999_v47 }
 0x2eb   : > { %6965 = vmatmul.msk.bf16.gmra.mxu0 %vm1139_vm0, %v9001_v56 }
 0x2ec   : > { %12380 = vst [vmem:[#allocation92_spill] sm:$0xff] %v9653_v9  ;;  %6993 = vmatmul.msk.bf16.gmra.mxu1 %vm1139_vm0, %v9001_v56 }
 0x2ed   : > { %7081 = vmatmul.msk.bf16.gmra.mxu2 %vm1139_vm0, %v9033_v30 }
 0x2ee   : > { %7109 = vmatmul.msk.bf16.gmra.mxu3 %vm1139_vm0, %v9033_v30 }
 0x2f0   : > { %v2484_v29 = vpop.f32.mrf.mxu2  ;;  %v1995_v43 = vpop.f32.mrf.mxu0 }
 0x2f1   : > { %v9665_v33 = vadd.f32 %v2484_v29, %v2279_v14  ;;  %v2633_v18 = vpop.f32.mrf.mxu3  ;;  %v2281_v47 = vadd.f32 %v1995_v43, %v9003_v57  ;;  %v2144_v20 = vpop.f32.mrf.mxu1  ;;  %v7156_v57 = vld [vmem:[%s12236_s1 + $0x1a0] sm:$0xf] }
 0x2f2   : > { %v9667_v41 = vadd.f32 %v2633_v18, %v2280_v8  ;;  %v2282_v23 = vadd.f32 %v2144_v20, %v9005_v60  ;;  %v8168_v60 = vld [vmem:[%s12236_s1 + $0x1a4] sm:$0xf0]  ;;  %v7158_v8 = vld [vmem:[%s12236_s1 + $0x1a8] sm:$0xf0] }
 0x2f8   : > { %v2486_v62 = vpop.f32.mrf.mxu2  ;;  %v1998_v44 = vpop.f32.mrf.mxu0 }
 0x2f9   : > { %v9671_v1 = vadd.f32 %v2486_v62, %v2281_v47  ;;  %v2635_v40 = vpop.f32.mrf.mxu3  ;;  %v2283_v55 = vadd.f32 %v1998_v44, %v9029_v17  ;;  %v2147_v14 = vpop.f32.mrf.mxu1  ;;  %v8167_v17 = vld [vmem:[%s12236_s1 + $0x1a4] sm:$0xf] }
 0x2fa   : > { %v9673_v0 = vadd.f32 %v2635_v40, %v2282_v23  ;;  %v2284_v29 = vadd.f32 %v2147_v14, %v9031_v22  ;;  %v7157_v22 = vor.u32 %v8168_v60, %v7156_v57  ;;  %v7161_v43 = vor.u32 %v8167_v17, %v7158_v8 }
 0x2fb   : > { %12381 = vst [vmem:[#allocation93_spill] sm:$0xff] %v9671_v1  ;;  %6966 = vmatmul.msk.bf16.gmra.mxu0 %vm1139_vm0, %v9033_v30 }
 0x2fc   : > { %12382 = vst [vmem:[#allocation94_spill] sm:$0xff] %v9673_v0  ;;  %6994 = vmatmul.msk.bf16.gmra.mxu1 %vm1139_vm0, %v9033_v30  ;;  %2956 = vmatpush.bf16.msra.mxu0 %v7157_v22 }
 0x2fd   : > { %7082 = vmatmul.msk.bf16.gmra.mxu2 %vm1139_vm0, %v9053_v3  ;;  %3105 = vmatpush.bf16.msra.mxu1 %v7161_v43 }
 0x2fe   : > { %7110 = vmatmul.msk.bf16.gmra.mxu3 %vm1139_vm0, %v9053_v3 }
 0x300   : > { %v2489_v18 = vpop.f32.mrf.mxu2  ;;  %v2000_v23 = vpop.f32.mrf.mxu0 }
 0x301   : > { %v9697_v47 = vadd.f32 %v2489_v18, %v2283_v55  ;;  %v2638_v20 = vpop.f32.mrf.mxu3  ;;  %v2285_v40 = vadd.f32 %v2000_v23, %v9035_v32  ;;  %v2149_v44 = vpop.f32.mrf.mxu1 }
 0x302   : > { %v9699_v62 = vadd.f32 %v2638_v20, %v2284_v29  ;;  %v2286_v14 = vadd.f32 %v2149_v44, %v9037_v37 }
 0x308   : > { %v2491_v57 = vpop.f32.mrf.mxu2  ;;  %v2003_v1 = vpop.f32.mrf.mxu0 }
 0x309   : > { %v9703_v60 = vadd.f32 %v2491_v57, %v2285_v40  ;;  %v2640_v0 = vpop.f32.mrf.mxu3  ;;  %v2287_v55 = vadd.f32 %v2003_v1, %v9049_v51  ;;  %v2152_v17 = vpop.f32.mrf.mxu1 }
 0x30a   : > { %v9705_v9 = vadd.f32 %v2640_v0, %v2286_v14  ;;  %v2288_v22 = vadd.f32 %v2152_v17, %v9051_v58 }
 0x30b   : > { %6967 = vmatmul.msk.bf16.gmra.mxu0 %vm1139_vm0, %v9053_v3 }
 0x30c   : > { %6995 = vmatmul.msk.bf16.gmra.mxu1 %vm1139_vm0, %v9053_v3 }
 0x30d   : > { %7083 = vmatmul.msk.bf16.gmra.mxu2 %vm1139_vm0, %v9073_v42 }
 0x30e   : > { %7111 = vmatmul.msk.bf16.gmra.mxu3 %vm1139_vm0, %v9073_v42 }
 0x310   : > { %v2494_v32 = vpop.f32.mrf.mxu2  ;;  %v2005_v51 = vpop.f32.mrf.mxu0 }
 0x311   : > { %v9717_v37 = vadd.f32 %v2494_v32, %v2287_v55  ;;  %v2643_v0 = vpop.f32.mrf.mxu3  ;;  %v2289_v58 = vadd.f32 %v2005_v51, %v9055_v5  ;;  %v2154_v29 = vpop.f32.mrf.mxu1  ;;  %v12385_v5 = vld [vmem:[#allocation12_spill] sm:$0xff]  ;;  %v12389_v51 = vld [vmem:[#allocation9_spill] sm:$0xff] }
 0x312   : > { %v9719_v1 = vadd.f32 %v2643_v0, %v2288_v22  ;;  %v2290_v8 = vadd.f32 %v2154_v29, %v9057_v10 }
 0x318   : > { %v2496_v18 = vpop.f32.mrf.mxu2  ;;  %v2008_v23 = vpop.f32.mrf.mxu0 }
 0x319   : > { %v9723_v43 = vadd.f32 %v2496_v18, %v2289_v58  ;;  %v2645_v20 = vpop.f32.mrf.mxu3  ;;  %v2291_v44 = vadd.f32 %v2008_v23, %v9069_v24  ;;  %v2157_v14 = vpop.f32.mrf.mxu1 }
 0x31a   : > { %v9725_v40 = vadd.f32 %v2645_v20, %v2290_v8  ;;  %v2292_v57 = vadd.f32 %v2157_v14, %v9071_v27  ;;  %v12388_v27 = vld [vmem:[#allocation8_spill] sm:$0xff]  ;;  %v12392_v14 = vld [vmem:[#allocation10_spill] sm:$0xff] }
 0x31b   : > { %12383 = vst [vmem:[#allocation95_spill] sm:$0xff] %v9723_v43  ;;  %6968 = vmatmul.msk.bf16.gmra.mxu0 %vm1139_vm0, %v9073_v42 }
 0x31c   : > { %12384 = vst [vmem:[#allocation96_spill] sm:$0xff] %v9725_v40  ;;  %6996 = vmatmul.msk.bf16.gmra.mxu1 %vm1139_vm0, %v9073_v42 }
 0x31d   : > { %7084 = vmatmul.msk.bf16.gmra.mxu2 %vm1139_vm0, %v12385_v5 }
 0x31e   : > { %7112 = vmatmul.msk.bf16.gmra.mxu3 %vm1139_vm0, %v12385_v5 }
 0x320   : > { %v2499_v10 = vpop.f32.mrf.mxu2  ;;  %v2010_v24 = vpop.f32.mrf.mxu0 }
 0x321   : > { %v9737_v55 = vadd.f32 %v2499_v10, %v2291_v44  ;;  %v2648_v17 = vpop.f32.mrf.mxu3  ;;  %v2293_v32 = vadd.f32 %v2010_v24, %v12388_v27  ;;  %v2159_v0 = vpop.f32.mrf.mxu1  ;;  %v12393_v10 = vld [vmem:[#allocation11_spill] sm:$0xff] }
 0x322   : > { %v9739_v22 = vadd.f32 %v2648_v17, %v2292_v57  ;;  %v2294_v58 = vadd.f32 %v2159_v0, %v12389_v51  ;;  %v12394_v57 = vld [vmem:[#allocation17_spill] sm:$0xff] }
 0x323   : > { %12386 = vst [vmem:[#allocation12_spill] sm:$0xff] %v9737_v55  ;;  %v12397_v51 = vld [vmem:[#allocation13_spill] sm:$0xff] }
 0x324   : > { %12387 = vst [vmem:[#allocation97_spill] sm:$0xff] %v9739_v22  ;;  %v12401_v22 = vld [vmem:[#allocation15_spill] sm:$0xff] }
 0x328   : > { %v2501_v29 = vpop.f32.mrf.mxu2  ;;  %v2013_v20 = vpop.f32.mrf.mxu0 }
 0x329   : > { %v9743_v8 = vadd.f32 %v2501_v29, %v2293_v32  ;;  %v2650_v18 = vpop.f32.mrf.mxu3  ;;  %v2295_v40 = vadd.f32 %v2013_v20, %v12392_v14  ;;  %v2162_v44 = vpop.f32.mrf.mxu1 }
 0x32a   : > { %v9745_v23 = vadd.f32 %v2650_v18, %v2294_v58  ;;  %v2296_v55 = vadd.f32 %v2162_v44, %v12393_v10  ;;  %v12398_v18 = vld [vmem:[#allocation14_spill] sm:$0xff] }
 0x32b   : > { %12390 = vst [vmem:[#allocation8_spill] sm:$0xff] %v9743_v8  ;;  %6969 = vmatmul.msk.bf16.gmra.mxu0 %vm1139_vm0, %v12385_v5 }
 0x32c   : > { %12391 = vst [vmem:[#allocation9_spill] sm:$0xff] %v9745_v23  ;;  %6997 = vmatmul.msk.bf16.gmra.mxu1 %vm1139_vm0, %v12385_v5 }
 0x32d   : > { %7085 = vmatmul.msk.bf16.gmra.mxu2 %vm1139_vm0, %v12394_v57 }
 0x32e   : > { %7113 = vmatmul.msk.bf16.gmra.mxu3 %vm1139_vm0, %v12394_v57 }
 0x330   : > { %v2504_v17 = vpop.f32.mrf.mxu2  ;;  %v2015_v32 = vpop.f32.mrf.mxu0 }
 0x331   : > { %v9757_v24 = vadd.f32 %v2504_v17, %v2295_v40  ;;  %v2653_v27 = vpop.f32.mrf.mxu3  ;;  %v2297_v58 = vadd.f32 %v2015_v32, %v12397_v51  ;;  %v2164_v29 = vpop.f32.mrf.mxu1  ;;  %v12402_v17 = vld [vmem:[#allocation16_spill] sm:$0xff] }
 0x332   : > { %v9759_v0 = vadd.f32 %v2653_v27, %v2296_v55  ;;  %v2298_v20 = vadd.f32 %v2164_v29, %v12398_v18  ;;  %v12403_v55 = vld [vmem:[#allocation22_spill] sm:$0xff] }
 0x333   : > { %12395 = vst [vmem:[#allocation10_spill] sm:$0xff] %v9757_v24 }
 0x334   : > { %12396 = vst [vmem:[#allocation11_spill] sm:$0xff] %v9759_v0  ;;  %v12410_v0 = vld [vmem:[#allocation20_spill] sm:$0xff] }
 0x338   : > { %v2506_v14 = vpop.f32.mrf.mxu2  ;;  %v2018_v23 = vpop.f32.mrf.mxu0 }
 0x339   : > { %v9763_v44 = vadd.f32 %v2506_v14, %v2297_v58  ;;  %v2655_v10 = vpop.f32.mrf.mxu3  ;;  %v2299_v43 = vadd.f32 %v2018_v23, %v12401_v22  ;;  %v2167_v40 = vpop.f32.mrf.mxu1  ;;  %v12406_v58 = vld [vmem:[#allocation18_spill] sm:$0xff] }
 0x33a   : > { %v9765_v8 = vadd.f32 %v2655_v10, %v2298_v20  ;;  %v2300_v24 = vadd.f32 %v2167_v40, %v12402_v17  ;;  %v12407_v20 = vld [vmem:[#allocation19_spill] sm:$0xff] }
 0x33b   : > { %12399 = vst [vmem:[#allocation13_spill] sm:$0xff] %v9763_v44  ;;  %6970 = vmatmul.msk.bf16.gmra.mxu0 %vm1139_vm0, %v12394_v57 }
 0x33c   : > { %12400 = vst [vmem:[#allocation14_spill] sm:$0xff] %v9765_v8  ;;  %6998 = vmatmul.msk.bf16.gmra.mxu1 %vm1139_vm0, %v12394_v57 }
 0x33d   : > { %7086 = vmatmul.msk.bf16.gmra.mxu2 %vm1139_vm0, %v12403_v55 }
 0x33e   : > { %7114 = vmatmul.msk.bf16.gmra.mxu3 %vm1139_vm0, %v12403_v55 }
 0x340   : > { %v2509_v27 = vpop.f32.mrf.mxu2  ;;  %v2020_v22 = vpop.f32.mrf.mxu0 }
 0x341   : > { %v9777_v32 = vadd.f32 %v2509_v27, %v2299_v43  ;;  %v2658_v51 = vpop.f32.mrf.mxu3  ;;  %v2301_v29 = vadd.f32 %v2020_v22, %v12406_v58  ;;  %v2169_v18 = vpop.f32.mrf.mxu1  ;;  %v8166_v27 = vld [vmem:[%s12236_s1 + $0x194] sm:$0xf0]  ;;  %v12411_v22 = vld [vmem:[#allocation21_spill] sm:$0xff] }
 0x342   : > { %v9779_v23 = vadd.f32 %v2658_v51, %v2300_v24  ;;  %v2302_v14 = vadd.f32 %v2169_v18, %v12407_v20  ;;  %v7148_v24 = vld [vmem:[%s12236_s1 + $0x190] sm:$0xf]  ;;  %v8165_v51 = vld [vmem:[%s12236_s1 + $0x194] sm:$0xf]  ;;  %v12412_v18 = vld [vmem:[#allocation27_spill] sm:$0xff] }
 0x343   : > { %12404 = vst [vmem:[#allocation15_spill] sm:$0xff] %v9777_v32 }
 0x344   : > { %12405 = vst [vmem:[#allocation16_spill] sm:$0xff] %v9779_v23 }
 0x348   : > { %v2511_v10 = vpop.f32.mrf.mxu2  ;;  %v2023_v8 = vpop.f32.mrf.mxu0 }
 0x349   : > { %v9783_v40 = vadd.f32 %v2511_v10, %v2301_v29  ;;  %v2660_v17 = vpop.f32.mrf.mxu3  ;;  %v2303_v57 = vadd.f32 %v2023_v8, %v12410_v0  ;;  %v2172_v43 = vpop.f32.mrf.mxu1  ;;  %v7149_v29 = vor.u32 %v8166_v27, %v7148_v24  ;;  %v7150_v8 = vld [vmem:[%s12236_s1 + $0x198] sm:$0xf0] }
 0x34a   : > { %v9785_v44 = vadd.f32 %v2660_v17, %v2302_v14  ;;  %v2304_v58 = vadd.f32 %v2172_v43, %v12411_v22  ;;  %v7153_v0 = vor.u32 %v8165_v51, %v7150_v8  ;;  %v12415_v24 = vld [vmem:[#allocation23_spill] sm:$0xff]  ;;  %v12416_v22 = vld [vmem:[#allocation24_spill] sm:$0xff] }
 0x34b   : > { %12408 = vst [vmem:[#allocation18_spill] sm:$0xff] %v9783_v40  ;;  %6971 = vmatmul.msk.bf16.gmra.mxu0 %vm1139_vm0, %v12403_v55 }
 0x34c   : > { %12409 = vst [vmem:[#allocation19_spill] sm:$0xff] %v9785_v44  ;;  %6999 = vmatmul.msk.bf16.gmra.mxu1 %vm1139_vm0, %v12403_v55  ;;  %2957 = vmatpush.bf16.msra.mxu0 %v7149_v29  ;;  %v12419_v29 = vld [vmem:[#allocation25_spill] sm:$0xff] }
 0x34d   : > { %7087 = vmatmul.msk.bf16.gmra.mxu2 %vm1139_vm0, %v12412_v18  ;;  %3106 = vmatpush.bf16.msra.mxu1 %v7153_v0 }
 0x34e   : > { %7115 = vmatmul.msk.bf16.gmra.mxu3 %vm1139_vm0, %v12412_v18 }
 0x350   : > { %v2514_v20 = vpop.f32.mrf.mxu2  ;;  %v2025_v17 = vpop.f32.mrf.mxu0 }
 0x351   : > { %v9809_v14 = vadd.f32 %v2514_v20, %v2303_v57  ;;  %v2663_v10 = vpop.f32.mrf.mxu3  ;;  %v2305_v27 = vadd.f32 %v2025_v17, %v12415_v24  ;;  %v2174_v51 = vpop.f32.mrf.mxu1  ;;  %v12420_v20 = vld [vmem:[#allocation26_spill] sm:$0xff]  ;;  %v12424_v24 = vld [vmem:[#allocation28_spill] sm:$0xff] }
 0x352   : > { %v9811_v43 = vadd.f32 %v2663_v10, %v2304_v58  ;;  %v2306_v8 = vadd.f32 %v2174_v51, %v12416_v22  ;;  %v12421_v58 = vld [vmem:[#allocation32_spill] sm:$0xff]  ;;  %v12425_v22 = vld [vmem:[#allocation29_spill] sm:$0xff] }
 0x353   : > { %12413 = vst [vmem:[#allocation20_spill] sm:$0xff] %v9809_v14 }
 0x354   : > { %12414 = vst [vmem:[#allocation21_spill] sm:$0xff] %v9811_v43  ;;  %v12428_v43 = vld [vmem:[#allocation30_spill] sm:$0xff] }
 0x358   : > { %v2516_v44 = vpop.f32.mrf.mxu2  ;;  %v2028_v32 = vpop.f32.mrf.mxu0 }
 0x359   : > { %v9815_v40 = vadd.f32 %v2516_v44, %v2305_v27  ;;  %v2665_v23 = vpop.f32.mrf.mxu3  ;;  %v2307_v0 = vadd.f32 %v2028_v32, %v12419_v29  ;;  %v2177_v57 = vpop.f32.mrf.mxu1 }
 0x35a   : > { %v9817_v55 = vadd.f32 %v2665_v23, %v2306_v8  ;;  %v2308_v14 = vadd.f32 %v2177_v57, %v12420_v20 }
 0x35b   : > { %12417 = vst [vmem:[#allocation23_spill] sm:$0xff] %v9815_v40  ;;  %6972 = vmatmul.msk.bf16.gmra.mxu0 %vm1139_vm0, %v12412_v18 }
 0x35c   : > { %12418 = vst [vmem:[#allocation24_spill] sm:$0xff] %v9817_v55  ;;  %7000 = vmatmul.msk.bf16.gmra.mxu1 %vm1139_vm0, %v12412_v18 }
 0x35d   : > { %7088 = vmatmul.msk.bf16.gmra.mxu2 %vm1139_vm0, %v12421_v58 }
 0x35e   : > { %7116 = vmatmul.msk.bf16.gmra.mxu3 %vm1139_vm0, %v12421_v58 }
 0x360   : > { %v2519_v44 = vpop.f32.mrf.mxu2  ;;  %v2030_v32 = vpop.f32.mrf.mxu0 }
 0x361   : > { %v9829_v23 = vadd.f32 %v2519_v44, %v2307_v0  ;;  %v2668_v10 = vpop.f32.mrf.mxu3  ;;  %v2309_v27 = vadd.f32 %v2030_v32, %v12424_v24  ;;  %v2179_v51 = vpop.f32.mrf.mxu1  ;;  %v12429_v44 = vld [vmem:[#allocation31_spill] sm:$0xff] }
 0x362   : > { %v9831_v17 = vadd.f32 %v2668_v10, %v2308_v14  ;;  %v2310_v8 = vadd.f32 %v2179_v51, %v12425_v22  ;;  %v12430_v14 = vld [vmem:[#allocation37_spill] sm:$0xff] }
 0x363   : > { %12422 = vst [vmem:[#allocation25_spill] sm:$0xff] %v9829_v23 }
 0x364   : > { %12423 = vst [vmem:[#allocation26_spill] sm:$0xff] %v9831_v17  ;;  %v12437_v17 = vld [vmem:[#allocation35_spill] sm:$0xff] }
 0x368   : > { %v2521_v29 = vpop.f32.mrf.mxu2  ;;  %v2033_v55 = vpop.f32.mrf.mxu0 }
 0x369   : > { %v9835_v57 = vadd.f32 %v2521_v29, %v2309_v27  ;;  %v2670_v20 = vpop.f32.mrf.mxu3  ;;  %v2311_v18 = vadd.f32 %v2033_v55, %v12428_v43  ;;  %v2182_v0 = vpop.f32.mrf.mxu1  ;;  %v12433_v27 = vld [vmem:[#allocation33_spill] sm:$0xff] }
 0x36a   : > { %v9837_v40 = vadd.f32 %v2670_v20, %v2310_v8  ;;  %v2312_v23 = vadd.f32 %v2182_v0, %v12429_v44  ;;  %v12434_v8 = vld [vmem:[#allocation34_spill] sm:$0xff] }
 0x36b   : > { %12426 = vst [vmem:[#allocation28_spill] sm:$0xff] %v9835_v57  ;;  %6973 = vmatmul.msk.bf16.gmra.mxu0 %vm1139_vm0, %v12421_v58 }
 0x36c   : > { %12427 = vst [vmem:[#allocation29_spill] sm:$0xff] %v9837_v40  ;;  %7001 = vmatmul.msk.bf16.gmra.mxu1 %vm1139_vm0, %v12421_v58 }
 0x36d   : > { %7089 = vmatmul.msk.bf16.gmra.mxu2 %vm1139_vm0, %v12430_v14 }
 0x36e   : > { %7117 = vmatmul.msk.bf16.gmra.mxu3 %vm1139_vm0, %v12430_v14 }
 0x370   : > { %v2524_v10 = vpop.f32.mrf.mxu2  ;;  %v2035_v55 = vpop.f32.mrf.mxu0 }
 0x371   : > { %v9849_v32 = vadd.f32 %v2524_v10, %v2311_v18  ;;  %v2673_v24 = vpop.f32.mrf.mxu3  ;;  %v2313_v51 = vadd.f32 %v2035_v55, %v12433_v27  ;;  %v2184_v22 = vpop.f32.mrf.mxu1  ;;  %v12438_v10 = vld [vmem:[#allocation36_spill] sm:$0xff] }
 0x372   : > { %v9851_v43 = vadd.f32 %v2673_v24, %v2312_v23  ;;  %v2314_v29 = vadd.f32 %v2184_v22, %v12434_v8  ;;  %v12439_v23 = vld [vmem:[#allocation42_spill] sm:$0xff] }
 0x373   : > { %12431 = vst [vmem:[#allocation30_spill] sm:$0xff] %v9849_v32 }
 0x374   : > { %12432 = vst [vmem:[#allocation31_spill] sm:$0xff] %v9851_v43  ;;  %v12446_v43 = vld [vmem:[#allocation40_spill] sm:$0xff] }
 0x378   : > { %v2526_v20 = vpop.f32.mrf.mxu2  ;;  %v2038_v40 = vpop.f32.mrf.mxu0 }
 0x379   : > { %v9855_v0 = vadd.f32 %v2526_v20, %v2313_v51  ;;  %v2675_v44 = vpop.f32.mrf.mxu3  ;;  %v2315_v58 = vadd.f32 %v2038_v40, %v12437_v17  ;;  %v2187_v18 = vpop.f32.mrf.mxu1  ;;  %v12442_v51 = vld [vmem:[#allocation38_spill] sm:$0xff] }
 0x37a   : > { %v9857_v57 = vadd.f32 %v2675_v44, %v2314_v29  ;;  %v2316_v32 = vadd.f32 %v2187_v18, %v12438_v10  ;;  %v12443_v29 = vld [vmem:[#allocation39_spill] sm:$0xff] }
 0x37b   : > { %12435 = vst [vmem:[#allocation33_spill] sm:$0xff] %v9855_v0  ;;  %6974 = vmatmul.msk.bf16.gmra.mxu0 %vm1139_vm0, %v12430_v14 }
 0x37c   : > { %12436 = vst [vmem:[#allocation34_spill] sm:$0xff] %v9857_v57  ;;  %7002 = vmatmul.msk.bf16.gmra.mxu1 %vm1139_vm0, %v12430_v14 }
 0x37d   : > { %7090 = vmatmul.msk.bf16.gmra.mxu2 %vm1139_vm0, %v12439_v23 }
 0x37e   : > { %7118 = vmatmul.msk.bf16.gmra.mxu3 %vm1139_vm0, %v12439_v23 }
 0x380   : > { %v2529_v24 = vpop.f32.mrf.mxu2  ;;  %v2040_v40 = vpop.f32.mrf.mxu0 }
 0x381   : > { %v9869_v55 = vadd.f32 %v2529_v24, %v2315_v58  ;;  %v2678_v27 = vpop.f32.mrf.mxu3  ;;  %v2317_v22 = vadd.f32 %v2040_v40, %v12442_v51  ;;  %v2189_v8 = vpop.f32.mrf.mxu1  ;;  %v12447_v24 = vld [vmem:[#allocation41_spill] sm:$0xff] }
 0x382   : > { %v9871_v17 = vadd.f32 %v2678_v27, %v2316_v32  ;;  %v2318_v20 = vadd.f32 %v2189_v8, %v12443_v29  ;;  %v12448_v32 = vld [vmem:[#allocation47_spill] sm:$0xff] }
 0x383   : > { %12440 = vst [vmem:[#allocation35_spill] sm:$0xff] %v9869_v55  ;;  %v8182_v27 = vld [vmem:[%s12238_s3 + $0x38] sm:$0xff] }
 0x384   : > { %12441 = vst [vmem:[#allocation36_spill] sm:$0xff] %v9871_v17  ;;  %3806 = vmatpush.bf16.msra.mxu2 %v8182_v27 }
 0x388   : > { %v2531_v44 = vpop.f32.mrf.mxu2  ;;  %v2043_v57 = vpop.f32.mrf.mxu0 }
 0x389   : > { %v9875_v18 = vadd.f32 %v2531_v44, %v2317_v22  ;;  %v2680_v10 = vpop.f32.mrf.mxu3  ;;  %v2319_v14 = vadd.f32 %v2043_v57, %v12446_v43  ;;  %v2192_v58 = vpop.f32.mrf.mxu1  ;;  %v3695_v57 = vld [vmem:[%s12238_s3 + $0x50] sm:$0xf]  ;;  %v12451_v44 = vld [vmem:[#allocation43_spill] sm:$0xff] }
 0x38a   : > { %v9877_v0 = vadd.f32 %v2680_v10, %v2318_v20  ;;  %v2320_v55 = vadd.f32 %v2192_v58, %v12447_v24  ;;  %v3737_v43 = vunpack.c.l.b16 %v3695_v57  ;;  %v12452_v24 = vld [vmem:[#allocation44_spill] sm:$0xff] }
 0x38b   : > { %12444 = vst [vmem:[#allocation38_spill] sm:$0xff] %v9875_v18  ;;  %6975 = vmatmul.msk.bf16.gmra.mxu0 %vm1139_vm0, %v12439_v23  ;;  %v7140_v57 = vld [vmem:[%s12236_s1 + $0x180] sm:$0xf] }
 0x38c   : > { %12445 = vst [vmem:[#allocation39_spill] sm:$0xff] %v9877_v0  ;;  %7003 = vmatmul.msk.bf16.gmra.mxu1 %vm1139_vm0, %v12439_v23  ;;  %v3748_v29 = vpack.c.b16 %v3737_v43, %v3737_v43  ;;  %v7142_v43 = vld [vmem:[%s12236_s1 + $0x188] sm:$0xf0] }
 0x38d   : > { %7091 = vmatmul.msk.bf16.gmra.mxu2 %vm1139_vm0, %v12448_v32 }
 0x38e   : > { %7119 = vmatmul.msk.bf16.gmra.mxu3 %vm1139_vm0, %v12448_v32  ;;  %v3804_v18 = vsel %vm3802_vm1, %v3748_v29, 0 }
 0x38f   : > { %3890 = vmatpush.bf16.msra.mxu3 %v3804_v18  ;;  %v12455_v18 = vld [vmem:[#allocation45_spill] sm:$0xff] }
 0x390   : > { %v2534_v40 = vpop.f32.mrf.mxu2  ;;  %v2045_v8 = vpop.f32.mrf.mxu0 }
 0x391   : > { %v9895_v51 = vadd.f32 %v2534_v40, %v2319_v14  ;;  %v2683_v22 = vpop.f32.mrf.mxu3  ;;  %v2321_v10 = vadd.f32 %v2045_v8, %v12451_v44  ;;  %v2194_v58 = vpop.f32.mrf.mxu1  ;;  %v8164_v14 = vld [vmem:[%s12236_s1 + $0x184] sm:$0xf0] }
 0x392   : > { %v9897_v20 = vadd.f32 %v2683_v22, %v2320_v55  ;;  %v2322_v0 = vadd.f32 %v2194_v58, %v12452_v24  ;;  %v7141_v27 = vor.u32 %v8164_v14, %v7140_v57  ;;  %v8163_v55 = vld [vmem:[%s12236_s1 + $0x184] sm:$0xf]  ;;  %v12456_v14 = vld [vmem:[#allocation46_spill] sm:$0xff] }
 0x393   : > { %12449 = vst [vmem:[#allocation40_spill] sm:$0xff] %v9895_v51  ;;  %v7145_v40 = vor.u32 %v8163_v55, %v7142_v43 }
 0x394   : > { %12450 = vst [vmem:[#allocation41_spill] sm:$0xff] %v9897_v20  ;;  %2958 = vmatpush.bf16.msra.mxu0 %v7141_v27  ;;  %v12457_v27 = vld [vmem:[#allocation52_spill] sm:$0xff] }
 0x395   : > { %3107 = vmatpush.bf16.msra.mxu1 %v7145_v40 }
 0x398   : > { %v2536_v22 = vpop.f32.mrf.mxu2  ;;  %v2048_v44 = vpop.f32.mrf.mxu0 }
 0x399   : > { %v9914_v8 = vadd.f32 %v2536_v22, %v2321_v10  ;;  %v2685_v29 = vpop.f32.mrf.mxu3  ;;  %v2323_v24 = vadd.f32 %v2048_v44, %v12455_v18  ;;  %v2197_v57 = vpop.f32.mrf.mxu1  ;;  %v12460_v22 = vld [vmem:[#allocation48_spill] sm:$0xff]  ;;  %v12461_v18 = vld [vmem:[#allocation49_spill] sm:$0xff] }
 0x39a   : > { %v9916_v58 = vadd.f32 %v2685_v29, %v2322_v0  ;;  %v2324_v20 = vadd.f32 %v2197_v57, %v12456_v14 }
 0x39b   : > { %12453 = vst [vmem:[#allocation43_spill] sm:$0xff] %v9914_v8  ;;  %6976 = vmatmul.msk.bf16.gmra.mxu0 %vm1139_vm0, %v12448_v32 }
 0x39c   : > { %12454 = vst [vmem:[#allocation44_spill] sm:$0xff] %v9916_v58  ;;  %7004 = vmatmul.msk.bf16.gmra.mxu1 %vm1139_vm0, %v12448_v32  ;;  %v12464_v32 = vld [vmem:[#allocation50_spill] sm:$0xff] }
 0x39d   : > { %7092 = vmatmul.msk.bf16.gmra.mxu2 %vm1139_vm0, %v12457_v27 }
 0x39e   : > { %7120 = vmatmul.msk.bf16.gmra.mxu3 %vm1139_vm0, %v12457_v27 }
 0x3a0   : > { %v2539_v10 = vpop.f32.mrf.mxu2  ;;  %v2050_v43 = vpop.f32.mrf.mxu0 }
 0x3a1   : > { %v9928_v0 = vadd.f32 %v2539_v10, %v2323_v24  ;;  %v2688_v55 = vpop.f32.mrf.mxu3  ;;  %v2325_v29 = vadd.f32 %v2050_v43, %v12460_v22  ;;  %v2199_v44 = vpop.f32.mrf.mxu1  ;;  %v12465_v10 = vld [vmem:[#allocation51_spill] sm:$0xff]  ;;  %v12468_v22 = vld [vmem:[#allocation53_spill] sm:$0xff] }
 0x3a2   : > { %v9930_v40 = vadd.f32 %v2688_v55, %v2324_v20  ;;  %v2326_v57 = vadd.f32 %v2199_v44, %v12461_v18  ;;  %v12466_v20 = vld [vmem:[#allocation57_spill] sm:$0xff]  ;;  %v12469_v18 = vld [vmem:[#allocation54_spill] sm:$0xff] }
 0x3a3   : > { %12458 = vst [vmem:[#allocation45_spill] sm:$0xff] %v9928_v0 }
 0x3a4   : > { %12459 = vst [vmem:[#allocation46_spill] sm:$0xff] %v9930_v40  ;;  %v12472_v40 = vld [vmem:[#allocation55_spill] sm:$0xff] }
 0x3a8   : > { %v2541_v14 = vpop.f32.mrf.mxu2  ;;  %v2053_v51 = vpop.f32.mrf.mxu0 }
 0x3a9   : > { %v9934_v58 = vadd.f32 %v2541_v14, %v2325_v29  ;;  %v2690_v8 = vpop.f32.mrf.mxu3  ;;  %v2327_v23 = vadd.f32 %v2053_v51, %v12464_v32  ;;  %v2202_v24 = vpop.f32.mrf.mxu1 }
 0x3aa   : > { %v9936_v17 = vadd.f32 %v2690_v8, %v2326_v57  ;;  %v2328_v0 = vadd.f32 %v2202_v24, %v12465_v10 }
 0x3ab   : > { %12462 = vst [vmem:[#allocation48_spill] sm:$0xff] %v9934_v58  ;;  %6977 = vmatmul.msk.bf16.gmra.mxu0 %vm1139_vm0, %v12457_v27 }
 0x3ac   : > { %12463 = vst [vmem:[#allocation49_spill] sm:$0xff] %v9936_v17  ;;  %7005 = vmatmul.msk.bf16.gmra.mxu1 %vm1139_vm0, %v12457_v27 }
 0x3ad   : > { %7093 = vmatmul.msk.bf16.gmra.mxu2 %vm1139_vm0, %v12466_v20 }
 0x3ae   : > { %7121 = vmatmul.msk.bf16.gmra.mxu3 %vm1139_vm0, %v12466_v20 }
 0x3b0   : > { %v2544_v55 = vpop.f32.mrf.mxu2  ;;  %v2055_v32 = vpop.f32.mrf.mxu0 }
 0x3b1   : > { %v9948_v8 = vadd.f32 %v2544_v55, %v2327_v23  ;;  %v2693_v43 = vpop.f32.mrf.mxu3  ;;  %v2329_v29 = vadd.f32 %v2055_v32, %v12468_v22  ;;  %v2204_v44 = vpop.f32.mrf.mxu1  ;;  %v12473_v55 = vld [vmem:[#allocation56_spill] sm:$0xff]  ;;  %v12476_v22 = vld [vmem:[#allocation58_spill] sm:$0xff] }
 0x3b2   : > { %v9950_v51 = vadd.f32 %v2693_v43, %v2328_v0  ;;  %v2330_v57 = vadd.f32 %v2204_v44, %v12469_v18  ;;  %v12478_v18 = vld [vmem:[#allocation59_spill] sm:$0xff] }
 0x3b3   : > { %12467 = vst [vmem:[#allocation50_spill] sm:$0xff] %v9948_v8 }
 0x3b8   : > { %v2546_v14 = vpop.f32.mrf.mxu2  ;;  %v2058_v17 = vpop.f32.mrf.mxu0 }
 0x3b9   : > { %v9954_v24 = vadd.f32 %v2546_v14, %v2329_v29  ;;  %v2695_v10 = vpop.f32.mrf.mxu3  ;;  %v2331_v27 = vadd.f32 %v2058_v17, %v12472_v40  ;;  %v2207_v23 = vpop.f32.mrf.mxu1  ;;  %v8181_v14 = vld [vmem:[%s12238_s3 + $0x30] sm:$0xff] }
 0x3ba   : > { %v9956_v58 = vadd.f32 %v2695_v10, %v2330_v57  ;;  %v2332_v8 = vadd.f32 %v2207_v23, %v12473_v55  ;;  %3807 = vmatpush.bf16.msra.mxu2 %v8181_v14  ;;  %v12482_v23 = vld [vmem:[#allocation60_spill] sm:$0xff] }
 0x3bb   : > { %12470 = vst [vmem:[#allocation51_spill] sm:$0xff] %v9954_v24  ;;  %6978 = vmatmul.msk.bf16.gmra.mxu0 %vm1139_vm0, %v12466_v20 }
 0x3bc   : > { %12471 = vst [vmem:[#allocation57_spill] sm:$0xff] %v9956_v58  ;;  %7006 = vmatmul.msk.bf16.gmra.mxu1 %vm1139_vm0, %v12466_v20 }
 0x3bd   : > { %7094 = vmatmul.msk.bf16.gmra.mxu2 %vm1139_vm0, %v9377_v19 }
 0x3be   : > { %7122 = vmatmul.msk.bf16.gmra.mxu3 %vm1139_vm0, %v9377_v19 }
 0x3c0   : > { %v2549_v0 = vpop.f32.mrf.mxu2  ;;  %v2060_v17 = vpop.f32.mrf.mxu0 }
 0x3c1   : > { %v9968_v43 = vadd.f32 %v2549_v0, %v2331_v27  ;;  %v2698_v32 = vpop.f32.mrf.mxu3  ;;  %v9973_v29 = vadd.f32 %v2060_v17, %v12476_v22  ;;  %v2209_v44 = vpop.f32.mrf.mxu1  ;;  %v844_v22 = vld [vmem:[%s8807_s18 + $0x1d0] sm:$0xff] }
 0x3c2   : > { %v9970_v40 = vadd.f32 %v2698_v32, %v2332_v8  ;;  %v9976_v57 = vadd.f32 %v2209_v44, %v12478_v18  ;;  %v12483_v32 = vld [vmem:[#allocation61_spill] sm:$0xff]  ;;  %v845_v44 = vld [vmem:[%s8807_s18 + $0x1d8] sm:$0xff] }
 0x3c3   : > { %12474 = vst [vmem:[#allocation53_spill] sm:$0xff] %v9968_v43 }
 0x3c4   : > { %12475 = vst [vmem:[#allocation54_spill] sm:$0xff] %v9970_v40  ;;  %v12486_v40 = vld [vmem:[#allocation64_spill] sm:$0xff] }
 0x3c5   : > { %12477 = vst [vmem:[#allocation55_spill] sm:$0xff] %v9973_v29 }
 0x3c6   : > { %12479 = vst [vmem:[#allocation56_spill] sm:$0xff] %v9976_v57  ;;  %v12484_v57 = vld [vmem:[#allocation63_spill] sm:$0xff] }
 0x3c8   : > { %v9981_v27 = vpop.f32.mrf.mxu2  ;;  %v2063_v8 = vpop.f32.mrf.mxu0 }
 0x3c9   : > { %12480 = vst [vmem:[#allocation58_spill] sm:$0xff] %v9981_v27  ;;  %v9983_v10 = vpop.f32.mrf.mxu3  ;;  %v2335_v55 = vadd.f32 %v2063_v8, %v12482_v23  ;;  %v2212_v0 = vpop.f32.mrf.mxu1 }
 0x3ca   : > { %12481 = vst [vmem:[#allocation59_spill] sm:$0xff] %v9983_v10  ;;  %v2336_v17 = vadd.f32 %v2212_v0, %v12483_v32  ;;  %v908_v0 = vpack.c.bf16 %v844_v22, %v844_v22  ;;  %v909_v32 = vpack.c.bf16 %v845_v44, %v845_v44 }
 0x3cb   : > { %6979 = vmatmul.msk.bf16.gmra.mxu0 %vm1139_vm0, %v9377_v19 }
 0x3cc   : > { %7007 = vmatmul.msk.bf16.gmra.mxu1 %vm1139_vm0, %v9377_v19  ;;  %v1903_v58 = vunpack.c.l.b16 %v908_v0  ;;  %v1904_v24 = vunpack.c.l.b16 %v909_v32 }
 0x3cd   : > { %7095 = vmatmul.msk.bf16.gmra.mxu2 %vm1139_vm0, %v9421_v13 }
 0x3ce   : > { %7123 = vmatmul.msk.bf16.gmra.mxu3 %vm1139_vm0, %v9421_v13  ;;  %v10011_v22 = vpack.c.b16 %v1904_v24, %v1903_v58  ;;  %v847_v58 = vld [vmem:[%s8807_s18 + $0x1e8] sm:$0xff] }
 0x3d0   : > { %v2554_v18 = vpop.f32.mrf.mxu2  ;;  %v2065_v23 = vpop.f32.mrf.mxu0 }
 0x3d1   : > { %v9997_v14 = vadd.f32 %v2554_v18, %v2335_v55  ;;  %v2703_v8 = vpop.f32.mrf.mxu3  ;;  %v10002_v27 = vadd.f32 %v2065_v23, %v12484_v57  ;;  %v2214_v29 = vpop.f32.mrf.mxu1  ;;  %v911_v23 = vpack.c.bf16 %v847_v58, %v847_v58 }
 0x3d2   : > { %v9999_v10 = vadd.f32 %v2703_v8, %v2336_v17  ;;  %v10005_v43 = vadd.f32 %v2214_v29, %v12486_v40  ;;  %v846_v40 = vld [vmem:[%s8807_s18 + $0x1e0] sm:$0xff] }
 0x3d3   : > { %12485 = vst [vmem:[#allocation60_spill] sm:$0xff] %v10002_v27 }
 0x3d4   : > { %12487 = vst [vmem:[#allocation61_spill] sm:$0xff] %v10005_v43  ;;  %v2395_v43 = vunpack.c.l.b16 %v911_v23 }
 0x3d8   : > { %v10007_v19 = vpop.f32.mrf.mxu2  ;;  %v2068_v18 = vpop.f32.mrf.mxu0 }
 0x3d9   : > { %12488 = vst [vmem:[#allocation63_spill] sm:$0xff] %v10007_v19  ;;  %v10009_v55 = vpop.f32.mrf.mxu3  ;;  %v2339_v17 = vadd.f32 %v2068_v18, %v9417_v25  ;;  %v2217_v44 = vpop.f32.mrf.mxu1 }
 0x3da   : > { %12489 = vst [vmem:[#allocation64_spill] sm:$0xff] %v10009_v55  ;;  %v2340_v57 = vadd.f32 %v2217_v44, %v9419_v2  ;;  %v910_v2 = vpack.c.bf16 %v846_v40, %v846_v40 }
 0x3db   : > { %6980 = vmatmul.msk.bf16.gmra.mxu0 %vm1139_vm0, %v9421_v13 }
 0x3dc   : > { %7008 = vmatmul.msk.bf16.gmra.mxu1 %vm1139_vm0, %v9421_v13  ;;  %v2394_v55 = vunpack.c.l.b16 %v910_v2 }
 0x3dd   : > { %7096 = vmatmul.msk.bf16.gmra.mxu2 %vm1139_vm0, %v10011_v22 }
 0x3de   : > { %7124 = vmatmul.msk.bf16.gmra.mxu3 %vm1139_vm0, %v10011_v22 }
 0x3e0   : > { %v2559_v24 = vpop.f32.mrf.mxu2  ;;  %v2070_v8 = vpop.f32.mrf.mxu0 }
 0x3e1   : > { %v10025_v29 = vadd.f32 %v2559_v24, %v2339_v17  ;;  %v2708_v25 = vpop.f32.mrf.mxu3  ;;  %v10030_v32 = vadd.f32 %v2070_v8, %v9423_v45  ;;  %v2219_v18 = vpop.f32.mrf.mxu1  ;;  %v10039_v24 = vpack.c.b16 %v2395_v43, %v2394_v55 }
 0x3e2   : > { %v10027_v0 = vadd.f32 %v2708_v25, %v2340_v57  ;;  %v10033_v44 = vadd.f32 %v2219_v18, %v9425_v39 }
 0x3e4   : > { %12490 = vst [vmem:[#allocation98_spill] sm:$0xff] %v10033_v44  ;;  %v12507_v44 = vld [vmem:[#allocation5_spill] sm:$0xff] }
 0x3e8   : > { %v10035_v19 = vpop.f32.mrf.mxu2  ;;  %v2073_v17 = vpop.f32.mrf.mxu0 }
 0x3e9   : > { %v10037_v27 = vpop.f32.mrf.mxu3  ;;  %v2343_v40 = vadd.f32 %v2073_v17, %v9435_v63  ;;  %v2222_v57 = vpop.f32.mrf.mxu1 }
 0x3ea   : > { %12491 = vst [vmem:[#allocation99_spill] sm:$0xff] %v10037_v27  ;;  %v2344_v58 = vadd.f32 %v2222_v57, %v9437_v26  ;;  %v12496_v57 = vld [vmem:[#allocation65_spill] sm:$0xff]  ;;  %v12497_v27 = vld [vmem:[#allocation4_spill] sm:$0xff] }
 0x3eb   : > { %6981 = vmatmul.msk.bf16.gmra.mxu0 %vm1139_vm0, %v10011_v22 }
 0x3ec   : > { %7009 = vmatmul.msk.bf16.gmra.mxu1 %vm1139_vm0, %v10011_v22 }
 0x3ed   : > { %7097 = vmatmul.msk.bf16.gmra.mxu2 %vm1139_vm0, %v10039_v24 }
 0x3ee   : > { %7125 = vmatmul.msk.bf16.gmra.mxu3 %vm1139_vm0, %v10039_v24 }
 0x3f0   : > { %v2564_v45 = vpop.f32.mrf.mxu2  ;;  %v2075_v63 = vpop.f32.mrf.mxu0 }
 0x3f1   : > { %v10051_v39 = vadd.f32 %v2564_v45, %v2343_v40  ;;  %v2713_v43 = vpop.f32.mrf.mxu3  ;;  %v10056_v26 = vadd.f32 %v2075_v63, %v9439_v36  ;;  %v2224_v25 = vpop.f32.mrf.mxu1  ;;  %v8180_v36 = vld [vmem:[%s12238_s3 + $0x28] sm:$0xff] }
 0x3f2   : > { %v10053_v55 = vadd.f32 %v2713_v43, %v2344_v58  ;;  %v10059_v8 = vadd.f32 %v2224_v25, %v9441_v16  ;;  %3808 = vmatpush.bf16.msra.mxu2 %v8180_v36  ;;  %v12499_v25 = vld [vmem:[#allocation66_spill] sm:$0xff]  ;;  %v12505_v36 = vld [vmem:[#allocation68_spill] sm:$0xff] }
 0x3f3   : > { %12492 = vst [vmem:[#allocation100_spill] sm:$0xff] %v10056_v26 }
 0x3f4   : > { %12493 = vst [vmem:[#allocation101_spill] sm:$0xff] %v10059_v8 }
 0x3f8   : > { %v10061_v2 = vpop.f32.mrf.mxu2  ;;  %v2078_v18 = vpop.f32.mrf.mxu0 }
 0x3f9   : > { %12494 = vst [vmem:[#allocation102_spill] sm:$0xff] %v10061_v2  ;;  %v10063_v23 = vpop.f32.mrf.mxu3  ;;  %v2347_v17 = vadd.f32 %v2078_v18, %v9451_v59  ;;  %v2227_v40 = vpop.f32.mrf.mxu1 }
 0x3fa   : > { %12495 = vst [vmem:[#allocation103_spill] sm:$0xff] %v10063_v23  ;;  %v2348_v45 = vadd.f32 %v2227_v40, %v12496_v57  ;;  %v12501_v57 = vld [vmem:[#allocation67_spill] sm:$0xff] }
 0x3fb   : > { %7186 = vmatmul.msk.bf16.vlgmr.msra.gmra.mxu0 %vm1139_vm0, %v12497_v27 }
 0x3fc   : > { %7214 = vmatmul.msk.bf16.vlgmr.msra.gmra.mxu1 %vm1139_vm0, %v12497_v27 }
 0x400   : > { %v2569_v16 = vpop.f32.mrf.mxu2  ;;  %v2080_v63 = vpop.f32.mrf.mxu0 }
 0x401   : > { %v10074_v58 = vadd.f32 %v2569_v16, %v2347_v17  ;;  %v2718_v43 = vpop.f32.mrf.mxu3  ;;  %v10079_v18 = vadd.f32 %v2080_v63, %v12499_v25  ;;  %v2229_v40 = vpop.f32.mrf.mxu1  ;;  %v12506_v16 = vld [vmem:[#allocation69_spill] sm:$0xff] }
 0x402   : > { %v10076_v59 = vadd.f32 %v2718_v43, %v2348_v45  ;;  %v10082_v23 = vadd.f32 %v2229_v40, %v12501_v57  ;;  %v12509_v57 = vld [vmem:[#allocation70_spill] sm:$0xff] }
 0x403   : > { %12498 = vst [vmem:[#allocation65_spill] sm:$0xff] %v10074_v58 }
 0x404   : > { %12500 = vst [vmem:[#allocation4_spill] sm:$0xff] %v10079_v18 }
 0x405   : > { %12502 = vst [vmem:[#allocation66_spill] sm:$0xff] %v10082_v23 }
 0x408   : > { %v10084_v27 = vpop.f32.mrf.mxu2  ;;  %v2083_v2 = vpop.f32.mrf.mxu0 }
 0x409   : > { %12503 = vst [vmem:[#allocation67_spill] sm:$0xff] %v10084_v27  ;;  %v10086_v8 = vpop.f32.mrf.mxu3  ;;  %v2351_v26 = vadd.f32 %v2083_v2, %v12505_v36  ;;  %v2232_v17 = vpop.f32.mrf.mxu1  ;;  %v12510_v36 = vld [vmem:[#allocation71_spill] sm:$0xff] }
 0x40a   : > { %12504 = vst [vmem:[#allocation104_spill] sm:$0xff] %v10086_v8  ;;  %v2352_v58 = vadd.f32 %v2232_v17, %v12506_v16 }
 0x40b   : > { %7187 = vmatmul.msk.bf16.gmra.mxu0 %vm1139_vm0, %v12507_v44 }
 0x40c   : > { %7215 = vmatmul.msk.bf16.gmra.mxu1 %vm1139_vm0, %v12507_v44  ;;  %v12513_v44 = vld [vmem:[#allocation72_spill] sm:$0xff] }
 0x410   : > { %v2574_v45 = vpop.f32.mrf.mxu2  ;;  %v2085_v25 = vpop.f32.mrf.mxu0 }
 0x411   : > { %v10094_v43 = vadd.f32 %v2574_v45, %v2351_v26  ;;  %v2723_v63 = vpop.f32.mrf.mxu3  ;;  %v10099_v8 = vadd.f32 %v2085_v25, %v12509_v57  ;;  %v2234_v2 = vpop.f32.mrf.mxu1  ;;  %v12514_v45 = vld [vmem:[#allocation73_spill] sm:$0xff] }
 0x412   : > { %v10096_v40 = vadd.f32 %v2723_v63, %v2352_v58  ;;  %v10102_v23 = vadd.f32 %v2234_v2, %v12510_v36  ;;  %v12517_v36 = vld [vmem:[#allocation74_spill] sm:$0xff] }
 0x413   : > { %12508 = vst [vmem:[#allocation68_spill] sm:$0xff] %v10094_v43 }
 0x414   : > { %12511 = vst [vmem:[#allocation69_spill] sm:$0xff] %v10102_v23 }
 0x418   : > { %v10104_v17 = vpop.f32.mrf.mxu2  ;;  %v2088_v27 = vpop.f32.mrf.mxu0 }
 0x419   : > { %v10106_v16 = vpop.f32.mrf.mxu3  ;;  %v2355_v18 = vadd.f32 %v2088_v27, %v12513_v44  ;;  %v2237_v26 = vpop.f32.mrf.mxu1  ;;  %v12519_v44 = vld [vmem:[#allocation75_spill] sm:$0xff] }
 0x41a   : > { %12512 = vst [vmem:[#allocation5_spill] sm:$0xff] %v10106_v16  ;;  %v2356_v43 = vadd.f32 %v2237_v26, %v12514_v45  ;;  %v8184_v26 = vld [vmem:[%s12238_s3 + $0x48] sm:$0xff] }
 0x41b   : > { %7188 = vmatmul.msk.bf16.gmra.mxu0 %vm1139_vm0, %v8877_v4  ;;  %3891 = vmatpush.bf16.msra.mxu3 %v8184_v26 }
 0x41c   : > { %7216 = vmatmul.msk.bf16.gmra.mxu1 %vm1139_vm0, %v8877_v4 }
 0x420   : > { %v2579_v58 = vpop.f32.mrf.mxu2  ;;  %v2090_v57 = vpop.f32.mrf.mxu0 }
 0x421   : > { %v10114_v63 = vadd.f32 %v2579_v58, %v2355_v18  ;;  %v2728_v25 = vpop.f32.mrf.mxu3  ;;  %v10119_v16 = vadd.f32 %v2090_v57, %v12517_v36  ;;  %v2239_v27 = vpop.f32.mrf.mxu1 }
 0x422   : > { %v10116_v2 = vadd.f32 %v2728_v25, %v2356_v43  ;;  %v10122_v23 = vadd.f32 %v2239_v27, %v12519_v44 }
 0x423   : > { %12515 = vst [vmem:[#allocation70_spill] sm:$0xff] %v10114_v63  ;;  %v12543_v63 = vld [vmem:[#allocation7_spill] sm:$0xff] }
 0x424   : > { %12516 = vst [vmem:[#allocation71_spill] sm:$0xff] %v10116_v2 }
 0x425   : > { %12518 = vst [vmem:[#allocation72_spill] sm:$0xff] %v10119_v16  ;;  %v12532_v16 = vld [vmem:[#allocation79_spill] sm:$0xff] }
 0x426   : > { %12520 = vst [vmem:[#allocation73_spill] sm:$0xff] %v10122_v23 }
 0x428   : > { %v10127_v4 = vpop.f32.mrf.mxu2  ;;  %v2093_v45 = vpop.f32.mrf.mxu0 }
 0x429   : > { %12521 = vst [vmem:[#allocation74_spill] sm:$0xff] %v10127_v4  ;;  %v10129_v18 = vpop.f32.mrf.mxu3  ;;  %v2359_v43 = vadd.f32 %v2093_v45, %v9511_v48  ;;  %v2242_v58 = vpop.f32.mrf.mxu1  ;;  %v12527_v45 = vld [vmem:[#allocation77_spill] sm:$0xff] }
 0x42a   : > { %12522 = vst [vmem:[#allocation75_spill] sm:$0xff] %v10129_v18  ;;  %v2360_v25 = vadd.f32 %v2242_v58, %v9513_v15  ;;  %v12525_v18 = vld [vmem:[#allocation76_spill] sm:$0xff] }
 0x42b   : > { %7189 = vmatmul.msk.bf16.gmra.mxu0 %vm1139_vm0, %v8889_v11  ;;  %v8179_v15 = vld [vmem:[%s12238_s3 + $0x20] sm:$0xff] }
 0x42c   : > { %7217 = vmatmul.msk.bf16.gmra.mxu1 %vm1139_vm0, %v8889_v11  ;;  %3809 = vmatpush.bf16.msra.mxu2 %v8179_v15 }
 0x430   : > { %v2584_v57 = vpop.f32.mrf.mxu2  ;;  %v2095_v44 = vpop.f32.mrf.mxu0 }
 0x431   : > { %v10137_v36 = vadd.f32 %v2584_v57, %v2359_v43  ;;  %v2733_v27 = vpop.f32.mrf.mxu3  ;;  %v10142_v23 = vadd.f32 %v2095_v44, %v12525_v18  ;;  %v2244_v48 = vpop.f32.mrf.mxu1  ;;  %v12531_v57 = vld [vmem:[#allocation78_spill] sm:$0xff] }
 0x432   : > { %v10139_v26 = vadd.f32 %v2733_v27, %v2360_v25  ;;  %v10145_v4 = vadd.f32 %v2244_v48, %v12527_v45  ;;  %v12533_v44 = vld [vmem:[#allocation6_spill] sm:$0xff] }
 0x433   : > { %12523 = vst [vmem:[#allocation105_spill] sm:$0xff] %v10137_v36 }
 0x434   : > { %12524 = vst [vmem:[#allocation106_spill] sm:$0xff] %v10139_v26 }
 0x435   : > { %12526 = vst [vmem:[#allocation76_spill] sm:$0xff] %v10142_v23 }
 0x436   : > { %12528 = vst [vmem:[#allocation77_spill] sm:$0xff] %v10145_v4 }
 0x438   : > { %v10150_v11 = vpop.f32.mrf.mxu2  ;;  %v2098_v58 = vpop.f32.mrf.mxu0 }
 0x439   : > { %12529 = vst [vmem:[#allocation107_spill] sm:$0xff] %v10150_v11  ;;  %v10152_v43 = vpop.f32.mrf.mxu3  ;;  %v2363_v25 = vadd.f32 %v2098_v58, %v12531_v57  ;;  %v2247_v27 = vpop.f32.mrf.mxu1  ;;  %v12537_v57 = vld [vmem:[#allocation81_spill] sm:$0xff] }
 0x43a   : > { %12530 = vst [vmem:[#allocation108_spill] sm:$0xff] %v10152_v43  ;;  %v2364_v18 = vadd.f32 %v2247_v27, %v12532_v16  ;;  %v12535_v43 = vld [vmem:[#allocation80_spill] sm:$0xff] }
 0x43b   : > { %7190 = vmatmul.msk.bf16.gmra.mxu0 %vm1139_vm0, %v12533_v44 }
 0x43c   : > { %7218 = vmatmul.msk.bf16.gmra.mxu1 %vm1139_vm0, %v12533_v44  ;;  %v12541_v44 = vld [vmem:[#allocation82_spill] sm:$0xff] }
 0x440   : > { %v2589_v48 = vpop.f32.mrf.mxu2  ;;  %v2100_v4 = vpop.f32.mrf.mxu0 }
 0x441   : > { %v10160_v45 = vadd.f32 %v2589_v48, %v2363_v25  ;;  %v2738_v15 = vpop.f32.mrf.mxu3  ;;  %v10165_v23 = vadd.f32 %v2100_v4, %v12535_v43  ;;  %v2249_v58 = vpop.f32.mrf.mxu1  ;;  %v12542_v48 = vld [vmem:[#allocation83_spill] sm:$0xff] }
 0x442   : > { %v10162_v11 = vadd.f32 %v2738_v15, %v2364_v18  ;;  %v10168_v26 = vadd.f32 %v2249_v58, %v12537_v57  ;;  %v12545_v57 = vld [vmem:[#allocation84_spill] sm:$0xff] }
 0x443   : > { %12534 = vst [vmem:[#allocation78_spill] sm:$0xff] %v10160_v45 }
 0x444   : > { %12536 = vst [vmem:[#allocation79_spill] sm:$0xff] %v10165_v23 }
 0x445   : > { %12538 = vst [vmem:[#allocation6_spill] sm:$0xff] %v10168_v26 }
 0x448   : > { %v10170_v16 = vpop.f32.mrf.mxu2  ;;  %v2103_v36 = vpop.f32.mrf.mxu0 }
 0x449   : > { %12539 = vst [vmem:[#allocation80_spill] sm:$0xff] %v10170_v16  ;;  %v10172_v27 = vpop.f32.mrf.mxu3  ;;  %v2367_v2 = vadd.f32 %v2103_v36, %v12541_v44  ;;  %v2252_v25 = vpop.f32.mrf.mxu1  ;;  %v12547_v44 = vld [vmem:[#allocation85_spill] sm:$0xff] }
 0x44a   : > { %12540 = vst [vmem:[#allocation81_spill] sm:$0xff] %v10172_v27  ;;  %v2368_v45 = vadd.f32 %v2252_v25, %v12542_v48 }
 0x44b   : > { %7191 = vmatmul.msk.bf16.gmra.mxu0 %vm1139_vm0, %v12543_v63 }
 0x44c   : > { %7219 = vmatmul.msk.bf16.gmra.mxu1 %vm1139_vm0, %v12543_v63  ;;  %v12551_v63 = vld [vmem:[#allocation86_spill] sm:$0xff] }
 0x450   : > { %v2594_v4 = vpop.f32.mrf.mxu2  ;;  %v2105_v15 = vpop.f32.mrf.mxu0 }
 0x451   : > { %v10180_v43 = vadd.f32 %v2594_v4, %v2367_v2  ;;  %v2743_v18 = vpop.f32.mrf.mxu3  ;;  %v10185_v27 = vadd.f32 %v2105_v15, %v12545_v57  ;;  %v2254_v36 = vpop.f32.mrf.mxu1  ;;  %v12552_v4 = vld [vmem:[#allocation87_spill] sm:$0xff] }
 0x452   : > { %v10182_v58 = vadd.f32 %v2743_v18, %v2368_v45  ;;  %v10188_v26 = vadd.f32 %v2254_v36, %v12547_v44  ;;  %v12554_v44 = vld [vmem:[#allocation88_spill] sm:$0xff] }
 0x453   : > { %12544 = vst [vmem:[#allocation82_spill] sm:$0xff] %v10180_v43 }
 0x454   : > { %12546 = vst [vmem:[#allocation83_spill] sm:$0xff] %v10185_v27 }
 0x455   : > { %12548 = vst [vmem:[#allocation7_spill] sm:$0xff] %v10188_v26 }
 0x458   : > { %v10190_v25 = vpop.f32.mrf.mxu2  ;;  %v2108_v16 = vpop.f32.mrf.mxu0 }
 0x459   : > { %12549 = vst [vmem:[#allocation84_spill] sm:$0xff] %v10190_v25  ;;  %v10192_v48 = vpop.f32.mrf.mxu3  ;;  %v2371_v23 = vadd.f32 %v2108_v16, %v12551_v63  ;;  %v2257_v2 = vpop.f32.mrf.mxu1  ;;  %v12555_v63 = vld [vmem:[#allocation89_spill] sm:$0xff] }
 0x45a   : > { %12550 = vst [vmem:[#allocation85_spill] sm:$0xff] %v10192_v48  ;;  %v2372_v43 = vadd.f32 %v2257_v2, %v12552_v4 }
 0x45b   : > { %7192 = vmatmul.msk.bf16.gmra.mxu0 %vm1139_vm0, %v8941_v49 }
 0x45c   : > { %7220 = vmatmul.msk.bf16.gmra.mxu1 %vm1139_vm0, %v8941_v49  ;;  %v12559_v49 = vld [vmem:[#allocation90_spill] sm:$0xff] }
 0x460   : > { %v2599_v45 = vpop.f32.mrf.mxu2  ;;  %v2110_v57 = vpop.f32.mrf.mxu0 }
 0x461   : > { %v10200_v18 = vadd.f32 %v2599_v45, %v2371_v23  ;;  %v2748_v15 = vpop.f32.mrf.mxu3  ;;  %v10205_v48 = vadd.f32 %v2110_v57, %v12554_v44  ;;  %v2259_v16 = vpop.f32.mrf.mxu1  ;;  %v12560_v45 = vld [vmem:[#allocation91_spill] sm:$0xff] }
 0x462   : > { %v10202_v36 = vadd.f32 %v2748_v15, %v2372_v43  ;;  %v10208_v26 = vadd.f32 %v2259_v16, %v12555_v63  ;;  %v8178_v43 = vld [vmem:[%s12238_s3 + $0x18] sm:$0xff] }
 0x463   : > { %12553 = vst [vmem:[#allocation86_spill] sm:$0xff] %v10200_v18  ;;  %3810 = vmatpush.bf16.msra.mxu2 %v8178_v43 }
 0x464   : > { %12556 = vst [vmem:[#allocation87_spill] sm:$0xff] %v10208_v26 }
 0x468   : > { %v10210_v2 = vpop.f32.mrf.mxu2  ;;  %v2113_v25 = vpop.f32.mrf.mxu0 }
 0x469   : > { %12557 = vst [vmem:[#allocation88_spill] sm:$0xff] %v10210_v2  ;;  %v10212_v4 = vpop.f32.mrf.mxu3  ;;  %v2375_v27 = vadd.f32 %v2113_v25, %v12559_v49  ;;  %v2262_v23 = vpop.f32.mrf.mxu1  ;;  %v8177_v25 = vld [vmem:[%s12238_s3 + $0x10] sm:$0xff] }
 0x46a   : > { %12558 = vst [vmem:[#allocation89_spill] sm:$0xff] %v10212_v4  ;;  %v2376_v18 = vadd.f32 %v2262_v23, %v12560_v45  ;;  %3811 = vmatpush.bf16.msra.mxu2 %v8177_v25  ;;  %v3361_v25 = vld [vmem:[%s12237_s2] sm:$0x3] }
 0x46b   : > { %7193 = vmatmul.msk.bf16.gmra.mxu0 %vm1139_vm0, %v8961_v7 }
 0x46c   : > { %7221 = vmatmul.msk.bf16.gmra.mxu1 %vm1139_vm0, %v8961_v7 }
 0x470   : > { %v2604_v15 = vpop.f32.mrf.mxu2  ;;  %v2115_v16 = vpop.f32.mrf.mxu0 }
 0x471   : > { %v10223_v57 = vadd.f32 %v2604_v15, %v2375_v27  ;;  %v2753_v44 = vpop.f32.mrf.mxu3  ;;  %v2377_v49 = vadd.f32 %v2115_v16, %v9591_v46  ;;  %v2264_v23 = vpop.f32.mrf.mxu1  ;;  %v8176_v27 = vld [vmem:[%s12238_s3 + $0x8] sm:$0xff]  ;;  %v8183_v46 = vld [vmem:[%s12238_s3 + $0x40] sm:$0xff] }
 0x472   : > { %v10228_v63 = vadd.f32 %v2753_v44, %v2376_v18  ;;  %v10232_v7 = vadd.f32 %v2264_v23, %v9593_v38  ;;  %3812 = vmatpush.bf16.msra.mxu2 %v8176_v27  ;;  %v8175_v18 = vld [vmem:[%s12238_s3] sm:$0xff]  ;;  %3892 = vmatpush.bf16.msra.mxu3 %v8183_v46  ;;  %v10253_v23 = vperm.slane %v3361_v25, 0 }
 0x474   : > { %12561 = vst [vmem:[#allocation90_spill] sm:$0xff] %v10232_v7 }
 0x476   : > { %3813 = vmatpush.bf16.msra.mxu2 %v8175_v18 }
 0x478   : > { %v2606_v45 = vpop.f32.mrf.mxu2  ;;  %v2960_v15 = vpop.f32.mrf.mxu0 }
 0x479   : > { %v10237_v43 = vadd.f32 %v2606_v45, %v2377_v49  ;;  %v3109_v38 = vpop.f32.mrf.mxu1  ;;  %v3249_v49 = vadd.f32 %v2960_v15, %v9605_v54  ;;  %v10256_v45 = vperm.slane %v3361_v25, 1 }
 0x47a   : > { %v3250_v27 = vadd.f32 %v3109_v38, %v9607_v21 }
 0x47b   : > { %12562 = vst [vmem:[#allocation91_spill] sm:$0xff] %v10237_v43  ;;  %7194 = vmatmul.msk.bf16.gmra.mxu0 %vm1139_vm0, %v8981_v28  ;;  %v3367_v46 = vadd.f32 %v10253_v23, %v3249_v49 }
 0x47c   : > { %7222 = vmatmul.msk.bf16.gmra.mxu1 %vm1139_vm0, %v8981_v28  ;;  %v3368_v7 = vadd.f32 %v10256_v45, %v3250_v27 }
 0x47d   : > { %v3479_v21 = vmax.f32 %v3367_v46, 0.0 }
 0x480   : > { %v2962_v44 = vpop.f32.mrf.mxu0 }
 0x481   : > { %v3111_v16 = vpop.f32.mrf.mxu1  ;;  %v3251_v15 = vadd.f32 %v2962_v44, %v9611_v6 }
 0x482   : > { %v3252_v25 = vadd.f32 %v3111_v16, %v9613_v34 }
 0x488   : > { %v2965_v18 = vpop.f32.mrf.mxu0 }
 0x489   : > { %v3253_v43 = vadd.f32 %v2965_v18, %v9625_v50  ;;  %v3114_v28 = vpop.f32.mrf.mxu1  ;;  %v3480_v50 = vmax.f32 %v3368_v7, 0.0 }
 0x48a   : > { %v3254_v4 = vadd.f32 %v3114_v28, %v9627_v61 }
 0x48b   : > { %v3371_v26 = vadd.f32 %v10253_v23, %v3253_v43  ;;  %7195 = vmatmul.msk.bf16.gmra.mxu0 %vm1139_vm0, %v9001_v56  ;;  %v3369_v43 = vadd.f32 %v10253_v23, %v3251_v15 }
 0x48c   : > { %v3372_v54 = vadd.f32 %v10256_v45, %v3254_v4  ;;  %7223 = vmatmul.msk.bf16.gmra.mxu1 %vm1139_vm0, %v9001_v56  ;;  %v3370_v4 = vadd.f32 %v10256_v45, %v3252_v25 }
 0x48d   : > { %v3483_v38 = vmax.f32 %v3371_v26, 0.0  ;;  %v3481_v26 = vmax.f32 %v3369_v43, 0.0 }
 0x48e   : > { %v3484_v49 = vmax.f32 %v3372_v54, 0.0  ;;  %v3482_v34 = vmax.f32 %v3370_v4, 0.0 }
 0x48f   : > { %v3591_v27 = vmax.f32 %v3479_v21, %v3483_v38 }
 0x490   : > { %v3592_v61 = vmax.f32 %v3480_v50, %v3484_v49  ;;  %v2967_v18 = vpop.f32.mrf.mxu0 }
 0x491   : > { %v3255_v28 = vadd.f32 %v2967_v18, %v9631_v35  ;;  %v3116_v2 = vpop.f32.mrf.mxu1 }
 0x492   : > { %v3256_v56 = vadd.f32 %v3116_v2, %v9633_v52 }
 0x493   : > { %v3373_v46 = vadd.f32 %v10253_v23, %v3255_v28 }
 0x494   : > { %v3374_v6 = vadd.f32 %v10256_v45, %v3256_v56 }
 0x495   : > { %v3485_v7 = vmax.f32 %v3373_v46, 0.0  ;;  %v12563_v46 = vld [vmem:[#allocation92_spill] sm:$0xff] }
 0x496   : > { %v3486_v44 = vmax.f32 %v3374_v6, 0.0 }
 0x497   : > { %v3593_v16 = vmax.f32 %v3481_v26, %v3485_v7 }
 0x498   : > { %v3594_v54 = vmax.f32 %v3482_v34, %v3486_v44  ;;  %v2970_v21 = vpop.f32.mrf.mxu0 }
 0x499   : > { %v10276_v38 = vpack.c.bf16 %v3593_v16, %v3591_v27  ;;  %v3119_v15 = vpop.f32.mrf.mxu1  ;;  %v3257_v50 = vadd.f32 %v2970_v21, %v9645_v12  ;;  %v12564_v16 = vld [vmem:[#allocation93_spill] sm:$0xff] }
 0x49a   : > { %v10278_v35 = vpack.c.bf16 %v3594_v54, %v3592_v61  ;;  %v3258_v25 = vadd.f32 %v3119_v15, %v9647_v53 }
 0x49b   : > { %7196 = vmatmul.msk.bf16.gmra.mxu0 %vm1139_vm0, %v9033_v30  ;;  %3814 = vmatmul.bf16.vlgmr.msra.gmra.mxu2 %v10276_v38  ;;  %v3375_v27 = vadd.f32 %v10253_v23, %v3257_v50  ;;  %v12565_v50 = vld [vmem:[#allocation94_spill] sm:$0xff] }
 0x49c   : > { %7224 = vmatmul.msk.bf16.gmra.mxu1 %vm1139_vm0, %v9033_v30  ;;  %7282 = vmatmul.msk.bf16.vlgmr.msra.gmra.mxu3 %vm3759_vm2, %v10278_v35  ;;  %v3376_v43 = vadd.f32 %v10256_v45, %v3258_v25 }
 0x49d   : > { %v3487_v12 = vmax.f32 %v3375_v27, 0.0 }
 0x4a0   : > { %v2972_v52 = vpop.f32.mrf.mxu0 }
 0x4a1   : > { %v3121_v2 = vpop.f32.mrf.mxu1  ;;  %v3259_v53 = vadd.f32 %v2972_v52, %v9651_v31 }
 0x4a2   : > { %v3260_v6 = vadd.f32 %v3121_v2, %v12563_v46 }
 0x4a3   : > { %v3377_v44 = vadd.f32 %v10253_v23, %v3259_v53 }
 0x4a4   : > { %v3378_v15 = vadd.f32 %v10256_v45, %v3260_v6 }
 0x4a5   : > { %v3489_v52 = vmax.f32 %v3377_v44, 0.0 }
 0x4a6   : > { %v3490_v2 = vmax.f32 %v3378_v15, 0.0 }
 0x4a8   : > { %v2975_v49 = vpop.f32.mrf.mxu0 }
 0x4a9   : > { %v3261_v61 = vadd.f32 %v2975_v49, %v9665_v33  ;;  %v3124_v18 = vpop.f32.mrf.mxu1  ;;  %v3488_v33 = vmax.f32 %v3376_v43, 0.0 }
 0x4aa   : > { %v3262_v28 = vadd.f32 %v3124_v18, %v9667_v41 }
 0x4ab   : > { %v3379_v30 = vadd.f32 %v10253_v23, %v3261_v61  ;;  %7197 = vmatmul.msk.bf16.gmra.mxu0 %vm1139_vm0, %v9053_v3 }
 0x4ac   : > { %v3380_v4 = vadd.f32 %v10256_v45, %v3262_v28  ;;  %7225 = vmatmul.msk.bf16.gmra.mxu1 %vm1139_vm0, %v9053_v3 }
 0x4ad   : > { %v3491_v56 = vmax.f32 %v3379_v30, 0.0 }
 0x4ae   : > { %v3492_v26 = vmax.f32 %v3380_v4, 0.0 }
 0x4af   : > { %v3595_v7 = vmax.f32 %v3487_v12, %v3491_v56 }
 0x4b0   : > { %v3596_v41 = vmax.f32 %v3488_v33, %v3492_v26  ;;  %v2977_v34 = vpop.f32.mrf.mxu0 }
 0x4b1   : > { %v3263_v54 = vadd.f32 %v2977_v34, %v12564_v16  ;;  %v3126_v21 = vpop.f32.mrf.mxu1 }
 0x4b2   : > { %v3264_v3 = vadd.f32 %v3126_v21, %v12565_v50 }
 0x4b3   : > { %v3381_v25 = vadd.f32 %v10253_v23, %v3263_v54 }
 0x4b4   : > { %v3382_v31 = vadd.f32 %v10256_v45, %v3264_v3 }
 0x4b5   : > { %v3493_v49 = vmax.f32 %v3381_v25, 0.0  ;;  %v12566_v25 = vld [vmem:[#allocation95_spill] sm:$0xff] }
 0x4b6   : > { %v3494_v27 = vmax.f32 %v3382_v31, 0.0 }
 0x4b7   : > { %v3597_v61 = vmax.f32 %v3489_v52, %v3493_v49 }
 0x4b8   : > { %v3598_v18 = vmax.f32 %v3490_v2, %v3494_v27  ;;  %v2980_v43 = vpop.f32.mrf.mxu0  ;;  %v12567_v2 = vld [vmem:[#allocation96_spill] sm:$0xff] }
 0x4b9   : > { %v3129_v28 = vpop.f32.mrf.mxu1  ;;  %v10307_v30 = vpack.c.bf16 %v3597_v61, %v3595_v7  ;;  %v3265_v56 = vadd.f32 %v2980_v43, %v9697_v47 }
 0x4ba   : > { %v10309_v4 = vpack.c.bf16 %v3598_v18, %v3596_v41  ;;  %v3266_v33 = vadd.f32 %v3129_v28, %v9699_v62 }
 0x4bb   : > { %7198 = vmatmul.msk.bf16.gmra.mxu0 %vm1139_vm0, %v9073_v42  ;;  %3819 = vmatmul.bf16.gmra.mxu2 %v10307_v30  ;;  %v3383_v6 = vadd.f32 %v10253_v23, %v3265_v56 }
 0x4bc   : > { %7226 = vmatmul.msk.bf16.gmra.mxu1 %vm1139_vm0, %v9073_v42  ;;  %7283 = vmatmul.msk.bf16.gmra.mxu3 %vm3759_vm2, %v10309_v4  ;;  %v3384_v41 = vadd.f32 %v10256_v45, %v3266_v33 }
 0x4bd   : > { %v3495_v47 = vmax.f32 %v3383_v6, 0.0  ;;  %v12568_v6 = vld [vmem:[#allocation17_spill] sm:$0xff] }
 0x4c0   : > { %v2982_v12 = vpop.f32.mrf.mxu0 }
 0x4c1   : > { %v3131_v53 = vpop.f32.mrf.mxu1  ;;  %v3267_v62 = vadd.f32 %v2982_v12, %v9703_v60 }
 0x4c2   : > { %v3268_v54 = vadd.f32 %v3131_v53, %v9705_v9 }
 0x4c3   : > { %v3385_v3 = vadd.f32 %v10253_v23, %v3267_v62 }
 0x4c4   : > { %v3386_v49 = vadd.f32 %v10256_v45, %v3268_v54 }
 0x4c5   : > { %v3497_v61 = vmax.f32 %v3385_v3, 0.0  ;;  %v12573_v3 = vld [vmem:[#allocation22_spill] sm:$0xff] }
 0x4c6   : > { %v3498_v9 = vmax.f32 %v3386_v49, 0.0 }
 0x4c8   : > { %v2985_v46 = vpop.f32.mrf.mxu0 }
 0x4c9   : > { %v3269_v26 = vadd.f32 %v2985_v46, %v9717_v37  ;;  %v3134_v7 = vpop.f32.mrf.mxu1  ;;  %v3496_v37 = vmax.f32 %v3384_v41, 0.0  ;;  %v12569_v41 = vld [vmem:[#allocation12_spill] sm:$0xff] }
 0x4ca   : > { %v3270_v34 = vadd.f32 %v3134_v7, %v9719_v1 }
 0x4cb   : > { %v3387_v42 = vadd.f32 %v10253_v23, %v3269_v26  ;;  %7199 = vmatmul.msk.bf16.gmra.mxu0 %vm1139_vm0, %v12385_v5 }
 0x4cc   : > { %v3388_v44 = vadd.f32 %v10256_v45, %v3270_v34  ;;  %7227 = vmatmul.msk.bf16.gmra.mxu1 %vm1139_vm0, %v12385_v5 }
 0x4cd   : > { %v3499_v16 = vmax.f32 %v3387_v42, 0.0  ;;  %v12570_v42 = vld [vmem:[#allocation97_spill] sm:$0xff] }
 0x4ce   : > { %v3500_v21 = vmax.f32 %v3388_v44, 0.0 }
 0x4cf   : > { %v3599_v15 = vmax.f32 %v3495_v47, %v3499_v16  ;;  %v12571_v16 = vld [vmem:[#allocation10_spill] sm:$0xff] }
 0x4d0   : > { %v3600_v1 = vmax.f32 %v3496_v37, %v3500_v21  ;;  %v2987_v50 = vpop.f32.mrf.mxu0 }
 0x4d1   : > { %v3271_v31 = vadd.f32 %v2987_v50, %v12566_v25  ;;  %v3136_v52 = vpop.f32.mrf.mxu1 }
 0x4d2   : > { %v3272_v5 = vadd.f32 %v3136_v52, %v12567_v2  ;;  %v12574_v52 = vld [vmem:[#allocation8_spill] sm:$0xff] }
 0x4d3   : > { %v3389_v27 = vadd.f32 %v10253_v23, %v3271_v31 }
 0x4d4   : > { %v3390_v60 = vadd.f32 %v10256_v45, %v3272_v5 }
 0x4d5   : > { %v3501_v18 = vmax.f32 %v3389_v27, 0.0  ;;  %v12575_v27 = vld [vmem:[#allocation9_spill] sm:$0xff] }
 0x4d6   : > { %v3502_v43 = vmax.f32 %v3390_v60, 0.0 }
 0x4d7   : > { %v3601_v28 = vmax.f32 %v3497_v61, %v3501_v18 }
 0x4d8   : > { %v3602_v12 = vmax.f32 %v3498_v9, %v3502_v43  ;;  %v2990_v53 = vpop.f32.mrf.mxu0 }
 0x4d9   : > { %v3139_v56 = vpop.f32.mrf.mxu1  ;;  %v10338_v33 = vpack.c.bf16 %v3601_v28, %v3599_v15  ;;  %v3273_v34 = vadd.f32 %v2990_v53, %v12569_v41  ;;  %v12572_v15 = vld [vmem:[#allocation11_spill] sm:$0xff]  ;;  %v12577_v41 = vld [vmem:[#allocation14_spill] sm:$0xff] }
 0x4da   : > { %v10340_v46 = vpack.c.bf16 %v3602_v12, %v3600_v1  ;;  %v3274_v44 = vadd.f32 %v3139_v56, %v12570_v42  ;;  %v12576_v12 = vld [vmem:[#allocation13_spill] sm:$0xff] }
 0x4db   : > { %7200 = vmatmul.msk.bf16.gmra.mxu0 %vm1139_vm0, %v12568_v6  ;;  %3824 = vmatmul.bf16.gmra.mxu2 %v10338_v33  ;;  %v3391_v62 = vadd.f32 %v10253_v23, %v3273_v34 }
 0x4dc   : > { %7228 = vmatmul.msk.bf16.gmra.mxu1 %vm1139_vm0, %v12568_v6  ;;  %7284 = vmatmul.msk.bf16.gmra.mxu3 %vm3759_vm2, %v10340_v46  ;;  %v3392_v21 = vadd.f32 %v10256_v45, %v3274_v44 }
 0x4dd   : > { %v3503_v31 = vmax.f32 %v3391_v62, 0.0 }
 0x4de   : > { %v3504_v5 = vmax.f32 %v3392_v21, 0.0 }
 0x4e0   : > { %v2992_v26 = vpop.f32.mrf.mxu0 }
 0x4e1   : > { %v3141_v7 = vpop.f32.mrf.mxu1  ;;  %v3275_v49 = vadd.f32 %v2992_v26, %v12574_v52 }
 0x4e2   : > { %v3276_v60 = vadd.f32 %v3141_v7, %v12575_v27 }
 0x4e3   : > { %v3393_v28 = vadd.f32 %v10253_v23, %v3275_v49  ;;  %v12580_v49 = vld [vmem:[#allocation16_spill] sm:$0xff] }
 0x4e4   : > { %v3394_v6 = vadd.f32 %v10256_v45, %v3276_v60  ;;  %v12581_v60 = vld [vmem:[#allocation20_spill] sm:$0xff] }
 0x4e5   : > { %v3505_v44 = vmax.f32 %v3393_v28, 0.0 }
 0x4e6   : > { %v3506_v7 = vmax.f32 %v3394_v6, 0.0 }
 0x4e8   : > { %v2995_v47 = vpop.f32.mrf.mxu0 }
 0x4e9   : > { %v3277_v37 = vadd.f32 %v2995_v47, %v12571_v16  ;;  %v3144_v54 = vpop.f32.mrf.mxu1 }
 0x4ea   : > { %v3278_v1 = vadd.f32 %v3144_v54, %v12572_v15 }
 0x4eb   : > { %v3395_v50 = vadd.f32 %v10253_v23, %v3277_v37  ;;  %7201 = vmatmul.msk.bf16.gmra.mxu0 %vm1139_vm0, %v12573_v3 }
 0x4ec   : > { %v3396_v25 = vadd.f32 %v10256_v45, %v3278_v1  ;;  %7229 = vmatmul.msk.bf16.gmra.mxu1 %vm1139_vm0, %v12573_v3 }
 0x4ed   : > { %v3507_v2 = vmax.f32 %v3395_v50, 0.0  ;;  %v12578_v50 = vld [vmem:[#allocation27_spill] sm:$0xff] }
 0x4ee   : > { %v3508_v61 = vmax.f32 %v3396_v25, 0.0 }
 0x4ef   : > { %v3603_v18 = vmax.f32 %v3503_v31, %v3507_v2  ;;  %v12579_v31 = vld [vmem:[#allocation15_spill] sm:$0xff] }
 0x4f0   : > { %v3604_v9 = vmax.f32 %v3504_v5, %v3508_v61  ;;  %v2997_v43 = vpop.f32.mrf.mxu0 }
 0x4f1   : > { %v3279_v53 = vadd.f32 %v2997_v43, %v12576_v12  ;;  %v3146_v56 = vpop.f32.mrf.mxu1  ;;  %v12582_v43 = vld [vmem:[#allocation21_spill] sm:$0xff] }
 0x4f2   : > { %v3280_v34 = vadd.f32 %v3146_v56, %v12577_v41  ;;  %v12584_v41 = vld [vmem:[#allocation18_spill] sm:$0xff] }
 0x4f3   : > { %v3397_v42 = vadd.f32 %v10253_v23, %v3279_v53  ;;  %v12583_v53 = vld [vmem:[#allocation32_spill] sm:$0xff] }
 0x4f4   : > { %v3398_v26 = vadd.f32 %v10256_v45, %v3280_v34 }
 0x4f5   : > { %v3509_v47 = vmax.f32 %v3397_v42, 0.0 }
 0x4f6   : > { %v3510_v62 = vmax.f32 %v3398_v26, 0.0 }
 0x4f7   : > { %v3605_v16 = vmax.f32 %v3505_v44, %v3509_v47  ;;  %v12585_v44 = vld [vmem:[#allocation19_spill] sm:$0xff] }
 0x4f8   : > { %v3606_v37 = vmax.f32 %v3506_v7, %v3510_v62  ;;  %v3000_v54 = vpop.f32.mrf.mxu0 }
 0x4f9   : > { %v3149_v21 = vpop.f32.mrf.mxu1  ;;  %v10369_v15 = vpack.c.bf16 %v3605_v16, %v3603_v18  ;;  %v3281_v52 = vadd.f32 %v3000_v54, %v12579_v31 }
 0x4fa   : > { %v10371_v1 = vpack.c.bf16 %v3606_v37, %v3604_v9  ;;  %v3282_v2 = vadd.f32 %v3149_v21, %v12580_v49  ;;  %v12586_v21 = vld [vmem:[#allocation23_spill] sm:$0xff]  ;;  %v12587_v49 = vld [vmem:[#allocation24_spill] sm:$0xff] }
 0x4fb   : > { %7202 = vmatmul.msk.bf16.gmra.mxu0 %vm1139_vm0, %v12578_v50  ;;  %3829 = vmatmul.bf16.gmra.mxu2 %v10369_v15  ;;  %v3399_v27 = vadd.f32 %v10253_v23, %v3281_v52 }
 0x4fc   : > { %7230 = vmatmul.msk.bf16.gmra.mxu1 %vm1139_vm0, %v12578_v50  ;;  %7285 = vmatmul.msk.bf16.gmra.mxu3 %vm3759_vm2, %v10371_v1  ;;  %v3400_v9 = vadd.f32 %v10256_v45, %v3282_v2 }
 0x4fd   : > { %v3511_v6 = vmax.f32 %v3399_v27, 0.0 }
 0x4fe   : > { %v3512_v26 = vmax.f32 %v3400_v9, 0.0 }
 0x500   : > { %v3002_v3 = vpop.f32.mrf.mxu0 }
 0x501   : > { %v3151_v25 = vpop.f32.mrf.mxu1  ;;  %v3283_v34 = vadd.f32 %v3002_v3, %v12584_v41 }
 0x502   : > { %v3284_v47 = vadd.f32 %v3151_v25, %v12585_v44 }
 0x503   : > { %v3401_v54 = vadd.f32 %v10253_v23, %v3283_v34 }
 0x504   : > { %v3402_v52 = vadd.f32 %v10256_v45, %v3284_v47  ;;  %v12588_v47 = vld [vmem:[#allocation37_spill] sm:$0xff] }
 0x505   : > { %v3513_v27 = vmax.f32 %v3401_v54, 0.0 }
 0x506   : > { %v3514_v25 = vmax.f32 %v3402_v52, 0.0 }
 0x508   : > { %v3005_v5 = vpop.f32.mrf.mxu0 }
 0x509   : > { %v3285_v61 = vadd.f32 %v3005_v5, %v12581_v60  ;;  %v3154_v18 = vpop.f32.mrf.mxu1 }
 0x50a   : > { %v3286_v28 = vadd.f32 %v3154_v18, %v12582_v43  ;;  %v10400_v18 = vpop.f32.mrf.mxu3 }
 0x50b   : > { %v3403_v12 = vadd.f32 %v10253_v23, %v3285_v61  ;;  %7203 = vmatmul.msk.bf16.gmra.mxu0 %vm1139_vm0, %v12583_v53 }
 0x50c   : > { %v3404_v56 = vadd.f32 %v10256_v45, %v3286_v28  ;;  %7231 = vmatmul.msk.bf16.gmra.mxu1 %vm1139_vm0, %v12583_v53  ;;  %v8226_v53 = vld [vmem:[%s12240_s5 + $0xf4] sm:$0xf0] }
 0x50d   : > { %v3515_v42 = vmax.f32 %v3403_v12, 0.0  ;;  %v7424_v12 = vld [vmem:[%s12240_s5 + $0xf0] sm:$0xf] }
 0x50e   : > { %v3516_v7 = vmax.f32 %v3404_v56, 0.0  ;;  %v8225_v56 = vld [vmem:[%s12240_s5 + $0xf4] sm:$0xf]  ;;  %v7425_v34 = vor.u32 %v8226_v53, %v7424_v12  ;;  %v12594_v53 = vld [vmem:[#allocation28_spill] sm:$0xff] }
 0x50f   : > { %v3607_v62 = vmax.f32 %v3511_v6, %v3515_v42  ;;  %v7426_v42 = vld [vmem:[%s12240_s5 + $0xf8] sm:$0xf0] }
 0x510   : > { %v3608_v16 = vmax.f32 %v3512_v26, %v3516_v7  ;;  %v3007_v37 = vpop.f32.mrf.mxu0  ;;  %v7429_v44 = vor.u32 %v8225_v56, %v7426_v42  ;;  %4438 = vmatpush.bf16.msrb.mxu0 %v7425_v34  ;;  %v12595_v42 = vld [vmem:[#allocation29_spill] sm:$0xff] }
 0x511   : > { %v3287_v50 = vadd.f32 %v3007_v37, %v12586_v21  ;;  %v3156_v31 = vpop.f32.mrf.mxu1  ;;  %v12589_v21 = vld [vmem:[#allocation25_spill] sm:$0xff] }
 0x512   : > { %v3288_v2 = vadd.f32 %v3156_v31, %v12587_v49  ;;  %4497 = vmatpush.bf16.msrb.mxu1 %v7429_v44  ;;  %v12590_v31 = vld [vmem:[#allocation26_spill] sm:$0xff] }
 0x513   : > { %v3405_v5 = vadd.f32 %v10253_v23, %v3287_v50 }
 0x514   : > { %v3406_v3 = vadd.f32 %v10256_v45, %v3288_v2 }
 0x515   : > { %v3517_v60 = vmax.f32 %v3405_v5, 0.0  ;;  %v12591_v5 = vld [vmem:[#allocation30_spill] sm:$0xff] }
 0x516   : > { %v3518_v61 = vmax.f32 %v3406_v3, 0.0 }
 0x517   : > { %v3609_v9 = vmax.f32 %v3513_v27, %v3517_v60 }
 0x518   : > { %v3610_v43 = vmax.f32 %v3514_v25, %v3518_v61  ;;  %v3010_v28 = vpop.f32.mrf.mxu0  ;;  %v12592_v25 = vld [vmem:[#allocation31_spill] sm:$0xff] }
 0x519   : > { %v3159_v6 = vpop.f32.mrf.mxu1  ;;  %v10411_v41 = vpack.c.bf16 %v3609_v9, %v3607_v62  ;;  %v3289_v50 = vadd.f32 %v3010_v28, %v12589_v21 }
 0x51a   : > { %v10416_v26 = vpack.c.bf16 %v3610_v43, %v3608_v16  ;;  %v3290_v52 = vadd.f32 %v3159_v6, %v12590_v31  ;;  %v12593_v43 = vld [vmem:[#allocation42_spill] sm:$0xff]  ;;  %v12596_v31 = vld [vmem:[#allocation33_spill] sm:$0xff] }
 0x51b   : > { %7204 = vmatmul.msk.bf16.gmra.mxu0 %vm1139_vm0, %v12588_v47  ;;  %3834 = vmatmul.bf16.gmra.mxu2 %v10411_v41  ;;  %v3407_v2 = vadd.f32 %v10253_v23, %v3289_v50 }
 0x51c   : > { %7232 = vmatmul.msk.bf16.gmra.mxu1 %vm1139_vm0, %v12588_v47  ;;  %7286 = vmatmul.msk.bf16.gmra.mxu3 %vm3759_vm2, %v10416_v26  ;;  %v3408_v60 = vadd.f32 %v10256_v45, %v3290_v52 }
 0x51d   : > { %v3519_v28 = vmax.f32 %v3407_v2, 0.0 }
 0x51e   : > { %v3815_v7 = vpop.f32.mrf.mxu2  ;;  %v3520_v34 = vmax.f32 %v3408_v60, 0.0 }
 0x51f   : > { %v3894_v62 = vpop.f32.mrf.mxu3 }
 0x520   : > { %v10425_v37 = vadd.f32 %v3894_v62, %v3815_v7  ;;  %v3012_v16 = vpop.f32.mrf.mxu0 }
 0x521   : > { %v3161_v54 = vpop.f32.mrf.mxu1  ;;  %v3291_v56 = vadd.f32 %v3012_v16, %v12594_v53 }
 0x522   : > { %v3292_v44 = vadd.f32 %v3161_v54, %v12595_v42  ;;  %v12600_v42 = vld [vmem:[#allocation47_spill] sm:$0xff] }
 0x523   : > { %v3409_v50 = vadd.f32 %v10253_v23, %v3291_v56 }
 0x525   : > { %v3521_v60 = vmax.f32 %v3409_v50, 0.0 }
 0x528   : > { %v3015_v49 = vpop.f32.mrf.mxu0 }
 0x529   : > { %v3293_v3 = vadd.f32 %v3015_v49, %v12591_v5  ;;  %v3164_v27 = vpop.f32.mrf.mxu1  ;;  %v3410_v5 = vadd.f32 %v10256_v45, %v3292_v44 }
 0x52a   : > { %v3294_v61 = vadd.f32 %v3164_v27, %v12592_v25 }
 0x52b   : > { %v3411_v9 = vadd.f32 %v10253_v23, %v3293_v3  ;;  %7205 = vmatmul.msk.bf16.gmra.mxu0 %vm1139_vm0, %v12593_v43  ;;  %v12597_v3 = vld [vmem:[#allocation34_spill] sm:$0xff]  ;;  %v3522_v54 = vmax.f32 %v3410_v5, 0.0 }
 0x52c   : > { %v3412_v12 = vadd.f32 %v10256_v45, %v3294_v61  ;;  %7233 = vmatmul.msk.bf16.gmra.mxu1 %vm1139_vm0, %v12593_v43  ;;  %v10447_v61 = vpop.f32.mrf.mxu2  ;;  %v10449_v43 = vpop.f32.mrf.mxu3 }
 0x52d   : > { %v3523_v6 = vmax.f32 %v3411_v9, 0.0  ;;  %12598 = vst [vmem:[#allocation92_spill] sm:$0xff] %v10447_v61 }
 0x52e   : > { %v3524_v47 = vmax.f32 %v3412_v12, 0.0  ;;  %12599 = vst [vmem:[#allocation93_spill] sm:$0xff] %v10449_v43 }
 0x52f   : > { %v3611_v7 = vmax.f32 %v3519_v28, %v3523_v6 }
 0x530   : > { %v3612_v62 = vmax.f32 %v3520_v34, %v3524_v47  ;;  %v3017_v21 = vpop.f32.mrf.mxu0 }
 0x531   : > { %v3295_v52 = vadd.f32 %v3017_v21, %v12596_v31  ;;  %v3166_v49 = vpop.f32.mrf.mxu1  ;;  %v12602_v31 = vld [vmem:[#allocation35_spill] sm:$0xff] }
 0x532   : > { %v3296_v27 = vadd.f32 %v3166_v49, %v12597_v3 }
 0x533   : > { %v3413_v2 = vadd.f32 %v10253_v23, %v3295_v52  ;;  %v12603_v52 = vld [vmem:[#allocation36_spill] sm:$0xff] }
 0x534   : > { %v3414_v16 = vadd.f32 %v10256_v45, %v3296_v27  ;;  %v12604_v27 = vld [vmem:[#allocation40_spill] sm:$0xff] }
 0x535   : > { %v3525_v25 = vmax.f32 %v3413_v2, 0.0 }
 0x536   : > { %v3526_v9 = vmax.f32 %v3414_v16, 0.0 }
 0x537   : > { %v3613_v12 = vmax.f32 %v3521_v60, %v3525_v25  ;;  %v12605_v25 = vld [vmem:[#allocation41_spill] sm:$0xff] }
 0x538   : > { %v3614_v28 = vmax.f32 %v3522_v54, %v3526_v9  ;;  %v3020_v53 = vpop.f32.mrf.mxu0 }
 0x539   : > { %v3169_v56 = vpop.f32.mrf.mxu1  ;;  %v10451_v6 = vpack.c.bf16 %v3613_v12, %v3611_v7  ;;  %v12606_v12 = vld [vmem:[#allocation52_spill] sm:$0xff] }
 0x53a   : > { %v10453_v34 = vpack.c.bf16 %v3614_v28, %v3612_v62  ;;  %v3297_v62 = vadd.f32 %v3020_v53, %v12602_v31  ;;  %v3298_v49 = vadd.f32 %v3169_v56, %v12603_v52  ;;  %v12607_v56 = vld [vmem:[#allocation38_spill] sm:$0xff]  ;;  %v12608_v31 = vld [vmem:[#allocation39_spill] sm:$0xff] }
 0x53b   : > { %7206 = vmatmul.msk.bf16.gmra.mxu0 %vm1139_vm0, %v12600_v42  ;;  %3839 = vmatmul.bf16.gmra.mxu2 %v10451_v6 }
 0x53c   : > { %7234 = vmatmul.msk.bf16.gmra.mxu1 %vm1139_vm0, %v12600_v42  ;;  %7287 = vmatmul.msk.bf16.gmra.mxu3 %vm3759_vm2, %v10453_v34  ;;  %v3415_v3 = vadd.f32 %v10253_v23, %v3297_v62  ;;  %v3416_v60 = vadd.f32 %v10256_v45, %v3298_v49 }
 0x53e   : > { %v3820_v44 = vpop.f32.mrf.mxu2  ;;  %v3527_v53 = vmax.f32 %v3415_v3, 0.0 }
 0x53f   : > { %v3899_v47 = vpop.f32.mrf.mxu3 }
 0x540   : > { %v10462_v21 = vadd.f32 %v3899_v47, %v3820_v44  ;;  %v3022_v50 = vpop.f32.mrf.mxu0  ;;  %v3528_v47 = vmax.f32 %v3416_v60, 0.0  ;;  %v12609_v60 = vld [vmem:[#allocation43_spill] sm:$0xff] }
 0x541   : > { %v3171_v7 = vpop.f32.mrf.mxu1  ;;  %v3299_v42 = vadd.f32 %v3022_v50, %v12607_v56  ;;  %v8223_v50 = vld [vmem:[%s12240_s5 + $0xe4] sm:$0xf] }
 0x542   : > { %12601 = vst [vmem:[#allocation94_spill] sm:$0xff] %v10462_v21  ;;  %v3300_v62 = vadd.f32 %v3171_v7, %v12608_v31  ;;  %v12610_v56 = vld [vmem:[#allocation44_spill] sm:$0xff] }
 0x543   : > { %v3417_v3 = vadd.f32 %v10253_v23, %v3299_v42 }
 0x546   : > { %v10502_v21 = vpop.f32.mrf.mxu2 }
 0x547   : > { %12611 = vst [vmem:[#allocation95_spill] sm:$0xff] %v10502_v21  ;;  %v10505_v61 = vpop.f32.mrf.mxu3 }
 0x548   : > { %v3025_v5 = vpop.f32.mrf.mxu0  ;;  %12612 = vst [vmem:[#allocation96_spill] sm:$0xff] %v10505_v61  ;;  %v12621_v61 = vld [vmem:[#allocation57_spill] sm:$0xff] }
 0x549   : > { %v3301_v2 = vadd.f32 %v3025_v5, %v12604_v27  ;;  %v3174_v16 = vpop.f32.mrf.mxu1 }
 0x54a   : > { %v3302_v54 = vadd.f32 %v3174_v16, %v12605_v25  ;;  %v8224_v16 = vld [vmem:[%s12240_s5 + $0xe4] sm:$0xf0] }
 0x54b   : > { %v3419_v9 = vadd.f32 %v10253_v23, %v3301_v2  ;;  %7207 = vmatmul.msk.bf16.gmra.mxu0 %vm1139_vm0, %v12606_v12  ;;  %v7416_v2 = vld [vmem:[%s12240_s5 + $0xe0] sm:$0xf] }
 0x54c   : > { %v3420_v28 = vadd.f32 %v10256_v45, %v3302_v54  ;;  %7235 = vmatmul.msk.bf16.gmra.mxu1 %vm1139_vm0, %v12606_v12  ;;  %v7417_v54 = vor.u32 %v8224_v16, %v7416_v2  ;;  %v8192_v12 = vld [vmem:[%s12239_s4 + $0x38] sm:$0xff]  ;;  %v3529_v2 = vmax.f32 %v3417_v3, 0.0 }
 0x54d   : > { %v3531_v44 = vmax.f32 %v3419_v9, 0.0  ;;  %v7418_v9 = vld [vmem:[%s12240_s5 + $0xe8] sm:$0xf0]  ;;  %4051 = vmatpush.bf16.msrb.mxu2 %v8192_v12 }
 0x54e   : > { %v3532_v52 = vmax.f32 %v3420_v28, 0.0  ;;  %v3984_v28 = vld [vmem:[%s12239_s4 + $0x50] sm:$0xf]  ;;  %4439 = vmatpush.bf16.msrb.mxu0 %v7417_v54 }
 0x54f   : > { %v3615_v49 = vmax.f32 %v3527_v53, %v3531_v44  ;;  %v3418_v53 = vadd.f32 %v10256_v45, %v3300_v62  ;;  %v7421_v44 = vor.u32 %v8223_v50, %v7418_v9 }
 0x550   : > { %v3616_v5 = vmax.f32 %v3528_v47, %v3532_v52  ;;  %v3027_v27 = vpop.f32.mrf.mxu0  ;;  %v4026_v47 = vunpack.c.l.b16 %v3984_v28 }
 0x551   : > { %v3303_v7 = vadd.f32 %v3027_v27, %v12609_v60  ;;  %v3176_v25 = vpop.f32.mrf.mxu1  ;;  %4498 = vmatpush.bf16.msrb.mxu1 %v7421_v44  ;;  %v3530_v60 = vmax.f32 %v3418_v53, 0.0 }
 0x552   : > { %v3304_v42 = vadd.f32 %v3176_v25, %v12610_v56  ;;  %v4037_v27 = vpack.c.b16 %v4026_v47, %v4026_v47  ;;  %v12614_v56 = vld [vmem:[#allocation45_spill] sm:$0xff] }
 0x553   : > { %v3421_v31 = vadd.f32 %v10253_v23, %v3303_v7 }
 0x554   : > { %v3422_v52 = vadd.f32 %v10256_v45, %v3304_v42  ;;  %v4049_v62 = vsel %vm3802_vm1, %v4037_v27, 0  ;;  %v12615_v42 = vld [vmem:[#allocation46_spill] sm:$0xff] }
 0x555   : > { %v3533_v16 = vmax.f32 %v3421_v31, 0.0  ;;  %4135 = vmatpush.bf16.msrb.mxu3 %v4049_v62  ;;  %v8191_v31 = vld [vmem:[%s12239_s4 + $0x30] sm:$0xff] }
 0x556   : > { %v3534_v43 = vmax.f32 %v3422_v52, 0.0  ;;  %v12616_v52 = vld [vmem:[#allocation50_spill] sm:$0xff]  ;;  %4052 = vmatpush.bf16.msrb.mxu2 %v8191_v31 }
 0x557   : > { %v3617_v50 = vmax.f32 %v3529_v2, %v3533_v16 }
 0x558   : > { %v3618_v25 = vmax.f32 %v3530_v60, %v3534_v43  ;;  %v3030_v7 = vpop.f32.mrf.mxu0 }
 0x559   : > { %v3179_v54 = vpop.f32.mrf.mxu1  ;;  %v10507_v9 = vpack.c.bf16 %v3617_v50, %v3615_v49  ;;  %v12617_v50 = vld [vmem:[#allocation62_spill] sm:$0xff] }
 0x55a   : > { %v10509_v12 = vpack.c.bf16 %v3618_v25, %v3616_v5  ;;  %v3305_v5 = vadd.f32 %v3030_v7, %v12614_v56  ;;  %v3306_v44 = vadd.f32 %v3179_v54, %v12615_v42  ;;  %v12618_v54 = vld [vmem:[#allocation48_spill] sm:$0xff] }
 0x55b   : > { %7208 = vmatmul.msk.bf16.gmra.mxu0 %vm1139_vm0, %v12466_v20  ;;  %3844 = vmatmul.bf16.gmra.mxu2 %v10507_v9 }
 0x55c   : > { %7236 = vmatmul.msk.bf16.gmra.mxu1 %vm1139_vm0, %v12466_v20  ;;  %7288 = vmatmul.msk.bf16.gmra.mxu3 %vm3759_vm2, %v10509_v12  ;;  %v3423_v20 = vadd.f32 %v10253_v23, %v3305_v5  ;;  %v3424_v16 = vadd.f32 %v10256_v45, %v3306_v44  ;;  %v12619_v5 = vld [vmem:[#allocation49_spill] sm:$0xff] }
 0x55e   : > { %v3825_v3 = vpop.f32.mrf.mxu2  ;;  %v3535_v7 = vmax.f32 %v3423_v20, 0.0  ;;  %v3536_v56 = vmax.f32 %v3424_v16, 0.0 }
 0x55f   : > { %v3904_v28 = vpop.f32.mrf.mxu3 }
 0x560   : > { %v10518_v43 = vadd.f32 %v3904_v28, %v3825_v3  ;;  %v3032_v53 = vpop.f32.mrf.mxu0 }
 0x561   : > { %v3181_v49 = vpop.f32.mrf.mxu1  ;;  %v3307_v3 = vadd.f32 %v3032_v53, %v12618_v54 }
 0x562   : > { %12613 = vst [vmem:[#allocation17_spill] sm:$0xff] %v10518_v43  ;;  %v3308_v42 = vadd.f32 %v3181_v49, %v12619_v5 }
 0x567   : > { %v10545_v54 = vpop.f32.mrf.mxu3 }
 0x568   : > { %v3035_v47 = vpop.f32.mrf.mxu0  ;;  %12623 = vst [vmem:[#allocation97_spill] sm:$0xff] %v10545_v54 }
 0x569   : > { %v3309_v27 = vadd.f32 %v3035_v47, %v12616_v52  ;;  %v3184_v2 = vpop.f32.mrf.mxu1  ;;  %v3425_v52 = vadd.f32 %v10253_v23, %v3307_v3 }
 0x56a   : > { %v3310_v60 = vadd.f32 %v3184_v2, %v9950_v51 }
 0x56b   : > { %v3427_v62 = vadd.f32 %v10253_v23, %v3309_v27  ;;  %7209 = vmatmul.msk.bf16.gmra.mxu0 %vm1139_vm0, %v12617_v50  ;;  %v12620_v27 = vld [vmem:[#allocation51_spill] sm:$0xff]  ;;  %v3537_v16 = vmax.f32 %v3425_v52, 0.0 }
 0x56c   : > { %v3428_v25 = vadd.f32 %v10256_v45, %v3310_v60  ;;  %7237 = vmatmul.msk.bf16.gmra.mxu1 %vm1139_vm0, %v12617_v50  ;;  %v3426_v60 = vadd.f32 %v10256_v45, %v3308_v42 }
 0x56d   : > { %v3539_v28 = vmax.f32 %v3427_v62, 0.0 }
 0x56e   : > { %v3540_v44 = vmax.f32 %v3428_v25, 0.0  ;;  %v3538_v49 = vmax.f32 %v3426_v60, 0.0  ;;  %v10543_v25 = vpop.f32.mrf.mxu2 }
 0x56f   : > { %v3619_v51 = vmax.f32 %v3535_v7, %v3539_v28  ;;  %12622 = vst [vmem:[#allocation12_spill] sm:$0xff] %v10543_v25 }
 0x570   : > { %v3620_v47 = vmax.f32 %v3536_v56, %v3540_v44  ;;  %v3037_v31 = vpop.f32.mrf.mxu0 }
 0x571   : > { %v3311_v2 = vadd.f32 %v3037_v31, %v12620_v27  ;;  %v3186_v43 = vpop.f32.mrf.mxu1  ;;  %v12625_v27 = vld [vmem:[#allocation53_spill] sm:$0xff] }
 0x572   : > { %v3312_v50 = vadd.f32 %v3186_v43, %v12621_v61 }
 0x573   : > { %v3429_v20 = vadd.f32 %v10253_v23, %v3311_v2  ;;  %v12626_v2 = vld [vmem:[#allocation54_spill] sm:$0xff] }
 0x574   : > { %v3430_v53 = vadd.f32 %v10256_v45, %v3312_v50  ;;  %v7408_v50 = vld [vmem:[%s12240_s5 + $0xd0] sm:$0xf] }
 0x575   : > { %v3541_v62 = vmax.f32 %v3429_v20, 0.0  ;;  %v8190_v20 = vld [vmem:[%s12239_s4 + $0x28] sm:$0xff] }
 0x576   : > { %v3542_v7 = vmax.f32 %v3430_v53, 0.0  ;;  %4053 = vmatpush.bf16.msrb.mxu2 %v8190_v20  ;;  %v12630_v20 = vld [vmem:[#allocation59_spill] sm:$0xff] }
 0x577   : > { %v3621_v3 = vmax.f32 %v3537_v16, %v3541_v62  ;;  %v8221_v16 = vld [vmem:[%s12240_s5 + $0xd4] sm:$0xf]  ;;  %v7410_v62 = vld [vmem:[%s12240_s5 + $0xd8] sm:$0xf0] }
 0x578   : > { %v3622_v28 = vmax.f32 %v3538_v49, %v3542_v7  ;;  %v3040_v56 = vpop.f32.mrf.mxu0  ;;  %v7413_v7 = vor.u32 %v8221_v16, %v7410_v62 }
 0x579   : > { %v3189_v5 = vpop.f32.mrf.mxu1  ;;  %v10547_v44 = vpack.c.bf16 %v3621_v3, %v3619_v51 }
 0x57a   : > { %v10549_v42 = vpack.c.bf16 %v3622_v28, %v3620_v47  ;;  %v3313_v47 = vadd.f32 %v3040_v56, %v12625_v27  ;;  %v3314_v60 = vadd.f32 %v3189_v5, %v12626_v2  ;;  %4499 = vmatpush.bf16.msrb.mxu1 %v7413_v7  ;;  %v12628_v27 = vld [vmem:[#allocation58_spill] sm:$0xff]  ;;  %v12631_v7 = vld [vmem:[#allocation60_spill] sm:$0xff] }
 0x57b   : > { %7210 = vmatmul.msk.bf16.gmra.mxu0 %vm1139_vm0, %v9421_v13  ;;  %3849 = vmatmul.bf16.gmra.mxu2 %v10547_v44 }
 0x57c   : > { %7238 = vmatmul.msk.bf16.gmra.mxu1 %vm1139_vm0, %v9421_v13  ;;  %7289 = vmatmul.msk.bf16.gmra.mxu3 %vm3759_vm2, %v10549_v42  ;;  %v8222_v13 = vld [vmem:[%s12240_s5 + $0xd4] sm:$0xf0]  ;;  %v3431_v3 = vadd.f32 %v10253_v23, %v3313_v47  ;;  %v3432_v5 = vadd.f32 %v10256_v45, %v3314_v60 }
 0x57d   : > { %v7409_v53 = vor.u32 %v8222_v13, %v7408_v50  ;;  %v12629_v13 = vld [vmem:[#allocation56_spill] sm:$0xff] }
 0x57e   : > { %v3830_v61 = vpop.f32.mrf.mxu2  ;;  %v2825_v47 = vadd.f32 %v12630_v20, %v12629_v13  ;;  %v3543_v60 = vmax.f32 %v3431_v3, 0.0  ;;  %v3544_v16 = vmax.f32 %v3432_v5, 0.0 }
 0x57f   : > { %v3909_v43 = vpop.f32.mrf.mxu3  ;;  %4440 = vmatpush.bf16.msrb.mxu0 %v7409_v53 }
 0x580   : > { %v10558_v31 = vadd.f32 %v3909_v43, %v3830_v61  ;;  %v3042_v52 = vpop.f32.mrf.mxu0  ;;  %v12627_v43 = vld [vmem:[#allocation55_spill] sm:$0xff] }
 0x581   : > { %v3191_v51 = vpop.f32.mrf.mxu1  ;;  %v2824_v2 = vadd.f32 %v12628_v27, %v12627_v43  ;;  %v12633_v27 = vld [vmem:[#allocation61_spill] sm:$0xff] }
 0x582   : > { %12624 = vst [vmem:[#allocation10_spill] sm:$0xff] %v10558_v31  ;;  %v3316_v62 = vadd.f32 %v3191_v51, %v2825_v47  ;;  %v12634_v31 = vld [vmem:[#allocation64_spill] sm:$0xff] }
 0x583   : > { %v3315_v53 = vadd.f32 %v3042_v52, %v2824_v2  ;;  %v2829_v54 = vadd.f32 %v12634_v31, %v12633_v27 }
 0x586   : > { %v10599_v47 = vpop.f32.mrf.mxu2 }
 0x588   : > { %v3045_v49 = vpop.f32.mrf.mxu0 }
 0x589   : > { %v3317_v28 = vadd.f32 %v3045_v49, %v9997_v14  ;;  %v3194_v56 = vpop.f32.mrf.mxu1 }
 0x58a   : > { %v3318_v61 = vadd.f32 %v3194_v56, %v9999_v10  ;;  %v12632_v56 = vld [vmem:[#allocation63_spill] sm:$0xff] }
 0x58b   : > { %v3435_v50 = vadd.f32 %v10253_v23, %v3317_v28  ;;  %7211 = vmatmul.msk.bf16.gmra.mxu0 %vm1139_vm0, %v10011_v22  ;;  %v2828_v28 = vadd.f32 %v12632_v56, %v12631_v7  ;;  %v849_v7 = vld [vmem:[%s8807_s18 + $0x1f8] sm:$0xff] }
 0x58c   : > { %v3436_v14 = vadd.f32 %v10256_v45, %v3318_v61  ;;  %7239 = vmatmul.msk.bf16.gmra.mxu1 %vm1139_vm0, %v10011_v22  ;;  %v3433_v61 = vadd.f32 %v10253_v23, %v3315_v53  ;;  %v3434_v22 = vadd.f32 %v10256_v45, %v3316_v62  ;;  %v913_v27 = vpack.c.bf16 %v849_v7, %v849_v7 }
 0x58d   : > { %v3547_v10 = vmax.f32 %v3435_v50, 0.0 }
 0x58e   : > { %v3548_v49 = vmax.f32 %v3436_v14, 0.0  ;;  %v3545_v5 = vmax.f32 %v3433_v61, 0.0  ;;  %v3546_v50 = vmax.f32 %v3434_v22, 0.0  ;;  %v10601_v14 = vpop.f32.mrf.mxu3  ;;  %v8189_v61 = vld [vmem:[%s12239_s4 + $0x20] sm:$0xff] }
 0x58f   : > { %v3623_v43 = vmax.f32 %v3543_v60, %v3547_v10  ;;  %4054 = vmatpush.bf16.msrb.mxu2 %v8189_v61  ;;  %v12638_v61 = vld [vmem:[#allocation102_spill] sm:$0xff] }
 0x590   : > { %v3624_v25 = vmax.f32 %v3544_v16, %v3548_v49  ;;  %v3047_v13 = vpop.f32.mrf.mxu0  ;;  %v848_v49 = vld [vmem:[%s8807_s18 + $0x1f0] sm:$0xff]  ;;  %s6673_s18 = sshll.u32 %s12736_s30, 3 }
 0x591   : > { %v3319_v20 = vadd.f32 %v3047_v13, %v2828_v28  ;;  %v3196_v21 = vpop.f32.mrf.mxu1  ;;  %s783_s23 = scalar_lea.vmem %s12250_s15, %s6673_s18 }
 0x592   : > { %v3320_v52 = vadd.f32 %v3196_v21, %v2829_v54  ;;  %v8194_v21 = vld [vmem:[%s12239_s4 + $0x48] sm:$0xff] }
 0x593   : > { %v3437_v3 = vadd.f32 %v10253_v23, %v3319_v20  ;;  %4136 = vmatpush.bf16.msrb.mxu3 %v8194_v21  ;;  %v2832_v21 = vadd.f32 %v10035_v19, %v10030_v32 }
 0x594   : > { %v3438_v51 = vadd.f32 %v10256_v45, %v3320_v52 }
 0x595   : > { %v3549_v2 = vmax.f32 %v3437_v3, 0.0 }
 0x596   : > { %v3550_v31 = vmax.f32 %v3438_v51, 0.0 }
 0x597   : > { %v3625_v60 = vmax.f32 %v3545_v5, %v3549_v2 }
 0x598   : > { %v3626_v53 = vmax.f32 %v3546_v50, %v3550_v31  ;;  %v3050_v10 = vpop.f32.mrf.mxu0 }
 0x599   : > { %v3199_v54 = vpop.f32.mrf.mxu1  ;;  %v10606_v16 = vpack.c.bf16 %v3625_v60, %v3623_v43  ;;  %v912_v43 = vpack.c.bf16 %v848_v49, %v848_v49  ;;  %v3321_v52 = vadd.f32 %v3050_v10, %v10025_v29  ;;  %v12635_v29 = vld [vmem:[#allocation98_spill] sm:$0xff] }
 0x59a   : > { %v10608_v62 = vpack.c.bf16 %v3626_v53, %v3624_v25  ;;  %v3322_v3 = vadd.f32 %v3199_v54, %v10027_v0  ;;  %v12636_v0 = vld [vmem:[#allocation99_spill] sm:$0xff] }
 0x59b   : > { %7212 = vmatmul.msk.bf16.gmra.mxu0 %vm1139_vm0, %v10039_v24  ;;  %3854 = vmatmul.bf16.gmra.mxu2 %v10606_v16  ;;  %v2885_v22 = vunpack.c.l.b16 %v912_v43  ;;  %v3439_v2 = vadd.f32 %v10253_v23, %v3321_v52  ;;  %v2833_v10 = vadd.f32 %v12636_v0, %v12635_v29 }
 0x59c   : > { %7240 = vmatmul.msk.bf16.gmra.mxu1 %vm1139_vm0, %v10039_v24  ;;  %7290 = vmatmul.msk.bf16.gmra.mxu3 %vm3759_vm2, %v10608_v62  ;;  %v2886_v24 = vunpack.c.l.b16 %v913_v27  ;;  %v3440_v60 = vadd.f32 %v10256_v45, %v3322_v3  ;;  %v12637_v27 = vld [vmem:[#allocation100_spill] sm:$0xff] }
 0x59d   : > { %v2836_v19 = vadd.f32 %v12638_v61, %v12637_v27  ;;  %v7400_v27 = vld [vmem:[%s12240_s5 + $0xc0] sm:$0xf]  ;;  %v8220_v61 = vld [vmem:[%s12240_s5 + $0xc4] sm:$0xf0] }
 0x59e   : > { %v3835_v56 = vpop.f32.mrf.mxu2  ;;  %v2887_v51 = vpack.c.b16 %v2886_v24, %v2885_v22  ;;  %v12639_v22 = vld [vmem:[#allocation101_spill] sm:$0xff]  ;;  %v12640_v24 = vld [vmem:[#allocation103_spill] sm:$0xff] }
 0x59f   : > { %v3914_v28 = vpop.f32.mrf.mxu3  ;;  %v2837_v52 = vadd.f32 %v12640_v24, %v12639_v22  ;;  %v7401_v22 = vor.u32 %v8220_v61, %v7400_v27  ;;  %v8219_v24 = vld [vmem:[%s12240_s5 + $0xc4] sm:$0xf] }
 0x5a0   : > { %v10619_v25 = vadd.f32 %v3914_v28, %v3835_v56  ;;  %v3052_v13 = vpop.f32.mrf.mxu0  ;;  %v3552_v28 = vmax.f32 %v3440_v60, 0.0 }
 0x5a1   : > { %v3201_v20 = vpop.f32.mrf.mxu1  ;;  %v3323_v7 = vadd.f32 %v3052_v13, %v2832_v21  ;;  %4441 = vmatpush.bf16.msrb.mxu0 %v7401_v22 }
 0x5a2   : > { %v3324_v43 = vadd.f32 %v3201_v20, %v2833_v10 }
 0x5a6   : > { %v10646_v29 = vpop.f32.mrf.mxu2 }
 0x5a7   : > { %v10648_v10 = vpop.f32.mrf.mxu3 }
 0x5a8   : > { %v3055_v5 = vpop.f32.mrf.mxu0 }
 0x5a9   : > { %v3325_v50 = vadd.f32 %v3055_v5, %v10051_v39  ;;  %v3204_v31 = vpop.f32.mrf.mxu1  ;;  %v3551_v39 = vmax.f32 %v3439_v2, 0.0 }
 0x5aa   : > { %v3326_v53 = vadd.f32 %v3204_v31, %v10053_v55 }
 0x5ab   : > { %v3443_v49 = vadd.f32 %v10253_v23, %v3325_v50  ;;  %7213 = vmatmul.msk.bf16.gmra.mxu0 %vm1139_vm0, %v2887_v51  ;;  %v3441_v50 = vadd.f32 %v10253_v23, %v3323_v7 }
 0x5ac   : > { %v3444_v54 = vadd.f32 %v10256_v45, %v3326_v53  ;;  %7241 = vmatmul.msk.bf16.gmra.mxu1 %vm1139_vm0, %v2887_v51  ;;  %v3442_v51 = vadd.f32 %v10256_v45, %v3324_v43 }
 0x5ad   : > { %v3555_v56 = vmax.f32 %v3443_v49, 0.0  ;;  %v3553_v60 = vmax.f32 %v3441_v50, 0.0 }
 0x5ae   : > { %v3556_v55 = vmax.f32 %v3444_v54, 0.0  ;;  %v3554_v49 = vmax.f32 %v3442_v51, 0.0 }
 0x5af   : > { %v3627_v32 = vmax.f32 %v3551_v39, %v3555_v56 }
 0x5b0   : > { %v3628_v3 = vmax.f32 %v3552_v28, %v3556_v55  ;;  %v3057_v5 = vpop.f32.mrf.mxu0 }
 0x5b1   : > { %v3327_v31 = vadd.f32 %v3057_v5, %v2836_v19  ;;  %v3206_v53 = vpop.f32.mrf.mxu1  ;;  %v8188_v19 = vld [vmem:[%s12239_s4 + $0x18] sm:$0xff] }
 0x5b2   : > { %v3328_v13 = vadd.f32 %v3206_v53, %v2837_v52  ;;  %v7402_v52 = vld [vmem:[%s12240_s5 + $0xc8] sm:$0xf0]  ;;  %4055 = vmatpush.bf16.msrb.mxu2 %v8188_v19  ;;  %v12646_v19 = vld [vmem:[#allocation66_spill] sm:$0xff] }
 0x5b3   : > { %v3445_v2 = vadd.f32 %v10253_v23, %v3327_v31  ;;  %v7405_v50 = vor.u32 %v8219_v24, %v7402_v52  ;;  %v12642_v53 = vld [vmem:[#allocation65_spill] sm:$0xff] }
 0x5b4   : > { %v3446_v20 = vadd.f32 %v10256_v45, %v3328_v13 }
 0x5b5   : > { %v3557_v21 = vmax.f32 %v3445_v2, 0.0  ;;  %4500 = vmatpush.bf16.msrb.mxu1 %v7405_v50 }
 0x5b6   : > { %v3558_v0 = vmax.f32 %v3446_v20, 0.0 }
 0x5b7   : > { %v3629_v54 = vmax.f32 %v3553_v60, %v3557_v21  ;;  %v12643_v60 = vld [vmem:[#allocation68_spill] sm:$0xff] }
 0x5b8   : > { %v3630_v39 = vmax.f32 %v3554_v49, %v3558_v0  ;;  %v3060_v7 = vpop.f32.mrf.mxu0 }
 0x5b9   : > { %v3209_v56 = vpop.f32.mrf.mxu1  ;;  %v10650_v28 = vpack.c.bf16 %v3629_v54, %v3627_v32  ;;  %v3329_v51 = vadd.f32 %v3060_v7, %v12642_v53 }
 0x5ba   : > { %v10652_v43 = vpack.c.bf16 %v3630_v39, %v3628_v3  ;;  %v3330_v13 = vadd.f32 %v3209_v56, %v10076_v59  ;;  %v12644_v39 = vld [vmem:[#allocation4_spill] sm:$0xff] }
 0x5bb   : > { %3859 = vmatmul.bf16.gmra.mxu2 %v10650_v28  ;;  %v3447_v20 = vadd.f32 %v10253_v23, %v3329_v51  ;;  %v2844_v51 = vadd.f32 %v10104_v17, %v10099_v8 }
 0x5bc   : > { %7291 = vmatmul.msk.bf16.gmra.mxu3 %vm3759_vm2, %v10652_v43  ;;  %v3448_v0 = vadd.f32 %v10256_v45, %v3330_v13  ;;  %v12648_v13 = vld [vmem:[#allocation69_spill] sm:$0xff] }
 0x5bd   : > { %v3559_v56 = vmax.f32 %v3447_v20, 0.0 }
 0x5be   : > { %v3840_v55 = vpop.f32.mrf.mxu2  ;;  %v3560_v52 = vmax.f32 %v3448_v0, 0.0 }
 0x5bf   : > { %v3919_v32 = vpop.f32.mrf.mxu3 }
 0x5c0   : > { %v10672_v3 = vadd.f32 %v3919_v32, %v3840_v55  ;;  %v3062_v5 = vpop.f32.mrf.mxu0  ;;  %v12645_v55 = vld [vmem:[#allocation67_spill] sm:$0xff]  ;;  %v12647_v32 = vld [vmem:[#allocation104_spill] sm:$0xff] }
 0x5c1   : > { %v3211_v31 = vpop.f32.mrf.mxu1  ;;  %v2840_v27 = vadd.f32 %v12645_v55, %v12644_v39  ;;  %v2841_v7 = vadd.f32 %v12647_v32, %v12646_v19 }
 0x5c2   : > { %12641 = vst [vmem:[#allocation11_spill] sm:$0xff] %v10672_v3 }
 0x5c3   : > { %v3331_v22 = vadd.f32 %v3062_v5, %v2840_v27  ;;  %v3332_v50 = vadd.f32 %v3211_v31, %v2841_v7 }
 0x5c5   : > { %v3449_v39 = vadd.f32 %v10253_v23, %v3331_v22  ;;  %v3450_v20 = vadd.f32 %v10256_v45, %v3332_v50  ;;  %v8187_v22 = vld [vmem:[%s12239_s4 + $0x10] sm:$0xff] }
 0x5c6   : > { %v10694_v17 = vpop.f32.mrf.mxu2  ;;  %4056 = vmatpush.bf16.msrb.mxu2 %v8187_v22  ;;  %v12659_v22 = vld [vmem:[#allocation73_spill] sm:$0xff] }
 0x5c7   : > { %v3562_v8 = vmax.f32 %v3450_v20, 0.0  ;;  %12650 = vst [vmem:[#allocation22_spill] sm:$0xff] %v10694_v17  ;;  %v10696_v32 = vpop.f32.mrf.mxu3  ;;  %v12664_v17 = vld [vmem:[#allocation108_spill] sm:$0xff] }
 0x5c8   : > { %v3065_v2 = vpop.f32.mrf.mxu0  ;;  %12651 = vst [vmem:[#allocation8_spill] sm:$0xff] %v10696_v32 }
 0x5c9   : > { %v3333_v21 = vadd.f32 %v3065_v2, %v12643_v60  ;;  %v3214_v49 = vpop.f32.mrf.mxu1  ;;  %v12649_v2 = vld [vmem:[#allocation5_spill] sm:$0xff] }
 0x5ca   : > { %v3334_v54 = vadd.f32 %v3214_v49, %v10096_v40  ;;  %v2845_v60 = vadd.f32 %v12649_v2, %v12648_v13 }
 0x5cb   : > { %v3451_v61 = vadd.f32 %v10253_v23, %v3333_v21 }
 0x5cc   : > { %v3452_v59 = vadd.f32 %v10256_v45, %v3334_v54  ;;  %v3561_v54 = vmax.f32 %v3449_v39, 0.0 }
 0x5cd   : > { %v3563_v24 = vmax.f32 %v3451_v61, 0.0 }
 0x5ce   : > { %v3564_v53 = vmax.f32 %v3452_v59, 0.0 }
 0x5cf   : > { %v3631_v40 = vmax.f32 %v3559_v56, %v3563_v24 }
 0x5d0   : > { %v3632_v49 = vmax.f32 %v3560_v52, %v3564_v53  ;;  %v3067_v21 = vpop.f32.mrf.mxu0 }
 0x5d1   : > { %v3335_v55 = vadd.f32 %v3067_v21, %v2844_v51  ;;  %v3216_v19 = vpop.f32.mrf.mxu1  ;;  %v12653_v21 = vld [vmem:[#allocation70_spill] sm:$0xff] }
 0x5d2   : > { %v3336_v5 = vadd.f32 %v3216_v19, %v2845_v60 }
 0x5d3   : > { %v3453_v0 = vadd.f32 %v10253_v23, %v3335_v55  ;;  %v12654_v55 = vld [vmem:[#allocation71_spill] sm:$0xff] }
 0x5d4   : > { %v3454_v31 = vadd.f32 %v10256_v45, %v3336_v5  ;;  %v12655_v5 = vld [vmem:[#allocation105_spill] sm:$0xff] }
 0x5d5   : > { %v3565_v27 = vmax.f32 %v3453_v0, 0.0 }
 0x5d6   : > { %v3566_v61 = vmax.f32 %v3454_v31, 0.0 }
 0x5d7   : > { %v3633_v7 = vmax.f32 %v3561_v54, %v3565_v27  ;;  %v12656_v27 = vld [vmem:[#allocation106_spill] sm:$0xff] }
 0x5d8   : > { %v3634_v59 = vmax.f32 %v3562_v8, %v3566_v61  ;;  %v3070_v56 = vpop.f32.mrf.mxu0  ;;  %v12657_v61 = vld [vmem:[#allocation72_spill] sm:$0xff] }
 0x5d9   : > { %v3219_v24 = vpop.f32.mrf.mxu1  ;;  %v10701_v52 = vpack.c.bf16 %v3633_v7, %v3631_v40  ;;  %v3337_v39 = vadd.f32 %v3070_v56, %v12653_v21  ;;  %v8193_v40 = vld [vmem:[%s12239_s4 + $0x40] sm:$0xff]  ;;  %v12658_v7 = vld [vmem:[#allocation74_spill] sm:$0xff] }
 0x5da   : > { %v10703_v50 = vpack.c.bf16 %v3634_v59, %v3632_v49  ;;  %v3338_v19 = vadd.f32 %v3219_v24, %v12654_v55  ;;  %4137 = vmatpush.bf16.msrb.mxu3 %v8193_v40  ;;  %v2848_v59 = vadd.f32 %v12658_v7, %v12657_v61  ;;  %v12660_v24 = vld [vmem:[#allocation75_spill] sm:$0xff] }
 0x5db   : > { %3864 = vmatmul.bf16.gmra.mxu2 %v10701_v52  ;;  %v3455_v20 = vadd.f32 %v10253_v23, %v3337_v39 }
 0x5dc   : > { %7292 = vmatmul.msk.bf16.gmra.mxu3 %vm3759_vm2, %v10703_v50  ;;  %v3456_v54 = vadd.f32 %v10256_v45, %v3338_v19  ;;  %v12662_v19 = vld [vmem:[#allocation107_spill] sm:$0xff] }
 0x5dd   : > { %v3567_v21 = vmax.f32 %v3455_v20, 0.0 }
 0x5de   : > { %v3845_v53 = vpop.f32.mrf.mxu2  ;;  %v3568_v40 = vmax.f32 %v3456_v54, 0.0 }
 0x5df   : > { %v3924_v51 = vpop.f32.mrf.mxu3 }
 0x5e0   : > { %v10708_v13 = vadd.f32 %v3924_v51, %v3845_v53  ;;  %v3072_v2 = vpop.f32.mrf.mxu0  ;;  %v2849_v53 = vadd.f32 %v12660_v24, %v12659_v22 }
 0x5e1   : > { %v3221_v60 = vpop.f32.mrf.mxu1  ;;  %v3339_v55 = vadd.f32 %v3072_v2, %v2848_v59 }
 0x5e2   : > { %12652 = vst [vmem:[#allocation9_spill] sm:$0xff] %v10708_v13  ;;  %v12661_v13 = vld [vmem:[#allocation76_spill] sm:$0xff] }
 0x5e3   : > { %v2852_v32 = vadd.f32 %v12662_v19, %v12661_v13  ;;  %v3457_v3 = vadd.f32 %v10253_v23, %v3339_v55  ;;  %v7394_v19 = vld [vmem:[%s12240_s5 + $0xb8] sm:$0xf0] }
 0x5e8   : > { %v3075_v49 = vpop.f32.mrf.mxu0 }
 0x5e9   : > { %v3341_v0 = vadd.f32 %v3075_v49, %v12655_v5  ;;  %v3224_v31 = vpop.f32.mrf.mxu1  ;;  %v3340_v49 = vadd.f32 %v3221_v60, %v2849_v53 }
 0x5ea   : > { %v3342_v8 = vadd.f32 %v3224_v31, %v12656_v27  ;;  %v12663_v27 = vld [vmem:[#allocation77_spill] sm:$0xff] }
 0x5eb   : > { %v3459_v56 = vadd.f32 %v10253_v23, %v3341_v0  ;;  %v2853_v61 = vadd.f32 %v12664_v17, %v12663_v27  ;;  %v3458_v20 = vadd.f32 %v10256_v45, %v3340_v49  ;;  %v10735_v17 = vpop.f32.mrf.mxu3  ;;  %v8186_v27 = vld [vmem:[%s12239_s4 + $0x8] sm:$0xff] }
 0x5ec   : > { %v3460_v51 = vadd.f32 %v10256_v45, %v3342_v8  ;;  %v3569_v8 = vmax.f32 %v3457_v3, 0.0  ;;  %12665 = vst [vmem:[#allocation13_spill] sm:$0xff] %v10735_v17  ;;  %v8217_v3 = vld [vmem:[%s12240_s5 + $0xb4] sm:$0xf]  ;;  %4057 = vmatpush.bf16.msrb.mxu2 %v8186_v27  ;;  %v12676_v17 = vld [vmem:[#allocation85_spill] sm:$0xff] }
 0x5ed   : > { %v3571_v39 = vmax.f32 %v3459_v56, 0.0  ;;  %v3570_v13 = vmax.f32 %v3458_v20, 0.0  ;;  %v10733_v56 = vpop.f32.mrf.mxu2  ;;  %v12671_v27 = vld [vmem:[#allocation6_spill] sm:$0xff] }
 0x5ee   : > { %v3572_v5 = vmax.f32 %v3460_v51, 0.0 }
 0x5ef   : > { %v3635_v31 = vmax.f32 %v3567_v21, %v3571_v39  ;;  %v8218_v39 = vld [vmem:[%s12240_s5 + $0xb4] sm:$0xf0] }
 0x5f0   : > { %v3636_v7 = vmax.f32 %v3568_v40, %v3572_v5  ;;  %v3077_v0 = vpop.f32.mrf.mxu0 }
 0x5f1   : > { %v3343_v22 = vadd.f32 %v3077_v0, %v2852_v32  ;;  %v3226_v24 = vpop.f32.mrf.mxu1  ;;  %v7392_v32 = vld [vmem:[%s12240_s5 + $0xb0] sm:$0xf]  ;;  %v7397_v0 = vor.u32 %v8217_v3, %v7394_v19  ;;  %v12670_v3 = vld [vmem:[#allocation80_spill] sm:$0xff] }
 0x5f2   : > { %v3344_v2 = vadd.f32 %v3226_v24, %v2853_v61  ;;  %v7393_v5 = vor.u32 %v8218_v39, %v7392_v32  ;;  %v12669_v39 = vld [vmem:[#allocation79_spill] sm:$0xff] }
 0x5f3   : > { %v3461_v54 = vadd.f32 %v10253_v23, %v3343_v22  ;;  %4501 = vmatpush.bf16.msrb.mxu1 %v7397_v0  ;;  %v12672_v0 = vld [vmem:[#allocation81_spill] sm:$0xff] }
 0x5f4   : > { %v3462_v60 = vadd.f32 %v10256_v45, %v3344_v2  ;;  %4442 = vmatpush.bf16.msrb.mxu0 %v7393_v5  ;;  %v2856_v5 = vadd.f32 %v12670_v3, %v12669_v39 }
 0x5f5   : > { %v3573_v59 = vmax.f32 %v3461_v54, 0.0  ;;  %v12667_v54 = vld [vmem:[#allocation78_spill] sm:$0xff] }
 0x5f6   : > { %v3574_v53 = vmax.f32 %v3462_v60, 0.0 }
 0x5f7   : > { %v3637_v51 = vmax.f32 %v3569_v8, %v3573_v59 }
 0x5f8   : > { %v3638_v21 = vmax.f32 %v3570_v13, %v3574_v53  ;;  %v3080_v55 = vpop.f32.mrf.mxu0  ;;  %v12668_v13 = vld [vmem:[#allocation82_spill] sm:$0xff] }
 0x5f9   : > { %v3229_v40 = vpop.f32.mrf.mxu1  ;;  %v10746_v49 = vpack.c.bf16 %v3637_v51, %v3635_v31  ;;  %v3345_v60 = vadd.f32 %v3080_v55, %v12667_v54  ;;  %v2857_v55 = vadd.f32 %v12672_v0, %v12671_v27  ;;  %v8185_v27 = vld [vmem:[%s12239_s4] sm:$0xff] }
 0x5fa   : > { %v10754_v61 = vpack.c.bf16 %v3638_v21, %v3636_v7  ;;  %v3346_v7 = vadd.f32 %v3229_v40, %v10162_v11  ;;  %4058 = vmatpush.bf16.msrb.mxu2 %v8185_v27 }
 0x5fb   : > { %3869 = vmatmul.bf16.gmra.mxu2 %v10746_v49  ;;  %v3463_v59 = vadd.f32 %v10253_v23, %v3345_v60 }
 0x5fc   : > { %7293 = vmatmul.msk.bf16.gmra.mxu3 %vm3759_vm2, %v10754_v61  ;;  %v3464_v21 = vadd.f32 %v10256_v45, %v3346_v7  ;;  %v12674_v7 = vld [vmem:[#allocation84_spill] sm:$0xff] }
 0x5fd   : > { %v3575_v40 = vmax.f32 %v3463_v59, 0.0 }
 0x5fe   : > { %v3850_v31 = vpop.f32.mrf.mxu2  ;;  %v3576_v54 = vmax.f32 %v3464_v21, 0.0 }
 0x5ff   : > { %v3929_v22 = vpop.f32.mrf.mxu3 }
 0x600   : > { %v10759_v24 = vadd.f32 %v3929_v22, %v3850_v31  ;;  %v3082_v20 = vpop.f32.mrf.mxu0 }
 0x601   : > { %v3231_v2 = vpop.f32.mrf.mxu1  ;;  %v3347_v31 = vadd.f32 %v3082_v20, %v2856_v5 }
 0x602   : > { %12666 = vst [vmem:[#allocation14_spill] sm:$0xff] %v10759_v24  ;;  %v3348_v60 = vadd.f32 %v3231_v2, %v2857_v55 }
 0x603   : > { %v3465_v59 = vadd.f32 %v10253_v23, %v3347_v31 }
 0x604   : > { %v3466_v2 = vadd.f32 %v10256_v45, %v3348_v60 }
 0x605   : > { %v3577_v0 = vmax.f32 %v3465_v59, 0.0  ;;  %v12678_v59 = vld [vmem:[#allocation86_spill] sm:$0xff] }
 0x606   : > { %v3578_v55 = vmax.f32 %v3466_v2, 0.0 }
 0x608   : > { %v3085_v8 = vpop.f32.mrf.mxu0 }
 0x609   : > { %v3349_v53 = vadd.f32 %v3085_v8, %v12668_v13  ;;  %v3234_v51 = vpop.f32.mrf.mxu1  ;;  %v12673_v13 = vld [vmem:[#allocation83_spill] sm:$0xff] }
 0x60a   : > { %v3350_v32 = vadd.f32 %v3234_v51, %v10182_v58  ;;  %v2860_v24 = vadd.f32 %v12674_v7, %v12673_v13  ;;  %v12675_v51 = vld [vmem:[#allocation7_spill] sm:$0xff] }
 0x60b   : > { %v3467_v19 = vadd.f32 %v10253_v23, %v3349_v53  ;;  %v2861_v39 = vadd.f32 %v12676_v17, %v12675_v51 }
 0x60c   : > { %v3468_v11 = vadd.f32 %v10256_v45, %v3350_v32 }
 0x60d   : > { %v3579_v22 = vmax.f32 %v3467_v19, 0.0 }
 0x60e   : > { %v3580_v8 = vmax.f32 %v3468_v11, 0.0  ;;  %v10784_v11 = vpop.f32.mrf.mxu2 }
 0x60f   : > { %v3639_v58 = vmax.f32 %v3575_v40, %v3579_v22  ;;  %v10786_v22 = vpop.f32.mrf.mxu3 }
 0x610   : > { %v3640_v3 = vmax.f32 %v3576_v54, %v3580_v8  ;;  %v3087_v53 = vpop.f32.mrf.mxu0 }
 0x611   : > { %v3351_v20 = vadd.f32 %v3087_v53, %v2860_v24  ;;  %v3236_v32 = vpop.f32.mrf.mxu1 }
 0x612   : > { %v3352_v21 = vadd.f32 %v3236_v32, %v2861_v39 }
 0x613   : > { %v3469_v5 = vadd.f32 %v10253_v23, %v3351_v20 }
 0x614   : > { %v3470_v19 = vadd.f32 %v10256_v45, %v3352_v21  ;;  %v8215_v21 = vld [vmem:[%s12240_s5 + $0xa4] sm:$0xf] }
 0x615   : > { %v3581_v17 = vmax.f32 %v3469_v5, 0.0 }
 0x616   : > { %v3582_v40 = vmax.f32 %v3470_v19, 0.0 }
 0x617   : > { %v3641_v54 = vmax.f32 %v3577_v0, %v3581_v17 }
 0x618   : > { %v3642_v31 = vmax.f32 %v3578_v55, %v3582_v40  ;;  %v3090_v24 = vpop.f32.mrf.mxu0 }
 0x619   : > { %v3239_v8 = vpop.f32.mrf.mxu1  ;;  %v10788_v13 = vpack.c.bf16 %v3641_v54, %v3639_v58  ;;  %v3353_v20 = vadd.f32 %v3090_v24, %v12678_v59  ;;  %v7384_v58 = vld [vmem:[%s12240_s5 + $0xa0] sm:$0xf] }
 0x61a   : > { %v10790_v60 = vpack.c.bf16 %v3642_v31, %v3640_v3  ;;  %v3354_v32 = vadd.f32 %v3239_v8, %v10202_v36  ;;  %v8216_v3 = vld [vmem:[%s12240_s5 + $0xa4] sm:$0xf0]  ;;  %v7386_v36 = vld [vmem:[%s12240_s5 + $0xa8] sm:$0xf0]  ;;  %v12679_v31 = vld [vmem:[#allocation88_spill] sm:$0xff] }
 0x61b   : > { %3874 = vmatmul.bf16.gmra.mxu2 %v10788_v13  ;;  %v3471_v5 = vadd.f32 %v10253_v23, %v3353_v20  ;;  %v7385_v17 = vor.u32 %v8216_v3, %v7384_v58  ;;  %v7389_v54 = vor.u32 %v8215_v21, %v7386_v36  ;;  %v2864_v24 = vadd.f32 %v12679_v31, %v10205_v48  ;;  %v12682_v21 = vld [vmem:[#allocation90_spill] sm:$0xff] }
 0x61c   : > { %7294 = vmatmul.msk.bf16.gmra.mxu3 %vm3759_vm2, %v10790_v60  ;;  %v3472_v55 = vadd.f32 %v10256_v45, %v3354_v32 }
 0x61d   : > { %4443 = vmatpush.bf16.msrb.mxu0 %v7385_v17  ;;  %4502 = vmatpush.bf16.msrb.mxu1 %v7389_v54  ;;  %v3583_v20 = vmax.f32 %v3471_v5, 0.0  ;;  %v12683_v17 = vld [vmem:[#allocation91_spill] sm:$0xff] }
 0x61e   : > { %v3855_v7 = vpop.f32.mrf.mxu2  ;;  %v3584_v3 = vmax.f32 %v3472_v55, 0.0 }
 0x61f   : > { %v3934_v51 = vpop.f32.mrf.mxu3 }
 0x620   : > { %v10795_v39 = vadd.f32 %v3934_v51, %v3855_v7  ;;  %v3092_v53 = vpop.f32.mrf.mxu0  ;;  %v12680_v7 = vld [vmem:[#allocation87_spill] sm:$0xff]  ;;  %v12681_v51 = vld [vmem:[#allocation89_spill] sm:$0xff] }
 0x621   : > { %v3241_v27 = vpop.f32.mrf.mxu1 }
 0x622   : > { %12677 = vst [vmem:[#allocation27_spill] sm:$0xff] %v10795_v39 }
 0x628   : > { %v3095_v2 = vpop.f32.mrf.mxu0 }
 0x629   : > { %v3357_v19 = vadd.f32 %v3095_v2, %v10223_v57  ;;  %v3244_v0 = vpop.f32.mrf.mxu1  ;;  %v2865_v57 = vadd.f32 %v12681_v51, %v12680_v7  ;;  %v3355_v2 = vadd.f32 %v3092_v53, %v2864_v24 }
 0x62a   : > { %v3358_v40 = vadd.f32 %v3244_v0, %v10228_v63  ;;  %v2869_v0 = vadd.f32 %v10400_v18, %v12682_v21 }
 0x62b   : > { %v3475_v8 = vadd.f32 %v10253_v23, %v3357_v19  ;;  %v3356_v32 = vadd.f32 %v3241_v27, %v2865_v57  ;;  %v3473_v19 = vadd.f32 %v10253_v23, %v3355_v2 }
 0x62c   : > { %v3476_v59 = vadd.f32 %v10256_v45, %v3358_v40 }
 0x62d   : > { %v3587_v58 = vmax.f32 %v3475_v8, 0.0  ;;  %v3474_v40 = vadd.f32 %v10256_v45, %v3356_v32  ;;  %v3585_v27 = vmax.f32 %v3473_v19, 0.0  ;;  %v10828_v8 = vpop.f32.mrf.mxu2 }
 0x62e   : > { %v3588_v39 = vmax.f32 %v3476_v59, 0.0 }
 0x62f   : > { %v3643_v63 = vmax.f32 %v3583_v20, %v3587_v58  ;;  %v3586_v24 = vmax.f32 %v3474_v40, 0.0  ;;  %v8209_v40 = vld [vmem:[%s12240_s5 + $0x74] sm:$0xf] }
 0x630   : > { %v3644_v48 = vmax.f32 %v3584_v3, %v3588_v39  ;;  %v3097_v36 = vpop.f32.mrf.mxu0  ;;  %v10830_v39 = vpop.f32.mrf.mxu3 }
 0x631   : > { %v3359_v31 = vadd.f32 %v3097_v36, %v12683_v17  ;;  %v3246_v7 = vpop.f32.mrf.mxu1 }
 0x632   : > { %v3360_v54 = vadd.f32 %v3246_v7, %v2869_v0  ;;  %v8213_v0 = vld [vmem:[%s12240_s5 + $0x94] sm:$0xf] }
 0x633   : > { %v3477_v53 = vadd.f32 %v10253_v23, %v3359_v31 }
 0x634   : > { %v3478_v5 = vadd.f32 %v10256_v45, %v3360_v54 }
 0x635   : > { %v3589_v55 = vmax.f32 %v3477_v53, 0.0  ;;  %v7368_v53 = vld [vmem:[%s12240_s5 + $0x80] sm:$0xf] }
 0x636   : > { %v3590_v18 = vmax.f32 %v3478_v5, 0.0  ;;  %v8212_v5 = vld [vmem:[%s12240_s5 + $0x84] sm:$0xf0] }
 0x637   : > { %v3645_v51 = vmax.f32 %v3585_v27, %v3589_v55  ;;  %v8211_v27 = vld [vmem:[%s12240_s5 + $0x84] sm:$0xf]  ;;  %v7369_v55 = vor.u32 %v8212_v5, %v7368_v53 }
 0x638   : > { %v3646_v57 = vmax.f32 %v3586_v24, %v3590_v18 }
 0x639   : > { %v10832_v59 = vpack.c.bf16 %v3645_v51, %v3643_v63 }
 0x63a   : > { %v10834_v20 = vpack.c.bf16 %v3646_v57, %v3644_v48 }
 0x63b   : > { %3879 = vmatmul.bf16.gmra.mxu2 %v10832_v59 }
 0x63c   : > { %7295 = vmatmul.msk.bf16.gmra.mxu3 %vm3759_vm2, %v10834_v20 }
 0x63e   : > { %v3860_v23 = vpop.f32.mrf.mxu2 }
 0x63f   : > { %v3939_v45 = vpop.f32.mrf.mxu3 }
 0x640   : > { %v10839_v2 = vadd.f32 %v3939_v45, %v3860_v23  ;;  %v7480_v45 = vld [vmem:[%s12240_s5 + $0x60] sm:$0xf] }
 0x646   : > { %v10844_v58 = vpop.f32.mrf.mxu2 }
 0x647   : > { %v10846_v3 = vpop.f32.mrf.mxu3 }
 0x64b   : > { %4059 = vmatmul.bf16.vlgmr.msrb.gmra.mxu2 %v10276_v38  ;;  %v7376_v38 = vld [vmem:[%s12240_s5 + $0x90] sm:$0xf] }
 0x64c   : > { %7336 = vmatmul.msk.bf16.vlgmr.msrb.gmra.mxu3 %vm3759_vm2, %v10278_v35  ;;  %v8214_v35 = vld [vmem:[%s12240_s5 + $0x94] sm:$0xf0] }
 0x65b   : > { %4064 = vmatmul.bf16.gmra.mxu2 %v10307_v30  ;;  %v7377_v30 = vor.u32 %v8214_v35, %v7376_v38 }
 0x65c   : > { %7337 = vmatmul.msk.bf16.gmra.mxu3 %vm3759_vm2, %v10309_v4  ;;  %v7378_v4 = vld [vmem:[%s12240_s5 + $0x98] sm:$0xf0] }
 0x65d   : > { %v7381_v48 = vor.u32 %v8213_v0, %v7378_v4  ;;  %4444 = vmatpush.bf16.msrb.mxu0 %v7377_v30 }
 0x65e   : > { %v3865_v32 = vpop.f32.mrf.mxu2 }
 0x65f   : > { %v3944_v63 = vpop.f32.mrf.mxu3  ;;  %4503 = vmatpush.bf16.msrb.mxu1 %v7381_v48 }
 0x660   : > { %v10851_v21 = vadd.f32 %v3944_v63, %v3865_v32  ;;  %v8208_v32 = vld [vmem:[%s12240_s5 + $0x64] sm:$0xf0]  ;;  %v8207_v63 = vld [vmem:[%s12240_s5 + $0x64] sm:$0xf] }
 0x661   : > { %4445 = vmatpush.bf16.msrb.mxu0 %v7369_v55  ;;  %v8242_v55 = vld [vmem:[%s12240_s5 + $0x174] sm:$0xf0] }
 0x666   : > { %v10868_v36 = vpop.f32.mrf.mxu2 }
 0x667   : > { %v10870_v19 = vpop.f32.mrf.mxu3 }
 0x66b   : > { %4069 = vmatmul.bf16.gmra.mxu2 %v10338_v33  ;;  %v7488_v33 = vld [vmem:[%s12240_s5 + $0x70] sm:$0xf] }
 0x66c   : > { %7338 = vmatmul.msk.bf16.gmra.mxu3 %vm3759_vm2, %v10340_v46  ;;  %v8210_v46 = vld [vmem:[%s12240_s5 + $0x74] sm:$0xf0] }
 0x67b   : > { %4074 = vmatmul.bf16.gmra.mxu2 %v10369_v15  ;;  %v7489_v15 = vor.u32 %v8210_v46, %v7488_v33 }
 0x67c   : > { %7339 = vmatmul.msk.bf16.gmra.mxu3 %vm3759_vm2, %v10371_v1  ;;  %v7490_v1 = vld [vmem:[%s12240_s5 + $0x78] sm:$0xf0] }
 0x67d   : > { %v7493_v54 = vor.u32 %v8209_v40, %v7490_v1  ;;  %4642 = vmatpush.bf16.msra.mxu2 %v7489_v15 }
 0x67e   : > { %v3870_v17 = vpop.f32.mrf.mxu2 }
 0x67f   : > { %v3949_v31 = vpop.f32.mrf.mxu3  ;;  %4701 = vmatpush.bf16.msra.mxu3 %v7493_v54 }
 0x680   : > { %v10875_v7 = vadd.f32 %v3949_v31, %v3870_v17 }
 0x686   : > { %v10904_v24 = vpop.f32.mrf.mxu2 }
 0x687   : > { %v10906_v18 = vpop.f32.mrf.mxu3 }
 0x68b   : > { %4079 = vmatmul.bf16.gmra.mxu2 %v10411_v41  ;;  %v7370_v41 = vld [vmem:[%s12240_s5 + $0x88] sm:$0xf0] }
 0x68c   : > { %7340 = vmatmul.msk.bf16.gmra.mxu3 %vm3759_vm2, %v10416_v26  ;;  %v7373_v26 = vor.u32 %v8211_v27, %v7370_v41  ;;  %v7568_v27 = vld [vmem:[%s12240_s5 + $0x170] sm:$0xf] }
 0x68e   : > { %4504 = vmatpush.bf16.msrb.mxu1 %v7373_v26  ;;  %v7570_v26 = vld [vmem:[%s12240_s5 + $0x178] sm:$0xf0] }
 0x69b   : > { %4084 = vmatmul.bf16.gmra.mxu2 %v10451_v6  ;;  %v7481_v6 = vor.u32 %v8208_v32, %v7480_v45 }
 0x69c   : > { %7341 = vmatmul.msk.bf16.gmra.mxu3 %vm3759_vm2, %v10453_v34  ;;  %v7482_v34 = vld [vmem:[%s12240_s5 + $0x68] sm:$0xf0] }
 0x69d   : > { %v7485_v38 = vor.u32 %v8207_v63, %v7482_v34  ;;  %4643 = vmatpush.bf16.msra.mxu2 %v7481_v6 }
 0x69e   : > { %v3875_v51 = vpop.f32.mrf.mxu2 }
 0x69f   : > { %v3954_v57 = vpop.f32.mrf.mxu3  ;;  %4702 = vmatpush.bf16.msra.mxu3 %v7485_v38 }
 0x6a0   : > { %v10911_v23 = vadd.f32 %v3954_v57, %v3875_v51  ;;  %v12685_v51 = vld [vmem:[#allocation93_spill] sm:$0xff] }
 0x6a6   : > { %v10928_v35 = vpop.f32.mrf.mxu2 }
 0x6a7   : > { %v10930_v0 = vpop.f32.mrf.mxu3 }
 0x6ab   : > { %4089 = vmatmul.bf16.gmra.mxu2 %v10507_v9  ;;  %v7472_v9 = vld [vmem:[%s12240_s5 + $0x50] sm:$0xf] }
 0x6ac   : > { %7342 = vmatmul.msk.bf16.gmra.mxu3 %vm3759_vm2, %v10509_v12  ;;  %v8206_v12 = vld [vmem:[%s12240_s5 + $0x54] sm:$0xf0] }
 0x6ad   : > { %v7473_v33 = vor.u32 %v8206_v12, %v7472_v9  ;;  %v7464_v12 = vld [vmem:[%s12240_s5 + $0x40] sm:$0xf] }
 0x6af   : > { %4644 = vmatpush.bf16.msra.mxu2 %v7473_v33 }
 0x6bb   : > { %4094 = vmatmul.bf16.gmra.mxu2 %v10547_v44  ;;  %v8205_v44 = vld [vmem:[%s12240_s5 + $0x54] sm:$0xf] }
 0x6bc   : > { %7343 = vmatmul.msk.bf16.gmra.mxu3 %vm3759_vm2, %v10549_v42  ;;  %v7474_v42 = vld [vmem:[%s12240_s5 + $0x58] sm:$0xf0] }
 0x6bd   : > { %v7477_v40 = vor.u32 %v8205_v44, %v7474_v42  ;;  %v8204_v44 = vld [vmem:[%s12240_s5 + $0x44] sm:$0xf0] }
 0x6be   : > { %v3880_v30 = vpop.f32.mrf.mxu2 }
 0x6bf   : > { %v3959_v4 = vpop.f32.mrf.mxu3  ;;  %4703 = vmatpush.bf16.msra.mxu3 %v7477_v40  ;;  %v12686_v40 = vld [vmem:[#allocation94_spill] sm:$0xff] }
 0x6c0   : > { %v10935_v48 = vadd.f32 %v3959_v4, %v3880_v30 }
 0x6c6   : > { %v3882_v17 = vpop.f32.mrf.mxu2 }
 0x6c7   : > { %v3961_v31 = vpop.f32.mrf.mxu3 }
 0x6c8   : > { %v10949_v46 = vadd.f32 %v3961_v31, %v3882_v17  ;;  %v7465_v31 = vor.u32 %v8204_v44, %v7464_v12 }
 0x6ca   : > { %4645 = vmatpush.bf16.msra.mxu2 %v7465_v31  ;;  %v12691_v31 = vld [vmem:[#allocation97_spill] sm:$0xff] }
 0x6cb   : > { %4099 = vmatmul.bf16.gmra.mxu2 %v10606_v16  ;;  %v8241_v16 = vld [vmem:[%s12240_s5 + $0x174] sm:$0xf] }
 0x6cc   : > { %7344 = vmatmul.msk.bf16.gmra.mxu3 %vm3759_vm2, %v10608_v62  ;;  %v7569_v62 = vor.u32 %v8242_v55, %v7568_v27  ;;  %v7573_v32 = vor.u32 %v8241_v16, %v7570_v26  ;;  %v7562_v16 = vld [vmem:[%s12240_s5 + $0x168] sm:$0xf0] }
 0x6ce   : > { %v4060_v15 = vpop.f32.mrf.mxu2  ;;  %4863 = vmatpush.bf16.msra.mxu0 %v7569_v62  ;;  %4922 = vmatpush.bf16.msra.mxu1 %v7573_v32  ;;  %v12688_v62 = vld [vmem:[#allocation96_spill] sm:$0xff] }
 0x6cf   : > { %v4139_v1 = vpop.f32.mrf.mxu3 }
 0x6d0   : > { %v4140_v54 = vadd.f32 %v4139_v1, %v4060_v15 }
 0x6d2   : > { %v4209_v53 = vmax.f32 %v10425_v37, %v4140_v54  ;;  %v12684_v37 = vld [vmem:[#allocation92_spill] sm:$0xff] }
 0x6d3   : > { %v3897_v57 = vadd.f32 %v12685_v51, %v12684_v37  ;;  %v7560_v54 = vld [vmem:[%s12240_s5 + $0x160] sm:$0xf] }
 0x6d4   : > { %v4237_v63 = vpack.c.bf16 %v4209_v53, %v4209_v53  ;;  %v8240_v53 = vld [vmem:[%s12240_s5 + $0x164] sm:$0xf0] }
 0x6d5   : > { %v7561_v55 = vor.u32 %v8240_v53, %v7560_v54 }
 0x6d6   : > { %v4062_v5 = vpop.f32.mrf.mxu2  ;;  %v4558_v38 = vunpack.c.l.b16 %v4237_v63 }
 0x6d7   : > { %v4141_v41 = vpop.f32.mrf.mxu3  ;;  %4864 = vmatpush.bf16.msra.mxu0 %v7561_v55 }
 0x6d8   : > { %v4142_v45 = vadd.f32 %v4141_v41, %v4062_v5  ;;  %v8239_v5 = vld [vmem:[%s12240_s5 + $0x164] sm:$0xf]  ;;  %v12687_v41 = vld [vmem:[#allocation95_spill] sm:$0xff] }
 0x6d9   : > { %v3902_v26 = vadd.f32 %v12688_v62, %v12687_v41  ;;  %v7565_v51 = vor.u32 %v8239_v5, %v7562_v16  ;;  %v7448_v62 = vld [vmem:[%s12240_s5 + $0x20] sm:$0xf] }
 0x6da   : > { %v4210_v6 = vmax.f32 %v3897_v57, %v4142_v45 }
 0x6db   : > { %4104 = vmatmul.bf16.gmra.mxu2 %v10650_v28  ;;  %v8203_v28 = vld [vmem:[%s12240_s5 + $0x44] sm:$0xf]  ;;  %4923 = vmatpush.bf16.msra.mxu1 %v7565_v51  ;;  %v7552_v51 = vld [vmem:[%s12240_s5 + $0x150] sm:$0xf] }
 0x6dc   : > { %v4238_v34 = vpack.c.bf16 %v4210_v6, %v4210_v6  ;;  %7345 = vmatmul.msk.bf16.gmra.mxu3 %vm3759_vm2, %v10652_v43  ;;  %v7466_v43 = vld [vmem:[%s12240_s5 + $0x48] sm:$0xf0] }
 0x6dd   : > { %v7469_v42 = vor.u32 %v8203_v28, %v7466_v43 }
 0x6de   : > { %v4559_v30 = vunpack.c.l.b16 %v4238_v34  ;;  %v4065_v4 = vpop.f32.mrf.mxu2 }
 0x6df   : > { %v4144_v17 = vpop.f32.mrf.mxu3  ;;  %4704 = vmatpush.bf16.msra.mxu3 %v7469_v42 }
 0x6e0   : > { %v10972_v9 = vpack.c.b16 %v4559_v30, %v4558_v38  ;;  %v4145_v33 = vadd.f32 %v4144_v17, %v4065_v4  ;;  %v12689_v17 = vld [vmem:[#allocation17_spill] sm:$0xff] }
 0x6e2   : > { %v4211_v15 = vmax.f32 %v12686_v40, %v4145_v33  ;;  %v7456_v40 = vld [vmem:[%s12240_s5 + $0x30] sm:$0xf] }
 0x6e4   : > { %v4239_v57 = vpack.c.bf16 %v4211_v15, %v4211_v15  ;;  %v8202_v15 = vld [vmem:[%s12240_s5 + $0x34] sm:$0xf0] }
 0x6e5   : > { %v7457_v53 = vor.u32 %v8202_v15, %v7456_v40  ;;  %v7432_v15 = vld [vmem:[%s12240_s5] sm:$0xf] }
 0x6e6   : > { %v4067_v1 = vpop.f32.mrf.mxu2  ;;  %v4318_v63 = vunpack.c.l.b16 %v4239_v57  ;;  %v8238_v57 = vld [vmem:[%s12240_s5 + $0x154] sm:$0xf0] }
 0x6e7   : > { %v4146_v27 = vpop.f32.mrf.mxu3  ;;  %4646 = vmatpush.bf16.msra.mxu2 %v7457_v53  ;;  %v3912_v53 = vadd.f32 %v10601_v14, %v10599_v47 }
 0x6e8   : > { %v4147_v37 = vadd.f32 %v4146_v27, %v4067_v1  ;;  %v8201_v1 = vld [vmem:[%s12240_s5 + $0x34] sm:$0xf] }
 0x6ea   : > { %v4212_v45 = vmax.f32 %v3902_v26, %v4147_v37  ;;  %v8199_v26 = vld [vmem:[%s12240_s5 + $0x24] sm:$0xf] }
 0x6eb   : > { %4109 = vmatmul.bf16.gmra.mxu2 %v10701_v52  ;;  %v12690_v52 = vld [vmem:[#allocation12_spill] sm:$0xff] }
 0x6ec   : > { %v4240_v32 = vpack.c.bf16 %v4212_v45, %v4212_v45  ;;  %7346 = vmatmul.msk.bf16.gmra.mxu3 %vm3759_vm2, %v10703_v50  ;;  %v3907_v43 = vadd.f32 %v12691_v31, %v12690_v52  ;;  %v8237_v45 = vld [vmem:[%s12240_s5 + $0x154] sm:$0xf]  ;;  %v7442_v31 = vld [vmem:[%s12240_s5 + $0x18] sm:$0xf0] }
 0x6ee   : > { %v4319_v6 = vunpack.c.l.b16 %v4240_v32  ;;  %v4070_v34 = vpop.f32.mrf.mxu2 }
 0x6ef   : > { %v4149_v38 = vpop.f32.mrf.mxu3 }
 0x6f0   : > { %v11004_v30 = vpack.c.b16 %v4319_v6, %v4318_v63  ;;  %v4150_v4 = vadd.f32 %v4149_v38, %v4070_v34  ;;  %v7553_v63 = vor.u32 %v8238_v57, %v7552_v51  ;;  %v7554_v6 = vld [vmem:[%s12240_s5 + $0x158] sm:$0xf0]  ;;  %v7450_v34 = vld [vmem:[%s12240_s5 + $0x28] sm:$0xf0]  ;;  %v7544_v57 = vld [vmem:[%s12240_s5 + $0x140] sm:$0xf] }
 0x6f2   : > { %4446 = vmatmul.bf16.vlgmr.msrb.gmra.mxu0 %v11004_v30  ;;  %4505 = vmatmul.bf16.vlgmr.msrb.gmra.mxu1 %v11004_v30  ;;  %v4213_v12 = vmax.f32 %v12689_v17, %v4150_v4  ;;  %v7557_v4 = vor.u32 %v8237_v45, %v7554_v6  ;;  %v7453_v17 = vor.u32 %v8199_v26, %v7450_v34 }
 0x6f3   : > { %4865 = vmatpush.bf16.msra.mxu0 %v7553_v63 }
 0x6f4   : > { %v4241_v50 = vpack.c.bf16 %v4213_v12, %v4213_v12  ;;  %v7440_v12 = vld [vmem:[%s12240_s5 + $0x10] sm:$0xf]  ;;  %4924 = vmatpush.bf16.msra.mxu1 %v7557_v4 }
 0x6f6   : > { %v4072_v44 = vpop.f32.mrf.mxu2  ;;  %v4320_v27 = vunpack.c.l.b16 %v4241_v50 }
 0x6f7   : > { %v4151_v28 = vpop.f32.mrf.mxu3 }
 0x6f8   : > { %v4152_v33 = vadd.f32 %v4151_v28, %v4072_v44  ;;  %v8198_v44 = vld [vmem:[%s12240_s5 + $0x14] sm:$0xf0]  ;;  %v8197_v28 = vld [vmem:[%s12240_s5 + $0x14] sm:$0xf] }
 0x6f9   : > { %v7441_v52 = vor.u32 %v8198_v44, %v7440_v12 }
 0x6fa   : > { %v4214_v42 = vmax.f32 %v3907_v43, %v4152_v33  ;;  %v7445_v43 = vor.u32 %v8197_v28, %v7442_v31  ;;  %v12692_v33 = vld [vmem:[#allocation10_spill] sm:$0xff] }
 0x6fb   : > { %4114 = vmatmul.bf16.gmra.mxu2 %v10746_v49  ;;  %v7458_v49 = vld [vmem:[%s12240_s5 + $0x38] sm:$0xf0] }
 0x6fc   : > { %v4242_v54 = vpack.c.bf16 %v4214_v42, %v4214_v42  ;;  %7347 = vmatmul.msk.bf16.gmra.mxu3 %vm3759_vm2, %v10754_v61  ;;  %v7461_v5 = vor.u32 %v8201_v1, %v7458_v49  ;;  %v8200_v61 = vld [vmem:[%s12240_s5 + $0x24] sm:$0xf0] }
 0x6fd   : > { %v7449_v32 = vor.u32 %v8200_v61, %v7448_v62  ;;  %v8196_v1 = vld [vmem:[%s12240_s5 + $0x4] sm:$0xf0] }
 0x6fe   : > { %v4321_v55 = vunpack.c.l.b16 %v4242_v54  ;;  %v4075_v16 = vpop.f32.mrf.mxu2  ;;  %4705 = vmatpush.bf16.msra.mxu3 %v7461_v5  ;;  %v8195_v54 = vld [vmem:[%s12240_s5 + $0x4] sm:$0xf]  ;;  %v7433_v5 = vor.u32 %v8196_v1, %v7432_v15  ;;  %v8233_v15 = vld [vmem:[%s12240_s5 + $0x134] sm:$0xf] }
 0x6ff   : > { %v4154_v41 = vpop.f32.mrf.mxu3  ;;  %4647 = vmatpush.bf16.msra.mxu2 %v7449_v32  ;;  %v7546_v32 = vld [vmem:[%s12240_s5 + $0x148] sm:$0xf0] }
 0x700   : > { %v11035_v37 = vpack.c.b16 %v4321_v55, %v4320_v27  ;;  %v4155_v38 = vadd.f32 %v4154_v41, %v4075_v16  ;;  %v7434_v27 = vld [vmem:[%s12240_s5 + $0x8] sm:$0xf0] }
 0x701   : > { %v7437_v55 = vor.u32 %v8195_v54, %v7434_v27 }
 0x702   : > { %4451 = vmatmul.bf16.gmra.mxu0 %v11035_v37  ;;  %4510 = vmatmul.bf16.gmra.mxu1 %v11035_v37  ;;  %v4215_v50 = vmax.f32 %v12692_v33, %v4155_v38 }
 0x703   : > { %4706 = vmatpush.bf16.msra.mxu3 %v7453_v17  ;;  %4648 = vmatpush.bf16.msra.mxu2 %v7441_v52  ;;  %v3917_v17 = vadd.f32 %v10648_v10, %v10646_v29  ;;  %v12693_v29 = vld [vmem:[#allocation11_spill] sm:$0xff] }
 0x704   : > { %v4243_v16 = vpack.c.bf16 %v4215_v50, %v4215_v50 }
 0x706   : > { %v4077_v42 = vpop.f32.mrf.mxu2  ;;  %v4322_v61 = vunpack.c.l.b16 %v4243_v16 }
 0x707   : > { %v4156_v40 = vpop.f32.mrf.mxu3  ;;  %4707 = vmatpush.bf16.msra.mxu3 %v7445_v43  ;;  %4649 = vmatpush.bf16.msra.mxu2 %v7433_v5  ;;  %v12695_v5 = vld [vmem:[#allocation8_spill] sm:$0xff] }
 0x708   : > { %v4157_v49 = vadd.f32 %v4156_v40, %v4077_v42 }
 0x70a   : > { %v4216_v41 = vmax.f32 %v3912_v53, %v4157_v49  ;;  %v7538_v53 = vld [vmem:[%s12240_s5 + $0x138] sm:$0xf0]  ;;  %v12694_v49 = vld [vmem:[#allocation22_spill] sm:$0xff] }
 0x70b   : > { %4119 = vmatmul.bf16.gmra.mxu2 %v10788_v13  ;;  %4708 = vmatpush.bf16.msra.mxu3 %v7437_v55  ;;  %v8236_v13 = vld [vmem:[%s12240_s5 + $0x144] sm:$0xf0]  ;;  %v3922_v27 = vadd.f32 %v12695_v5, %v12694_v49  ;;  %v7541_v16 = vor.u32 %v8233_v15, %v7538_v53 }
 0x70c   : > { %v4244_v62 = vpack.c.bf16 %v4216_v41, %v4216_v41  ;;  %7348 = vmatmul.msk.bf16.gmra.mxu3 %vm3759_vm2, %v10790_v60  ;;  %v8235_v60 = vld [vmem:[%s12240_s5 + $0x144] sm:$0xf]  ;;  %v7545_v45 = vor.u32 %v8236_v13, %v7544_v57 }
 0x70d   : > { %v7549_v6 = vor.u32 %v8235_v60, %v7546_v32 }
 0x70e   : > { %v4323_v47 = vunpack.c.l.b16 %v4244_v62  ;;  %v4080_v14 = vpop.f32.mrf.mxu2  ;;  %4866 = vmatpush.bf16.msra.mxu0 %v7545_v45  ;;  %v12696_v45 = vld [vmem:[#allocation9_spill] sm:$0xff] }
 0x70f   : > { %v4159_v26 = vpop.f32.mrf.mxu3  ;;  %4925 = vmatpush.bf16.msra.mxu1 %v7549_v6  ;;  %v7528_v6 = vld [vmem:[%s12240_s5 + $0x120] sm:$0xf] }
 0x710   : > { %v11084_v51 = vpack.c.b16 %v4323_v47, %v4322_v61  ;;  %v4160_v63 = vadd.f32 %v4159_v26, %v4080_v14 }
 0x712   : > { %4456 = vmatmul.bf16.gmra.mxu0 %v11084_v51  ;;  %4515 = vmatmul.bf16.gmra.mxu1 %v11084_v51  ;;  %v4217_v34 = vmax.f32 %v10619_v25, %v4160_v63 }
 0x713   : > { %4926 = vmatpush.bf16.msra.mxu1 %v7541_v16 }
 0x714   : > { %v4245_v44 = vpack.c.bf16 %v4217_v34, %v4217_v34  ;;  %v8231_v34 = vld [vmem:[%s12240_s5 + $0x124] sm:$0xf] }
 0x716   : > { %v4082_v38 = vpop.f32.mrf.mxu2  ;;  %v4324_v31 = vunpack.c.l.b16 %v4245_v44 }
 0x717   : > { %v4161_v4 = vpop.f32.mrf.mxu3 }
 0x718   : > { %v4162_v12 = vadd.f32 %v4161_v4, %v4082_v38 }
 0x71a   : > { %v4218_v28 = vmax.f32 %v3917_v17, %v4162_v12  ;;  %v7530_v17 = vld [vmem:[%s12240_s5 + $0x128] sm:$0xf0] }
 0x71b   : > { %4124 = vmatmul.bf16.gmra.mxu2 %v10832_v59  ;;  %v7536_v59 = vld [vmem:[%s12240_s5 + $0x130] sm:$0xf]  ;;  %v12697_v12 = vld [vmem:[#allocation13_spill] sm:$0xff] }
 0x71c   : > { %v4246_v52 = vpack.c.bf16 %v4218_v28, %v4218_v28  ;;  %7349 = vmatmul.msk.bf16.gmra.mxu3 %vm3759_vm2, %v10834_v20  ;;  %v8234_v20 = vld [vmem:[%s12240_s5 + $0x134] sm:$0xf0]  ;;  %v3927_v44 = vadd.f32 %v12697_v12, %v10733_v56  ;;  %v12698_v56 = vld [vmem:[#allocation14_spill] sm:$0xff] }
 0x71d   : > { %v7537_v54 = vor.u32 %v8234_v20, %v7536_v59 }
 0x71e   : > { %v4325_v43 = vunpack.c.l.b16 %v4246_v52  ;;  %v4085_v33 = vpop.f32.mrf.mxu2  ;;  %v7533_v52 = vor.u32 %v8231_v34, %v7530_v17 }
 0x71f   : > { %v4164_v50 = vpop.f32.mrf.mxu3  ;;  %4867 = vmatpush.bf16.msra.mxu0 %v7537_v54  ;;  %v3932_v54 = vadd.f32 %v10786_v22, %v10784_v11  ;;  %v8230_v11 = vld [vmem:[%s12240_s5 + $0x114] sm:$0xf0]  ;;  %v8229_v22 = vld [vmem:[%s12240_s5 + $0x114] sm:$0xf] }
 0x720   : > { %v11106_v42 = vpack.c.b16 %v4325_v43, %v4324_v31  ;;  %v4165_v25 = vadd.f32 %v4164_v50, %v4085_v33  ;;  %4927 = vmatpush.bf16.msra.mxu1 %v7533_v52 }
 0x722   : > { %4461 = vmatmul.bf16.gmra.mxu0 %v11106_v42  ;;  %4520 = vmatmul.bf16.gmra.mxu1 %v11106_v42  ;;  %v4219_v10 = vmax.f32 %v12693_v29, %v4165_v25 }
 0x724   : > { %v4247_v41 = vpack.c.bf16 %v4219_v10, %v4219_v10 }
 0x726   : > { %v4087_v40 = vpop.f32.mrf.mxu2  ;;  %v4326_v47 = vunpack.c.l.b16 %v4247_v41 }
 0x727   : > { %v4166_v1 = vpop.f32.mrf.mxu3 }
 0x728   : > { %v4167_v55 = vadd.f32 %v4166_v1, %v4087_v40 }
 0x72a   : > { %v4220_v62 = vmax.f32 %v3922_v27, %v4167_v55 }
 0x72b   : > { %4650 = vmatmul.bf16.vlgmr.msra.gmra.mxu2 %v10972_v9 }
 0x72c   : > { %v4248_v61 = vpack.c.bf16 %v4220_v62, %v4220_v62  ;;  %4709 = vmatmul.bf16.vlgmr.msra.gmra.mxu3 %v10972_v9  ;;  %v8232_v9 = vld [vmem:[%s12240_s5 + $0x124] sm:$0xf0] }
 0x72d   : > { %v7529_v4 = vor.u32 %v8232_v9, %v7528_v6  ;;  %v3937_v6 = vadd.f32 %v10830_v39, %v10828_v8  ;;  %v8228_v8 = vld [vmem:[%s12240_s5 + $0x104] sm:$0xf0]  ;;  %v8227_v39 = vld [vmem:[%s12240_s5 + $0x104] sm:$0xf] }
 0x72e   : > { %v4327_v14 = vunpack.c.l.b16 %v4248_v61  ;;  %v4090_v26 = vpop.f32.mrf.mxu2  ;;  %v7520_v61 = vld [vmem:[%s12240_s5 + $0x110] sm:$0xf] }
 0x72f   : > { %v4169_v57 = vpop.f32.mrf.mxu3  ;;  %4868 = vmatpush.bf16.msra.mxu0 %v7529_v4 }
 0x730   : > { %v11127_v13 = vpack.c.b16 %v4327_v14, %v4326_v47  ;;  %v4170_v60 = vadd.f32 %v4169_v57, %v4090_v26  ;;  %v7521_v47 = vor.u32 %v8230_v11, %v7520_v61  ;;  %v7522_v14 = vld [vmem:[%s12240_s5 + $0x118] sm:$0xf0] }
 0x731   : > { %v7525_v57 = vor.u32 %v8229_v22, %v7522_v14  ;;  %v7650_v61 = vld [vmem:[%s12240_s5 + $0x1f8] sm:$0xf0] }
 0x732   : > { %4466 = vmatmul.bf16.gmra.mxu0 %v11127_v13  ;;  %4525 = vmatmul.bf16.gmra.mxu1 %v11127_v13  ;;  %v4221_v32 = vmax.f32 %v12696_v45, %v4170_v60  ;;  %v12699_v60 = vld [vmem:[#allocation27_spill] sm:$0xff] }
 0x733   : > { %4869 = vmatpush.bf16.msra.mxu0 %v7521_v47  ;;  %4928 = vmatpush.bf16.msra.mxu1 %v7525_v57  ;;  %v8274_v57 = vld [vmem:[%s12240_s5 + $0x274] sm:$0xf0] }
 0x734   : > { %v4249_v31 = vpack.c.bf16 %v4221_v32, %v4221_v32 }
 0x736   : > { %v4092_v63 = vpop.f32.mrf.mxu2  ;;  %v4328_v50 = vunpack.c.l.b16 %v4249_v31  ;;  %v7512_v31 = vld [vmem:[%s12240_s5 + $0x100] sm:$0xf] }
 0x737   : > { %v4171_v38 = vpop.f32.mrf.mxu3 }
 0x738   : > { %v4172_v28 = vadd.f32 %v4171_v38, %v4092_v63 }
 0x73a   : > { %v4222_v43 = vmax.f32 %v3927_v44, %v4172_v28 }
 0x73b   : > { %4655 = vmatmul.bf16.gmra.mxu2 %v11004_v30 }
 0x73c   : > { %v4250_v33 = vpack.c.bf16 %v4222_v43, %v4222_v43  ;;  %4714 = vmatmul.bf16.gmra.mxu3 %v11004_v30  ;;  %v7513_v43 = vor.u32 %v8228_v8, %v7512_v31 }
 0x73e   : > { %v4329_v25 = vunpack.c.l.b16 %v4250_v33  ;;  %v4095_v29 = vpop.f32.mrf.mxu2  ;;  %v7514_v33 = vld [vmem:[%s12240_s5 + $0x108] sm:$0xf0]  ;;  %4870 = vmatpush.bf16.msra.mxu0 %v7513_v43 }
 0x73f   : > { %v4174_v10 = vpop.f32.mrf.mxu3 }
 0x740   : > { %v11148_v40 = vpack.c.b16 %v4329_v25, %v4328_v50  ;;  %v4175_v59 = vadd.f32 %v4174_v10, %v4095_v29  ;;  %v7517_v25 = vor.u32 %v8227_v39, %v7514_v33  ;;  %v7640_v33 = vld [vmem:[%s12240_s5 + $0x1e0] sm:$0xf] }
 0x742   : > { %4471 = vmatmul.bf16.gmra.mxu0 %v11148_v40  ;;  %4530 = vmatmul.bf16.gmra.mxu1 %v11148_v40  ;;  %v4223_v20 = vmax.f32 %v12698_v56, %v4175_v59  ;;  %v3942_v56 = vadd.f32 %v10846_v3, %v10844_v58  ;;  %v7648_v58 = vld [vmem:[%s12240_s5 + $0x1f0] sm:$0xf]  ;;  %v8258_v3 = vld [vmem:[%s12240_s5 + $0x1f4] sm:$0xf0] }
 0x743   : > { %4929 = vmatpush.bf16.msra.mxu1 %v7517_v25  ;;  %v8255_v25 = vld [vmem:[%s12240_s5 + $0x1e4] sm:$0xf] }
 0x744   : > { %v4251_v30 = vpack.c.bf16 %v4223_v20, %v4223_v20 }
 0x746   : > { %v4097_v15 = vpop.f32.mrf.mxu2  ;;  %v4330_v27 = vunpack.c.l.b16 %v4251_v30 }
 0x747   : > { %v4176_v1 = vpop.f32.mrf.mxu3 }
 0x748   : > { %v4177_v53 = vadd.f32 %v4176_v1, %v4097_v15 }
 0x74a   : > { %v4224_v49 = vmax.f32 %v3932_v54, %v4177_v53 }
 0x74b   : > { %4660 = vmatmul.bf16.gmra.mxu2 %v11035_v37 }
 0x74c   : > { %v4252_v5 = vpack.c.bf16 %v4224_v49, %v4224_v49  ;;  %4719 = vmatmul.bf16.gmra.mxu3 %v11035_v37 }
 0x74e   : > { %v4331_v55 = vunpack.c.l.b16 %v4252_v5  ;;  %v4100_v16 = vpop.f32.mrf.mxu2 }
 0x74f   : > { %v4179_v41 = vpop.f32.mrf.mxu3 }
 0x750   : > { %v11157_v62 = vpack.c.b16 %v4331_v55, %v4330_v27  ;;  %v4180_v26 = vadd.f32 %v4179_v41, %v4100_v16  ;;  %v8257_v16 = vld [vmem:[%s12240_s5 + $0x1f4] sm:$0xf]  ;;  %v7649_v41 = vor.u32 %v8258_v3, %v7648_v58 }
 0x751   : > { %v7653_v22 = vor.u32 %v8257_v16, %v7650_v61 }
 0x752   : > { %4476 = vmatmul.bf16.gmra.mxu0 %v11157_v62  ;;  %4535 = vmatmul.bf16.gmra.mxu1 %v11157_v62  ;;  %v4225_v45 = vmax.f32 %v12699_v60, %v4180_v26  ;;  %v7728_v26 = vld [vmem:[%s12240_s5 + $0x270] sm:$0xf]  ;;  %v8273_v60 = vld [vmem:[%s12240_s5 + $0x274] sm:$0xf] }
 0x753   : > { %5124 = vmatpush.bf16.msrb.mxu2 %v7649_v41  ;;  %5183 = vmatpush.bf16.msrb.mxu3 %v7653_v22 }
 0x754   : > { %v4253_v34 = vpack.c.bf16 %v4225_v45, %v4225_v45 }
 0x756   : > { %v4102_v32 = vpop.f32.mrf.mxu2  ;;  %v4332_v17 = vunpack.c.l.b16 %v4253_v34 }
 0x757   : > { %v4181_v63 = vpop.f32.mrf.mxu3 }
 0x758   : > { %v4182_v9 = vadd.f32 %v4181_v63, %v4102_v32  ;;  %v7729_v63 = vor.u32 %v8274_v57, %v7728_v26 }
 0x75a   : > { %v4226_v38 = vmax.f32 %v3937_v6, %v4182_v9  ;;  %v3947_v6 = vadd.f32 %v10870_v19, %v10868_v36  ;;  %5385 = vmatpush.bf16.msrb.mxu0 %v7729_v63  ;;  %v7632_v63 = vld [vmem:[%s12240_s5 + $0x1d0] sm:$0xf] }
 0x75b   : > { %4665 = vmatmul.bf16.gmra.mxu2 %v11084_v51 }
 0x75c   : > { %v4254_v4 = vpack.c.bf16 %v4226_v38, %v4226_v38  ;;  %4724 = vmatmul.bf16.gmra.mxu3 %v11084_v51 }
 0x75e   : > { %v4333_v12 = vunpack.c.l.b16 %v4254_v4  ;;  %v4105_v44 = vpop.f32.mrf.mxu2 }
 0x75f   : > { %v4184_v28 = vpop.f32.mrf.mxu3 }
 0x760   : > { %v11178_v52 = vpack.c.b16 %v4333_v12, %v4332_v17  ;;  %v4185_v50 = vadd.f32 %v4184_v28, %v4105_v44 }
 0x762   : > { %4481 = vmatmul.bf16.gmra.mxu0 %v11178_v52  ;;  %4540 = vmatmul.bf16.gmra.mxu1 %v11178_v52  ;;  %v4227_v29 = vmax.f32 %v10839_v2, %v4185_v50  ;;  %v8256_v50 = vld [vmem:[%s12240_s5 + $0x1e4] sm:$0xf0] }
 0x764   : > { %v4255_v15 = vpack.c.bf16 %v4227_v29, %v4227_v29  ;;  %v7641_v29 = vor.u32 %v8256_v50, %v7640_v33  ;;  %v7626_v50 = vld [vmem:[%s12240_s5 + $0x1c8] sm:$0xf0] }
 0x766   : > { %v4107_v10 = vpop.f32.mrf.mxu2  ;;  %v4334_v53 = vunpack.c.l.b16 %v4255_v15  ;;  %5125 = vmatpush.bf16.msrb.mxu2 %v7641_v29  ;;  %v7720_v15 = vld [vmem:[%s12240_s5 + $0x260] sm:$0xf]  ;;  %v8270_v29 = vld [vmem:[%s12240_s5 + $0x254] sm:$0xf0] }
 0x767   : > { %v4186_v59 = vpop.f32.mrf.mxu3 }
 0x768   : > { %v4187_v20 = vadd.f32 %v4186_v59, %v4107_v10  ;;  %v7642_v10 = vld [vmem:[%s12240_s5 + $0x1e8] sm:$0xf0] }
 0x76a   : > { %v4228_v1 = vmax.f32 %v3942_v56, %v4187_v20  ;;  %v7645_v56 = vor.u32 %v8255_v25, %v7642_v10  ;;  %v7712_v25 = vld [vmem:[%s12240_s5 + $0x250] sm:$0xf] }
 0x76b   : > { %4670 = vmatmul.bf16.gmra.mxu2 %v11106_v42 }
 0x76c   : > { %v4256_v54 = vpack.c.bf16 %v4228_v1, %v4228_v1  ;;  %4729 = vmatmul.bf16.gmra.mxu3 %v11106_v42  ;;  %v8272_v1 = vld [vmem:[%s12240_s5 + $0x264] sm:$0xf0] }
 0x76d   : > { %5184 = vmatpush.bf16.msrb.mxu3 %v7645_v56 }
 0x76e   : > { %v4335_v30 = vunpack.c.l.b16 %v4256_v54  ;;  %v4110_v49 = vpop.f32.mrf.mxu2 }
 0x76f   : > { %v4189_v5 = vpop.f32.mrf.mxu3  ;;  %v11199_v27 = vpop.f32.mrf.mxu0 }
 0x770   : > { %v11201_v2 = vpack.c.b16 %v4335_v30, %v4334_v53  ;;  %v11203_v55 = vpop.f32.mrf.mxu1  ;;  %v4190_v11 = vadd.f32 %v4189_v5, %v4110_v49  ;;  %v7721_v30 = vor.u32 %v8272_v1, %v7720_v15  ;;  %v7722_v49 = vld [vmem:[%s12240_s5 + $0x268] sm:$0xf0]  ;;  %v3952_v5 = vadd.f32 %v10906_v18, %v10904_v24  ;;  %v7616_v1 = vld [vmem:[%s12240_s5 + $0x1b0] sm:$0xf] }
 0x772   : > { %4486 = vmatmul.bf16.gmra.mxu0 %v11201_v2  ;;  %4545 = vmatmul.bf16.gmra.mxu1 %v11201_v2  ;;  %v4229_v47 = vmax.f32 %v10851_v21, %v4190_v11  ;;  %v7730_v21 = vld [vmem:[%s12240_s5 + $0x278] sm:$0xf0] }
 0x773   : > { %v7733_v38 = vor.u32 %v8273_v60, %v7730_v21  ;;  %5386 = vmatpush.bf16.msrb.mxu0 %v7721_v30  ;;  %v8254_v21 = vld [vmem:[%s12240_s5 + $0x1d4] sm:$0xf0] }
 0x774   : > { %v4257_v4 = vpack.c.bf16 %v4229_v47, %v4229_v47 }
 0x775   : > { %5444 = vmatpush.bf16.msrb.mxu1 %v7733_v38 }
 0x776   : > { %v4112_v14 = vpop.f32.mrf.mxu2  ;;  %v4336_v44 = vunpack.c.l.b16 %v4257_v4 }
 0x777   : > { %v4191_v45 = vpop.f32.mrf.mxu3  ;;  %v11229_v32 = vpop.f32.mrf.mxu0 }
 0x778   : > { %v4192_v9 = vadd.f32 %v4191_v45, %v4112_v14  ;;  %v11236_v34 = vpop.f32.mrf.mxu1 }
 0x77a   : > { %v4230_v17 = vmax.f32 %v3947_v6, %v4192_v9  ;;  %v8253_v6 = vld [vmem:[%s12240_s5 + $0x1d4] sm:$0xf]  ;;  %v7633_v9 = vor.u32 %v8254_v21, %v7632_v63 }
 0x77b   : > { %4675 = vmatmul.bf16.gmra.mxu2 %v11127_v13 }
 0x77c   : > { %v4258_v12 = vpack.c.bf16 %v4230_v17, %v4230_v17  ;;  %4734 = vmatmul.bf16.gmra.mxu3 %v11127_v13  ;;  %5126 = vmatpush.bf16.msrb.mxu2 %v7633_v9 }
 0x77e   : > { %v4337_v28 = vunpack.c.l.b16 %v4258_v12  ;;  %v4115_v31 = vpop.f32.mrf.mxu2  ;;  %v7624_v12 = vld [vmem:[%s12240_s5 + $0x1c0] sm:$0xf] }
 0x77f   : > { %v4194_v8 = vpop.f32.mrf.mxu3  ;;  %v11240_v39 = vpop.f32.mrf.mxu0 }
 0x780   : > { %v11242_v36 = vpack.c.b16 %v4337_v28, %v4336_v44  ;;  %v4195_v19 = vadd.f32 %v4194_v8, %v4115_v31  ;;  %v11244_v43 = vpop.f32.mrf.mxu1  ;;  %v8252_v44 = vld [vmem:[%s12240_s5 + $0x1c4] sm:$0xf0]  ;;  %v8251_v28 = vld [vmem:[%s12240_s5 + $0x1c4] sm:$0xf]  ;;  %v3957_v31 = vadd.f32 %v10930_v0, %v10928_v35  ;;  %v8269_v35 = vld [vmem:[%s12240_s5 + $0x254] sm:$0xf] }
 0x781   : > { %v7625_v33 = vor.u32 %v8252_v44, %v7624_v12  ;;  %v7629_v10 = vor.u32 %v8251_v28, %v7626_v50  ;;  %v7714_v0 = vld [vmem:[%s12240_s5 + $0x258] sm:$0xf0]  ;;  %v8244_v50 = vld [vmem:[%s12240_s5 + $0x184] sm:$0xf0] }
 0x782   : > { %v4231_v59 = vmax.f32 %v10875_v7, %v4195_v19  ;;  %4491 = vmatmul.bf16.gmra.mxu0 %v11242_v36  ;;  %4550 = vmatmul.bf16.gmra.mxu1 %v11242_v36  ;;  %v8271_v7 = vld [vmem:[%s12240_s5 + $0x264] sm:$0xf]  ;;  %v7717_v15 = vor.u32 %v8269_v35, %v7714_v0  ;;  %v7594_v35 = vld [vmem:[%s12240_s5 + $0x188] sm:$0xf0] }
 0x783   : > { %v7725_v16 = vor.u32 %v8271_v7, %v7722_v49  ;;  %5127 = vmatpush.bf16.msrb.mxu2 %v7625_v33  ;;  %v8250_v7 = vld [vmem:[%s12240_s5 + $0x1b4] sm:$0xf0]  ;;  %v7592_v33 = vld [vmem:[%s12240_s5 + $0x180] sm:$0xf] }
 0x784   : > { %v4259_v41 = vpack.c.bf16 %v4231_v59, %v4231_v59  ;;  %v7713_v59 = vor.u32 %v8270_v29, %v7712_v25  ;;  %v7617_v49 = vor.u32 %v8250_v7, %v7616_v1  ;;  %v8243_v25 = vld [vmem:[%s12240_s5 + $0x184] sm:$0xf]  ;;  %v7704_v1 = vld [vmem:[%s12240_s5 + $0x240] sm:$0xf]  ;;  %v8268_v7 = vld [vmem:[%s12240_s5 + $0x244] sm:$0xf0] }
 0x785   : > { %5445 = vmatpush.bf16.msrb.mxu1 %v7725_v16  ;;  %v7597_v0 = vor.u32 %v8243_v25, %v7594_v35 }
 0x786   : > { %v4117_v20 = vpop.f32.mrf.mxu2  ;;  %v4779_v22 = vunpack.c.l.b16 %v4259_v41  ;;  %5387 = vmatpush.bf16.msrb.mxu0 %v7713_v59  ;;  %v7593_v59 = vor.u32 %v8244_v50, %v7592_v33 }
 0x787   : > { %v4196_v54 = vpop.f32.mrf.mxu3  ;;  %v11270_v53 = vpop.f32.mrf.mxu0  ;;  %5128 = vmatpush.bf16.msrb.mxu2 %v7617_v49 }
 0x788   : > { %v4197_v58 = vadd.f32 %v4196_v54, %v4117_v20  ;;  %v11277_v3 = vpop.f32.mrf.mxu1  ;;  %v8249_v54 = vld [vmem:[%s12240_s5 + $0x1b4] sm:$0xf] }
 0x789   : > { %5446 = vmatpush.bf16.msrb.mxu1 %v7717_v15 }
 0x78a   : > { %v4232_v61 = vmax.f32 %v3952_v5, %v4197_v58  ;;  %v7618_v5 = vld [vmem:[%s12240_s5 + $0x1b8] sm:$0xf0] }
 0x78b   : > { %4680 = vmatmul.bf16.gmra.mxu2 %v11148_v40  ;;  %v7621_v58 = vor.u32 %v8249_v54, %v7618_v5  ;;  %v8267_v54 = vld [vmem:[%s12240_s5 + $0x244] sm:$0xf] }
 0x78c   : > { %v4260_v11 = vpack.c.bf16 %v4232_v61, %v4232_v61  ;;  %4739 = vmatmul.bf16.gmra.mxu3 %v11148_v40 }
 0x78e   : > { %v4780_v47 = vunpack.c.l.b16 %v4260_v11  ;;  %v4120_v14 = vpop.f32.mrf.mxu2 }
 0x78f   : > { %v4199_v26 = vpop.f32.mrf.mxu3  ;;  %v11281_v57 = vpop.f32.mrf.mxu0 }
 0x790   : > { %v11283_v24 = vpack.c.b16 %v4780_v47, %v4779_v22  ;;  %v4200_v18 = vadd.f32 %v4199_v26, %v4120_v14  ;;  %v11285_v60 = vpop.f32.mrf.mxu1  ;;  %v7608_v47 = vld [vmem:[%s12240_s5 + $0x1a0] sm:$0xf]  ;;  %v8248_v14 = vld [vmem:[%s12240_s5 + $0x1a4] sm:$0xf0]  ;;  %v8247_v26 = vld [vmem:[%s12240_s5 + $0x1a4] sm:$0xf] }
 0x791   : > { %v7609_v21 = vor.u32 %v8248_v14, %v7608_v47 }
 0x792   : > { %v4233_v45 = vmax.f32 %v10911_v23, %v4200_v18  ;;  %4871 = vmatmul.bf16.vlgmr.msra.gmra.mxu0 %v11035_v37  ;;  %4930 = vmatmul.bf16.vlgmr.msra.gmra.mxu1 %v11035_v37  ;;  %v7634_v23 = vld [vmem:[%s12240_s5 + $0x1d8] sm:$0xf0] }
 0x793   : > { %v7637_v38 = vor.u32 %v8253_v6, %v7634_v23  ;;  %v7610_v6 = vld [vmem:[%s12240_s5 + $0x1a8] sm:$0xf0]  ;;  %5129 = vmatpush.bf16.msrb.mxu2 %v7609_v21 }
 0x794   : > { %v4261_v56 = vpack.c.bf16 %v4233_v45, %v4233_v45  ;;  %v7613_v9 = vor.u32 %v8247_v26, %v7610_v6 }
 0x795   : > { %5185 = vmatpush.bf16.msrb.mxu3 %v7637_v38  ;;  %v7600_v38 = vld [vmem:[%s12240_s5 + $0x190] sm:$0xf] }
 0x796   : > { %v4122_v37 = vpop.f32.mrf.mxu2  ;;  %v5040_v16 = vunpack.c.l.b16 %v4261_v56 }
 0x797   : > { %v4201_v4 = vpop.f32.mrf.mxu3  ;;  %v11302_v17 = vpop.f32.mrf.mxu0 }
 0x798   : > { %v4202_v8 = vadd.f32 %v4201_v4, %v4122_v37  ;;  %v11315_v19 = vpop.f32.mrf.mxu1  ;;  %v8246_v37 = vld [vmem:[%s12240_s5 + $0x194] sm:$0xf0]  ;;  %v8245_v4 = vld [vmem:[%s12240_s5 + $0x194] sm:$0xf] }
 0x799   : > { %5186 = vmatpush.bf16.msrb.mxu3 %v7629_v10  ;;  %v7601_v12 = vor.u32 %v8246_v37, %v7600_v38 }
 0x79a   : > { %v4234_v20 = vmax.f32 %v3957_v31, %v4202_v8 }
 0x79b   : > { %4685 = vmatmul.bf16.gmra.mxu2 %v11157_v62 }
 0x79c   : > { %v4262_v30 = vpack.c.bf16 %v4234_v20, %v4234_v20  ;;  %4744 = vmatmul.bf16.gmra.mxu3 %v11157_v62  ;;  %5130 = vmatpush.bf16.msrb.mxu2 %v7601_v12 }
 0x79d   : > { %5187 = vmatpush.bf16.msrb.mxu3 %v7621_v58 }
 0x79e   : > { %v5041_v41 = vunpack.c.l.b16 %v4262_v30  ;;  %v4125_v61 = vpop.f32.mrf.mxu2  ;;  %v7706_v30 = vld [vmem:[%s12240_s5 + $0x248] sm:$0xf0] }
 0x79f   : > { %v4204_v11 = vpop.f32.mrf.mxu3  ;;  %v11346_v22 = vpop.f32.mrf.mxu0 }
 0x7a0   : > { %v11357_v18 = vpack.c.b16 %v5041_v41, %v5040_v16  ;;  %v4205_v45 = vadd.f32 %v4204_v11, %v4125_v61  ;;  %v11359_v63 = vpop.f32.mrf.mxu1  ;;  %5131 = vmatpush.bf16.msrb.mxu2 %v7593_v59  ;;  %v7709_v16 = vor.u32 %v8267_v54, %v7706_v30 }
 0x7a1   : > { %5188 = vmatpush.bf16.msrb.mxu3 %v7613_v9 }
 0x7a2   : > { %v4235_v23 = vmax.f32 %v10935_v48, %v4205_v45  ;;  %4876 = vmatmul.bf16.gmra.mxu0 %v11084_v51  ;;  %4935 = vmatmul.bf16.gmra.mxu1 %v11084_v51  ;;  %v7602_v48 = vld [vmem:[%s12240_s5 + $0x198] sm:$0xf0] }
 0x7a3   : > { %v7605_v44 = vor.u32 %v8245_v4, %v7602_v48  ;;  %5447 = vmatpush.bf16.msrb.mxu1 %v7709_v16  ;;  %v8266_v48 = vld [vmem:[%s12240_s5 + $0x234] sm:$0xf0] }
 0x7a4   : > { %v4263_v56 = vpack.c.bf16 %v4235_v23, %v4235_v23 }
 0x7a5   : > { %5189 = vmatpush.bf16.msrb.mxu3 %v7605_v44 }
 0x7a6   : > { %v4127_v28 = vpop.f32.mrf.mxu2  ;;  %v5301_v49 = vunpack.c.l.b16 %v4263_v56 }
 0x7a7   : > { %v4206_v31 = vpop.f32.mrf.mxu3  ;;  %v11379_v8 = vpop.f32.mrf.mxu0 }
 0x7a8   : > { %v4207_v29 = vadd.f32 %v4206_v31, %v4127_v28  ;;  %v11390_v10 = vpop.f32.mrf.mxu1 }
 0x7a9   : > { %5190 = vmatpush.bf16.msrb.mxu3 %v7597_v0 }
 0x7aa   : > { %v4236_v20 = vmax.f32 %v10949_v46, %v4207_v29  ;;  %v7705_v46 = vor.u32 %v8268_v7, %v7704_v1 }
 0x7ab   : > { %4690 = vmatmul.bf16.gmra.mxu2 %v11178_v52 }
 0x7ac   : > { %v4264_v15 = vpack.c.bf16 %v4236_v20, %v4236_v20  ;;  %4749 = vmatmul.bf16.gmra.mxu3 %v11178_v52  ;;  %5388 = vmatpush.bf16.msrb.mxu0 %v7705_v46 }
 0x7ae   : > { %v5302_v5 = vunpack.c.l.b16 %v4264_v15  ;;  %v4651_v58 = vpop.f32.mrf.mxu2 }
 0x7af   : > { %v11410_v41 = vpop.f32.mrf.mxu0  ;;  %v11413_v61 = vadd.f32 %v4651_v58, %v11199_v27  ;;  %v4710_v11 = vpop.f32.mrf.mxu3 }
 0x7b0   : > { %v11415_v47 = vpop.f32.mrf.mxu1  ;;  %v11418_v14 = vadd.f32 %v4710_v11, %v11203_v55  ;;  %v11420_v26 = vpack.c.b16 %v5302_v5, %v5301_v49 }
 0x7b2   : > { %4881 = vmatmul.bf16.gmra.mxu0 %v11106_v42  ;;  %4940 = vmatmul.bf16.gmra.mxu1 %v11106_v42 }
 0x7b6   : > { %v4653_v45 = vpop.f32.mrf.mxu2 }
 0x7b7   : > { %v11424_v21 = vpop.f32.mrf.mxu0  ;;  %v11427_v27 = vadd.f32 %v4653_v45, %v11229_v32  ;;  %v4712_v6 = vpop.f32.mrf.mxu3 }
 0x7b8   : > { %v11429_v9 = vpop.f32.mrf.mxu1  ;;  %v11432_v23 = vadd.f32 %v4712_v6, %v11236_v34  ;;  %v7696_v34 = vld [vmem:[%s12240_s5 + $0x230] sm:$0xf] }
 0x7b9   : > { %v7697_v44 = vor.u32 %v8266_v48, %v7696_v34 }
 0x7bb   : > { %4695 = vmatmul.bf16.gmra.mxu2 %v11201_v2  ;;  %5389 = vmatpush.bf16.msrb.mxu0 %v7697_v44  ;;  %v8262_v44 = vld [vmem:[%s12240_s5 + $0x214] sm:$0xf0] }
 0x7bc   : > { %4754 = vmatmul.bf16.gmra.mxu3 %v11201_v2 }
 0x7be   : > { %v4656_v55 = vpop.f32.mrf.mxu2 }
 0x7bf   : > { %v11436_v38 = vpop.f32.mrf.mxu0  ;;  %v11439_v37 = vadd.f32 %v4656_v55, %v11240_v39  ;;  %v4715_v4 = vpop.f32.mrf.mxu3  ;;  %v8265_v39 = vld [vmem:[%s12240_s5 + $0x234] sm:$0xf] }
 0x7c0   : > { %v11441_v12 = vpop.f32.mrf.mxu1  ;;  %v11444_v32 = vadd.f32 %v4715_v4, %v11244_v43  ;;  %v7698_v43 = vld [vmem:[%s12240_s5 + $0x238] sm:$0xf0] }
 0x7c1   : > { %v7701_v28 = vor.u32 %v8265_v39, %v7698_v43  ;;  %v8261_v43 = vld [vmem:[%s12240_s5 + $0x214] sm:$0xf] }
 0x7c2   : > { %4886 = vmatmul.bf16.gmra.mxu0 %v11127_v13  ;;  %4945 = vmatmul.bf16.gmra.mxu1 %v11127_v13 }
 0x7c3   : > { %5448 = vmatpush.bf16.msrb.mxu1 %v7701_v28  ;;  %v7682_v28 = vld [vmem:[%s12240_s5 + $0x218] sm:$0xf0] }
 0x7c6   : > { %v4658_v31 = vpop.f32.mrf.mxu2 }
 0x7c7   : > { %v11460_v33 = vpop.f32.mrf.mxu0  ;;  %v11463_v50 = vadd.f32 %v4658_v31, %v11270_v53  ;;  %v4717_v25 = vpop.f32.mrf.mxu3  ;;  %v7685_v31 = vor.u32 %v8261_v43, %v7682_v28 }
 0x7c8   : > { %v11465_v29 = vpop.f32.mrf.mxu1  ;;  %v11468_v59 = vadd.f32 %v4717_v25, %v11277_v3  ;;  %v8264_v3 = vld [vmem:[%s12240_s5 + $0x224] sm:$0xf0] }
 0x7cb   : > { %5132 = vmatmul.bf16.vlgmr.msrb.gmra.mxu2 %v11084_v51 }
 0x7cc   : > { %5191 = vmatmul.bf16.vlgmr.msrb.gmra.mxu3 %v11084_v51  ;;  %v7688_v51 = vld [vmem:[%s12240_s5 + $0x220] sm:$0xf] }
 0x7cd   : > { %v7689_v1 = vor.u32 %v8264_v3, %v7688_v51 }
 0x7ce   : > { %v4661_v35 = vpop.f32.mrf.mxu2 }
 0x7cf   : > { %v11472_v0 = vpop.f32.mrf.mxu0  ;;  %v11475_v56 = vadd.f32 %v4661_v35, %v11281_v57  ;;  %v4720_v20 = vpop.f32.mrf.mxu3  ;;  %v8263_v57 = vld [vmem:[%s12240_s5 + $0x224] sm:$0xf]  ;;  %5390 = vmatpush.bf16.msrb.mxu0 %v7689_v1 }
 0x7d0   : > { %v11477_v15 = vpop.f32.mrf.mxu1  ;;  %v11480_v53 = vadd.f32 %v4720_v20, %v11285_v60  ;;  %v7690_v60 = vld [vmem:[%s12240_s5 + $0x228] sm:$0xf0] }
 0x7d1   : > { %v7693_v7 = vor.u32 %v8263_v57, %v7690_v60 }
 0x7d2   : > { %4891 = vmatmul.bf16.gmra.mxu0 %v11148_v40  ;;  %4950 = vmatmul.bf16.gmra.mxu1 %v11148_v40 }
 0x7d3   : > { %5449 = vmatpush.bf16.msrb.mxu1 %v7693_v7 }
 0x7d6   : > { %v4663_v54 = vpop.f32.mrf.mxu2 }
 0x7d7   : > { %v11496_v46 = vpop.f32.mrf.mxu0  ;;  %v11499_v30 = vadd.f32 %v4663_v54, %v11302_v17  ;;  %v4722_v49 = vpop.f32.mrf.mxu3  ;;  %5450 = vmatpush.bf16.msrb.mxu1 %v7685_v31 }
 0x7d8   : > { %v11501_v5 = vpop.f32.mrf.mxu1  ;;  %v11504_v58 = vadd.f32 %v4722_v49, %v11315_v19  ;;  %v8260_v49 = vld [vmem:[%s12240_s5 + $0x204] sm:$0xf0] }
 0x7db   : > { %5137 = vmatmul.bf16.gmra.mxu2 %v11106_v42 }
 0x7dc   : > { %5196 = vmatmul.bf16.gmra.mxu3 %v11106_v42 }
 0x7de   : > { %v4666_v16 = vpop.f32.mrf.mxu2 }
 0x7df   : > { %v11508_v11 = vpop.f32.mrf.mxu0  ;;  %v11511_v45 = vadd.f32 %v4666_v16, %v11346_v22  ;;  %v4725_v6 = vpop.f32.mrf.mxu3 }
 0x7e0   : > { %v11513_v55 = vpop.f32.mrf.mxu1  ;;  %v11516_v17 = vadd.f32 %v4725_v6, %v11359_v63  ;;  %v7680_v63 = vld [vmem:[%s12240_s5 + $0x210] sm:$0xf] }
 0x7e2   : > { %4896 = vmatmul.bf16.gmra.mxu0 %v11157_v62  ;;  %4955 = vmatmul.bf16.gmra.mxu1 %v11157_v62 }
 0x7e6   : > { %v4668_v19 = vpop.f32.mrf.mxu2 }
 0x7e7   : > { %v11520_v4 = vpop.f32.mrf.mxu0  ;;  %v11523_v34 = vadd.f32 %v4668_v19, %v11379_v8  ;;  %v4727_v48 = vpop.f32.mrf.mxu3  ;;  %v7681_v8 = vor.u32 %v8262_v44, %v7680_v63 }
 0x7e8   : > { %v11525_v39 = vpop.f32.mrf.mxu1  ;;  %v11528_v22 = vadd.f32 %v4727_v48, %v11390_v10 }
 0x7e9   : > { %5391 = vmatpush.bf16.msrb.mxu0 %v7681_v8 }
 0x7eb   : > { %5142 = vmatmul.bf16.gmra.mxu2 %v11127_v13 }
 0x7ec   : > { %5201 = vmatmul.bf16.gmra.mxu3 %v11127_v13 }
 0x7ee   : > { %v4671_v10 = vpop.f32.mrf.mxu2 }
 0x7ef   : > { %v11544_v25 = vpop.f32.mrf.mxu0  ;;  %v11547_v35 = vadd.f32 %v4671_v10, %v11410_v41  ;;  %v4730_v20 = vpop.f32.mrf.mxu3 }
 0x7f0   : > { %v11549_v51 = vpop.f32.mrf.mxu1  ;;  %v11552_v3 = vadd.f32 %v4730_v20, %v11415_v47  ;;  %v7672_v47 = vld [vmem:[%s12240_s5 + $0x200] sm:$0xf] }
 0x7f1   : > { %v7673_v16 = vor.u32 %v8260_v49, %v7672_v47 }
 0x7f2   : > { %4901 = vmatmul.bf16.gmra.mxu0 %v11178_v52  ;;  %4960 = vmatmul.bf16.gmra.mxu1 %v11178_v52 }
 0x7f3   : > { %5392 = vmatpush.bf16.msrb.mxu0 %v7673_v16 }
 0x7f6   : > { %v4673_v57 = vpop.f32.mrf.mxu2 }
 0x7f7   : > { %v11556_v1 = vpop.f32.mrf.mxu0  ;;  %v11559_v60 = vadd.f32 %v4673_v57, %v11424_v21  ;;  %v4732_v7 = vpop.f32.mrf.mxu3  ;;  %v8259_v21 = vld [vmem:[%s12240_s5 + $0x204] sm:$0xf] }
 0x7f8   : > { %12700 = vst [vmem:[#allocation15_spill] sm:$0xff] %v11556_v1  ;;  %v11561_v54 = vpop.f32.mrf.mxu1  ;;  %v11564_v41 = vadd.f32 %v4732_v7, %v11429_v9  ;;  %v7674_v9 = vld [vmem:[%s12240_s5 + $0x208] sm:$0xf0] }
 0x7f9   : > { %12701 = vst [vmem:[#allocation16_spill] sm:$0xff] %v11561_v54  ;;  %v7677_v19 = vor.u32 %v8259_v21, %v7674_v9 }
 0x7fb   : > { %5147 = vmatmul.bf16.gmra.mxu2 %v11148_v40  ;;  %5451 = vmatpush.bf16.msrb.mxu1 %v7677_v19 }
 0x7fc   : > { %5206 = vmatmul.bf16.gmra.mxu3 %v11148_v40 }
 0x7fe   : > { %v4676_v6 = vpop.f32.mrf.mxu2 }
 0x7ff   : > { %v11580_v48 = vpop.f32.mrf.mxu0  ;;  %v11583_v63 = vadd.f32 %v4676_v6, %v11436_v38  ;;  %v4735_v44 = vpop.f32.mrf.mxu3 }
 0x800   : > { %v11585_v43 = vpop.f32.mrf.mxu1  ;;  %v11588_v8 = vadd.f32 %v4735_v44, %v11441_v12 }
 0x802   : > { %4906 = vmatmul.bf16.gmra.mxu0 %v11201_v2  ;;  %4965 = vmatmul.bf16.gmra.mxu1 %v11201_v2 }
 0x806   : > { %v4678_v28 = vpop.f32.mrf.mxu2 }
 0x807   : > { %v11592_v31 = vpop.f32.mrf.mxu0  ;;  %v11595_v10 = vadd.f32 %v4678_v28, %v11460_v33  ;;  %v4737_v38 = vpop.f32.mrf.mxu3 }
 0x808   : > { %12702 = vst [vmem:[#allocation20_spill] sm:$0xff] %v11592_v31  ;;  %v11597_v20 = vpop.f32.mrf.mxu1  ;;  %v11600_v57 = vadd.f32 %v4737_v38, %v11465_v29 }
 0x809   : > { %12703 = vst [vmem:[#allocation21_spill] sm:$0xff] %v11597_v20  ;;  %v5543_v20 = vld [vmem:[%s12241_s6] sm:$0x3] }
 0x80b   : > { %5152 = vmatmul.bf16.gmra.mxu2 %v11157_v62 }
 0x80c   : > { %5211 = vmatmul.bf16.gmra.mxu3 %v11157_v62 }
 0x80e   : > { %v4681_v12 = vpop.f32.mrf.mxu2 }
 0x80f   : > { %v11605_v7 = vadd.f32 %v4681_v12, %v11472_v0  ;;  %v4740_v47 = vpop.f32.mrf.mxu3  ;;  %v4872_v49 = vpop.f32.mrf.mxu0 }
 0x810   : > { %v11608_v21 = vadd.f32 %v4740_v47, %v11477_v15  ;;  %v11611_v33 = vadd.f32 %v4872_v49, %v11413_v61  ;;  %v4931_v16 = vpop.f32.mrf.mxu1 }
 0x811   : > { %v11614_v29 = vadd.f32 %v4931_v16, %v11418_v14 }
 0x812   : > { %4911 = vmatmul.bf16.gmra.mxu0 %v11242_v36  ;;  %4970 = vmatmul.bf16.gmra.mxu1 %v11242_v36 }
 0x816   : > { %v4683_v9 = vpop.f32.mrf.mxu2 }
 0x817   : > { %v11619_v0 = vadd.f32 %v4683_v9, %v11496_v46  ;;  %v4742_v6 = vpop.f32.mrf.mxu3  ;;  %v4874_v19 = vpop.f32.mrf.mxu0 }
 0x818   : > { %v11622_v15 = vadd.f32 %v4742_v6, %v11501_v5  ;;  %v11625_v61 = vadd.f32 %v4874_v19, %v11427_v27  ;;  %v4933_v44 = vpop.f32.mrf.mxu1 }
 0x819   : > { %v11628_v14 = vadd.f32 %v4933_v44, %v11432_v23 }
 0x81b   : > { %5157 = vmatmul.bf16.gmra.mxu2 %v11178_v52 }
 0x81c   : > { %5216 = vmatmul.bf16.gmra.mxu3 %v11178_v52 }
 0x81e   : > { %v4686_v28 = vpop.f32.mrf.mxu2 }
 0x81f   : > { %v11633_v46 = vadd.f32 %v4686_v28, %v11508_v11  ;;  %v4745_v38 = vpop.f32.mrf.mxu3  ;;  %v4877_v12 = vpop.f32.mrf.mxu0 }
 0x820   : > { %v11636_v5 = vadd.f32 %v4745_v38, %v11513_v55  ;;  %v11639_v27 = vadd.f32 %v4877_v12, %v11439_v37  ;;  %v4936_v47 = vpop.f32.mrf.mxu1 }
 0x821   : > { %v11642_v23 = vadd.f32 %v4936_v47, %v11444_v32 }
 0x822   : > { %4916 = vmatmul.bf16.gmra.mxu0 %v11283_v24  ;;  %4975 = vmatmul.bf16.gmra.mxu1 %v11283_v24 }
 0x826   : > { %v4688_v49 = vpop.f32.mrf.mxu2 }
 0x827   : > { %v11647_v11 = vadd.f32 %v4688_v49, %v11520_v4  ;;  %v4747_v16 = vpop.f32.mrf.mxu3  ;;  %v4879_v9 = vpop.f32.mrf.mxu0 }
 0x828   : > { %v11650_v55 = vadd.f32 %v4747_v16, %v11525_v39  ;;  %v11653_v37 = vadd.f32 %v4879_v9, %v11463_v50  ;;  %v4938_v6 = vpop.f32.mrf.mxu1 }
 0x829   : > { %v11656_v32 = vadd.f32 %v4938_v6, %v11468_v59 }
 0x82b   : > { %5162 = vmatmul.bf16.gmra.mxu2 %v11201_v2 }
 0x82c   : > { %5221 = vmatmul.bf16.gmra.mxu3 %v11201_v2 }
 0x82e   : > { %v4691_v19 = vpop.f32.mrf.mxu2 }
 0x82f   : > { %v11661_v4 = vadd.f32 %v4691_v19, %v11544_v25  ;;  %v4750_v44 = vpop.f32.mrf.mxu3  ;;  %v4882_v28 = vpop.f32.mrf.mxu0 }
 0x830   : > { %v11664_v39 = vadd.f32 %v4750_v44, %v11549_v51  ;;  %v11667_v50 = vadd.f32 %v4882_v28, %v11475_v56  ;;  %v4941_v38 = vpop.f32.mrf.mxu1 }
 0x831   : > { %v11670_v59 = vadd.f32 %v4941_v38, %v11480_v53 }
 0x832   : > { %5393 = vmatmul.bf16.vlgmr.msrb.gmra.mxu0 %v11106_v42  ;;  %5452 = vmatmul.bf16.vlgmr.msrb.gmra.mxu1 %v11106_v42 }
 0x836   : > { %v11674_v12 = vpop.f32.mrf.mxu2 }
 0x837   : > { %12704 = vst [vmem:[#allocation32_spill] sm:$0xff] %v11674_v12  ;;  %v11676_v25 = vpop.f32.mrf.mxu3  ;;  %v4884_v47 = vpop.f32.mrf.mxu0 }
 0x838   : > { %12705 = vst [vmem:[#allocation18_spill] sm:$0xff] %v11676_v25  ;;  %v11679_v49 = vadd.f32 %v4884_v47, %v11499_v30  ;;  %v4943_v51 = vpop.f32.mrf.mxu1 }
 0x839   : > { %v11682_v56 = vadd.f32 %v4943_v51, %v11504_v58 }
 0x83b   : > { %5167 = vmatmul.bf16.gmra.mxu2 %v11242_v36 }
 0x83c   : > { %5226 = vmatmul.bf16.gmra.mxu3 %v11242_v36 }
 0x83e   : > { %v4696_v53 = vpop.f32.mrf.mxu2 }
 0x83f   : > { %v11687_v16 = vadd.f32 %v4696_v53, %v11580_v48  ;;  %v4755_v42 = vpop.f32.mrf.mxu3  ;;  %v4887_v9 = vpop.f32.mrf.mxu0 }
 0x840   : > { %v11690_v6 = vadd.f32 %v4755_v42, %v11585_v43  ;;  %v11693_v30 = vadd.f32 %v4887_v9, %v11511_v45  ;;  %v4946_v19 = vpop.f32.mrf.mxu1 }
 0x841   : > { %v11696_v58 = vadd.f32 %v4946_v19, %v11516_v17 }
 0x842   : > { %5398 = vmatmul.bf16.gmra.mxu0 %v11127_v13  ;;  %5457 = vmatmul.bf16.gmra.mxu1 %v11127_v13  ;;  %v8282_v13 = vld [vmem:[%s12242_s7 + $0x38] sm:$0xff] }
 0x843   : > { %5755 = vmatpush.bf16.msra.mxu2 %v8282_v13 }
 0x847   : > { %v4889_v44 = vpop.f32.mrf.mxu0 }
 0x848   : > { %v11701_v48 = vadd.f32 %v4889_v44, %v11523_v34  ;;  %v4948_v28 = vpop.f32.mrf.mxu1  ;;  %v8284_v34 = vld [vmem:[%s12242_s7 + $0x48] sm:$0xff] }
 0x849   : > { %v11704_v38 = vadd.f32 %v4948_v28, %v11528_v22  ;;  %5795 = vmatpush.bf16.msra.mxu3 %v8284_v34  ;;  %v11764_v34 = vpop.f32.mrf.mxu2 }
 0x84a   : > { %12706 = vst [vmem:[#allocation19_spill] sm:$0xff] %v11764_v34 }
 0x84b   : > { %5172 = vmatmul.bf16.gmra.mxu2 %v11283_v24 }
 0x84c   : > { %5231 = vmatmul.bf16.gmra.mxu3 %v11283_v24 }
 0x84f   : > { %v4892_v45 = vpop.f32.mrf.mxu0 }
 0x850   : > { %v11709_v17 = vadd.f32 %v4892_v45, %v11547_v35  ;;  %v4951_v43 = vpop.f32.mrf.mxu1 }
 0x851   : > { %v11712_v47 = vadd.f32 %v4951_v43, %v11552_v3 }
 0x852   : > { %5403 = vmatmul.bf16.gmra.mxu0 %v11148_v40  ;;  %5462 = vmatmul.bf16.gmra.mxu1 %v11148_v40 }
 0x857   : > { %v4894_v22 = vpop.f32.mrf.mxu0 }
 0x858   : > { %v11723_v35 = vadd.f32 %v4894_v22, %v11559_v60  ;;  %v4953_v3 = vpop.f32.mrf.mxu1  ;;  %v8281_v60 = vld [vmem:[%s12242_s7 + $0x30] sm:$0xff] }
 0x859   : > { %v11726_v51 = vadd.f32 %v4953_v3, %v11564_v41  ;;  %5756 = vmatpush.bf16.msra.mxu2 %v8281_v60 }
 0x85b   : > { %5177 = vmatmul.bf16.gmra.mxu2 %v11357_v18 }
 0x85c   : > { %5236 = vmatmul.bf16.gmra.mxu3 %v11357_v18 }
 0x85f   : > { %v4897_v40 = vpop.f32.mrf.mxu0 }
 0x860   : > { %v11731_v53 = vadd.f32 %v4897_v40, %v11583_v63  ;;  %v4956_v42 = vpop.f32.mrf.mxu1 }
 0x861   : > { %v11734_v9 = vadd.f32 %v4956_v42, %v11588_v8 }
 0x862   : > { %5408 = vmatmul.bf16.gmra.mxu0 %v11157_v62  ;;  %5467 = vmatmul.bf16.gmra.mxu1 %v11157_v62 }
 0x867   : > { %v4899_v41 = vpop.f32.mrf.mxu0 }
 0x868   : > { %v11742_v19 = vadd.f32 %v4899_v41, %v11595_v10  ;;  %v4958_v44 = vpop.f32.mrf.mxu1 }
 0x869   : > { %v11745_v63 = vadd.f32 %v4958_v44, %v11600_v57 }
 0x86f   : > { %v4902_v28 = vpop.f32.mrf.mxu0 }
 0x870   : > { %v11748_v8 = vadd.f32 %v4902_v28, %v11605_v7  ;;  %v4961_v45 = vpop.f32.mrf.mxu1  ;;  %v8280_v7 = vld [vmem:[%s12242_s7 + $0x28] sm:$0xff] }
 0x871   : > { %v11751_v62 = vadd.f32 %v4961_v45, %v11608_v21  ;;  %5757 = vmatpush.bf16.msra.mxu2 %v8280_v7  ;;  %v11766_v21 = vpop.f32.mrf.mxu3 }
 0x872   : > { %5413 = vmatmul.bf16.gmra.mxu0 %v11178_v52  ;;  %5472 = vmatmul.bf16.gmra.mxu1 %v11178_v52  ;;  %12707 = vst [vmem:[#allocation23_spill] sm:$0xff] %v11766_v21 }
 0x877   : > { %v4904_v43 = vpop.f32.mrf.mxu0 }
 0x878   : > { %v11756_v10 = vadd.f32 %v4904_v43, %v11619_v0  ;;  %v4963_v13 = vpop.f32.mrf.mxu1 }
 0x879   : > { %v11759_v57 = vadd.f32 %v4963_v13, %v11622_v15  ;;  %v5133_v15 = vpop.f32.mrf.mxu2  ;;  %v5192_v40 = vpop.f32.mrf.mxu3 }
 0x87a   : > { %v5242_v34 = vadd.f32 %v5133_v15, %v11611_v33  ;;  %v5243_v31 = vadd.f32 %v5192_v40, %v11614_v29 }
 0x87f   : > { %v4907_v22 = vpop.f32.mrf.mxu0 }
 0x880   : > { %v11769_v52 = vadd.f32 %v4907_v22, %v11633_v46  ;;  %v4966_v3 = vpop.f32.mrf.mxu1  ;;  %v8279_v46 = vld [vmem:[%s12242_s7 + $0x20] sm:$0xff] }
 0x881   : > { %v11772_v0 = vadd.f32 %v4966_v3, %v11636_v5  ;;  %5758 = vmatpush.bf16.msra.mxu2 %v8279_v46  ;;  %v5135_v5 = vpop.f32.mrf.mxu2  ;;  %v5194_v45 = vpop.f32.mrf.mxu3 }
 0x882   : > { %5418 = vmatmul.bf16.gmra.mxu0 %v11201_v2  ;;  %5477 = vmatmul.bf16.gmra.mxu1 %v11201_v2  ;;  %v5244_v29 = vadd.f32 %v5135_v5, %v11625_v61 }
 0x887   : > { %v4909_v42 = vpop.f32.mrf.mxu0 }
 0x888   : > { %v11777_v60 = vadd.f32 %v4909_v42, %v11647_v11  ;;  %v4968_v41 = vpop.f32.mrf.mxu1 }
 0x889   : > { %v11780_v44 = vadd.f32 %v4968_v41, %v11650_v55  ;;  %v5138_v7 = vpop.f32.mrf.mxu2  ;;  %v5197_v22 = vpop.f32.mrf.mxu3 }
 0x88a   : > { %v5247_v25 = vadd.f32 %v5197_v22, %v11642_v23 }
 0x88f   : > { %v4912_v28 = vpop.f32.mrf.mxu0 }
 0x890   : > { %v11786_v2 = vadd.f32 %v4912_v28, %v11661_v4  ;;  %v4971_v43 = vpop.f32.mrf.mxu1 }
 0x891   : > { %v11789_v13 = vadd.f32 %v4971_v43, %v11664_v39  ;;  %v5140_v39 = vpop.f32.mrf.mxu2  ;;  %v5199_v46 = vpop.f32.mrf.mxu3 }
 0x892   : > { %5423 = vmatmul.bf16.gmra.mxu0 %v11242_v36  ;;  %5482 = vmatmul.bf16.gmra.mxu1 %v11242_v36  ;;  %v8278_v36 = vld [vmem:[%s12242_s7 + $0x18] sm:$0xff] }
 0x893   : > { %12708 = vst [vmem:[#allocation24_spill] sm:$0xff] %v11789_v13  ;;  %5759 = vmatpush.bf16.msra.mxu2 %v8278_v36  ;;  %v8275_v36 = vld [vmem:[%s12242_s7] sm:$0xff] }
 0x897   : > { %v11793_v11 = vpop.f32.mrf.mxu0 }
 0x898   : > { %12709 = vst [vmem:[#allocation37_spill] sm:$0xff] %v11793_v11  ;;  %v11795_v55 = vpop.f32.mrf.mxu1 }
 0x899   : > { %12710 = vst [vmem:[#allocation25_spill] sm:$0xff] %v11795_v55 }
 0x89f   : > { %v4917_v3 = vpop.f32.mrf.mxu0 }
 0x8a0   : > { %v11798_v42 = vadd.f32 %v4917_v3, %v11687_v16  ;;  %v4976_v4 = vpop.f32.mrf.mxu1  ;;  %v8277_v16 = vld [vmem:[%s12242_s7 + $0x10] sm:$0xff]  ;;  %v11821_v3 = vpop.f32.mrf.mxu2 }
 0x8a1   : > { %v11801_v41 = vadd.f32 %v4976_v4, %v11690_v6  ;;  %v8283_v6 = vld [vmem:[%s12242_s7 + $0x40] sm:$0xff]  ;;  %5760 = vmatpush.bf16.msra.mxu2 %v8277_v16  ;;  %v11823_v4 = vpop.f32.mrf.mxu3 }
 0x8a2   : > { %12711 = vst [vmem:[#allocation26_spill] sm:$0xff] %v11798_v42  ;;  %5428 = vmatmul.bf16.gmra.mxu0 %v11283_v24  ;;  %5487 = vmatmul.bf16.gmra.mxu1 %v11283_v24  ;;  %v8276_v24 = vld [vmem:[%s12242_s7 + $0x8] sm:$0xff] }
 0x8a3   : > { %12712 = vst [vmem:[#allocation30_spill] sm:$0xff] %v11801_v41  ;;  %5796 = vmatpush.bf16.msra.mxu3 %v8283_v6  ;;  %v11841_v41 = vperm.slane %v5543_v20, 1 }
 0x8a5   : > { %5761 = vmatpush.bf16.msra.mxu2 %v8276_v24 }
 0x8a7   : > { %v11811_v28 = vpop.f32.mrf.mxu0 }
 0x8a8   : > { %12713 = vst [vmem:[#allocation31_spill] sm:$0xff] %v11811_v28  ;;  %v11816_v43 = vpop.f32.mrf.mxu1  ;;  %v11830_v16 = vpop.f32.mrf.mxu2 }
 0x8a9   : > { %12714 = vst [vmem:[#allocation42_spill] sm:$0xff] %v11816_v43  ;;  %5762 = vmatpush.bf16.msra.mxu2 %v8275_v36  ;;  %v11832_v43 = vpop.f32.mrf.mxu3  ;;  %v11839_v36 = vperm.slane %v5543_v20, 0  ;;  %v5245_v20 = vadd.f32 %v5194_v45, %v11628_v14 }
 0x8af   : > { %v5394_v28 = vpop.f32.mrf.mxu0 }
 0x8b0   : > { %v5453_v21 = vpop.f32.mrf.mxu1  ;;  %v5503_v55 = vadd.f32 %v5394_v28, %v5242_v34  ;;  %v5148_v13 = vpop.f32.mrf.mxu2 }
 0x8b1   : > { %v5504_v11 = vadd.f32 %v5453_v21, %v5243_v31  ;;  %v5207_v34 = vpop.f32.mrf.mxu3 }
 0x8b2   : > { %5433 = vmatmul.bf16.gmra.mxu0 %v11357_v18  ;;  %5492 = vmatmul.bf16.gmra.mxu1 %v11357_v18  ;;  %v5246_v18 = vadd.f32 %v5138_v7, %v11639_v27  ;;  %v5549_v42 = vadd.f32 %v11839_v36, %v5503_v55 }
 0x8b3   : > { %v5550_v33 = vadd.f32 %v11841_v41, %v5504_v11 }
 0x8b4   : > { %v5589_v23 = vmax.f32 %v5549_v42, 0.0 }
 0x8b5   : > { %v5590_v40 = vmax.f32 %v5550_v33, 0.0 }
 0x8b7   : > { %v5396_v6 = vpop.f32.mrf.mxu0 }
 0x8b8   : > { %v5455_v24 = vpop.f32.mrf.mxu1  ;;  %v5150_v28 = vpop.f32.mrf.mxu2 }
 0x8b9   : > { %v5506_v55 = vadd.f32 %v5455_v24, %v5245_v20  ;;  %v5209_v24 = vpop.f32.mrf.mxu3 }
 0x8bb   : > { %v5552_v14 = vadd.f32 %v11841_v41, %v5506_v55  ;;  %v5251_v55 = vadd.f32 %v11823_v4, %v11670_v59  ;;  %v5252_v59 = vadd.f32 %v11830_v16, %v11679_v49 }
 0x8bf   : > { %v5399_v54 = vpop.f32.mrf.mxu0 }
 0x8c0   : > { %v5507_v12 = vadd.f32 %v5399_v54, %v5246_v18  ;;  %v5458_v1 = vpop.f32.mrf.mxu1  ;;  %v5505_v54 = vadd.f32 %v5396_v6, %v5244_v29 }
 0x8c1   : > { %v5508_v15 = vadd.f32 %v5458_v1, %v5247_v25  ;;  %v5248_v1 = vadd.f32 %v5140_v39, %v11653_v37  ;;  %v5249_v25 = vadd.f32 %v5199_v46, %v11656_v32  ;;  %v5592_v39 = vmax.f32 %v5552_v14, 0.0 }
 0x8c2   : > { %v5553_v31 = vadd.f32 %v11839_v36, %v5507_v12  ;;  %5438 = vmatmul.bf16.gmra.mxu0 %v11420_v26  ;;  %5497 = vmatmul.bf16.gmra.mxu1 %v11420_v26  ;;  %v5551_v7 = vadd.f32 %v11839_v36, %v5505_v54 }
 0x8c3   : > { %v5554_v27 = vadd.f32 %v11841_v41, %v5508_v15 }
 0x8c4   : > { %v5593_v21 = vmax.f32 %v5553_v31, 0.0  ;;  %v5591_v18 = vmax.f32 %v5551_v7, 0.0 }
 0x8c5   : > { %v5594_v11 = vmax.f32 %v5554_v27, 0.0  ;;  %v5153_v27 = vpop.f32.mrf.mxu2 }
 0x8c6   : > { %v5629_v61 = vmax.f32 %v5589_v23, %v5593_v21  ;;  %v5212_v23 = vpop.f32.mrf.mxu3 }
 0x8c7   : > { %v5630_v12 = vmax.f32 %v5590_v40, %v5594_v11  ;;  %v5401_v5 = vpop.f32.mrf.mxu0  ;;  %v5250_v40 = vadd.f32 %v11821_v3, %v11667_v50 }
 0x8c8   : > { %v5509_v26 = vadd.f32 %v5401_v5, %v5248_v1  ;;  %v5460_v22 = vpop.f32.mrf.mxu1 }
 0x8c9   : > { %v5510_v45 = vadd.f32 %v5460_v22, %v5249_v25  ;;  %v5255_v25 = vadd.f32 %v5207_v34, %v11696_v58 }
 0x8ca   : > { %v5555_v42 = vadd.f32 %v11839_v36, %v5509_v26 }
 0x8cb   : > { %v5556_v6 = vadd.f32 %v11841_v41, %v5510_v45 }
 0x8cc   : > { %v5595_v37 = vmax.f32 %v5555_v42, 0.0 }
 0x8cd   : > { %v5596_v33 = vmax.f32 %v5556_v6, 0.0 }
 0x8ce   : > { %v5631_v32 = vmax.f32 %v5591_v18, %v5595_v37  ;;  %v11874_v7 = vpop.f32.mrf.mxu3  ;;  %v5256_v37 = vadd.f32 %v5150_v28, %v11701_v48 }
 0x8cf   : > { %v5632_v46 = vmax.f32 %v5592_v39, %v5596_v33  ;;  %v5404_v15 = vpop.f32.mrf.mxu0  ;;  %v5257_v33 = vadd.f32 %v5209_v24, %v11704_v38 }
 0x8d0   : > { %v11859_v29 = vpack.c.bf16 %v5631_v32, %v5629_v61  ;;  %v5463_v31 = vpop.f32.mrf.mxu1  ;;  %v5511_v11 = vadd.f32 %v5404_v15, %v5250_v40  ;;  %v5254_v61 = vadd.f32 %v5148_v13, %v11693_v30  ;;  %v5253_v30 = vadd.f32 %v11832_v43, %v11682_v56 }
 0x8d1   : > { %v11861_v20 = vpack.c.bf16 %v5632_v46, %v5630_v12  ;;  %v5512_v1 = vadd.f32 %v5463_v31, %v5251_v55  ;;  %v11872_v12 = vpop.f32.mrf.mxu2 }
 0x8d2   : > { %5763 = vmatmul.bf16.vlgmr.msra.gmra.mxu2 %v11859_v29  ;;  %v5557_v26 = vadd.f32 %v11839_v36, %v5511_v11 }
 0x8d3   : > { %7774 = vmatmul.msk.bf16.vlgmr.msra.gmra.mxu3 %vm5739_vm3, %v11861_v20  ;;  %v5558_v50 = vadd.f32 %v11841_v41, %v5512_v1 }
 0x8d4   : > { %v5597_v13 = vmax.f32 %v5557_v26, 0.0 }
 0x8d5   : > { %v5598_v42 = vmax.f32 %v5558_v50, 0.0  ;;  %v8294_v50 = vld [vmem:[%s12243_s8 + $0x48] sm:$0xff] }
 0x8d6   : > { %5943 = vmatpush.bf16.msrb.mxu3 %v8294_v50 }
 0x8d7   : > { %v5406_v54 = vpop.f32.mrf.mxu0 }
 0x8d8   : > { %v5465_v21 = vpop.f32.mrf.mxu1  ;;  %v5513_v34 = vadd.f32 %v5406_v54, %v5252_v59  ;;  %v5217_v54 = vpop.f32.mrf.mxu3 }
 0x8d9   : > { %v5514_v6 = vadd.f32 %v5465_v21, %v5253_v30  ;;  %v5158_v56 = vpop.f32.mrf.mxu2  ;;  %v5259_v30 = vadd.f32 %v5212_v23, %v11712_v47  ;;  %v5260_v23 = vadd.f32 %v11872_v12, %v11723_v35 }
 0x8da   : > { %v5559_v16 = vadd.f32 %v11839_v36, %v5513_v34 }
 0x8db   : > { %v5560_v43 = vadd.f32 %v11841_v41, %v5514_v6 }
 0x8dc   : > { %v5599_v55 = vmax.f32 %v5559_v16, 0.0 }
 0x8dd   : > { %v5600_v28 = vmax.f32 %v5560_v43, 0.0 }
 0x8df   : > { %v5409_v5 = vpop.f32.mrf.mxu0 }
 0x8e0   : > { %v5515_v22 = vadd.f32 %v5409_v5, %v5254_v61  ;;  %v5468_v14 = vpop.f32.mrf.mxu1 }
 0x8e1   : > { %v5516_v3 = vadd.f32 %v5468_v14, %v5255_v25  ;;  %v5160_v26 = vpop.f32.mrf.mxu2  ;;  %v8292_v14 = vld [vmem:[%s12243_s8 + $0x38] sm:$0xff] }
 0x8e2   : > { %v5561_v4 = vadd.f32 %v11839_v36, %v5515_v22  ;;  %v5219_v22 = vpop.f32.mrf.mxu3  ;;  %5903 = vmatpush.bf16.msrb.mxu2 %v8292_v14 }
 0x8e3   : > { %v5562_v58 = vadd.f32 %v11841_v41, %v5516_v3 }
 0x8e4   : > { %v5601_v45 = vmax.f32 %v5561_v4, 0.0  ;;  %v5258_v4 = vadd.f32 %v5153_v27, %v11709_v17 }
 0x8e5   : > { %v5602_v18 = vmax.f32 %v5562_v58, 0.0 }
 0x8e6   : > { %v5633_v39 = vmax.f32 %v5597_v13, %v5601_v45  ;;  %v8291_v45 = vld [vmem:[%s12243_s8 + $0x30] sm:$0xff] }
 0x8e7   : > { %v5634_v32 = vmax.f32 %v5598_v42, %v5602_v18  ;;  %v5411_v49 = vpop.f32.mrf.mxu0  ;;  %v5262_v42 = vadd.f32 %v5158_v56, %v11731_v53  ;;  %v5263_v18 = vadd.f32 %v5217_v54, %v11734_v9  ;;  %5904 = vmatpush.bf16.msrb.mxu2 %v8291_v45  ;;  %v5261_v53 = vadd.f32 %v11874_v7, %v11726_v51  ;;  %v8290_v51 = vld [vmem:[%s12243_s8 + $0x28] sm:$0xff] }
 0x8e8   : > { %v5517_v46 = vadd.f32 %v5411_v49, %v5256_v37  ;;  %v5470_v15 = vpop.f32.mrf.mxu1 }
 0x8e9   : > { %v5518_v31 = vadd.f32 %v5470_v15, %v5257_v33  ;;  %v5163_v13 = vpop.f32.mrf.mxu2 }
 0x8ea   : > { %v5563_v40 = vadd.f32 %v11839_v36, %v5517_v46  ;;  %v5222_v6 = vpop.f32.mrf.mxu3 }
 0x8eb   : > { %v5564_v21 = vadd.f32 %v11841_v41, %v5518_v31  ;;  %v5264_v31 = vadd.f32 %v5160_v26, %v11742_v19  ;;  %5905 = vmatpush.bf16.msrb.mxu2 %v8290_v51 }
 0x8ec   : > { %v5603_v48 = vmax.f32 %v5563_v40, 0.0  ;;  %v5265_v40 = vadd.f32 %v5219_v22, %v11745_v63 }
 0x8ed   : > { %v5604_v11 = vmax.f32 %v5564_v21, 0.0 }
 0x8ee   : > { %v5635_v38 = vmax.f32 %v5599_v55, %v5603_v48 }
 0x8ef   : > { %v5636_v24 = vmax.f32 %v5600_v28, %v5604_v11  ;;  %v5414_v1 = vpop.f32.mrf.mxu0 }
 0x8f0   : > { %v5473_v61 = vpop.f32.mrf.mxu1  ;;  %v11890_v25 = vpack.c.bf16 %v5635_v38, %v5633_v39  ;;  %v5519_v58 = vadd.f32 %v5414_v1, %v5258_v4 }
 0x8f1   : > { %v11892_v5 = vpack.c.bf16 %v5636_v24, %v5634_v32  ;;  %v5520_v34 = vadd.f32 %v5473_v61, %v5259_v30  ;;  %v5165_v21 = vpop.f32.mrf.mxu2 }
 0x8f2   : > { %5768 = vmatmul.bf16.gmra.mxu2 %v11890_v25  ;;  %v5565_v39 = vadd.f32 %v11839_v36, %v5519_v58  ;;  %v5224_v7 = vpop.f32.mrf.mxu3 }
 0x8f3   : > { %7775 = vmatmul.msk.bf16.gmra.mxu3 %vm5739_vm3, %v11892_v5  ;;  %v5566_v47 = vadd.f32 %v11841_v41, %v5520_v34  ;;  %v8289_v34 = vld [vmem:[%s12243_s8 + $0x20] sm:$0xff] }
 0x8f4   : > { %v5605_v9 = vmax.f32 %v5565_v39, 0.0  ;;  %5906 = vmatpush.bf16.msrb.mxu2 %v8289_v34 }
 0x8f5   : > { %v5606_v15 = vmax.f32 %v5566_v47, 0.0 }
 0x8f7   : > { %v5416_v3 = vpop.f32.mrf.mxu0 }
 0x8f8   : > { %v5475_v59 = vpop.f32.mrf.mxu1  ;;  %v5521_v16 = vadd.f32 %v5416_v3, %v5260_v23  ;;  %v8293_v23 = vld [vmem:[%s12243_s8 + $0x40] sm:$0xff] }
 0x8f9   : > { %v5522_v56 = vadd.f32 %v5475_v59, %v5261_v53  ;;  %v5168_v4 = vpop.f32.mrf.mxu2  ;;  %5944 = vmatpush.bf16.msrb.mxu3 %v8293_v23 }
 0x8fa   : > { %v5567_v55 = vadd.f32 %v11839_v36, %v5521_v16  ;;  %v5227_v58 = vpop.f32.mrf.mxu3  ;;  %v5268_v16 = vadd.f32 %v5165_v21, %v11756_v10 }
 0x8fb   : > { %v5568_v11 = vadd.f32 %v11841_v41, %v5522_v56  ;;  %v5271_v53 = vadd.f32 %v5227_v58, %v11772_v0 }
 0x8fc   : > { %v5607_v24 = vmax.f32 %v5567_v55, 0.0 }
 0x8fd   : > { %v5608_v61 = vmax.f32 %v5568_v11, 0.0 }
 0x8ff   : > { %v5419_v37 = vpop.f32.mrf.mxu0 }
 0x900   : > { %v5523_v33 = vadd.f32 %v5419_v37, %v5262_v42  ;;  %v5478_v17 = vpop.f32.mrf.mxu1  ;;  %v5267_v37 = vadd.f32 %v5222_v6, %v11751_v62 }
 0x901   : > { %v5524_v27 = vadd.f32 %v5478_v17, %v5263_v18  ;;  %v5266_v18 = vadd.f32 %v5163_v13, %v11748_v8  ;;  %v5170_v39 = vpop.f32.mrf.mxu2 }
 0x902   : > { %v5569_v32 = vadd.f32 %v11839_v36, %v5523_v33  ;;  %v5229_v33 = vpop.f32.mrf.mxu3 }
 0x903   : > { %v5570_v49 = vadd.f32 %v11841_v41, %v5524_v27  ;;  %v8288_v27 = vld [vmem:[%s12243_s8 + $0x18] sm:$0xff] }
 0x904   : > { %v5609_v46 = vmax.f32 %v5569_v32, 0.0  ;;  %v5270_v32 = vadd.f32 %v5168_v4, %v11769_v52  ;;  %5907 = vmatpush.bf16.msrb.mxu2 %v8288_v27 }
 0x905   : > { %v5610_v43 = vmax.f32 %v5570_v49, 0.0 }
 0x906   : > { %v5637_v54 = vmax.f32 %v5605_v9, %v5609_v46 }
 0x907   : > { %v5638_v35 = vmax.f32 %v5606_v15, %v5610_v43  ;;  %v5421_v12 = vpop.f32.mrf.mxu0  ;;  %v5269_v15 = vadd.f32 %v5224_v7, %v11759_v57  ;;  %v8287_v57 = vld [vmem:[%s12243_s8 + $0x10] sm:$0xff] }
 0x908   : > { %v5525_v48 = vadd.f32 %v5421_v12, %v5264_v31  ;;  %v5480_v28 = vpop.f32.mrf.mxu1  ;;  %v5272_v12 = vadd.f32 %v5170_v39, %v11777_v60  ;;  %5908 = vmatpush.bf16.msrb.mxu2 %v8287_v57  ;;  %v12726_v57 = vld [vmem:[#allocation21_spill] sm:$0xff] }
 0x909   : > { %v5526_v38 = vadd.f32 %v5480_v28, %v5265_v40  ;;  %v5173_v31 = vpop.f32.mrf.mxu2 }
 0x90a   : > { %v5571_v19 = vadd.f32 %v11839_v36, %v5525_v48  ;;  %v5232_v51 = vpop.f32.mrf.mxu3  ;;  %v5273_v48 = vadd.f32 %v5229_v33, %v11780_v44  ;;  %v5274_v33 = vadd.f32 %v5173_v31, %v11786_v2 }
 0x90b   : > { %v5572_v63 = vadd.f32 %v11841_v41, %v5526_v38 }
 0x90c   : > { %v5611_v1 = vmax.f32 %v5571_v19, 0.0 }
 0x90d   : > { %v5612_v26 = vmax.f32 %v5572_v63, 0.0 }
 0x90e   : > { %v5639_v22 = vmax.f32 %v5607_v24, %v5611_v1 }
 0x90f   : > { %v5640_v14 = vmax.f32 %v5608_v61, %v5612_v26  ;;  %v5424_v50 = vpop.f32.mrf.mxu0 }
 0x910   : > { %v5483_v3 = vpop.f32.mrf.mxu1  ;;  %v11927_v59 = vpack.c.bf16 %v5639_v22, %v5637_v54  ;;  %v5527_v17 = vadd.f32 %v5424_v50, %v5266_v18  ;;  %v8285_v18 = vld [vmem:[%s12243_s8] sm:$0xff] }
 0x911   : > { %v11929_v30 = vpack.c.bf16 %v5640_v14, %v5638_v35  ;;  %v5528_v47 = vadd.f32 %v5483_v3, %v5267_v37  ;;  %v5175_v22 = vpop.f32.mrf.mxu2 }
 0x912   : > { %5773 = vmatmul.bf16.gmra.mxu2 %v11927_v59  ;;  %v5573_v8 = vadd.f32 %v11839_v36, %v5527_v17  ;;  %v5234_v3 = vpop.f32.mrf.mxu3 }
 0x913   : > { %7776 = vmatmul.msk.bf16.gmra.mxu3 %vm5739_vm3, %v11929_v30  ;;  %v5574_v6 = vadd.f32 %v11841_v41, %v5528_v47  ;;  %v12715_v47 = vld [vmem:[#allocation24_spill] sm:$0xff] }
 0x914   : > { %v5613_v56 = vmax.f32 %v5573_v8, 0.0  ;;  %v5275_v27 = vadd.f32 %v5232_v51, %v12715_v47  ;;  %v12724_v51 = vld [vmem:[#allocation20_spill] sm:$0xff] }
 0x915   : > { %v5614_v54 = vmax.f32 %v5574_v6, 0.0  ;;  %v12719_v6 = vld [vmem:[#allocation16_spill] sm:$0xff] }
 0x917   : > { %v5426_v45 = vpop.f32.mrf.mxu0 }
 0x918   : > { %v5485_v42 = vpop.f32.mrf.mxu1  ;;  %v5529_v0 = vadd.f32 %v5426_v45, %v5268_v16  ;;  %v8286_v45 = vld [vmem:[%s12243_s8 + $0x8] sm:$0xff] }
 0x919   : > { %v5530_v40 = vadd.f32 %v5485_v42, %v5269_v15  ;;  %5909 = vmatpush.bf16.msrb.mxu2 %v8286_v45  ;;  %v5178_v39 = vpop.f32.mrf.mxu2 }
 0x91a   : > { %v5575_v7 = vadd.f32 %v11839_v36, %v5529_v0  ;;  %v5237_v17 = vpop.f32.mrf.mxu3 }
 0x91b   : > { %v5576_v38 = vadd.f32 %v11841_v41, %v5530_v40 }
 0x91c   : > { %v5615_v24 = vmax.f32 %v5575_v7, 0.0  ;;  %v12727_v7 = vld [vmem:[#allocation23_spill] sm:$0xff] }
 0x91d   : > { %v5616_v1 = vmax.f32 %v5576_v38, 0.0  ;;  %5910 = vmatpush.bf16.msrb.mxu2 %v8285_v18 }
 0x91f   : > { %v5429_v49 = vpop.f32.mrf.mxu0 }
 0x920   : > { %v5531_v62 = vadd.f32 %v5429_v49, %v5270_v32  ;;  %v5488_v13 = vpop.f32.mrf.mxu1  ;;  %v12717_v49 = vld [vmem:[#allocation32_spill] sm:$0xff] }
 0x921   : > { %v5532_v9 = vadd.f32 %v5488_v13, %v5271_v53  ;;  %v12716_v53 = vld [vmem:[#allocation15_spill] sm:$0xff]  ;;  %v5180_v38 = vpop.f32.mrf.mxu2 }
 0x922   : > { %v5577_v46 = vadd.f32 %v11839_v36, %v5531_v62  ;;  %v4694_v8 = vadd.f32 %v12717_v49, %v12716_v53  ;;  %v12718_v62 = vld [vmem:[#allocation26_spill] sm:$0xff] }
 0x923   : > { %v5578_v52 = vadd.f32 %v11841_v41, %v5532_v9  ;;  %v5278_v13 = vadd.f32 %v5178_v39, %v12718_v62  ;;  %v12720_v9 = vld [vmem:[#allocation18_spill] sm:$0xff] }
 0x924   : > { %v5617_v43 = vmax.f32 %v5577_v46, 0.0  ;;  %v4753_v16 = vadd.f32 %v12720_v9, %v12719_v6  ;;  %v12721_v46 = vld [vmem:[#allocation30_spill] sm:$0xff] }
 0x925   : > { %v5618_v35 = vmax.f32 %v5578_v52, 0.0  ;;  %v5279_v15 = vadd.f32 %v5237_v17, %v12721_v46 }
 0x926   : > { %v5641_v55 = vmax.f32 %v5613_v56, %v5617_v43  ;;  %v12722_v56 = vld [vmem:[#allocation37_spill] sm:$0xff] }
 0x927   : > { %v5642_v10 = vmax.f32 %v5614_v54, %v5618_v35  ;;  %v5431_v21 = vpop.f32.mrf.mxu0  ;;  %v5015_v0 = vadd.f32 %v12722_v56, %v4694_v8  ;;  %v12723_v54 = vld [vmem:[#allocation25_spill] sm:$0xff] }
 0x928   : > { %v5533_v28 = vadd.f32 %v5431_v21, %v5272_v12  ;;  %v5490_v11 = vpop.f32.mrf.mxu1  ;;  %v5016_v40 = vadd.f32 %v12723_v54, %v4753_v16 }
 0x929   : > { %v5534_v19 = vadd.f32 %v5490_v11, %v5273_v48 }
 0x92a   : > { %v5579_v60 = vadd.f32 %v11839_v36, %v5533_v28  ;;  %v4758_v28 = vadd.f32 %v12727_v7, %v12726_v57  ;;  %v5277_v11 = vadd.f32 %v5234_v3, %v5016_v40 }
 0x92b   : > { %v5580_v63 = vadd.f32 %v11841_v41, %v5534_v19 }
 0x92c   : > { %v5619_v44 = vmax.f32 %v5579_v60, 0.0  ;;  %v12728_v60 = vld [vmem:[#allocation31_spill] sm:$0xff] }
 0x92d   : > { %v5620_v61 = vmax.f32 %v5580_v63, 0.0 }
 0x92e   : > { %v5643_v26 = vmax.f32 %v5615_v24, %v5619_v44  ;;  %v5239_v24 = vpop.f32.mrf.mxu3 }
 0x92f   : > { %v5644_v14 = vmax.f32 %v5616_v1, %v5620_v61  ;;  %v5434_v50 = vpop.f32.mrf.mxu0 }
 0x930   : > { %v5493_v4 = vpop.f32.mrf.mxu1  ;;  %v11962_v58 = vpack.c.bf16 %v5643_v26, %v5641_v55  ;;  %v5535_v23 = vadd.f32 %v5434_v50, %v5274_v33  ;;  %v12725_v55 = vld [vmem:[#allocation19_spill] sm:$0xff]  ;;  %v12729_v26 = vld [vmem:[#allocation42_spill] sm:$0xff] }
 0x931   : > { %v11964_v34 = vpack.c.bf16 %v5644_v14, %v5642_v10  ;;  %v5536_v32 = vadd.f32 %v5493_v4, %v5275_v27  ;;  %v4699_v48 = vadd.f32 %v12725_v55, %v12724_v51  ;;  %v5276_v10 = vadd.f32 %v5175_v22, %v5015_v0 }
 0x932   : > { %5778 = vmatmul.bf16.gmra.mxu2 %v11962_v58  ;;  %v5581_v2 = vadd.f32 %v11839_v36, %v5535_v23  ;;  %v5020_v14 = vadd.f32 %v12729_v26, %v4758_v28  ;;  %v8306_v28 = vld [vmem:[%s12244_s9 + $0x58] sm:$0xff]  ;;  %v8305_v26 = vld [vmem:[%s12244_s9 + $0x50] sm:$0xff] }
 0x933   : > { %7777 = vmatmul.msk.bf16.gmra.mxu3 %vm5739_vm3, %v11964_v34  ;;  %v5582_v35 = vadd.f32 %v11841_v41, %v5536_v32  ;;  %v5019_v63 = vadd.f32 %v12728_v60, %v4699_v48  ;;  %v8318_v60 = vld [vmem:[%s12244_s9 + $0xb8] sm:$0xff] }
 0x934   : > { %v5621_v44 = vmax.f32 %v5581_v2, 0.0  ;;  %v5281_v39 = vadd.f32 %v5239_v24, %v5020_v14  ;;  %v8302_v2 = vld [vmem:[%s12244_s9 + $0x38] sm:$0xff]  ;;  %6231 = vmatpush.bf16.msra.mxu2 %v8318_v60  ;;  %v8296_v14 = vld [vmem:[%s12244_s9 + $0x8] sm:$0xff] }
 0x935   : > { %v5622_v50 = vmax.f32 %v5582_v35, 0.0  ;;  %v5280_v45 = vadd.f32 %v5180_v38, %v5019_v63  ;;  %6146 = vmatpush.bf16.msra.mxu1 %v8302_v2  ;;  %v8308_v35 = vld [vmem:[%s12244_s9 + $0x68] sm:$0xff]  ;;  %v8326_v63 = vld [vmem:[%s12244_s9 + $0xf8] sm:$0xff] }
 0x936   : > { %v8298_v24 = vld [vmem:[%s12244_s9 + $0x18] sm:$0xff]  ;;  %6318 = vmatpush.bf16.msra.mxu3 %v8326_v63 }
 0x937   : > { %v5436_v42 = vpop.f32.mrf.mxu0 }
 0x938   : > { %v5495_v37 = vpop.f32.mrf.mxu1  ;;  %v5537_v1 = vadd.f32 %v5436_v42, %v5276_v10 }
 0x939   : > { %v5538_v4 = vadd.f32 %v5495_v37, %v5277_v11 }
 0x93a   : > { %v5583_v3 = vadd.f32 %v11839_v36, %v5537_v1  ;;  %v8317_v1 = vld [vmem:[%s12244_s9 + $0xb0] sm:$0xff] }
 0x93b   : > { %v5584_v23 = vadd.f32 %v11841_v41, %v5538_v4  ;;  %6232 = vmatpush.bf16.msra.mxu2 %v8317_v1 }
 0x93c   : > { %v5623_v49 = vmax.f32 %v5583_v3, 0.0 }
 0x93d   : > { %v5624_v37 = vmax.f32 %v5584_v23, 0.0  ;;  %v8303_v23 = vld [vmem:[%s12244_s9 + $0x40] sm:$0xff] }
 0x93f   : > { %v5439_v52 = vpop.f32.mrf.mxu0 }
 0x940   : > { %v5539_v43 = vadd.f32 %v5439_v52, %v5278_v13  ;;  %v5498_v31 = vpop.f32.mrf.mxu1 }
 0x941   : > { %v5540_v12 = vadd.f32 %v5498_v31, %v5279_v15 }
 0x942   : > { %v5585_v21 = vadd.f32 %v11839_v36, %v5539_v43 }
 0x943   : > { %v5586_v19 = vadd.f32 %v11841_v41, %v5540_v12 }
 0x944   : > { %v5625_v61 = vmax.f32 %v5585_v21, 0.0 }
 0x945   : > { %v5626_v22 = vmax.f32 %v5586_v19, 0.0 }
 0x946   : > { %v5645_v18 = vmax.f32 %v5621_v44, %v5625_v61  ;;  %v8297_v44 = vld [vmem:[%s12244_s9 + $0x10] sm:$0xff] }
 0x947   : > { %v5646_v33 = vmax.f32 %v5622_v50, %v5626_v22  ;;  %v5441_v17 = vpop.f32.mrf.mxu0  ;;  %v8325_v61 = vld [vmem:[%s12244_s9 + $0xf0] sm:$0xff]  ;;  %v8295_v50 = vld [vmem:[%s12244_s9] sm:$0xff] }
 0x948   : > { %v5541_v47 = vadd.f32 %v5441_v17, %v5280_v45  ;;  %v5500_v27 = vpop.f32.mrf.mxu1  ;;  %6319 = vmatpush.bf16.msra.mxu3 %v8325_v61  ;;  %v8315_v17 = vld [vmem:[%s12244_s9 + $0xa0] sm:$0xff] }
 0x949   : > { %v5542_v32 = vadd.f32 %v5500_v27, %v5281_v39  ;;  %v8324_v39 = vld [vmem:[%s12244_s9 + $0xe8] sm:$0xff] }
 0x94a   : > { %v5587_v42 = vadd.f32 %v11839_v36, %v5541_v47  ;;  %v8304_v27 = vld [vmem:[%s12244_s9 + $0x48] sm:$0xff] }
 0x94b   : > { %v5588_v53 = vadd.f32 %v11841_v41, %v5542_v32  ;;  %v8310_v41 = vld [vmem:[%s12244_s9 + $0x78] sm:$0xff] }
 0x94c   : > { %v5627_v8 = vmax.f32 %v5587_v42, 0.0  ;;  %6078 = vmatpush.bf16.msra.mxu0 %v8310_v41  ;;  %6320 = vmatpush.bf16.msra.mxu3 %v8324_v39  ;;  %v8327_v39 = vld [vmem:[%s12244_s9 + $0x100] sm:$0xff] }
 0x94d   : > { %v5628_v62 = vmax.f32 %v5588_v53, 0.0  ;;  %v8323_v53 = vld [vmem:[%s12244_s9 + $0xe0] sm:$0xff] }
 0x94e   : > { %v5647_v13 = vmax.f32 %v5623_v49, %v5627_v8  ;;  %v8314_v49 = vld [vmem:[%s12244_s9 + $0x98] sm:$0xff] }
 0x94f   : > { %v5648_v6 = vmax.f32 %v5624_v37, %v5628_v62  ;;  %v8313_v37 = vld [vmem:[%s12244_s9 + $0x90] sm:$0xff] }
 0x950   : > { %v5657_v9 = vpack.c.bf16 %v5647_v13, %v5645_v18  ;;  %v8316_v18 = vld [vmem:[%s12244_s9 + $0xa8] sm:$0xff]  ;;  %6321 = vmatpush.bf16.msra.mxu3 %v8323_v53 }
 0x951   : > { %v5658_v16 = vpack.c.bf16 %v5648_v6, %v5646_v33  ;;  %6233 = vmatpush.bf16.msra.mxu2 %v8316_v18  ;;  %v8322_v6 = vld [vmem:[%s12244_s9 + $0xd8] sm:$0xff] }
 0x952   : > { %5783 = vmatmul.bf16.gmra.mxu2 %v5657_v9 }
 0x953   : > { %7778 = vmatmul.msk.bf16.gmra.mxu3 %vm5739_vm3, %v5658_v16 }
 0x954   : > { %6322 = vmatpush.bf16.msra.mxu3 %v8322_v6 }
 0x955   : > { %v5764_v46 = vpop.f32.mrf.mxu2  ;;  %6234 = vmatpush.bf16.msra.mxu2 %v8315_v17 }
 0x956   : > { %v5798_v15 = vpop.f32.mrf.mxu3 }
 0x957   : > { %v12000_v52 = vadd.f32 %v5798_v15, %v5764_v46  ;;  %v8312_v46 = vld [vmem:[%s12244_s9 + $0x88] sm:$0xff] }
 0x959   : > { %6235 = vmatpush.bf16.msra.mxu2 %v8314_v49 }
 0x95d   : > { %v5766_v56 = vpop.f32.mrf.mxu2  ;;  %6236 = vmatpush.bf16.msra.mxu2 %v8313_v37 }
 0x95e   : > { %v5800_v0 = vpop.f32.mrf.mxu3 }
 0x95f   : > { %v12002_v36 = vadd.f32 %v5800_v0, %v5766_v56 }
 0x961   : > { %6237 = vmatpush.bf16.msra.mxu2 %v8312_v46 }
 0x962   : > { %5911 = vmatmul.bf16.vlgmr.msrb.gmra.mxu2 %v11859_v29 }
 0x963   : > { %7819 = vmatmul.msk.bf16.vlgmr.msrb.gmra.mxu3 %vm5739_vm3, %v11861_v20  ;;  %v8309_v20 = vld [vmem:[%s12244_s9 + $0x70] sm:$0xff] }
 0x964   : > { %6079 = vmatpush.bf16.msra.mxu0 %v8309_v20 }
 0x968   : > { %6080 = vmatpush.bf16.msra.mxu0 %v8308_v35 }
 0x972   : > { %5916 = vmatmul.bf16.gmra.mxu2 %v11890_v25 }
 0x973   : > { %7820 = vmatmul.msk.bf16.gmra.mxu3 %vm5739_vm3, %v11892_v5  ;;  %v8301_v5 = vld [vmem:[%s12244_s9 + $0x30] sm:$0xff] }
 0x974   : > { %6147 = vmatpush.bf16.msra.mxu1 %v8301_v5  ;;  %v8333_v5 = vld [vmem:[%s12244_s9 + $0x130] sm:$0xff] }
 0x975   : > { %v5769_v43 = vpop.f32.mrf.mxu2 }
 0x976   : > { %v5803_v29 = vpop.f32.mrf.mxu3 }
 0x977   : > { %v12016_v31 = vadd.f32 %v5803_v29, %v5769_v43 }
 0x97d   : > { %v5771_v54 = vpop.f32.mrf.mxu2 }
 0x97e   : > { %v5805_v40 = vpop.f32.mrf.mxu3 }
 0x97f   : > { %v12021_v25 = vadd.f32 %v5805_v40, %v5771_v54  ;;  %v8321_v54 = vld [vmem:[%s12244_s9 + $0xd0] sm:$0xff] }
 0x980   : > { %6323 = vmatpush.bf16.msra.mxu3 %v8321_v54  ;;  %v8340_v54 = vld [vmem:[%s12246_s11 + $0x28] sm:$0xff] }
 0x982   : > { %5921 = vmatmul.bf16.gmra.mxu2 %v11927_v59 }
 0x983   : > { %7821 = vmatmul.msk.bf16.gmra.mxu3 %vm5739_vm3, %v11929_v30  ;;  %v8300_v30 = vld [vmem:[%s12244_s9 + $0x28] sm:$0xff] }
 0x984   : > { %6148 = vmatpush.bf16.msra.mxu1 %v8300_v30 }
 0x992   : > { %5926 = vmatmul.bf16.gmra.mxu2 %v11962_v58  ;;  %v8307_v58 = vld [vmem:[%s12244_s9 + $0x60] sm:$0xff] }
 0x993   : > { %7822 = vmatmul.msk.bf16.gmra.mxu3 %vm5739_vm3, %v11964_v34  ;;  %v8299_v34 = vld [vmem:[%s12244_s9 + $0x20] sm:$0xff]  ;;  %6081 = vmatpush.bf16.msra.mxu0 %v8307_v58 }
 0x994   : > { %6149 = vmatpush.bf16.msra.mxu1 %v8299_v34 }
 0x995   : > { %v5774_v12 = vpop.f32.mrf.mxu2 }
 0x996   : > { %v5808_v59 = vpop.f32.mrf.mxu3 }
 0x997   : > { %v12035_v51 = vadd.f32 %v5808_v59, %v5774_v12  ;;  %6082 = vmatpush.bf16.msra.mxu0 %v8306_v28  ;;  %v8320_v59 = vld [vmem:[%s12244_s9 + $0xc8] sm:$0xff] }
 0x998   : > { %6150 = vmatpush.bf16.msra.mxu1 %v8298_v24  ;;  %6324 = vmatpush.bf16.msra.mxu3 %v8320_v59  ;;  %v8350_v59 = vld [vmem:[%s12248_s13 + $0x38] sm:$0xff] }
 0x99b   : > { %6083 = vmatpush.bf16.msra.mxu0 %v8305_v26 }
 0x99c   : > { %6151 = vmatpush.bf16.msra.mxu1 %v8297_v44  ;;  %v8329_v44 = vld [vmem:[%s12244_s9 + $0x110] sm:$0xff] }
 0x99d   : > { %v5776_v55 = vpop.f32.mrf.mxu2 }
 0x99e   : > { %v5810_v48 = vpop.f32.mrf.mxu3 }
 0x99f   : > { %v12040_v10 = vadd.f32 %v5810_v48, %v5776_v55  ;;  %6084 = vmatpush.bf16.msra.mxu0 %v8304_v27  ;;  %v8332_v48 = vld [vmem:[%s12244_s9 + $0x128] sm:$0xff] }
 0x9a0   : > { %6152 = vmatpush.bf16.msra.mxu1 %v8296_v14 }
 0x9a2   : > { %5931 = vmatmul.bf16.gmra.mxu2 %v5657_v9 }
 0x9a3   : > { %7823 = vmatmul.msk.bf16.gmra.mxu3 %vm5739_vm3, %v5658_v16  ;;  %6085 = vmatpush.bf16.msra.mxu0 %v8303_v23 }
 0x9a4   : > { %6153 = vmatpush.bf16.msra.mxu1 %v8295_v50  ;;  %v8328_v50 = vld [vmem:[%s12244_s9 + $0x108] sm:$0xff] }
 0x9b5   : > { %v5779_v21 = vpop.f32.mrf.mxu2 }
 0x9b6   : > { %v5813_v57 = vpop.f32.mrf.mxu3 }
 0x9b7   : > { %v12049_v7 = vadd.f32 %v5813_v57, %v5779_v21  ;;  %v8331_v57 = vld [vmem:[%s12244_s9 + $0x120] sm:$0xff] }
 0x9bd   : > { %v5781_v11 = vpop.f32.mrf.mxu2 }
 0x9be   : > { %v5815_v38 = vpop.f32.mrf.mxu3 }
 0x9bf   : > { %v12054_v19 = vadd.f32 %v5815_v38, %v5781_v11 }
 0x9d5   : > { %v5784_v4 = vpop.f32.mrf.mxu2 }
 0x9d6   : > { %v5818_v22 = vpop.f32.mrf.mxu3 }
 0x9d7   : > { %v12083_v45 = vadd.f32 %v5818_v22, %v5784_v4 }
 0x9dd   : > { %v5786_v33 = vpop.f32.mrf.mxu2 }
 0x9de   : > { %v5820_v3 = vpop.f32.mrf.mxu3 }
 0x9df   : > { %v12094_v47 = vadd.f32 %v5820_v3, %v5786_v33 }
 0x9e5   : > { %v5912_v32 = vpop.f32.mrf.mxu2 }
 0x9e6   : > { %v5946_v42 = vpop.f32.mrf.mxu3 }
 0x9e7   : > { %v5947_v8 = vadd.f32 %v5946_v42, %v5912_v32 }
 0x9e9   : > { %v5971_v62 = vmax.f32 %v12000_v52, %v5947_v8  ;;  %v8311_v52 = vld [vmem:[%s12244_s9 + $0x80] sm:$0xff] }
 0x9ea   : > { %6238 = vmatpush.bf16.msra.mxu2 %v8311_v52 }
 0x9eb   : > { %v5981_v15 = vpack.c.bf16 %v5971_v62, %v5971_v62 }
 0x9ed   : > { %v5914_v13 = vpop.f32.mrf.mxu2  ;;  %v6094_v41 = vunpack.c.l.b16 %v5981_v15 }
 0x9ee   : > { %v5948_v9 = vpop.f32.mrf.mxu3  ;;  %6583 = vmatpush.bf16.msrb.mxu2 %v8350_v59 }
 0x9ef   : > { %v5949_v16 = vadd.f32 %v5948_v9, %v5914_v13 }
 0x9f1   : > { %v5972_v56 = vmax.f32 %v12002_v36, %v5949_v16  ;;  %v8334_v36 = vld [vmem:[%s12244_s9 + $0x138] sm:$0xff] }
 0x9f2   : > { %6405 = vmatpush.bf16.msrb.mxu0 %v8334_v36  ;;  %v8338_v36 = vld [vmem:[%s12246_s11 + $0x18] sm:$0xff] }
 0x9f3   : > { %v5982_v0 = vpack.c.bf16 %v5972_v56, %v5972_v56 }
 0x9f5   : > { %v6095_v2 = vunpack.c.l.b16 %v5982_v0  ;;  %v5917_v43 = vpop.f32.mrf.mxu2 }
 0x9f6   : > { %v5951_v29 = vpop.f32.mrf.mxu3  ;;  %6406 = vmatpush.bf16.msrb.mxu0 %v8333_v5  ;;  %v8336_v5 = vld [vmem:[%s12246_s11 + $0x8] sm:$0xff] }
 0x9f7   : > { %v6096_v20 = vpack.c.b16 %v6095_v2, %v6094_v41  ;;  %v5952_v40 = vadd.f32 %v5951_v29, %v5917_v43 }
 0x9f9   : > { %6154 = vmatmul.bf16.vlgmr.msra.gmra.mxu1 %v6096_v20  ;;  %v5973_v35 = vmax.f32 %v12016_v31, %v5952_v40  ;;  %v8319_v31 = vld [vmem:[%s12244_s9 + $0xc0] sm:$0xff]  ;;  %v8342_v20 = vld [vmem:[%s12246_s11 + $0x38] sm:$0xff]  ;;  %v8337_v40 = vld [vmem:[%s12246_s11 + $0x10] sm:$0xff] }
 0x9fa   : > { %6407 = vmatpush.bf16.msrb.mxu0 %v8332_v48  ;;  %6325 = vmatpush.bf16.msra.mxu3 %v8319_v31  ;;  %v8348_v48 = vld [vmem:[%s12248_s13 + $0x28] sm:$0xff]  ;;  %v8347_v31 = vld [vmem:[%s12248_s13 + $0x20] sm:$0xff] }
 0x9fb   : > { %v5983_v58 = vpack.c.bf16 %v5973_v35, %v5973_v35  ;;  %6498 = vmatpush.bf16.msrb.mxu1 %v8342_v20  ;;  %v8335_v35 = vld [vmem:[%s12246_s11] sm:$0xff] }
 0x9fd   : > { %v5919_v12 = vpop.f32.mrf.mxu2  ;;  %v6026_v28 = vunpack.c.l.b16 %v5983_v58 }
 0x9fe   : > { %v5953_v30 = vpop.f32.mrf.mxu3  ;;  %6408 = vmatpush.bf16.msrb.mxu0 %v8331_v57 }
 0x9ff   : > { %v5954_v55 = vadd.f32 %v5953_v30, %v5919_v12  ;;  %v8349_v30 = vld [vmem:[%s12248_s13 + $0x30] sm:$0xff] }
 0xa00   : > { %6584 = vmatpush.bf16.msrb.mxu2 %v8349_v30 }
 0xa01   : > { %v5974_v34 = vmax.f32 %v12021_v25, %v5954_v55  ;;  %v8330_v25 = vld [vmem:[%s12244_s9 + $0x118] sm:$0xff] }
 0xa02   : > { %6409 = vmatpush.bf16.msrb.mxu0 %v8330_v25 }
 0xa03   : > { %v5984_v21 = vpack.c.bf16 %v5974_v34, %v5974_v34 }
 0xa04   : > { %6585 = vmatpush.bf16.msrb.mxu2 %v8348_v48 }
 0xa05   : > { %v6027_v11 = vunpack.c.l.b16 %v5984_v21  ;;  %v5922_v38 = vpop.f32.mrf.mxu2 }
 0xa06   : > { %v5956_v60 = vpop.f32.mrf.mxu3  ;;  %6410 = vmatpush.bf16.msrb.mxu0 %v8329_v44 }
 0xa07   : > { %v6028_v63 = vpack.c.b16 %v6027_v11, %v6026_v28  ;;  %v5957_v24 = vadd.f32 %v5956_v60, %v5922_v38 }
 0xa08   : > { %6586 = vmatpush.bf16.msrb.mxu2 %v8347_v31 }
 0xa09   : > { %6086 = vmatmul.bf16.vlgmr.msra.gmra.mxu0 %v6028_v63  ;;  %v5975_v1 = vmax.f32 %v12035_v51, %v5957_v24 }
 0xa0a   : > { %6411 = vmatpush.bf16.msrb.mxu0 %v8328_v50 }
 0xa0b   : > { %v5985_v4 = vpack.c.bf16 %v5975_v1, %v5975_v1 }
 0xa0d   : > { %v5924_v61 = vpop.f32.mrf.mxu2  ;;  %v6179_v33 = vunpack.c.l.b16 %v5985_v4 }
 0xa0e   : > { %v5958_v26 = vpop.f32.mrf.mxu3  ;;  %6412 = vmatpush.bf16.msrb.mxu0 %v8327_v39 }
 0xa0f   : > { %v5959_v14 = vadd.f32 %v5958_v26, %v5924_v61  ;;  %v8375_v61 = vld [vmem:[%s12245_s10] ss:$0 sm:$0xff] }
 0xa11   : > { %v5976_v22 = vmax.f32 %v12040_v10, %v5959_v14 }
 0xa13   : > { %v5986_v18 = vpack.c.bf16 %v5976_v22, %v5976_v22 }
 0xa15   : > { %v6180_v17 = vunpack.c.l.b16 %v5986_v18  ;;  %v5927_v51 = vpop.f32.mrf.mxu2 }
 0xa16   : > { %v5961_v3 = vpop.f32.mrf.mxu3 }
 0xa17   : > { %v6181_v27 = vpack.c.b16 %v6180_v17, %v6179_v33  ;;  %v5962_v23 = vadd.f32 %v5961_v3, %v5927_v51  ;;  %v8346_v17 = vld [vmem:[%s12248_s13 + $0x18] sm:$0xff]  ;;  %v8345_v51 = vld [vmem:[%s12248_s13 + $0x10] sm:$0xff]  ;;  %v8344_v3 = vld [vmem:[%s12248_s13 + $0x8] sm:$0xff] }
 0xa18   : > { %6587 = vmatpush.bf16.msrb.mxu2 %v8346_v17 }
 0xa19   : > { %6239 = vmatmul.bf16.vlgmr.msra.gmra.mxu2 %v6181_v27  ;;  %v5977_v32 = vmax.f32 %v12049_v7, %v5962_v23  ;;  %v8343_v27 = vld [vmem:[%s12248_s13] sm:$0xff] }
 0xa1b   : > { %v5987_v10 = vpack.c.bf16 %v5977_v32, %v5977_v32  ;;  %v8376_v32 = vld [vmem:[%s12247_s12] ss:$0 sm:$0xff] }
 0xa1c   : > { %6588 = vmatpush.bf16.msrb.mxu2 %v8345_v51 }
 0xa1d   : > { %v5929_v42 = vpop.f32.mrf.mxu2  ;;  %v6266_v62 = vunpack.c.l.b16 %v5987_v10 }
 0xa1e   : > { %v5963_v53 = vpop.f32.mrf.mxu3 }
 0xa1f   : > { %v5964_v49 = vadd.f32 %v5963_v53, %v5929_v42 }
 0xa20   : > { %6589 = vmatpush.bf16.msrb.mxu2 %v8344_v3 }
 0xa21   : > { %v5978_v8 = vmax.f32 %v12054_v19, %v5964_v49 }
 0xa23   : > { %v5988_v37 = vpack.c.bf16 %v5978_v8, %v5978_v8 }
 0xa24   : > { %6590 = vmatpush.bf16.msrb.mxu2 %v8343_v27 }
 0xa25   : > { %v6267_v13 = vunpack.c.l.b16 %v5988_v37  ;;  %v5932_v6 = vpop.f32.mrf.mxu2 }
 0xa26   : > { %v5966_v9 = vpop.f32.mrf.mxu3 }
 0xa27   : > { %v6268_v16 = vpack.c.b16 %v6267_v13, %v6266_v62  ;;  %v5967_v46 = vadd.f32 %v5966_v9, %v5932_v6  ;;  %v8377_v62 = vld [vmem:[%s12249_s14] ss:$0 sm:$0xff] }
 0xa29   : > { %6326 = vmatmul.bf16.vlgmr.msra.gmra.mxu3 %v6268_v16  ;;  %v5979_v15 = vmax.f32 %v12083_v45, %v5967_v46  ;;  %v8341_v45 = vld [vmem:[%s12246_s11 + $0x30] sm:$0xff] }
 0xa2a   : > { %6499 = vmatpush.bf16.msrb.mxu1 %v8341_v45 }
 0xa2b   : > { %v5989_v7 = vpack.c.bf16 %v5979_v15, %v5979_v15 }
 0xa2d   : > { %v5934_v56 = vpop.f32.mrf.mxu2  ;;  %v6353_v43 = vunpack.c.l.b16 %v5989_v7 }
 0xa2e   : > { %v5968_v0 = vpop.f32.mrf.mxu3  ;;  %6500 = vmatpush.bf16.msrb.mxu1 %v8340_v54 }
 0xa2f   : > { %v5969_v52 = vadd.f32 %v5968_v0, %v5934_v56 }
 0xa31   : > { %v5980_v41 = vmax.f32 %v12094_v47, %v5969_v52  ;;  %v8339_v47 = vld [vmem:[%s12246_s11 + $0x20] sm:$0xff] }
 0xa32   : > { %6501 = vmatpush.bf16.msrb.mxu1 %v8339_v47 }
 0xa33   : > { %v5990_v2 = vpack.c.bf16 %v5980_v41, %v5980_v41 }
 0xa35   : > { %v6354_v29 = vunpack.c.l.b16 %v5990_v2 }
 0xa36   : > { %6502 = vmatpush.bf16.msrb.mxu1 %v8338_v36 }
 0xa37   : > { %v6355_v19 = vpack.c.b16 %v6354_v29, %v6353_v43 }
 0xa39   : > { %6413 = vmatmul.bf16.vlgmr.msrb.gmra.mxu0 %v6355_v19 }
 0xa3a   : > { %6503 = vmatpush.bf16.msrb.mxu1 %v8337_v40 }
 0xa3e   : > { %6504 = vmatpush.bf16.msrb.mxu1 %v8336_v5 }
 0xa42   : > { %6505 = vmatpush.bf16.msrb.mxu1 %v8335_v35 }
 0xa76   : > { %v6155_v55 = vpop.f32.mrf.mxu1 }
 0xa7e   : > { %v6157_v38 = vpop.f32.mrf.mxu1 }
 0xa86   : > { %v6087_v12 = vpop.f32.mrf.mxu0 }
 0xa87   : > { %v6156_v57 = vadd.f32 %v6155_v55, %v6087_v12 }
 0xa8e   : > { %v6089_v58 = vpop.f32.mrf.mxu0 }
 0xa8f   : > { %v6158_v63 = vadd.f32 %v6157_v38, %v6089_v58 }
 0xa9c   : > { %v6240_v34 = vpop.f32.mrf.mxu2 }
 0xa9d   : > { %v6245_v11 = vadd.f32 %v6240_v34, %v6156_v57 }
 0xaa4   : > { %v6242_v60 = vpop.f32.mrf.mxu2 }
 0xaa5   : > { %v6246_v44 = vadd.f32 %v6242_v60, %v6158_v63 }
 0xaac   : > { %v6327_v21 = vpop.f32.mrf.mxu3 }
 0xaad   : > { %v6332_v25 = vadd.f32 %v6327_v21, %v6245_v11 }
 0xab4   : > { %v6329_v24 = vpop.f32.mrf.mxu3 }
 0xab5   : > { %v6333_v26 = vadd.f32 %v6329_v24, %v6246_v44 }
 0xab6   : > { %v6414_v28 = vpop.f32.mrf.mxu0 }
 0xab7   : > { %v6419_v1 = vadd.f32 %v6414_v28, %v6332_v25 }
 0xab9   : > { %v6425_v50 = vadd.f32 %v8375_v61, %v6419_v1 }
 0xabb   : > { %v6427_v18 = vmax.f32 %v6425_v50, 0.0 }
 0xabe   : > { %v6416_v14 = vpop.f32.mrf.mxu0 }
 0xabf   : > { %v6420_v4 = vadd.f32 %v6416_v14, %v6333_v26 }
 0xac1   : > { %v6426_v22 = vadd.f32 %v8375_v61, %v6420_v4 }
 0xac3   : > { %v6428_v39 = vmax.f32 %v6426_v22, 0.0 }
 0xac5   : > { %v6429_v33 = vpack.c.bf16 %v6428_v39, %v6427_v18 }
 0xac7   : > { %6506 = vmatmul.bf16.vlgmr.msrb.gmra.mxu1 %v6429_v33 }
 0xb44   : > { %v6507_v23 = vpop.f32.mrf.mxu1 }
 0xb45   : > { %v6508_v42 = vadd.f32 %v8376_v32, %v6507_v23 }
 0xb47   : > { %v6512_v10 = vmax.f32 %v6508_v42, 0.0 }
 0xb4c   : > { %v6509_v53 = vpop.f32.mrf.mxu1 }
 0xb4d   : > { %v6510_v49 = vadd.f32 %v8376_v32, %v6509_v53 }
 0xb4f   : > { %v6513_v8 = vmax.f32 %v6510_v49, 0.0 }
 0xb51   : > { %v6514_v37 = vpack.c.bf16 %v6513_v8, %v6512_v10 }
 0xb53   : > { %6591 = vmatmul.bf16.vlgmr.msrb.gmra.mxu2 %v6514_v37 }
 0xbd6   : > { %v6592_v13 = vpop.f32.mrf.mxu2 }
 0xbd7   : > { %v6593_v6 = vadd.f32 %v8377_v62, %v6592_v13 }
 0xbd9   : > { %v6597_v9 = vmax.f32 %v6593_v6, 0.0 }
 0xbdb   : > { %6599 = vst [vmem:[%s783_s23] sm:$0xff] %v6597_v9 }
 0xbde   : > { %v6594_v16 = vpop.f32.mrf.mxu2 }
 0xbdf   : > { %v6595_v46 = vadd.f32 %v8377_v62, %v6594_v16 }
 0xbe1   : > { %v6598_v15 = vmax.f32 %v6595_v46, 0.0 }
 0xbe3   : > { %6600 = vst [vmem:[%s783_s23 + $0x8] sm:$0xff] %v6598_v15 }
 0xbe4 PF: > { %s12731_s20 = sld [smem:[#allocation3_spill]]  ;;  %p22_p9 = scmp.ge.s32.totalorder %s8499_s22, 4  }
 0xbe5   : > { %s12732_s18 = smov %s8396_s19 }
 0xbe6   :  { %24 = sbr.rel (!%p22_p9) target bundleno = 4 (0x4), region = 165 }
 0xbea   : > { %s12733_s19 = smov %s12731_s20  ;;  %s12734_s20 = smov %s8499_s22 }

</bundles_post_ra>
